<compile_context>
chip_gen: v7x
topology: tpu7x:2x2x1
jax: 0.10.0
libtpu: 0.0.40
codegen_flags: <defaults>
</compile_context>

<pallas_src>
import jax
import jax.numpy as jnp
import numpy as np
from jax import lax
from jax.experimental import pallas as pl
from jax.experimental.pallas import tpu as pltpu

KSIZE = 3
PAD = 1          # Conv2d padding=1 in ConvBNAct
LANE = 128       # TPU lane width; channel dims padded up to a multiple of this
SUBLANE = 8      # canvas row pitch is aligned to this so flat reshapes are layout-free


def _round_up(v, m):
    return ((v + m - 1) // m) * m


def decoder_block_kernel(x_ref, mask_ref, w1_ref, w2_ref, w3_ref,
                         s1_ref, b1_ref, s2_ref, b2_ref, s3_ref, b3_ref,
                         out_ref, canvas_ref):
    # x_ref     : (1, H, W, C)  unpadded NHWC input block, C = 128-padded, bf16
    # mask_ref  : (H*Wp, 1)     f32 {0,1}; 1.0 on valid (non-padding) canvas columns
    # w*_ref    : (3, 3, C, C)  HWIO conv weights, channel-padded, bf16
    # s*/b*_ref : (1, C)        folded eval-mode BN scale / bias, f32
    # out_ref   : (1, H, W, C)  lane-dense f32 output (wrapper slices :Cout)
    # canvas_ref: (Lpad, C)     flat zero-bordered activation canvas, bf16
    _, H, W, C = x_ref.shape
    Wp = _round_up(W + 2 * PAD, SUBLANE)   # canvas row pitch (sublane aligned)
    M = H * Wp                             # rows of one full-width activation slab
    LEAD = PAD                             # zero rows ahead of the padded image
    interior = LEAD + PAD * Wp             # flat row of (padded row PAD, col 0)

    # 1) Zero the whole canvas every step (lead/tail rows + the conv zero border;
    #    ~100 KB of stores, negligible, and stays correct when the "parallel"
    #    batch axis is sharded across TensorCores with private scratch).
    canvas_ref[...] = jnp.zeros(canvas_ref.shape, canvas_ref.dtype)

    # 2) In-kernel spatial padding: copy the unpadded input rows into the canvas
    #    interior (border columns/rows are already zero from step 1).
    x = x_ref[0]                           # (H, W, C) bf16
    for r in range(H):
        canvas_ref[pl.ds(interior + r * Wp + PAD, W), :] = x[r]

    mask = mask_ref[...]                   # (M, 1) f32

    def conv_bn_relu(w_ref, s_ref, b_ref):
        # 3x3 conv as 9 contiguous-window MXU matmuls over the flat canvas:
        # the window starting at flat row ky*Wp + kx holds, for accumulator row
        # i = y*Wp + j, exactly padded_image[y + ky, j + kx - PAD], so no strided
        # im2col copy is ever materialized.  bf16 operands, f32 accumulation.
        w = w_ref[...]                     # (3, 3, C, C) bf16
        acc = jnp.zeros((M, C), jnp.float32)
        for ky in range(KSIZE):
            for kx in range(KSIZE):
                win = canvas_ref[pl.ds(ky * Wp + kx, M), :]      # (M, C) bf16
                acc = acc + jnp.dot(win, w[ky, kx],
                                    preferred_element_type=jnp.float32)
        # fused eval-mode BN (scale/bias) + ReLU epilogue in f32 on the VPU.
        return jnp.maximum(acc * s_ref[...] + b_ref[...], 0.0)

    # conv1 -> stage full-width slab back into the canvas interior rows; the column
    # mask re-zeroes the conv-padding columns so they stay valid padding for conv2.
    act = conv_bn_relu(w1_ref, s1_ref, b1_ref)
    canvas_ref[pl.ds(interior, M), :] = (act * mask).astype(canvas_ref.dtype)

    # conv2 (reads the staged conv1 output; store depends on all reads -> safe)
    act = conv_bn_relu(w2_ref, s2_ref, b2_ref)
    canvas_ref[pl.ds(interior, M), :] = (act * mask).astype(canvas_ref.dtype)

    # conv3 -> extract the valid W columns and store lane-dense f32 output.
    act = conv_bn_relu(w3_ref, s3_ref, b3_ref)
    out_ref[0] = act.reshape(H, Wp, C)[:, PAD:PAD + W, :].astype(out_ref.dtype)


def _pad_last(a, target):
    return jnp.pad(a, [(0, 0)] * (a.ndim - 1) + [(0, target - a.shape[-1])])


def decoder_block_nhwc(x_nhwc, weights, scales, biases):
    """DecoderBlock forward (eval-mode BN), NHWC in / NHWC out.

    x_nhwc : (N, H, W, Cin) float32
    weights: [w1 (3,3,Cin,Cout), w2 (3,3,Cout,Cout), w3 (3,3,Cout,Cout)] HWIO
    scales / biases: per-conv folded BN scale / bias, each (Cout,)
    Returns (N, H, W, Cout) float32.
    """
    N, H, W, Cin = x_nhwc.shape
    Cout = weights[0].shape[-1]
    C = LANE * pl.cdiv(max(Cin, Cout), LANE)       # channel-pad to a lane multiple
    Wp = _round_up(W + 2 * PAD, SUBLANE)           # canvas row pitch
    M = H * Wp
    # canvas length: must cover both the padded image and the last tap window.
    L = max((KSIZE - 1) * Wp + (KSIZE - 1) + M, PAD + (H + 2 * PAD) * Wp)
    Lpad = _round_up(L, SUBLANE)

    # Channel padding only (spatial padding happens inside the kernel); bf16
    # halves the input / weight DMA and feeds the MXU its native operand type.
    x_p = jnp.pad(x_nhwc, ((0, 0), (0, 0), (0, 0), (0, C - Cin))).astype(jnp.bfloat16)
    ws = [jnp.pad(w, ((0, 0), (0, 0),
                      (0, C - w.shape[2]), (0, C - w.shape[3]))
                  ).astype(jnp.bfloat16) for w in weights]
    # Padded channels get scale = bias = 0, so ReLU keeps them exactly 0 between stages.
    ss = [_pad_last(s.astype(jnp.float32), C).reshape(1, C) for s in scales]
    bs = [_pad_last(b.astype(jnp.float32), C).reshape(1, C) for b in biases]

    # Per-flat-row column-validity mask (1.0 on real image columns of the canvas).
    col = np.arange(Wp)
    col_valid = ((col >= PAD) & (col < PAD + W)).astype(np.float32)
    mask = jnp.asarray(np.tile(col_valid, H).reshape(M, 1))

    # Explicit VMEM budget (blocks are double-buffered by the pipeline) + headroom.
    bpe16, bpe32 = 2, 4
    est = (2 * H * W * C * bpe16                       # input block
           + 2 * H * W * C * bpe32                     # output block
           + 2 * 3 * KSIZE * KSIZE * C * C * bpe16     # weight blocks
           + 2 * (6 * C + M) * bpe32                   # scale/bias + mask blocks
           + Lpad * C * bpe16                          # flat canvas scratch
           + 10 * M * C * bpe32)                       # f32 accumulator / temporaries
    vmem_limit = int(min(64 * 1024 * 1024, max(2 * est, 32 * 1024 * 1024)))

    full4 = lambda n: (0, 0, 0, 0)
    vec2 = lambda n: (0, 0)

    out = pl.pallas_call(
        decoder_block_kernel,
        out_shape=jax.ShapeDtypeStruct((N, H, W, C), jnp.float32),
        grid_spec=pltpu.PrefetchScalarGridSpec(
            num_scalar_prefetch=0,
            grid=(N,),
            in_specs=[
                pl.BlockSpec((1, H, W, C), lambda n: (n, 0, 0, 0)),
                pl.BlockSpec((M, 1), vec2),
                pl.BlockSpec((KSIZE, KSIZE, C, C), full4),
                pl.BlockSpec((KSIZE, KSIZE, C, C), full4),
                pl.BlockSpec((KSIZE, KSIZE, C, C), full4),
                pl.BlockSpec((1, C), vec2), pl.BlockSpec((1, C), vec2),
                pl.BlockSpec((1, C), vec2), pl.BlockSpec((1, C), vec2),
                pl.BlockSpec((1, C), vec2), pl.BlockSpec((1, C), vec2),
            ],
            out_specs=pl.BlockSpec((1, H, W, C), lambda n: (n, 0, 0, 0)),
            scratch_shapes=[pltpu.VMEM((Lpad, C), jnp.bfloat16)],
        ),
        compiler_params=pltpu.CompilerParams(
            # independent batch elements -> shard across both TCs on v7x
            dimension_semantics=("parallel",),
            vmem_limit_bytes=vmem_limit),
    )(x_p, mask, ws[0], ws[1], ws[2],
      ss[0], bs[0], ss[1], bs[1], ss[2], bs[2])

    # Drop the zero-padded channels.
    return out[..., :Cout]


def ref_forward_nhwc(x, weights, scales, biases, intermediate_dtype=None):
    """Pure-JAX NHWC reference.  If intermediate_dtype is set, the inter-stage
    activations are rounded to it (to mirror the kernel's bf16 staging buffer)."""
    dn = ('NHWC', 'HWIO', 'NHWC')
    y = x
    last = len(weights) - 1
    for idx, (w, s, b) in enumerate(zip(weights, scales, biases)):
        y = lax.conv_general_dilated(y, w, (1, 1), [(PAD, PAD), (PAD, PAD)],
                                     dimension_numbers=dn)
        y = jnp.maximum(y * s[None, None, None, :] + b[None, None, None, :], 0.0)
        if intermediate_dtype is not None and idx < last:
            y = y.astype(intermediate_dtype).astype(jnp.float32)
    return y


if __name__ == "__main__":
    N, Cin, Cout, H, W = 2, 4, 8, 16, 16
    eps = 1e-5

    keys = jax.random.split(jax.random.PRNGKey(0), 16)
    x = jax.random.normal(keys[0], (N, H, W, Cin), jnp.float32)   # NHWC

    # Conv weights (HWIO). PyTorch stores (Cout, Cin, 3, 3); transposing to HWIO
    # once at parameter-load time gives identical math.
    w1 = jax.random.normal(keys[1], (KSIZE, KSIZE, Cin, Cout), jnp.float32) * 0.1
    w2 = jax.random.normal(keys[2], (KSIZE, KSIZE, Cout, Cout), jnp.float32) * 0.1
    w3 = jax.random.normal(keys[3], (KSIZE, KSIZE, Cout, Cout), jnp.float32) * 0.1

    def bn_params(kg, kb, km, kv):
        gamma = jax.random.uniform(kg, (Cout,), jnp.float32, 0.5, 1.5)
        beta = jax.random.normal(kb, (Cout,), jnp.float32) * 0.1
        rmean = jax.random.normal(km, (Cout,), jnp.float32) * 0.1
        rvar = jax.random.uniform(kv, (Cout,), jnp.float32, 0.5, 1.5)
        scale = gamma / jnp.sqrt(rvar + eps)        # eval-mode BN folding
        bias = beta - rmean * scale
        return scale, bias

    s1, b1 = bn_params(*keys[4:8])
    s2, b2 = bn_params(*keys[8:12])
    s3, b3 = bn_params(*keys[12:16])

    weights, scales, biases = [w1, w2, w3], [s1, s2, s3], [b1, b2, b3]

    out = decoder_block_nhwc(x, weights, scales, biases)
    out = jax.block_until_ready(out)
    assert out.shape == (N, H, W, Cout), out.shape

    # (1) Structural check: f32 reference on the same bf16-rounded operands with
    #     bf16-rounded inter-stage activations (matches the kernel's numerics).
    _bf = lambda a: a.astype(jnp.bfloat16).astype(jnp.float32)
    ref_matched = ref_forward_nhwc(_bf(x), [_bf(w) for w in weights], scales, biases,
                                   intermediate_dtype=jnp.bfloat16)
    ref_matched = jax.block_until_ready(ref_matched)
    assert np.allclose(np.asarray(out), np.asarray(ref_matched),
                       atol=1e-2, rtol=1e-2), "mismatch vs matched-precision reference"

    # (2) End-to-end sanity check vs the pure-f32 module; tolerance reflects the
    #     bf16 MXU operands / bf16 staging used by the kernel.
    ref_f32 = ref_forward_nhwc(x, weights, scales, biases)
    ref_f32 = jax.block_until_ready(ref_f32)
    assert np.allclose(np.asarray(out), np.asarray(ref_f32),
                       atol=1.5e-1, rtol=1e-1), "mismatch vs pure-f32 reference"

    print("KERNEL_OK")
</pallas_src>

<mosaic_0001>
module attributes {stable_mosaic.version = 11 : i64} {
  func.func @decoder_block_kernel(%arg0: i32, %arg1: memref<1x16x16x128xbf16, #tpu.memory_space<vmem>>, %arg2: memref<384x1xf32, #tpu.memory_space<vmem>>, %arg3: memref<3x3x128x128xbf16, #tpu.memory_space<vmem>>, %arg4: memref<3x3x128x128xbf16, #tpu.memory_space<vmem>>, %arg5: memref<3x3x128x128xbf16, #tpu.memory_space<vmem>>, %arg6: memref<1x128xf32, #tpu.memory_space<vmem>>, %arg7: memref<1x128xf32, #tpu.memory_space<vmem>>, %arg8: memref<1x128xf32, #tpu.memory_space<vmem>>, %arg9: memref<1x128xf32, #tpu.memory_space<vmem>>, %arg10: memref<1x128xf32, #tpu.memory_space<vmem>>, %arg11: memref<1x128xf32, #tpu.memory_space<vmem>>, %arg12: memref<1x16x16x128xf32, #tpu.memory_space<vmem>>, %arg13: memref<440x128xbf16, #tpu.memory_space<vmem>>) attributes {dimension_semantics = [#tpu.dimension_semantics<parallel>], iteration_bounds = array<i64: 2>, scalar_prefetch = 0 : i64, scratch_operands = 1 : i64, tpu.core_type = #tpu.core_type<tc>, window_params = [{transform_indices = @transform_0, window_bounds = array<i64: 1, 16, 16, 128>}, {pipeline_mode = #tpu.pipeline_mode<synchronous>, transform_indices = @transform_1, window_bounds = array<i64: 384, 1>}, {pipeline_mode = #tpu.pipeline_mode<synchronous>, transform_indices = @transform_2, window_bounds = array<i64: 3, 3, 128, 128>}, {pipeline_mode = #tpu.pipeline_mode<synchronous>, transform_indices = @transform_3, window_bounds = array<i64: 3, 3, 128, 128>}, {pipeline_mode = #tpu.pipeline_mode<synchronous>, transform_indices = @transform_4, window_bounds = array<i64: 3, 3, 128, 128>}, {pipeline_mode = #tpu.pipeline_mode<synchronous>, transform_indices = @transform_5, window_bounds = array<i64: 1, 128>}, {pipeline_mode = #tpu.pipeline_mode<synchronous>, transform_indices = @transform_6, window_bounds = array<i64: 1, 128>}, {pipeline_mode = #tpu.pipeline_mode<synchronous>, transform_indices = @transform_7, window_bounds = array<i64: 1, 128>}, {pipeline_mode = #tpu.pipeline_mode<synchronous>, transform_indices = @transform_8, window_bounds = array<i64: 1, 128>}, {pipeline_mode = #tpu.pipeline_mode<synchronous>, transform_indices = @transform_9, window_bounds = array<i64: 1, 128>}, {pipeline_mode = #tpu.pipeline_mode<synchronous>, transform_indices = @transform_10, window_bounds = array<i64: 1, 128>}, {transform_indices = @transform_11, window_bounds = array<i64: 1, 16, 16, 128>}]} {
    %cst = arith.constant 0.000000e+00 : bf16
    %0 = vector.broadcast %cst : bf16 to vector<440x128xbf16>
    %c0 = arith.constant 0 : index
    %c0_0 = arith.constant 0 : index
    %1 = vector.load %arg13[%c0, %c0_0] : memref<440x128xbf16, #tpu.memory_space<vmem>>, vector<440x128xbf16>
    tpu.vector_store %arg13[%c0, %c0_0], %0 {strides = array<i32>} : memref<440x128xbf16, #tpu.memory_space<vmem>>, vector<440x128xbf16>,
    %c0_1 = arith.constant 0 : index
    %c0_2 = arith.constant 0 : index
    %c0_3 = arith.constant 0 : index
    %c0_4 = arith.constant 0 : index
    %2 = vector.load %arg1[%c0_1, %c0_2, %c0_3, %c0_4] : memref<1x16x16x128xbf16, #tpu.memory_space<vmem>>, vector<1x16x16x128xbf16>
    %3 = vector.shape_cast %2 : vector<1x16x16x128xbf16> to vector<16x16x128xbf16>
    %4 = vector.extract_strided_slice %3 {offsets = [0, 0, 0], sizes = [1, 16, 128], strides = [1, 1, 1]} : vector<16x16x128xbf16> to vector<1x16x128xbf16>
    %5 = vector.shape_cast %4 : vector<1x16x128xbf16> to vector<16x128xbf16>
    %c26 = arith.constant 26 : index
    %c0_5 = arith.constant 0 : index
    %6 = vector.load %arg13[%c26, %c0_5] : memref<440x128xbf16, #tpu.memory_space<vmem>>, vector<16x128xbf16>
    tpu.vector_store %arg13[%c26, %c0_5], %5 {strides = array<i32>} : memref<440x128xbf16, #tpu.memory_space<vmem>>, vector<16x128xbf16>,
    %7 = vector.extract_strided_slice %3 {offsets = [1, 0, 0], sizes = [1, 16, 128], strides = [1, 1, 1]} : vector<16x16x128xbf16> to vector<1x16x128xbf16>
    %8 = vector.shape_cast %7 : vector<1x16x128xbf16> to vector<16x128xbf16>
    %c50 = arith.constant 50 : index
    %c0_6 = arith.constant 0 : index
    %9 = vector.load %arg13[%c50, %c0_6] : memref<440x128xbf16, #tpu.memory_space<vmem>>, vector<16x128xbf16>
    tpu.vector_store %arg13[%c50, %c0_6], %8 {strides = array<i32>} : memref<440x128xbf16, #tpu.memory_space<vmem>>, vector<16x128xbf16>,
    %10 = vector.extract_strided_slice %3 {offsets = [2, 0, 0], sizes = [1, 16, 128], strides = [1, 1, 1]} : vector<16x16x128xbf16> to vector<1x16x128xbf16>
    %11 = vector.shape_cast %10 : vector<1x16x128xbf16> to vector<16x128xbf16>
    %c74 = arith.constant 74 : index
    %c0_7 = arith.constant 0 : index
    %12 = vector.load %arg13[%c74, %c0_7] : memref<440x128xbf16, #tpu.memory_space<vmem>>, vector<16x128xbf16>
    tpu.vector_store %arg13[%c74, %c0_7], %11 {strides = array<i32>} : memref<440x128xbf16, #tpu.memory_space<vmem>>, vector<16x128xbf16>,
    %13 = vector.extract_strided_slice %3 {offsets = [3, 0, 0], sizes = [1, 16, 128], strides = [1, 1, 1]} : vector<16x16x128xbf16> to vector<1x16x128xbf16>
    %14 = vector.shape_cast %13 : vector<1x16x128xbf16> to vector<16x128xbf16>
    %c98 = arith.constant 98 : index
    %c0_8 = arith.constant 0 : index
    %15 = vector.load %arg13[%c98, %c0_8] : memref<440x128xbf16, #tpu.memory_space<vmem>>, vector<16x128xbf16>
    tpu.vector_store %arg13[%c98, %c0_8], %14 {strides = array<i32>} : memref<440x128xbf16, #tpu.memory_space<vmem>>, vector<16x128xbf16>,
    %16 = vector.extract_strided_slice %3 {offsets = [4, 0, 0], sizes = [1, 16, 128], strides = [1, 1, 1]} : vector<16x16x128xbf16> to vector<1x16x128xbf16>
    %17 = vector.shape_cast %16 : vector<1x16x128xbf16> to vector<16x128xbf16>
    %c122 = arith.constant 122 : index
    %c0_9 = arith.constant 0 : index
    %18 = vector.load %arg13[%c122, %c0_9] : memref<440x128xbf16, #tpu.memory_space<vmem>>, vector<16x128xbf16>
    tpu.vector_store %arg13[%c122, %c0_9], %17 {strides = array<i32>} : memref<440x128xbf16, #tpu.memory_space<vmem>>, vector<16x128xbf16>,
    %19 = vector.extract_strided_slice %3 {offsets = [5, 0, 0], sizes = [1, 16, 128], strides = [1, 1, 1]} : vector<16x16x128xbf16> to vector<1x16x128xbf16>
    %20 = vector.shape_cast %19 : vector<1x16x128xbf16> to vector<16x128xbf16>
    %c146 = arith.constant 146 : index
    %c0_10 = arith.constant 0 : index
    %21 = vector.load %arg13[%c146, %c0_10] : memref<440x128xbf16, #tpu.memory_space<vmem>>, vector<16x128xbf16>
    tpu.vector_store %arg13[%c146, %c0_10], %20 {strides = array<i32>} : memref<440x128xbf16, #tpu.memory_space<vmem>>, vector<16x128xbf16>,
    %22 = vector.extract_strided_slice %3 {offsets = [6, 0, 0], sizes = [1, 16, 128], strides = [1, 1, 1]} : vector<16x16x128xbf16> to vector<1x16x128xbf16>
    %23 = vector.shape_cast %22 : vector<1x16x128xbf16> to vector<16x128xbf16>
    %c170 = arith.constant 170 : index
    %c0_11 = arith.constant 0 : index
    %24 = vector.load %arg13[%c170, %c0_11] : memref<440x128xbf16, #tpu.memory_space<vmem>>, vector<16x128xbf16>
    tpu.vector_store %arg13[%c170, %c0_11], %23 {strides = array<i32>} : memref<440x128xbf16, #tpu.memory_space<vmem>>, vector<16x128xbf16>,
    %25 = vector.extract_strided_slice %3 {offsets = [7, 0, 0], sizes = [1, 16, 128], strides = [1, 1, 1]} : vector<16x16x128xbf16> to vector<1x16x128xbf16>
    %26 = vector.shape_cast %25 : vector<1x16x128xbf16> to vector<16x128xbf16>
    %c194 = arith.constant 194 : index
    %c0_12 = arith.constant 0 : index
    %27 = vector.load %arg13[%c194, %c0_12] : memref<440x128xbf16, #tpu.memory_space<vmem>>, vector<16x128xbf16>
    tpu.vector_store %arg13[%c194, %c0_12], %26 {strides = array<i32>} : memref<440x128xbf16, #tpu.memory_space<vmem>>, vector<16x128xbf16>,
    %28 = vector.extract_strided_slice %3 {offsets = [8, 0, 0], sizes = [1, 16, 128], strides = [1, 1, 1]} : vector<16x16x128xbf16> to vector<1x16x128xbf16>
    %29 = vector.shape_cast %28 : vector<1x16x128xbf16> to vector<16x128xbf16>
    %c218 = arith.constant 218 : index
    %c0_13 = arith.constant 0 : index
    %30 = vector.load %arg13[%c218, %c0_13] : memref<440x128xbf16, #tpu.memory_space<vmem>>, vector<16x128xbf16>
    tpu.vector_store %arg13[%c218, %c0_13], %29 {strides = array<i32>} : memref<440x128xbf16, #tpu.memory_space<vmem>>, vector<16x128xbf16>,
    %31 = vector.extract_strided_slice %3 {offsets = [9, 0, 0], sizes = [1, 16, 128], strides = [1, 1, 1]} : vector<16x16x128xbf16> to vector<1x16x128xbf16>
    %32 = vector.shape_cast %31 : vector<1x16x128xbf16> to vector<16x128xbf16>
    %c242 = arith.constant 242 : index
    %c0_14 = arith.constant 0 : index
    %33 = vector.load %arg13[%c242, %c0_14] : memref<440x128xbf16, #tpu.memory_space<vmem>>, vector<16x128xbf16>
    tpu.vector_store %arg13[%c242, %c0_14], %32 {strides = array<i32>} : memref<440x128xbf16, #tpu.memory_space<vmem>>, vector<16x128xbf16>,
    %34 = vector.extract_strided_slice %3 {offsets = [10, 0, 0], sizes = [1, 16, 128], strides = [1, 1, 1]} : vector<16x16x128xbf16> to vector<1x16x128xbf16>
    %35 = vector.shape_cast %34 : vector<1x16x128xbf16> to vector<16x128xbf16>
    %c266 = arith.constant 266 : index
    %c0_15 = arith.constant 0 : index
    %36 = vector.load %arg13[%c266, %c0_15] : memref<440x128xbf16, #tpu.memory_space<vmem>>, vector<16x128xbf16>
    tpu.vector_store %arg13[%c266, %c0_15], %35 {strides = array<i32>} : memref<440x128xbf16, #tpu.memory_space<vmem>>, vector<16x128xbf16>,
    %37 = vector.extract_strided_slice %3 {offsets = [11, 0, 0], sizes = [1, 16, 128], strides = [1, 1, 1]} : vector<16x16x128xbf16> to vector<1x16x128xbf16>
    %38 = vector.shape_cast %37 : vector<1x16x128xbf16> to vector<16x128xbf16>
    %c290 = arith.constant 290 : index
    %c0_16 = arith.constant 0 : index
    %39 = vector.load %arg13[%c290, %c0_16] : memref<440x128xbf16, #tpu.memory_space<vmem>>, vector<16x128xbf16>
    tpu.vector_store %arg13[%c290, %c0_16], %38 {strides = array<i32>} : memref<440x128xbf16, #tpu.memory_space<vmem>>, vector<16x128xbf16>,
    %40 = vector.extract_strided_slice %3 {offsets = [12, 0, 0], sizes = [1, 16, 128], strides = [1, 1, 1]} : vector<16x16x128xbf16> to vector<1x16x128xbf16>
    %41 = vector.shape_cast %40 : vector<1x16x128xbf16> to vector<16x128xbf16>
    %c314 = arith.constant 314 : index
    %c0_17 = arith.constant 0 : index
    %42 = vector.load %arg13[%c314, %c0_17] : memref<440x128xbf16, #tpu.memory_space<vmem>>, vector<16x128xbf16>
    tpu.vector_store %arg13[%c314, %c0_17], %41 {strides = array<i32>} : memref<440x128xbf16, #tpu.memory_space<vmem>>, vector<16x128xbf16>,
    %43 = vector.extract_strided_slice %3 {offsets = [13, 0, 0], sizes = [1, 16, 128], strides = [1, 1, 1]} : vector<16x16x128xbf16> to vector<1x16x128xbf16>
    %44 = vector.shape_cast %43 : vector<1x16x128xbf16> to vector<16x128xbf16>
    %c338 = arith.constant 338 : index
    %c0_18 = arith.constant 0 : index
    %45 = vector.load %arg13[%c338, %c0_18] : memref<440x128xbf16, #tpu.memory_space<vmem>>, vector<16x128xbf16>
    tpu.vector_store %arg13[%c338, %c0_18], %44 {strides = array<i32>} : memref<440x128xbf16, #tpu.memory_space<vmem>>, vector<16x128xbf16>,
    %46 = vector.extract_strided_slice %3 {offsets = [14, 0, 0], sizes = [1, 16, 128], strides = [1, 1, 1]} : vector<16x16x128xbf16> to vector<1x16x128xbf16>
    %47 = vector.shape_cast %46 : vector<1x16x128xbf16> to vector<16x128xbf16>
    %c362 = arith.constant 362 : index
    %c0_19 = arith.constant 0 : index
    %48 = vector.load %arg13[%c362, %c0_19] : memref<440x128xbf16, #tpu.memory_space<vmem>>, vector<16x128xbf16>
    tpu.vector_store %arg13[%c362, %c0_19], %47 {strides = array<i32>} : memref<440x128xbf16, #tpu.memory_space<vmem>>, vector<16x128xbf16>,
    %49 = vector.extract_strided_slice %3 {offsets = [15, 0, 0], sizes = [1, 16, 128], strides = [1, 1, 1]} : vector<16x16x128xbf16> to vector<1x16x128xbf16>
    %50 = vector.shape_cast %49 : vector<1x16x128xbf16> to vector<16x128xbf16>
    %c386 = arith.constant 386 : index
    %c0_20 = arith.constant 0 : index
    %51 = vector.load %arg13[%c386, %c0_20] : memref<440x128xbf16, #tpu.memory_space<vmem>>, vector<16x128xbf16>
    tpu.vector_store %arg13[%c386, %c0_20], %50 {strides = array<i32>} : memref<440x128xbf16, #tpu.memory_space<vmem>>, vector<16x128xbf16>,
    %c0_21 = arith.constant 0 : index
    %c0_22 = arith.constant 0 : index
    %52 = vector.load %arg2[%c0_21, %c0_22] : memref<384x1xf32, #tpu.memory_space<vmem>>, vector<384x1xf32>
    %c0_23 = arith.constant 0 : index
    %c0_24 = arith.constant 0 : index
    %c0_25 = arith.constant 0 : index
    %c0_26 = arith.constant 0 : index
    %53 = vector.load %arg3[%c0_23, %c0_24, %c0_25, %c0_26] : memref<3x3x128x128xbf16, #tpu.memory_space<vmem>>, vector<3x3x128x128xbf16>
    %cst_27 = arith.constant 0.000000e+00 : f32
    %54 = vector.broadcast %cst_27 : f32 to vector<384x128xf32>
    %c0_28 = arith.constant 0 : index
    %c0_29 = arith.constant 0 : index
    %55 = vector.load %arg13[%c0_28, %c0_29] : memref<440x128xbf16, #tpu.memory_space<vmem>>, vector<384x128xbf16>
    %56 = vector.extract_strided_slice %53 {offsets = [0, 0, 0, 0], sizes = [1, 1, 128, 128], strides = [1, 1, 1, 1]} : vector<3x3x128x128xbf16> to vector<1x1x128x128xbf16>
    %57 = vector.shape_cast %56 : vector<1x1x128x128xbf16> to vector<128x128xbf16>
    %cst_30 = arith.constant dense<0.000000e+00> : vector<384x128xf32>
    %58 = tpu.matmul %55, %57, %cst_30 {dimension_numbers = #tpu.dot_dimension_numbers<[1], [0], [0], [1], [0, 0, 1, 1], [], []>} : vector<384x128xbf16>, vector<128x128xbf16>, vector<384x128xf32> -> vector<384x128xf32>
    %59 = arith.addf %54, %58 : vector<384x128xf32>
    %c1 = arith.constant 1 : index
    %c0_31 = arith.constant 0 : index
    %60 = vector.load %arg13[%c1, %c0_31] : memref<440x128xbf16, #tpu.memory_space<vmem>>, vector<384x128xbf16>
    %61 = vector.extract_strided_slice %53 {offsets = [0, 1, 0, 0], sizes = [1, 1, 128, 128], strides = [1, 1, 1, 1]} : vector<3x3x128x128xbf16> to vector<1x1x128x128xbf16>
    %62 = vector.shape_cast %61 : vector<1x1x128x128xbf16> to vector<128x128xbf16>
    %cst_32 = arith.constant dense<0.000000e+00> : vector<384x128xf32>
    %63 = tpu.matmul %60, %62, %cst_32 {dimension_numbers = #tpu.dot_dimension_numbers<[1], [0], [0], [1], [0, 0, 1, 1], [], []>} : vector<384x128xbf16>, vector<128x128xbf16>, vector<384x128xf32> -> vector<384x128xf32>
    %64 = arith.addf %59, %63 : vector<384x128xf32>
    %c2 = arith.constant 2 : index
    %c0_33 = arith.constant 0 : index
    %65 = vector.load %arg13[%c2, %c0_33] : memref<440x128xbf16, #tpu.memory_space<vmem>>, vector<384x128xbf16>
    %66 = vector.extract_strided_slice %53 {offsets = [0, 2, 0, 0], sizes = [1, 1, 128, 128], strides = [1, 1, 1, 1]} : vector<3x3x128x128xbf16> to vector<1x1x128x128xbf16>
    %67 = vector.shape_cast %66 : vector<1x1x128x128xbf16> to vector<128x128xbf16>
    %cst_34 = arith.constant dense<0.000000e+00> : vector<384x128xf32>
    %68 = tpu.matmul %65, %67, %cst_34 {dimension_numbers = #tpu.dot_dimension_numbers<[1], [0], [0], [1], [0, 0, 1, 1], [], []>} : vector<384x128xbf16>, vector<128x128xbf16>, vector<384x128xf32> -> vector<384x128xf32>
    %69 = arith.addf %64, %68 : vector<384x128xf32>
    %c24 = arith.constant 24 : index
    %c0_35 = arith.constant 0 : index
    %70 = vector.load %arg13[%c24, %c0_35] : memref<440x128xbf16, #tpu.memory_space<vmem>>, vector<384x128xbf16>
    %71 = vector.extract_strided_slice %53 {offsets = [1, 0, 0, 0], sizes = [1, 1, 128, 128], strides = [1, 1, 1, 1]} : vector<3x3x128x128xbf16> to vector<1x1x128x128xbf16>
    %72 = vector.shape_cast %71 : vector<1x1x128x128xbf16> to vector<128x128xbf16>
    %cst_36 = arith.constant dense<0.000000e+00> : vector<384x128xf32>
    %73 = tpu.matmul %70, %72, %cst_36 {dimension_numbers = #tpu.dot_dimension_numbers<[1], [0], [0], [1], [0, 0, 1, 1], [], []>} : vector<384x128xbf16>, vector<128x128xbf16>, vector<384x128xf32> -> vector<384x128xf32>
    %74 = arith.addf %69, %73 : vector<384x128xf32>
    %c25 = arith.constant 25 : index
    %c0_37 = arith.constant 0 : index
    %75 = vector.load %arg13[%c25, %c0_37] : memref<440x128xbf16, #tpu.memory_space<vmem>>, vector<384x128xbf16>
    %76 = vector.extract_strided_slice %53 {offsets = [1, 1, 0, 0], sizes = [1, 1, 128, 128], strides = [1, 1, 1, 1]} : vector<3x3x128x128xbf16> to vector<1x1x128x128xbf16>
    %77 = vector.shape_cast %76 : vector<1x1x128x128xbf16> to vector<128x128xbf16>
    %cst_38 = arith.constant dense<0.000000e+00> : vector<384x128xf32>
    %78 = tpu.matmul %75, %77, %cst_38 {dimension_numbers = #tpu.dot_dimension_numbers<[1], [0], [0], [1], [0, 0, 1, 1], [], []>} : vector<384x128xbf16>, vector<128x128xbf16>, vector<384x128xf32> -> vector<384x128xf32>
    %79 = arith.addf %74, %78 : vector<384x128xf32>
    %c26_39 = arith.constant 26 : index
    %c0_40 = arith.constant 0 : index
    %80 = vector.load %arg13[%c26_39, %c0_40] : memref<440x128xbf16, #tpu.memory_space<vmem>>, vector<384x128xbf16>
    %81 = vector.extract_strided_slice %53 {offsets = [1, 2, 0, 0], sizes = [1, 1, 128, 128], strides = [1, 1, 1, 1]} : vector<3x3x128x128xbf16> to vector<1x1x128x128xbf16>
    %82 = vector.shape_cast %81 : vector<1x1x128x128xbf16> to vector<128x128xbf16>
    %cst_41 = arith.constant dense<0.000000e+00> : vector<384x128xf32>
    %83 = tpu.matmul %80, %82, %cst_41 {dimension_numbers = #tpu.dot_dimension_numbers<[1], [0], [0], [1], [0, 0, 1, 1], [], []>} : vector<384x128xbf16>, vector<128x128xbf16>, vector<384x128xf32> -> vector<384x128xf32>
    %84 = arith.addf %79, %83 : vector<384x128xf32>
    %c48 = arith.constant 48 : index
    %c0_42 = arith.constant 0 : index
    %85 = vector.load %arg13[%c48, %c0_42] : memref<440x128xbf16, #tpu.memory_space<vmem>>, vector<384x128xbf16>
    %86 = vector.extract_strided_slice %53 {offsets = [2, 0, 0, 0], sizes = [1, 1, 128, 128], strides = [1, 1, 1, 1]} : vector<3x3x128x128xbf16> to vector<1x1x128x128xbf16>
    %87 = vector.shape_cast %86 : vector<1x1x128x128xbf16> to vector<128x128xbf16>
    %cst_43 = arith.constant dense<0.000000e+00> : vector<384x128xf32>
    %88 = tpu.matmul %85, %87, %cst_43 {dimension_numbers = #tpu.dot_dimension_numbers<[1], [0], [0], [1], [0, 0, 1, 1], [], []>} : vector<384x128xbf16>, vector<128x128xbf16>, vector<384x128xf32> -> vector<384x128xf32>
    %89 = arith.addf %84, %88 : vector<384x128xf32>
    %c49 = arith.constant 49 : index
    %c0_44 = arith.constant 0 : index
    %90 = vector.load %arg13[%c49, %c0_44] : memref<440x128xbf16, #tpu.memory_space<vmem>>, vector<384x128xbf16>
    %91 = vector.extract_strided_slice %53 {offsets = [2, 1, 0, 0], sizes = [1, 1, 128, 128], strides = [1, 1, 1, 1]} : vector<3x3x128x128xbf16> to vector<1x1x128x128xbf16>
    %92 = vector.shape_cast %91 : vector<1x1x128x128xbf16> to vector<128x128xbf16>
    %cst_45 = arith.constant dense<0.000000e+00> : vector<384x128xf32>
    %93 = tpu.matmul %90, %92, %cst_45 {dimension_numbers = #tpu.dot_dimension_numbers<[1], [0], [0], [1], [0, 0, 1, 1], [], []>} : vector<384x128xbf16>, vector<128x128xbf16>, vector<384x128xf32> -> vector<384x128xf32>
    %94 = arith.addf %89, %93 : vector<384x128xf32>
    %c50_46 = arith.constant 50 : index
    %c0_47 = arith.constant 0 : index
    %95 = vector.load %arg13[%c50_46, %c0_47] : memref<440x128xbf16, #tpu.memory_space<vmem>>, vector<384x128xbf16>
    %96 = vector.extract_strided_slice %53 {offsets = [2, 2, 0, 0], sizes = [1, 1, 128, 128], strides = [1, 1, 1, 1]} : vector<3x3x128x128xbf16> to vector<1x1x128x128xbf16>
    %97 = vector.shape_cast %96 : vector<1x1x128x128xbf16> to vector<128x128xbf16>
    %cst_48 = arith.constant dense<0.000000e+00> : vector<384x128xf32>
    %98 = tpu.matmul %95, %97, %cst_48 {dimension_numbers = #tpu.dot_dimension_numbers<[1], [0], [0], [1], [0, 0, 1, 1], [], []>} : vector<384x128xbf16>, vector<128x128xbf16>, vector<384x128xf32> -> vector<384x128xf32>
    %99 = arith.addf %94, %98 : vector<384x128xf32>
    %c0_49 = arith.constant 0 : index
    %c0_50 = arith.constant 0 : index
    %100 = vector.load %arg6[%c0_49, %c0_50] : memref<1x128xf32, #tpu.memory_space<vmem>>, vector<1x128xf32>
    %101 = vector.broadcast %100 : vector<1x128xf32> to vector<384x128xf32>
    %102 = arith.mulf %99, %101 : vector<384x128xf32>
    %c0_51 = arith.constant 0 : index
    %c0_52 = arith.constant 0 : index
    %103 = vector.load %arg7[%c0_51, %c0_52] : memref<1x128xf32, #tpu.memory_space<vmem>>, vector<1x128xf32>
    %104 = vector.broadcast %103 : vector<1x128xf32> to vector<384x128xf32>
    %105 = arith.addf %102, %104 : vector<384x128xf32>
    %cst_53 = arith.constant 0.000000e+00 : f32
    %106 = vector.broadcast %cst_53 : f32 to vector<384x128xf32>
    %107 = arith.maximumf %105, %106 : vector<384x128xf32>
    %108 = vector.broadcast %52 : vector<384x1xf32> to vector<384x128xf32>
    %109 = arith.mulf %107, %108 : vector<384x128xf32>
    %110 = arith.truncf %109 : vector<384x128xf32> to vector<384x128xbf16>
    %c25_54 = arith.constant 25 : index
    %c0_55 = arith.constant 0 : index
    %111 = vector.load %arg13[%c25_54, %c0_55] : memref<440x128xbf16, #tpu.memory_space<vmem>>, vector<384x128xbf16>
    tpu.vector_store %arg13[%c25_54, %c0_55], %110 {strides = array<i32>} : memref<440x128xbf16, #tpu.memory_space<vmem>>, vector<384x128xbf16>,
    %c0_56 = arith.constant 0 : index
    %c0_57 = arith.constant 0 : index
    %c0_58 = arith.constant 0 : index
    %c0_59 = arith.constant 0 : index
    %112 = vector.load %arg4[%c0_56, %c0_57, %c0_58, %c0_59] : memref<3x3x128x128xbf16, #tpu.memory_space<vmem>>, vector<3x3x128x128xbf16>
    %cst_60 = arith.constant 0.000000e+00 : f32
    %113 = vector.broadcast %cst_60 : f32 to vector<384x128xf32>
    %c0_61 = arith.constant 0 : index
    %c0_62 = arith.constant 0 : index
    %114 = vector.load %arg13[%c0_61, %c0_62] : memref<440x128xbf16, #tpu.memory_space<vmem>>, vector<384x128xbf16>
    %115 = vector.extract_strided_slice %112 {offsets = [0, 0, 0, 0], sizes = [1, 1, 128, 128], strides = [1, 1, 1, 1]} : vector<3x3x128x128xbf16> to vector<1x1x128x128xbf16>
    %116 = vector.shape_cast %115 : vector<1x1x128x128xbf16> to vector<128x128xbf16>
    %cst_63 = arith.constant dense<0.000000e+00> : vector<384x128xf32>
    %117 = tpu.matmul %114, %116, %cst_63 {dimension_numbers = #tpu.dot_dimension_numbers<[1], [0], [0], [1], [0, 0, 1, 1], [], []>} : vector<384x128xbf16>, vector<128x128xbf16>, vector<384x128xf32> -> vector<384x128xf32>
    %118 = arith.addf %113, %117 : vector<384x128xf32>
    %c1_64 = arith.constant 1 : index
    %c0_65 = arith.constant 0 : index
    %119 = vector.load %arg13[%c1_64, %c0_65] : memref<440x128xbf16, #tpu.memory_space<vmem>>, vector<384x128xbf16>
    %120 = vector.extract_strided_slice %112 {offsets = [0, 1, 0, 0], sizes = [1, 1, 128, 128], strides = [1, 1, 1, 1]} : vector<3x3x128x128xbf16> to vector<1x1x128x128xbf16>
    %121 = vector.shape_cast %120 : vector<1x1x128x128xbf16> to vector<128x128xbf16>
    %cst_66 = arith.constant dense<0.000000e+00> : vector<384x128xf32>
    %122 = tpu.matmul %119, %121, %cst_66 {dimension_numbers = #tpu.dot_dimension_numbers<[1], [0], [0], [1], [0, 0, 1, 1], [], []>} : vector<384x128xbf16>, vector<128x128xbf16>, vector<384x128xf32> -> vector<384x128xf32>
    %123 = arith.addf %118, %122 : vector<384x128xf32>
    %c2_67 = arith.constant 2 : index
    %c0_68 = arith.constant 0 : index
    %124 = vector.load %arg13[%c2_67, %c0_68] : memref<440x128xbf16, #tpu.memory_space<vmem>>, vector<384x128xbf16>
    %125 = vector.extract_strided_slice %112 {offsets = [0, 2, 0, 0], sizes = [1, 1, 128, 128], strides = [1, 1, 1, 1]} : vector<3x3x128x128xbf16> to vector<1x1x128x128xbf16>
    %126 = vector.shape_cast %125 : vector<1x1x128x128xbf16> to vector<128x128xbf16>
    %cst_69 = arith.constant dense<0.000000e+00> : vector<384x128xf32>
    %127 = tpu.matmul %124, %126, %cst_69 {dimension_numbers = #tpu.dot_dimension_numbers<[1], [0], [0], [1], [0, 0, 1, 1], [], []>} : vector<384x128xbf16>, vector<128x128xbf16>, vector<384x128xf32> -> vector<384x128xf32>
    %128 = arith.addf %123, %127 : vector<384x128xf32>
    %c24_70 = arith.constant 24 : index
    %c0_71 = arith.constant 0 : index
    %129 = vector.load %arg13[%c24_70, %c0_71] : memref<440x128xbf16, #tpu.memory_space<vmem>>, vector<384x128xbf16>
    %130 = vector.extract_strided_slice %112 {offsets = [1, 0, 0, 0], sizes = [1, 1, 128, 128], strides = [1, 1, 1, 1]} : vector<3x3x128x128xbf16> to vector<1x1x128x128xbf16>
    %131 = vector.shape_cast %130 : vector<1x1x128x128xbf16> to vector<128x128xbf16>
    %cst_72 = arith.constant dense<0.000000e+00> : vector<384x128xf32>
    %132 = tpu.matmul %129, %131, %cst_72 {dimension_numbers = #tpu.dot_dimension_numbers<[1], [0], [0], [1], [0, 0, 1, 1], [], []>} : vector<384x128xbf16>, vector<128x128xbf16>, vector<384x128xf32> -> vector<384x128xf32>
    %133 = arith.addf %128, %132 : vector<384x128xf32>
    %c25_73 = arith.constant 25 : index
    %c0_74 = arith.constant 0 : index
    %134 = vector.load %arg13[%c25_73, %c0_74] : memref<440x128xbf16, #tpu.memory_space<vmem>>, vector<384x128xbf16>
    %135 = vector.extract_strided_slice %112 {offsets = [1, 1, 0, 0], sizes = [1, 1, 128, 128], strides = [1, 1, 1, 1]} : vector<3x3x128x128xbf16> to vector<1x1x128x128xbf16>
    %136 = vector.shape_cast %135 : vector<1x1x128x128xbf16> to vector<128x128xbf16>
    %cst_75 = arith.constant dense<0.000000e+00> : vector<384x128xf32>
    %137 = tpu.matmul %134, %136, %cst_75 {dimension_numbers = #tpu.dot_dimension_numbers<[1], [0], [0], [1], [0, 0, 1, 1], [], []>} : vector<384x128xbf16>, vector<128x128xbf16>, vector<384x128xf32> -> vector<384x128xf32>
    %138 = arith.addf %133, %137 : vector<384x128xf32>
    %c26_76 = arith.constant 26 : index
    %c0_77 = arith.constant 0 : index
    %139 = vector.load %arg13[%c26_76, %c0_77] : memref<440x128xbf16, #tpu.memory_space<vmem>>, vector<384x128xbf16>
    %140 = vector.extract_strided_slice %112 {offsets = [1, 2, 0, 0], sizes = [1, 1, 128, 128], strides = [1, 1, 1, 1]} : vector<3x3x128x128xbf16> to vector<1x1x128x128xbf16>
    %141 = vector.shape_cast %140 : vector<1x1x128x128xbf16> to vector<128x128xbf16>
    %cst_78 = arith.constant dense<0.000000e+00> : vector<384x128xf32>
    %142 = tpu.matmul %139, %141, %cst_78 {dimension_numbers = #tpu.dot_dimension_numbers<[1], [0], [0], [1], [0, 0, 1, 1], [], []>} : vector<384x128xbf16>, vector<128x128xbf16>, vector<384x128xf32> -> vector<384x128xf32>
    %143 = arith.addf %138, %142 : vector<384x128xf32>
    %c48_79 = arith.constant 48 : index
    %c0_80 = arith.constant 0 : index
    %144 = vector.load %arg13[%c48_79, %c0_80] : memref<440x128xbf16, #tpu.memory_space<vmem>>, vector<384x128xbf16>
    %145 = vector.extract_strided_slice %112 {offsets = [2, 0, 0, 0], sizes = [1, 1, 128, 128], strides = [1, 1, 1, 1]} : vector<3x3x128x128xbf16> to vector<1x1x128x128xbf16>
    %146 = vector.shape_cast %145 : vector<1x1x128x128xbf16> to vector<128x128xbf16>
    %cst_81 = arith.constant dense<0.000000e+00> : vector<384x128xf32>
    %147 = tpu.matmul %144, %146, %cst_81 {dimension_numbers = #tpu.dot_dimension_numbers<[1], [0], [0], [1], [0, 0, 1, 1], [], []>} : vector<384x128xbf16>, vector<128x128xbf16>, vector<384x128xf32> -> vector<384x128xf32>
    %148 = arith.addf %143, %147 : vector<384x128xf32>
    %c49_82 = arith.constant 49 : index
    %c0_83 = arith.constant 0 : index
    %149 = vector.load %arg13[%c49_82, %c0_83] : memref<440x128xbf16, #tpu.memory_space<vmem>>, vector<384x128xbf16>
    %150 = vector.extract_strided_slice %112 {offsets = [2, 1, 0, 0], sizes = [1, 1, 128, 128], strides = [1, 1, 1, 1]} : vector<3x3x128x128xbf16> to vector<1x1x128x128xbf16>
    %151 = vector.shape_cast %150 : vector<1x1x128x128xbf16> to vector<128x128xbf16>
    %cst_84 = arith.constant dense<0.000000e+00> : vector<384x128xf32>
    %152 = tpu.matmul %149, %151, %cst_84 {dimension_numbers = #tpu.dot_dimension_numbers<[1], [0], [0], [1], [0, 0, 1, 1], [], []>} : vector<384x128xbf16>, vector<128x128xbf16>, vector<384x128xf32> -> vector<384x128xf32>
    %153 = arith.addf %148, %152 : vector<384x128xf32>
    %c50_85 = arith.constant 50 : index
    %c0_86 = arith.constant 0 : index
    %154 = vector.load %arg13[%c50_85, %c0_86] : memref<440x128xbf16, #tpu.memory_space<vmem>>, vector<384x128xbf16>
    %155 = vector.extract_strided_slice %112 {offsets = [2, 2, 0, 0], sizes = [1, 1, 128, 128], strides = [1, 1, 1, 1]} : vector<3x3x128x128xbf16> to vector<1x1x128x128xbf16>
    %156 = vector.shape_cast %155 : vector<1x1x128x128xbf16> to vector<128x128xbf16>
    %cst_87 = arith.constant dense<0.000000e+00> : vector<384x128xf32>
    %157 = tpu.matmul %154, %156, %cst_87 {dimension_numbers = #tpu.dot_dimension_numbers<[1], [0], [0], [1], [0, 0, 1, 1], [], []>} : vector<384x128xbf16>, vector<128x128xbf16>, vector<384x128xf32> -> vector<384x128xf32>
    %158 = arith.addf %153, %157 : vector<384x128xf32>
    %c0_88 = arith.constant 0 : index
    %c0_89 = arith.constant 0 : index
    %159 = vector.load %arg8[%c0_88, %c0_89] : memref<1x128xf32, #tpu.memory_space<vmem>>, vector<1x128xf32>
    %160 = vector.broadcast %159 : vector<1x128xf32> to vector<384x128xf32>
    %161 = arith.mulf %158, %160 : vector<384x128xf32>
    %c0_90 = arith.constant 0 : index
    %c0_91 = arith.constant 0 : index
    %162 = vector.load %arg9[%c0_90, %c0_91] : memref<1x128xf32, #tpu.memory_space<vmem>>, vector<1x128xf32>
    %163 = vector.broadcast %162 : vector<1x128xf32> to vector<384x128xf32>
    %164 = arith.addf %161, %163 : vector<384x128xf32>
    %cst_92 = arith.constant 0.000000e+00 : f32
    %165 = vector.broadcast %cst_92 : f32 to vector<384x128xf32>
    %166 = arith.maximumf %164, %165 : vector<384x128xf32>
    %167 = vector.broadcast %52 : vector<384x1xf32> to vector<384x128xf32>
    %168 = arith.mulf %166, %167 : vector<384x128xf32>
    %169 = arith.truncf %168 : vector<384x128xf32> to vector<384x128xbf16>
    %c25_93 = arith.constant 25 : index
    %c0_94 = arith.constant 0 : index
    %170 = vector.load %arg13[%c25_93, %c0_94] : memref<440x128xbf16, #tpu.memory_space<vmem>>, vector<384x128xbf16>
    tpu.vector_store %arg13[%c25_93, %c0_94], %169 {strides = array<i32>} : memref<440x128xbf16, #tpu.memory_space<vmem>>, vector<384x128xbf16>,
    %c0_95 = arith.constant 0 : index
    %c0_96 = arith.constant 0 : index
    %c0_97 = arith.constant 0 : index
    %c0_98 = arith.constant 0 : index
    %171 = vector.load %arg5[%c0_95, %c0_96, %c0_97, %c0_98] : memref<3x3x128x128xbf16, #tpu.memory_space<vmem>>, vector<3x3x128x128xbf16>
    %cst_99 = arith.constant 0.000000e+00 : f32
    %172 = vector.broadcast %cst_99 : f32 to vector<384x128xf32>
    %c0_100 = arith.constant 0 : index
    %c0_101 = arith.constant 0 : index
    %173 = vector.load %arg13[%c0_100, %c0_101] : memref<440x128xbf16, #tpu.memory_space<vmem>>, vector<384x128xbf16>
    %174 = vector.extract_strided_slice %171 {offsets = [0, 0, 0, 0], sizes = [1, 1, 128, 128], strides = [1, 1, 1, 1]} : vector<3x3x128x128xbf16> to vector<1x1x128x128xbf16>
    %175 = vector.shape_cast %174 : vector<1x1x128x128xbf16> to vector<128x128xbf16>
    %cst_102 = arith.constant dense<0.000000e+00> : vector<384x128xf32>
    %176 = tpu.matmul %173, %175, %cst_102 {dimension_numbers = #tpu.dot_dimension_numbers<[1], [0], [0], [1], [0, 0, 1, 1], [], []>} : vector<384x128xbf16>, vector<128x128xbf16>, vector<384x128xf32> -> vector<384x128xf32>
    %177 = arith.addf %172, %176 : vector<384x128xf32>
    %c1_103 = arith.constant 1 : index
    %c0_104 = arith.constant 0 : index
    %178 = vector.load %arg13[%c1_103, %c0_104] : memref<440x128xbf16, #tpu.memory_space<vmem>>, vector<384x128xbf16>
    %179 = vector.extract_strided_slice %171 {offsets = [0, 1, 0, 0], sizes = [1, 1, 128, 128], strides = [1, 1, 1, 1]} : vector<3x3x128x128xbf16> to vector<1x1x128x128xbf16>
    %180 = vector.shape_cast %179 : vector<1x1x128x128xbf16> to vector<128x128xbf16>
    %cst_105 = arith.constant dense<0.000000e+00> : vector<384x128xf32>
    %181 = tpu.matmul %178, %180, %cst_105 {dimension_numbers = #tpu.dot_dimension_numbers<[1], [0], [0], [1], [0, 0, 1, 1], [], []>} : vector<384x128xbf16>, vector<128x128xbf16>, vector<384x128xf32> -> vector<384x128xf32>
    %182 = arith.addf %177, %181 : vector<384x128xf32>
    %c2_106 = arith.constant 2 : index
    %c0_107 = arith.constant 0 : index
    %183 = vector.load %arg13[%c2_106, %c0_107] : memref<440x128xbf16, #tpu.memory_space<vmem>>, vector<384x128xbf16>
    %184 = vector.extract_strided_slice %171 {offsets = [0, 2, 0, 0], sizes = [1, 1, 128, 128], strides = [1, 1, 1, 1]} : vector<3x3x128x128xbf16> to vector<1x1x128x128xbf16>
    %185 = vector.shape_cast %184 : vector<1x1x128x128xbf16> to vector<128x128xbf16>
    %cst_108 = arith.constant dense<0.000000e+00> : vector<384x128xf32>
    %186 = tpu.matmul %183, %185, %cst_108 {dimension_numbers = #tpu.dot_dimension_numbers<[1], [0], [0], [1], [0, 0, 1, 1], [], []>} : vector<384x128xbf16>, vector<128x128xbf16>, vector<384x128xf32> -> vector<384x128xf32>
    %187 = arith.addf %182, %186 : vector<384x128xf32>
    %c24_109 = arith.constant 24 : index
    %c0_110 = arith.constant 0 : index
    %188 = vector.load %arg13[%c24_109, %c0_110] : memref<440x128xbf16, #tpu.memory_space<vmem>>, vector<384x128xbf16>
    %189 = vector.extract_strided_slice %171 {offsets = [1, 0, 0, 0], sizes = [1, 1, 128, 128], strides = [1, 1, 1, 1]} : vector<3x3x128x128xbf16> to vector<1x1x128x128xbf16>
    %190 = vector.shape_cast %189 : vector<1x1x128x128xbf16> to vector<128x128xbf16>
    %cst_111 = arith.constant dense<0.000000e+00> : vector<384x128xf32>
    %191 = tpu.matmul %188, %190, %cst_111 {dimension_numbers = #tpu.dot_dimension_numbers<[1], [0], [0], [1], [0, 0, 1, 1], [], []>} : vector<384x128xbf16>, vector<128x128xbf16>, vector<384x128xf32> -> vector<384x128xf32>
    %192 = arith.addf %187, %191 : vector<384x128xf32>
    %c25_112 = arith.constant 25 : index
    %c0_113 = arith.constant 0 : index
    %193 = vector.load %arg13[%c25_112, %c0_113] : memref<440x128xbf16, #tpu.memory_space<vmem>>, vector<384x128xbf16>
    %194 = vector.extract_strided_slice %171 {offsets = [1, 1, 0, 0], sizes = [1, 1, 128, 128], strides = [1, 1, 1, 1]} : vector<3x3x128x128xbf16> to vector<1x1x128x128xbf16>
    %195 = vector.shape_cast %194 : vector<1x1x128x128xbf16> to vector<128x128xbf16>
    %cst_114 = arith.constant dense<0.000000e+00> : vector<384x128xf32>
    %196 = tpu.matmul %193, %195, %cst_114 {dimension_numbers = #tpu.dot_dimension_numbers<[1], [0], [0], [1], [0, 0, 1, 1], [], []>} : vector<384x128xbf16>, vector<128x128xbf16>, vector<384x128xf32> -> vector<384x128xf32>
    %197 = arith.addf %192, %196 : vector<384x128xf32>
    %c26_115 = arith.constant 26 : index
    %c0_116 = arith.constant 0 : index
    %198 = vector.load %arg13[%c26_115, %c0_116] : memref<440x128xbf16, #tpu.memory_space<vmem>>, vector<384x128xbf16>
    %199 = vector.extract_strided_slice %171 {offsets = [1, 2, 0, 0], sizes = [1, 1, 128, 128], strides = [1, 1, 1, 1]} : vector<3x3x128x128xbf16> to vector<1x1x128x128xbf16>
    %200 = vector.shape_cast %199 : vector<1x1x128x128xbf16> to vector<128x128xbf16>
    %cst_117 = arith.constant dense<0.000000e+00> : vector<384x128xf32>
    %201 = tpu.matmul %198, %200, %cst_117 {dimension_numbers = #tpu.dot_dimension_numbers<[1], [0], [0], [1], [0, 0, 1, 1], [], []>} : vector<384x128xbf16>, vector<128x128xbf16>, vector<384x128xf32> -> vector<384x128xf32>
    %202 = arith.addf %197, %201 : vector<384x128xf32>
    %c48_118 = arith.constant 48 : index
    %c0_119 = arith.constant 0 : index
    %203 = vector.load %arg13[%c48_118, %c0_119] : memref<440x128xbf16, #tpu.memory_space<vmem>>, vector<384x128xbf16>
    %204 = vector.extract_strided_slice %171 {offsets = [2, 0, 0, 0], sizes = [1, 1, 128, 128], strides = [1, 1, 1, 1]} : vector<3x3x128x128xbf16> to vector<1x1x128x128xbf16>
    %205 = vector.shape_cast %204 : vector<1x1x128x128xbf16> to vector<128x128xbf16>
    %cst_120 = arith.constant dense<0.000000e+00> : vector<384x128xf32>
    %206 = tpu.matmul %203, %205, %cst_120 {dimension_numbers = #tpu.dot_dimension_numbers<[1], [0], [0], [1], [0, 0, 1, 1], [], []>} : vector<384x128xbf16>, vector<128x128xbf16>, vector<384x128xf32> -> vector<384x128xf32>
    %207 = arith.addf %202, %206 : vector<384x128xf32>
    %c49_121 = arith.constant 49 : index
    %c0_122 = arith.constant 0 : index
    %208 = vector.load %arg13[%c49_121, %c0_122] : memref<440x128xbf16, #tpu.memory_space<vmem>>, vector<384x128xbf16>
    %209 = vector.extract_strided_slice %171 {offsets = [2, 1, 0, 0], sizes = [1, 1, 128, 128], strides = [1, 1, 1, 1]} : vector<3x3x128x128xbf16> to vector<1x1x128x128xbf16>
    %210 = vector.shape_cast %209 : vector<1x1x128x128xbf16> to vector<128x128xbf16>
    %cst_123 = arith.constant dense<0.000000e+00> : vector<384x128xf32>
    %211 = tpu.matmul %208, %210, %cst_123 {dimension_numbers = #tpu.dot_dimension_numbers<[1], [0], [0], [1], [0, 0, 1, 1], [], []>} : vector<384x128xbf16>, vector<128x128xbf16>, vector<384x128xf32> -> vector<384x128xf32>
    %212 = arith.addf %207, %211 : vector<384x128xf32>
    %c50_124 = arith.constant 50 : index
    %c0_125 = arith.constant 0 : index
    %213 = vector.load %arg13[%c50_124, %c0_125] : memref<440x128xbf16, #tpu.memory_space<vmem>>, vector<384x128xbf16>
    %214 = vector.extract_strided_slice %171 {offsets = [2, 2, 0, 0], sizes = [1, 1, 128, 128], strides = [1, 1, 1, 1]} : vector<3x3x128x128xbf16> to vector<1x1x128x128xbf16>
    %215 = vector.shape_cast %214 : vector<1x1x128x128xbf16> to vector<128x128xbf16>
    %cst_126 = arith.constant dense<0.000000e+00> : vector<384x128xf32>
    %216 = tpu.matmul %213, %215, %cst_126 {dimension_numbers = #tpu.dot_dimension_numbers<[1], [0], [0], [1], [0, 0, 1, 1], [], []>} : vector<384x128xbf16>, vector<128x128xbf16>, vector<384x128xf32> -> vector<384x128xf32>
    %217 = arith.addf %212, %216 : vector<384x128xf32>
    %c0_127 = arith.constant 0 : index
    %c0_128 = arith.constant 0 : index
    %218 = vector.load %arg10[%c0_127, %c0_128] : memref<1x128xf32, #tpu.memory_space<vmem>>, vector<1x128xf32>
    %219 = vector.broadcast %218 : vector<1x128xf32> to vector<384x128xf32>
    %220 = arith.mulf %217, %219 : vector<384x128xf32>
    %c0_129 = arith.constant 0 : index
    %c0_130 = arith.constant 0 : index
    %221 = vector.load %arg11[%c0_129, %c0_130] : memref<1x128xf32, #tpu.memory_space<vmem>>, vector<1x128xf32>
    %222 = vector.broadcast %221 : vector<1x128xf32> to vector<384x128xf32>
    %223 = arith.addf %220, %222 : vector<384x128xf32>
    %cst_131 = arith.constant 0.000000e+00 : f32
    %224 = vector.broadcast %cst_131 : f32 to vector<384x128xf32>
    %225 = arith.maximumf %223, %224 : vector<384x128xf32>
    %226 = vector.shape_cast %225 : vector<384x128xf32> to vector<16x24x128xf32>
    %227 = vector.extract_strided_slice %226 {offsets = [0, 1, 0], sizes = [16, 16, 128], strides = [1, 1, 1]} : vector<16x24x128xf32> to vector<16x16x128xf32>
    %c0_132 = arith.constant 0 : index
    %c0_133 = arith.constant 0 : index
    %c0_134 = arith.constant 0 : index
    %c0_135 = arith.constant 0 : index
    %228 = vector.load %arg12[%c0_132, %c0_133, %c0_134, %c0_135] : memref<1x16x16x128xf32, #tpu.memory_space<vmem>>, vector<1x16x16x128xf32>
    %229 = vector.shape_cast %228 : vector<1x16x16x128xf32> to vector<16x16x128xf32>
    %230 = vector.shape_cast %227 : vector<16x16x128xf32> to vector<1x16x16x128xf32>
    tpu.vector_store %arg12[%c0_132, %c0_133, %c0_134, %c0_135], %230 {strides = array<i32>} : memref<1x16x16x128xf32, #tpu.memory_space<vmem>>, vector<1x16x16x128xf32>,
    return
  }
  func.func @transform_0(%arg0: i32) -> (i32, i32, i32, i32) {
    %c0_i32 = arith.constant 0 : i32
    %c0_i32_0 = arith.constant 0 : i32
    %c0_i32_1 = arith.constant 0 : i32
    %c0_i32_2 = arith.constant 0 : i32
    return %arg0, %c0_i32, %c0_i32_0, %c0_i32_1 : i32, i32, i32, i32
  }
  func.func @transform_1(%arg0: i32) -> (i32, i32) {
    %c0_i32 = arith.constant 0 : i32
    %c0_i32_0 = arith.constant 0 : i32
    %c0_i32_1 = arith.constant 0 : i32
    return %c0_i32, %c0_i32_0 : i32, i32
  }
  func.func @transform_2(%arg0: i32) -> (i32, i32, i32, i32) {
    %c0_i32 = arith.constant 0 : i32
    %c0_i32_0 = arith.constant 0 : i32
    %c0_i32_1 = arith.constant 0 : i32
    %c0_i32_2 = arith.constant 0 : i32
    %c0_i32_3 = arith.constant 0 : i32
    return %c0_i32, %c0_i32_0, %c0_i32_1, %c0_i32_2 : i32, i32, i32, i32
  }
  func.func @transform_3(%arg0: i32) -> (i32, i32, i32, i32) {
    %c0_i32 = arith.constant 0 : i32
    %c0_i32_0 = arith.constant 0 : i32
    %c0_i32_1 = arith.constant 0 : i32
    %c0_i32_2 = arith.constant 0 : i32
    %c0_i32_3 = arith.constant 0 : i32
    return %c0_i32, %c0_i32_0, %c0_i32_1, %c0_i32_2 : i32, i32, i32, i32
  }
  func.func @transform_4(%arg0: i32) -> (i32, i32, i32, i32) {
    %c0_i32 = arith.constant 0 : i32
    %c0_i32_0 = arith.constant 0 : i32
    %c0_i32_1 = arith.constant 0 : i32
    %c0_i32_2 = arith.constant 0 : i32
    %c0_i32_3 = arith.constant 0 : i32
    return %c0_i32, %c0_i32_0, %c0_i32_1, %c0_i32_2 : i32, i32, i32, i32
  }
  func.func @transform_5(%arg0: i32) -> (i32, i32) {
    %c0_i32 = arith.constant 0 : i32
    %c0_i32_0 = arith.constant 0 : i32
    %c0_i32_1 = arith.constant 0 : i32
    return %c0_i32, %c0_i32_0 : i32, i32
  }
  func.func @transform_6(%arg0: i32) -> (i32, i32) {
    %c0_i32 = arith.constant 0 : i32
    %c0_i32_0 = arith.constant 0 : i32
    %c0_i32_1 = arith.constant 0 : i32
    return %c0_i32, %c0_i32_0 : i32, i32
  }
  func.func @transform_7(%arg0: i32) -> (i32, i32) {
    %c0_i32 = arith.constant 0 : i32
    %c0_i32_0 = arith.constant 0 : i32
    %c0_i32_1 = arith.constant 0 : i32
    return %c0_i32, %c0_i32_0 : i32, i32
  }
  func.func @transform_8(%arg0: i32) -> (i32, i32) {
    %c0_i32 = arith.constant 0 : i32
    %c0_i32_0 = arith.constant 0 : i32
    %c0_i32_1 = arith.constant 0 : i32
    return %c0_i32, %c0_i32_0 : i32, i32
  }
  func.func @transform_9(%arg0: i32) -> (i32, i32) {
    %c0_i32 = arith.constant 0 : i32
    %c0_i32_0 = arith.constant 0 : i32
    %c0_i32_1 = arith.constant 0 : i32
    return %c0_i32, %c0_i32_0 : i32, i32
  }
  func.func @transform_10(%arg0: i32) -> (i32, i32) {
    %c0_i32 = arith.constant 0 : i32
    %c0_i32_0 = arith.constant 0 : i32
    %c0_i32_1 = arith.constant 0 : i32
    return %c0_i32, %c0_i32_0 : i32, i32
  }
  func.func @transform_11(%arg0: i32) -> (i32, i32, i32, i32) {
    %c0_i32 = arith.constant 0 : i32
    %c0_i32_0 = arith.constant 0 : i32
    %c0_i32_1 = arith.constant 0 : i32
    %c0_i32_2 = arith.constant 0 : i32
    return %arg0, %c0_i32, %c0_i32_0, %c0_i32_1 : i32, i32, i32, i32
  }
}

</mosaic_0001>

<bundles_post_ra>
// kernel: tpu_custom_call.1
= control target key start
LH: loop header
LB: loop body
LE: loop exit
PB: predicated region body
PF: predicated region fallthrough
CT: control target
= control target key end

     0   :  { %s26244_s0 = inlined_call_operand.vmem [shape: bf16[2,16,16,128], index: 0, kind: input, shape index: {}]   ;;  %s26245_s1 = inlined_call_operand.vmem [shape: f32[384,1], index: 1, kind: input, shape index: {}]   ;;  %s26246_s2 = inlined_call_operand.hbm [shape: bf16[3,3,128,128], index: 2, kind: input, shape index: {}]   ;;  %s26247_s3 = inlined_call_operand.hbm [shape: bf16[3,3,128,128], index: 3, kind: input, shape index: {}]   ;;  %s26248_s4 = inlined_call_operand.hbm [shape: bf16[3,3,128,128], index: 4, kind: input, shape index: {}]   ;;  %s26249_s5 = inlined_call_operand.vmem [shape: f32[1,128], index: 5, kind: input, shape index: {}]   ;;  %s26250_s6 = inlined_call_operand.vmem [shape: f32[1,128], index: 6, kind: input, shape index: {}]   ;;  %s26251_s7 = inlined_call_operand.vmem [shape: f32[1,128], index: 7, kind: input, shape index: {}]   ;;  %s26252_s8 = inlined_call_operand.vmem [shape: f32[1,128], index: 8, kind: input, shape index: {}]   ;;  %s26253_s9 = inlined_call_operand.vmem [shape: f32[1,128], index: 9, kind: input, shape index: {}]   ;;  %s26254_s10 = inlined_call_operand.vmem [shape: f32[1,128], index: 10, kind: input, shape index: {}]   ;;  %s26255_s11 = inlined_call_operand.hbm [shape: f32[2,16,16,128], index: 11, kind: output, shape index: {}]  }
   0x1   :  { %26318 = sst [smem:[#allocation59_spill]] %s26255_s11 }
   0x2   :  { %16 = vsyncpa [#allocation4], 0 }
   0x3   :  { %17 = vsyncpa [#allocation7], 0 }
   0x4   :  { %18 = vsyncpa [#allocation5], 0 }
   0x5   :  { %20 = vsyncpa [#allocation5 + $0x1], 0  ;;  %s22936_s17 = smov 0   ;;  %s22938_s18 = smov 0  }
   0x6   :  { %s22940_s19 = smov 0   ;;  %s22942_s20 = smov 0  }
   0x7 LB: > { %26319 = sst [smem:[#allocation13_spill]] %s22853_s17  ;;  %s22957_s21 = sadd.s32 4294967295, %s22865_s20   ;;  %s22865_s20 = sphi %s22942_s20, %s26515_s20   ;;  %s22861_s19 = sphi %s22940_s19, %s26517_s19   ;;  %s22857_s18 = sphi %s22938_s18, %s26519_s18   ;;  %s22853_s17 = sphi %s22936_s17, %s26518_s17  }
   0x8   : > { %26320 = sst [smem:[#allocation14_spill]] %s22861_s19  ;;  %s17358_s22 = sadd.s32 4294967294, %s22865_s20  }
   0x9   : > { %26321 = sst [smem:[#allocation15_spill]] %s22865_s20  ;;  %s22961_s23 = sadd.s32 1, %s22865_s20  }
   0xa   : > { %26322 = sst [smem:[#allocation16_spill]] %s22961_s23  ;;  %s269_s24 = sadd.s32 1, %s22861_s19 }
   0xb   : > { %s266_s25 = ssub.s32 %s22865_s20, %s22961_s23  ;;  %p279_p0 = scmp.ne.s32.totalorder %s22861_s19, %s22857_s18 }
   0xc   : > { %p267_p1 = scmp.eq.s32.totalorder %s266_s25, 0  ;;  %p280_p2 = scmp.eq.s32.totalorder %s22957_s21, 1 }
   0xd   : > { %p285_p3 = scmp.ne.s32.totalorder %s22857_s18, %s22853_s17  ;;  %p286_p4 = scmp.eq.s32.totalorder %s17358_s22, 1 }
   0xe   : > { %s22972_s26 = scalar_select %p267_p1, %s22861_s19, %s269_s24  }
   0xf   : > { %p22974_p5 = por %p280_p2, %p279_p0  ;;  %p22978_p6 = por %p286_p4, %p285_p3 }
  0x10   : > { %26323 = sst [smem:[#allocation17_spill]] %s22972_s26  ;;  %p17359_p7 = scmp.ge.s32.totalorder %s22865_s20, 1 }
  0x11   : > { %s26324_s27 = scalar_select %p22974_p5, 1, 0 }
  0x12   : > { %s26325_s28 = scalar_select %p22978_p6, 1, 0 }
  0x13   : > { %p293_p8 = scmp.lt.s32.totalorder %s22865_s20, 3  ;;  %p26259_p9 = scmp.eq.s32.totalorder %s22957_s21, 0 }
  0x14   : > { %26326 = sst [smem:[#allocation18_spill]] %s26325_s28  ;;  %s22867_s30 = smov [#allocation6]  }
  0x15   : > { %p22985_p10 = pnand %p17359_p7, %p293_p8  ;;  %s321_s12 = sshll.u32 %s22867_s30, 4  ;;  %s22991_s12 = int_to_ptr.vmem [resolvable:$true] %s321_s12 }
  0x16   : > { %s22868_s14 = smov [#allocation3]   ;;  %s22869_s16 = smov [#allocation8]  }
  0x17   : > { %s26327_s29 = scalar_select %p22985_p10, 1, 0 }
  0x18   : > { %p21944_p11 = pneg %p22985_p10  ;;  %s308_s15 = sshll.u32 %s22868_s14, 4  ;;  %s22999_s15 = int_to_ptr.vmem [resolvable:$true] %s308_s15 }
  0x19   : > { %s23001_s22 = sshll.u32 %s22869_s16, 4  ;;  %s22711_s26 = scalar_lea.hbm %s26247_s3, 9216  ;;  %s335_s22 = int_to_ptr.vmem [resolvable:$true] %s23001_s22 }
  0x1a   : > { %p22995_p12 = pnand %p26259_p9, %p21944_p11  ;;  %p22712_p13 = scmp.ne.s32.totalorder %s26247_s3, %s22711_s26 }
  0x1b   : > { %p22718_p3 = scmp.lt.u32.totalorder %s22711_s26, %s26247_s3 }
  0x1c   : > { %p23011_p0 = pneg %p22995_p12 }
  0x1e   : > { %p22714_p1 = pnand %p23011_p0, %p22712_p13 }
  0x20   : > { %p22715_p2 = pneg %p22714_p1 }
  0x22   : > { %p22720_p4 = pnand %p22718_p3, %p22715_p2 }
  0x24   : > { %22723 = shalt.err (!%p22720_p4)
}
  0x25   : > { %s22724_s19 = scalar_lea.vmem %s22991_s12, 9216  ;;  %p22732_p9 = scmp.lt.s32.totalorder %s22991_s12, %s22991_s12 }
  0x26   : > { %p22725_p7 = scmp.ne.s32.totalorder %s22991_s12, %s22724_s19  ;;  %p22733_p6 = scmp.lt.s32.totalorder %s22724_s19, %s22724_s19 }
  0x28   : > { %p22727_p8 = pnand %p22725_p7, %p23011_p0  ;;  %p22734_p13 = por %p22733_p6, %p22732_p9 }
  0x2a   : > { %p22728_p11 = pneg %p22727_p8 }
  0x2c   : > { %p22735_p1 = pnand %p22734_p13, %p22728_p11 }
  0x2e   : > { %22738 = shalt.err (!%p22735_p1)
}
  0x2f   : > { %s22870_s24 = smov 64   ;;  %s22871_s26 = smov 4  }
  0x30   : > { %21950 = dma.hbm_to_vmem [thread:$0]  (!%p22995_p12), %s26247_s3, 9216, %s22991_s12, [#allocation7], %s22870_s24, %s22870_s24, %s22871_s26  }
  0x31   : > { %s22739_s19 = scalar_lea.hbm %s26246_s2, 9216 }
  0x32   : > { %p22740_p6 = scmp.ne.s32.totalorder %s26246_s2, %s22739_s19  ;;  %p22746_p3 = scmp.lt.u32.totalorder %s22739_s19, %s26246_s2 }
  0x34   : > { %p22742_p9 = pnand %p22740_p6, %p23011_p0 }
  0x36   : > { %p22743_p2 = pneg %p22742_p9 }
  0x38   : > { %p22748_p4 = pnand %p22746_p3, %p22743_p2 }
  0x3a   : > { %22751 = shalt.err (!%p22748_p4)
}
  0x3b   : > { %s22752_s12 = scalar_lea.vmem %s22999_s15, 9216  ;;  %p22760_p13 = scmp.lt.s32.totalorder %s22999_s15, %s22999_s15 }
  0x3c   : > { %p22753_p7 = scmp.ne.s32.totalorder %s22999_s15, %s22752_s12  ;;  %p22761_p1 = scmp.lt.s32.totalorder %s22752_s12, %s22752_s12 }
  0x3e   : > { %p22755_p8 = pnand %p22753_p7, %p23011_p0  ;;  %p22762_p6 = por %p22761_p1, %p22760_p13 }
  0x40   : > { %p22756_p11 = pneg %p22755_p8 }
  0x42   : > { %p22763_p9 = pnand %p22762_p6, %p22756_p11 }
  0x44   : > { %22766 = shalt.err (!%p22763_p9)
}
  0x45   : > { %21947 = dma.hbm_to_vmem [thread:$0]  (!%p22995_p12), %s26246_s2, 9216, %s22999_s15, [#allocation4], %s22870_s24, %s22870_s24, %s22871_s26  }
  0x46   : > { %s22767_s25 = scalar_lea.hbm %s26248_s4, 9216 }
  0x47   : > { %p22768_p2 = scmp.ne.s32.totalorder %s26248_s4, %s22767_s25  ;;  %p22774_p7 = scmp.lt.u32.totalorder %s22767_s25, %s26248_s4 }
  0x49   : > { %p22770_p3 = pnand %p22768_p2, %p23011_p0 }
  0x4b   : > { %p22771_p4 = pneg %p22770_p3 }
  0x4d   : > { %p22776_p8 = pnand %p22774_p7, %p22771_p4 }
  0x4f   : > { %22779 = shalt.err (!%p22776_p8)
}
  0x50   : > { %s22780_s12 = scalar_lea.vmem %s335_s22, 9216  ;;  %p22788_p6 = scmp.lt.s32.totalorder %s335_s22, %s335_s22 }
  0x51   : > { %p22781_p11 = scmp.ne.s32.totalorder %s335_s22, %s22780_s12  ;;  %p22789_p9 = scmp.lt.s32.totalorder %s22780_s12, %s22780_s12 }
  0x53   : > { %p22783_p13 = pnand %p22781_p11, %p23011_p0  ;;  %p22790_p5 = por %p22789_p9, %p22788_p6 }
  0x55   : > { %p22784_p1 = pneg %p22783_p13 }
  0x57   : > { %p22791_p10 = pnand %p22790_p5, %p22784_p1 }
  0x59   : > { %22794 = shalt.err (!%p22791_p10)
}
  0x5a   : > { %21953 = dma.hbm_to_vmem [thread:$0]  (!%p22995_p12), %s26248_s4, 9216, %s335_s22, [#allocation7], %s22870_s24, %s22870_s24, %s22871_s26  }
  0x5b   : > { %p26330_p2 = scmp.ne.s32.totalorder %s26327_s29, 0 }
  0x5d   : > { %376 = sbr.rel (%p26330_p2) target bundleno = 2985 (0xba9), region = 64 }
  0x64   : > { %p26331_p0 = scmp.eq.s32.totalorder %s22957_s21, 0 }
  0x66   : > { %22840 = dma.done.wait (%p26331_p0), [#allocation4], 9216   ;;  %p26332_p3 = pmov %p26331_p0 }
  0x67   : > { %p26333_p5 = pmov %p26331_p0 }
  0x68   : > { %22842 = vsyncadd (%p26332_p3), [#allocation4], 4294958080 }
  0x69   : > { %22844 = dma.done.wait (%p26333_p5), [#allocation7], 18432   ;;  %p26334_p10 = pmov %p26331_p0 }
  0x6a   : > { %v22872_v0 = vmov 0   ;;  %v22007_v1 = vld [vmem:[#allocation3 + $0x40] sm:$0xff]   ;;  %v22009_v3 = vld [vmem:[#allocation3 + $0x48] sm:$0xff]   ;;  %p424_p12 = scmp.lt.s32.totalorder %s22957_s21, 1  ;;  %v22011_v5 = vld [vmem:[#allocation3 + $0x50] sm:$0xff]   ;;  %vm519_vm0 = vcmask 1040384  }
  0x6b   : > { %22846 = vsyncadd (%p26334_p10), [#allocation7], 4294948864  ;;  %430 = vst [vmem:[#allocation2] sm:$0xf] %v22872_v0  ;;  %22005 = vset.pattern.permute.xlu0 %v22872_v0  ;;  %22006 = vset.pattern.permute.xlu1 %v22872_v0  ;;  %v22008_v2 = vld [vmem:[#allocation3 + $0x100] sm:$0xff]   ;;  %v22010_v4 = vld [vmem:[#allocation3 + $0x108] sm:$0xff]  }
  0x6c   : > { %431 = vst [vmem:[#allocation2 + $0x4] sm:$0xf] %v22872_v0  ;;  %432 = vst [vmem:[#allocation2 + $0x8] sm:$0xf] %v22872_v0  ;;  %19034 = vmatprep.subr.bf16.mxu1 %v22007_v1  ;;  %19290 = vmatprep.subr.bf16.mxu0 %v22008_v2  ;;  %v22012_v6 = vld [vmem:[#allocation3 + $0x110] sm:$0xff]   ;;  %s425_s23 = scalar_select %p424_p12, %s22957_s21, 1 }
  0x6d   : > { %433 = vst [vmem:[#allocation2 + $0xc] sm:$0xf] %v22872_v0  ;;  %434 = vst [vmem:[#allocation2 + $0x10] sm:$0xf] %v22872_v0  ;;  %19035 = vmatpush3.bf16.msra.mxu1 %v22007_v1  ;;  %19291 = vmatpush3.bf16.msra.mxu0 %v22008_v2  ;;  %v22013_v7 = vld [vmem:[#allocation3 + $0x58] sm:$0xff]   ;;  %v22015_v9 = vld [vmem:[#allocation3 + $0x60] sm:$0xff]  }
  0x6e   : > { %435 = vst [vmem:[#allocation2 + $0x14] sm:$0xf] %v22872_v0  ;;  %436 = vst [vmem:[#allocation2 + $0x18] sm:$0xf] %v22872_v0  ;;  %19036 = vmatprep.subr.bf16.mxu1 %v22009_v3  ;;  %19292 = vmatprep.subr.bf16.mxu0 %v22010_v4  ;;  %v22014_v8 = vld [vmem:[#allocation3 + $0x118] sm:$0xff]   ;;  %s18072_s29 = sshll.u32 %s425_s23, 7 }
  0x6f   : > { %437 = vst [vmem:[#allocation2 + $0x1c] sm:$0xf] %v22872_v0  ;;  %438 = vst [vmem:[#allocation2 + $0x20] sm:$0xf] %v22872_v0  ;;  %v22016_v10 = vld [vmem:[#allocation3 + $0x120] sm:$0xff]   ;;  %s23098_s24 = scalar_lea.vmem %s26244_s0, %s18072_s29  ;;  %v22017_v11 = vld [vmem:[#allocation3 + $0x68] sm:$0xff]  }
  0x70   : > { %439 = vst [vmem:[#allocation2 + $0x24] sm:$0xf] %v22872_v0  ;;  %440 = vst [vmem:[#allocation2 + $0x28] sm:$0xf] %v22872_v0  ;;  %vm520_vm1 = vcmask 1044484   ;;  %v22018_v15 = vld [vmem:[#allocation3 + $0x128] sm:$0xff]  }
  0x71   : > { %441 = vst [vmem:[#allocation2 + $0x2c] sm:$0xf] %v22872_v0  ;;  %442 = vst [vmem:[#allocation2 + $0x30] sm:$0xf] %v22872_v0  ;;  %19037 = vmatpush3.bf16.msra.mxu1 %v22009_v3  ;;  %19293 = vmatpush3.bf16.msra.mxu0 %v22010_v4  ;;  %v485_v12 = vld [vmem:[%s23098_s24] sm:$0xf] }
  0x72   : > { %443 = vst [vmem:[#allocation2 + $0x34] sm:$0xf] %v22872_v0  ;;  %444 = vst [vmem:[#allocation2 + $0x38] sm:$0xf] %v22872_v0  ;;  %19038 = vmatprep.subr.bf16.mxu1 %v22011_v5  ;;  %19294 = vmatprep.subr.bf16.mxu0 %v22012_v6  ;;  %v920_v13 = vld [vmem:[#allocation2] sm:$0xf] }
  0x73   : > { %445 = vst [vmem:[#allocation2 + $0x3c] sm:$0xf] %v22872_v0  ;;  %446 = vst [vmem:[#allocation2 + $0x40] sm:$0xf] %v22872_v0  ;;  %v921_v14 = vld [vmem:[#allocation2 + $0x4] sm:$0xf] }
  0x74   : > { %447 = vst [vmem:[#allocation2 + $0x44] sm:$0xf] %v22872_v0  ;;  %448 = vst [vmem:[#allocation2 + $0x48] sm:$0xf] %v22872_v0  ;;  %v522_v16 = vrot.slane %v485_v12, 7  ;;  %v23101_v17 = vcombine.low %v920_v13, %v921_v14  ;;  %v22019_v22 = vld [vmem:[#allocation3 + $0x70] sm:$0xff]  }
  0x75   : > { %449 = vst [vmem:[#allocation2 + $0x4c] sm:$0xf] %v22872_v0  ;;  %450 = vst [vmem:[#allocation2 + $0x50] sm:$0xf] %v22872_v0  ;;  %19039 = vmatpush3.bf16.msra.mxu1 %v22011_v5  ;;  %19295 = vmatpush3.bf16.msra.mxu0 %v22012_v6  ;;  %v486_v18 = vld [vmem:[%s23098_s24 + $0x4] sm:$0xf] }
  0x76   : > { %451 = vst [vmem:[#allocation2 + $0x54] sm:$0xf] %v22872_v0  ;;  %452 = vst [vmem:[#allocation2 + $0x58] sm:$0xf] %v22872_v0  ;;  %19040 = vmatprep.subr.bf16.mxu1 %v22013_v7  ;;  %19296 = vmatprep.subr.bf16.mxu0 %v22014_v8  ;;  %v487_v19 = vld [vmem:[%s23098_s24 + $0x8] sm:$0xf] }
  0x77   : > { %453 = vst [vmem:[#allocation2 + $0x5c] sm:$0xf] %v22872_v0  ;;  %454 = vst [vmem:[#allocation2 + $0x60] sm:$0xf] %v22872_v0  ;;  %v524_v21 = vrot.slane %v486_v18, 7  ;;  %v1096_v23 = vshll.u32 %v23101_v17, 16 }
  0x78   : > { %455 = vst [vmem:[#allocation2 + $0x64] sm:$0xf] %v22872_v0  ;;  %456 = vst [vmem:[#allocation2 + $0x68] sm:$0xf] %v22872_v0  ;;  %v523_v24 = vrot.slane %v522_v16, 4  ;;  %v535_v25 = vrot.slane %v487_v19, 7 }
  0x79   : > { %457 = vst [vmem:[#allocation2 + $0x6c] sm:$0xf] %v22872_v0  ;;  %458 = vst [vmem:[#allocation2 + $0x70] sm:$0xf] %v22872_v0  ;;  %19041 = vmatpush3.bf16.msra.mxu1 %v22013_v7  ;;  %19297 = vmatpush3.bf16.msra.mxu0 %v22014_v8  ;;  %v1094_v26 = vshrl.u32 %v23101_v17, 16  ;;  %v526_v27 = vrot.slane %v524_v21, 4 }
  0x7a   : > { %459 = vst [vmem:[#allocation2 + $0x74] sm:$0xf] %v22872_v0  ;;  %460 = vst [vmem:[#allocation2 + $0x78] sm:$0xf] %v22872_v0  ;;  %19042 = vmatprep.subr.bf16.mxu1 %v22015_v9  ;;  %19298 = vmatprep.subr.bf16.mxu0 %v22016_v10  ;;  %v488_v28 = vld [vmem:[%s23098_s24 + $0xc] sm:$0xf] }
  0x7b   : > { %461 = vst [vmem:[#allocation2 + $0x7c] sm:$0xf] %v22872_v0  ;;  %462 = vst [vmem:[#allocation2 + $0x80] sm:$0xf] %v22872_v0  ;;  %v22020_v29 = vld [vmem:[#allocation3 + $0x130] sm:$0xff]   ;;  %v1098_v30 = vrot.slane %v1096_v23, 1 }
  0x7c   : > { %463 = vst [vmem:[#allocation2 + $0x84] sm:$0xf] %v22872_v0  ;;  %464 = vst [vmem:[#allocation2 + $0x88] sm:$0xf] %v22872_v0  ;;  %vm1092_vm3 = vsmask.f32 7424 }
  0x7d   : > { %465 = vst [vmem:[#allocation2 + $0x8c] sm:$0xf] %v22872_v0  ;;  %466 = vst [vmem:[#allocation2 + $0x90] sm:$0xf] %v22872_v0  ;;  %19043 = vmatpush3.bf16.msra.mxu1 %v22015_v9  ;;  %19299 = vmatpush3.bf16.msra.mxu0 %v22016_v10  ;;  %v536_v32 = vrot.slane %v535_v25, 4  ;;  %v537_v33 = vrot.slane %v488_v28, 7  ;;  %v1099_v53 = vor.u32 %v1098_v30, %v1094_v26 }
  0x7e   : > { %467 = vst [vmem:[#allocation2 + $0x94] sm:$0xf] %v22872_v0  ;;  %468 = vst [vmem:[#allocation2 + $0x98] sm:$0xf] %v22872_v0  ;;  %19044 = vmatprep.subr.bf16.mxu1 %v22017_v11  ;;  %19300 = vmatprep.subr.bf16.mxu0 %v22018_v15  ;;  %v22021_v34 = vld [vmem:[#allocation3 + $0x78] sm:$0xff]   ;;  %v23120_v46 = vld [vmem:[#allocation3] sm:$0xff]  }
  0x7f   : > { %469 = vst [vmem:[#allocation2 + $0x9c] sm:$0xf] %v22872_v0  ;;  %470 = vst [vmem:[#allocation2 + $0xa0] sm:$0xf] %v22872_v0  ;;  %v489_v35 = vld [vmem:[%s23098_s24 + $0x10] sm:$0xf] }
  0x80   : > { %471 = vst [vmem:[#allocation2 + $0xa4] sm:$0xf] %v22872_v0  ;;  %472 = vst [vmem:[#allocation2 + $0xa8] sm:$0xf] %v22872_v0  ;;  %v539_v37 = vrot.slane %v537_v33, 4  ;;  %v548_v39 = vrot.slane %v489_v35, 7 }
  0x81   : > { %473 = vst [vmem:[#allocation2 + $0xac] sm:$0xf] %v22872_v0  ;;  %474 = vst [vmem:[#allocation2 + $0xb0] sm:$0xf] %v22872_v0  ;;  %19045 = vmatpush3.bf16.msra.mxu1 %v22017_v11  ;;  %v490_v38 = vld [vmem:[%s23098_s24 + $0x14] sm:$0xf]  ;;  %19301 = vmatpush3.bf16.msra.mxu0 %v22018_v15 }
  0x82   : > { %475 = vst [vmem:[#allocation2 + $0xb4] sm:$0xf] %v22872_v0  ;;  %476 = vst [vmem:[#allocation2 + $0xb8] sm:$0xf] %v22872_v0  ;;  %v491_v40 = vld [vmem:[%s23098_s24 + $0x18] sm:$0xf]  ;;  %19046 = vmatprep.subr.bf16.mxu1 %v22019_v22  ;;  %19302 = vmatprep.subr.bf16.mxu0 %v22020_v29 }
  0x83   : > { %477 = vst [vmem:[#allocation2 + $0xbc] sm:$0xf] %v22872_v0  ;;  %478 = vst [vmem:[#allocation2 + $0xc0] sm:$0xf] %v22872_v0  ;;  %v550_v41 = vrot.slane %v490_v38, 7  ;;  %v561_v42 = vrot.slane %v491_v40, 7 }
  0x84   : > { %479 = vst [vmem:[#allocation2 + $0xc4] sm:$0xf] %v22872_v0  ;;  %480 = vst [vmem:[#allocation2 + $0xc8] sm:$0xf] %v22872_v0  ;;  %v22022_v43 = vld [vmem:[#allocation3 + $0x138] sm:$0xff]   ;;  %v549_v44 = vrot.slane %v548_v39, 4 }
  0x85   : > { %481 = vst [vmem:[#allocation2 + $0xcc] sm:$0xf] %v22872_v0  ;;  %482 = vst [vmem:[#allocation2 + $0xd0] sm:$0xf] %v22872_v0  ;;  %v552_v47 = vrot.slane %v550_v41, 4  ;;  %19047 = vmatpush3.bf16.msra.mxu1 %v22019_v22  ;;  %v23122_v49 = vld [vmem:[#allocation3 + $0x140] sm:$0xff]   ;;  %19303 = vmatpush3.bf16.msra.mxu0 %v22020_v29 }
  0x86   : > { %483 = vst [vmem:[#allocation2 + $0xd4] sm:$0xf] %v22872_v0  ;;  %484 = vst [vmem:[#allocation2 + $0xd8] sm:$0xf] %v22872_v0  ;;  %v562_v51 = vrot.slane %v561_v42, 4  ;;  %19048 = vmatprep.subr.bf16.mxu1 %v22021_v34  ;;  %19304 = vmatprep.subr.bf16.mxu0 %v22022_v43  ;;  %v22036_v19 = vld [vmem:[#allocation3 + $0x8] sm:$0xff]  }
  0x87   : > { %vm23106_vm2 = vmor %vm519_vm0, %vm520_vm1  ;;  %530 = vst [vmem:[#allocation2 + $0xc] sm:$0xe] %v522_v16  ;;  %v23127_v52 = vld [vmem:[%s23098_s24 + $0x1c] sm:$0xf]  ;;  %v22031_v23 = vld [vmem:[#allocation3 + $0x148] sm:$0xff]   ;;  %vm1887_vm4 = vcmask 1046528  }
  0x88   : > { %v525_v31 = vsel %vm23106_vm2, %v523_v24, %v524_v21  ;;  %543 = vst [vmem:[#allocation2 + $0x18] sm:$0xe] %v535_v25  ;;  %532 = vst [vmem:[#allocation2 + $0x14] sm:$0x1] %v526_v27  ;;  %v538_v36 = vsel %vm23106_vm2, %v536_v32, %v537_v33  ;;  %v551_v50 = vsel %vm23106_vm2, %v549_v44, %v550_v41  ;;  %v563_v58 = vrot.slane %v23127_v52, 7  ;;  %v22046_v52 = vld [vmem:[#allocation3 + $0x10] sm:$0xff]  }
  0x89   : > { %531 = vst [vmem:[#allocation2 + $0x10] sm:$0xf] %v525_v31  ;;  %544 = vst [vmem:[#allocation2 + $0x1c] sm:$0xf] %v538_v36  ;;  %19049 = vmatpush3.bf16.msra.mxu1 %v22021_v34  ;;  %19305 = vmatpush3.bf16.msra.mxu0 %v22022_v43  ;;  %v493_v36 = vld [vmem:[%s23098_s24 + $0x20] sm:$0xf] }
  0x8a   : > { %545 = vst [vmem:[#allocation2 + $0x20] sm:$0x1] %v539_v37  ;;  %556 = vst [vmem:[#allocation2 + $0x24] sm:$0xe] %v548_v39  ;;  %v564_v0 = vsel %vm23106_vm2, %v562_v51, %v563_v58  ;;  %19098 = vmatprep.subr.bf16.mxu1 %v23120_v46  ;;  %19354 = vmatprep.subr.bf16.mxu0 %v23122_v49  ;;  %v494_v51 = vld [vmem:[%s23098_s24 + $0x24] sm:$0xf] }
  0x8b   : > { %569 = vst [vmem:[#allocation2 + $0x30] sm:$0xe] %v561_v42  ;;  %557 = vst [vmem:[#allocation2 + $0x28] sm:$0xf] %v551_v50  ;;  %vm6603_vm5 = vcmask 1043456   ;;  %s421_s15 = sand.u32 1, %s22857_s18  }
  0x8c   : > { %558 = vst [vmem:[#allocation2 + $0x2c] sm:$0x1] %v552_v47  ;;  %570 = vst [vmem:[#allocation2 + $0x34] sm:$0xf] %v564_v0  ;;  %vm6604_vm6 = vsmask.f32 7938 }
  0x8d   : > { %vm6120_vm7 = vsmask.f32 256  ;;  %vm6121_vm8 = vsmask.f32 4368  ;;  %vm23900_vm9 = vmand %vm6603_vm5, %vm6604_vm6  ;;  %s17368_s22 = sshll.u32 %s421_s15, 8  ;;  %s18169_s26 = sshll.u32 %s22957_s21, 12 }
  0x8e   : > { %v22024_v45 = vld [vmem:[#allocation2 + $0x8] sm:$0xff]   ;;  %vm23907_vm10 = vmor %vm6120_vm7, %vm6121_vm8  ;;  %s26509_s25 = sld [smem:[#allocation59_spill]]  ;;  %s26203_s21 = scalar_lea.sflag [#allocation5], %s421_s15 }
  0x8f   : > { %v2795_v48 = vld [vmem:[#allocation2 + $0xc] sm:$0xf]  ;;  %v1101_v54 = vshll.u32 %v22024_v45, 16  ;;  %v1105_v55 = vshrl.u32 %v22024_v45, 16  ;;  %v23131_v57 = vld [vmem:[#allocation2 + $0x14] sm:$0xff]   ;;  %v565_v45 = vrot.slane %v563_v58, 4  ;;  %vm24577_vm11 = vmand %vm519_vm0, %vm6120_vm7 }
  0x90   : > { %v23129_v56 = vld [vmem:[#allocation2 + $0x10] sm:$0xf]  ;;  %v2975_v62 = vshll.u32 %v23131_v57, 16  ;;  %v2979_v63 = vshrl.u32 %v23131_v57, 16  ;;  %v22032_v5 = vld [vmem:[#allocation2 + $0x18] sm:$0xff]   ;;  %p26510_p7 = scmp.ne.s32.totalorder %s26324_s27, 0 }
  0x91   : > { %v1103_v59 = vrot.slane %v1101_v54, 1  ;;  %v17453_v60 = vcombine.low %v2795_v48, %v23129_v56  ;;  %v22027_v61 = vld [vmem:[#allocation2 + $0x10] sm:$0xff]   ;;  %v23141_v4 = vld [vmem:[#allocation2 + $0x1c] sm:$0xff]   ;;  %v1117_v13 = vshll.u32 %v22032_v5, 16  ;;  %v1121_v25 = vshrl.u32 %v22032_v5, 16  ;;  %s22873_s16 = smov [#allocation9]  }
  0x92   : > { %v2977_v6 = vrot.slane %v2975_v62, 1  ;;  %v1109_v8 = vshll.u32 %v22027_v61, 16  ;;  %v1113_v9 = vshrl.u32 %v22027_v61, 16  ;;  %v22034_v10 = vld [vmem:[#allocation2 + $0x20] sm:$0xff]   ;;  %v2983_v12 = vshll.u32 %v23141_v4, 16  ;;  %v22037_v54 = vld [vmem:[#allocation3 + $0x150] sm:$0xff]  }
  0x93   : > { %v1104_v1 = vsel %vm1092_vm3, %v1099_v53, %v1103_v59  ;;  %v2968_v2 = vshrl.u32 %v17453_v60, 16  ;;  %v2970_v3 = vshll.u32 %v17453_v60, 16  ;;  %v1107_v7 = vor.u32 %v1105_v55, %v1103_v59  ;;  %v23146_v18 = vld [vmem:[#allocation2 + $0x24] sm:$0xff]   ;;  %v23148_v26 = vld [vmem:[#allocation2 + $0x2c] sm:$0xff]   ;;  %571 = vst [vmem:[#allocation2 + $0x38] sm:$0x1] %v565_v45 }
  0x94   : > { %19050 = vmatprep.mubr.bf16.mxu1 %v1104_v1  ;;  %v2987_v14 = vshrl.u32 %v23141_v4, 16  ;;  %v1111_v15 = vrot.slane %v1109_v8, 1  ;;  %v2981_v16 = vor.u32 %v2979_v63, %v2977_v6  ;;  %v2985_v22 = vrot.slane %v2983_v12, 1  ;;  %v22038_v35 = vld [vmem:[#allocation2 + $0x28] sm:$0xff]   ;;  %v23158_v41 = vld [vmem:[#allocation2 + $0x30] sm:$0xff]   ;;  %s26194_s30 = scalar_lea.hbm %s26509_s25, %s18169_s26  ;;  %s22799_s19 = sshll.u32 %s22873_s16, 4  ;;  %s22800_s19 = int_to_ptr.vmem [resolvable:$false] %s22799_s19 }
  0x95   : > { %v2972_v11 = vrot.slane %v2970_v3, 1  ;;  %v1119_v24 = vrot.slane %v1117_v13, 1  ;;  %v2991_v29 = vshll.u32 %v23146_v18, 16  ;;  %v1125_v30 = vshll.u32 %v22034_v10, 16  ;;  %v495_v63 = vld [vmem:[%s23098_s24 + $0x28] sm:$0xf] }
  0x96   : > { %v1112_v27 = vsel %vm1092_vm3, %v1107_v7, %v1111_v15  ;;  %v1115_v28 = vor.u32 %v1113_v9, %v1111_v15  ;;  %v2986_v32 = vsel %vm1092_vm3, %v2981_v16, %v2985_v22  ;;  %v2989_v33 = vor.u32 %v2987_v14, %v2985_v22  ;;  %v496_v1 = vld [vmem:[%s23098_s24 + $0x2c] sm:$0xf]  ;;  %v22042_v5 = vld [vmem:[#allocation3 + $0x158] sm:$0xff]   ;;  %v497_v13 = vld [vmem:[%s23098_s24 + $0x30] sm:$0xf]  ;;  %s22801_s12 = scalar_lea.vmem %s22800_s19, 8192 }
  0x97   : > { %v2973_v21 = vor.u32 %v2972_v11, %v2968_v2  ;;  %19051 = vmatmul.mubr.bf16.vlgmr.msra.gmra.mrb[0].mxu1 %v1112_v27  ;;  %v1123_v34 = vor.u32 %v1121_v25, %v1119_v24  ;;  %v2993_v38 = vrot.slane %v2991_v29, 1  ;;  %v1127_v39 = vrot.slane %v1125_v30, 1  ;;  %v22054_v14 = vld [vmem:[#allocation3 + $0x18] sm:$0xff]   ;;  %v22048_v16 = vld [vmem:[#allocation3 + $0x160] sm:$0xff]  }
  0x98   : > { %19099 = vmatpush3.bf16.msra.mxu1 %v23120_v46  ;;  %v1120_v37 = vsel %vm1092_vm3, %v1115_v28, %v1119_v24  ;;  %v2995_v40 = vshrl.u32 %v23146_v18, 16  ;;  %v2999_v42 = vshll.u32 %v23148_v26, 16  ;;  %v1129_v43 = vshrl.u32 %v22034_v10, 16  ;;  %v23177_v22 = vld [vmem:[%s23098_s24 + $0x38] sm:$0xf] }
  0x99   : > { %v2978_v31 = vsel %vm1092_vm3, %v2973_v21, %v2977_v6  ;;  %19054 = vmatprep.mubr.bf16.mxu1 %v1120_v37  ;;  %v1133_v44 = vshll.u32 %v22038_v35, 16  ;;  %v2994_v46 = vsel %vm1092_vm3, %v2989_v33, %v2993_v38  ;;  %v1128_v47 = vsel %vm1092_vm3, %v1123_v34, %v1127_v39  ;;  %19100 = vmatprep.subr.bf16.mxu1 %v22036_v19  ;;  %v22049_v37 = vld [vmem:[#allocation3 + $0x168] sm:$0xff]  }
  0x9a   : > { %19306 = vmatprep.mubr.bf16.mxu0 %v2978_v31  ;;  %v2997_v48 = vor.u32 %v2995_v40, %v2993_v38  ;;  %v3003_v50 = vshrl.u32 %v23148_v26, 16  ;;  %v3001_v53 = vrot.slane %v2999_v42, 1  ;;  %v1131_v55 = vor.u32 %v1129_v43, %v1127_v39 }
  0x9b   : > { %19307 = vmatmul.mubr.bf16.vlgmr.msra.gmra.mrb[0].mxu0 %v2986_v32  ;;  %v1135_v58 = vrot.slane %v1133_v44, 1  ;;  %v1141_v59 = vshll.u32 %v23158_v41, 16  ;;  %v574_v60 = vrot.slane %v493_v36, 7  ;;  %v576_v61 = vrot.slane %v494_v51, 7 }
  0x9c   : > { %19355 = vmatpush3.bf16.msra.mxu0 %v23122_v49  ;;  %19310 = vmatprep.mubr.bf16.mxu0 %v2994_v46  ;;  %v1137_v49 = vshrl.u32 %v22038_v35, 16  ;;  %v1145_v62 = vshrl.u32 %v23158_v41, 16  ;;  %v3002_v2 = vsel %vm1092_vm3, %v2997_v48, %v3001_v53  ;;  %v587_v7 = vrot.slane %v495_v63, 7  ;;  %v22055_v48 = vld [vmem:[#allocation3 + $0x170] sm:$0xff]  }
  0x9d   : > { %19356 = vmatprep.subr.bf16.mxu0 %v22031_v23  ;;  %19101 = vmatpush3.bf16.msra.mxu1 %v22036_v19  ;;  %v1136_v0 = vsel %vm1092_vm3, %v1131_v55, %v1135_v58  ;;  %v575_v3 = vrot.slane %v574_v60, 4  ;;  %582 = vst [vmem:[#allocation2 + $0x3c] sm:$0xe] %v574_v60  ;;  %v578_v6 = vrot.slane %v576_v61, 4  ;;  %v1143_v8 = vrot.slane %v1141_v59, 1 }
  0x9e   : > { %19102 = vmatprep.subr.bf16.mxu1 %v22046_v52  ;;  %v589_v9 = vrot.slane %v496_v1, 7  ;;  %v1139_v10 = vor.u32 %v1137_v49, %v1135_v58  ;;  %v588_v12 = vrot.slane %v587_v7, 4  ;;  %595 = vst [vmem:[#allocation2 + $0x48] sm:$0xe] %v587_v7  ;;  %v498_v19 = vld [vmem:[%s23098_s24 + $0x34] sm:$0xf]  ;;  %v3005_v29 = vor.u32 %v3003_v50, %v3001_v53 }
  0x9f   : > { %19055 = vmatmul.mubr.bf16.gmra.mrb[4].mxu1 %v1128_v47  ;;  %v577_v11 = vsel %vm23106_vm2, %v575_v3, %v576_v61  ;;  %584 = vst [vmem:[#allocation2 + $0x44] sm:$0x1] %v578_v6  ;;  %v600_v21 = vrot.slane %v497_v13, 7  ;;  %v602_v25 = vrot.slane %v498_v19, 7  ;;  %v613_v28 = vrot.slane %v23177_v22, 7 }
  0xa0   : > { %19357 = vmatpush3.bf16.msra.mxu0 %v22031_v23  ;;  %19058 = vmatprep.mubr.bf16.mxu1 %v1136_v0  ;;  %583 = vst [vmem:[#allocation2 + $0x40] sm:$0xf] %v577_v11  ;;  %v591_v15 = vrot.slane %v589_v9, 4  ;;  %v23179_v23 = vld [vmem:[#allocation2 + $0x34] sm:$0xff]   ;;  %v590_v24 = vsel %vm23106_vm2, %v588_v12, %v589_v9  ;;  %v1144_v31 = vsel %vm1092_vm3, %v1139_v10, %v1143_v8  ;;  %v500_v9 = vld [vmem:[%s23098_s24 + $0x3c] sm:$0xf] }
  0xa1   : > { %19358 = vmatprep.subr.bf16.mxu0 %v22037_v54  ;;  %19103 = vmatpush3.bf16.msra.mxu1 %v22046_v52  ;;  %596 = vst [vmem:[#allocation2 + $0x4c] sm:$0xf] %v590_v24  ;;  %v601_v27 = vrot.slane %v600_v21, 4  ;;  %608 = vst [vmem:[#allocation2 + $0x54] sm:$0xe] %v600_v21  ;;  %v3007_v30 = vshll.u32 %v23179_v23, 16  ;;  %v1147_v38 = vor.u32 %v1145_v62, %v1143_v8 }
  0xa2   : > { %19104 = vmatprep.subr.bf16.mxu1 %v22054_v14  ;;  %597 = vst [vmem:[#allocation2 + $0x50] sm:$0x1] %v591_v15  ;;  %v604_v32 = vrot.slane %v602_v25, 4  ;;  %621 = vst [vmem:[#allocation2 + $0x60] sm:$0xe] %v613_v28  ;;  %v3011_v36 = vshrl.u32 %v23179_v23, 16 }
  0xa3   : > { %19311 = vmatmul.mubr.bf16.gmra.mrb[4].mxu0 %v3002_v2  ;;  %v603_v34 = vsel %vm23106_vm2, %v601_v27, %v602_v25  ;;  %v3009_v35 = vrot.slane %v3007_v30, 1  ;;  %v22060_v2 = vld [vmem:[#allocation3 + $0x178] sm:$0xff]   ;;  %v614_v27 = vrot.slane %v613_v28, 4 }
  0xa4   : > { %19359 = vmatpush3.bf16.msra.mxu0 %v22037_v54  ;;  %v22043_v33 = vld [vmem:[#allocation2 + $0x38] sm:$0xff]   ;;  %609 = vst [vmem:[#allocation2 + $0x58] sm:$0xf] %v603_v34  ;;  %610 = vst [vmem:[#allocation2 + $0x5c] sm:$0x1] %v604_v32 }
  0xa5   : > { %19360 = vmatprep.subr.bf16.mxu0 %v22042_v5  ;;  %19105 = vmatpush3.bf16.msra.mxu1 %v22054_v14  ;;  %v1149_v39 = vshll.u32 %v22043_v33, 16  ;;  %v3010_v41 = vsel %vm1092_vm3, %v3005_v29, %v3009_v35  ;;  %v1153_v43 = vshrl.u32 %v22043_v33, 16  ;;  %v3013_v50 = vor.u32 %v3011_v36, %v3009_v35  ;;  %v501_v33 = vld [vmem:[%s23098_s24 + $0x40] sm:$0xf] }
  0xa6   : > { %v23191_v40 = vld [vmem:[#allocation2 + $0x44] sm:$0xff]   ;;  %19314 = vmatprep.mubr.bf16.mxu0 %v3010_v41  ;;  %v22064_v34 = vld [vmem:[#allocation3 + $0x20] sm:$0xff]  }
  0xa7   : > { %19059 = vmatmul.mubr.bf16.gmra.mrb[8].mxu1 %v1144_v31  ;;  %v23194_v42 = vld [vmem:[#allocation2 + $0x3c] sm:$0xff]   ;;  %v1151_v44 = vrot.slane %v1149_v39, 1  ;;  %v3023_v45 = vshll.u32 %v23191_v40, 16  ;;  %v3027_v47 = vshrl.u32 %v23191_v40, 16  ;;  %v502_v39 = vld [vmem:[%s23098_s24 + $0x44] sm:$0xf]  ;;  %19106 = vmatprep.subr.bf16.mxu1 %v22064_v34 }
  0xa8   : > { %19361 = vmatpush3.bf16.msra.mxu0 %v22042_v5  ;;  %v22045_v46 = vld [vmem:[#allocation2 + $0x40] sm:$0xff]   ;;  %v3015_v51 = vshll.u32 %v23194_v42, 16  ;;  %v3019_v52 = vshrl.u32 %v23194_v42, 16  ;;  %v22050_v59 = vld [vmem:[#allocation2 + $0x48] sm:$0xff]  }
  0xa9   : > { %19362 = vmatprep.subr.bf16.mxu0 %v22048_v16  ;;  %v1152_v53 = vsel %vm1092_vm3, %v1147_v38, %v1151_v44  ;;  %v3025_v54 = vrot.slane %v3023_v45, 1  ;;  %v1155_v55 = vor.u32 %v1153_v43, %v1151_v44  ;;  %v1157_v58 = vshll.u32 %v22045_v46, 16  ;;  %v23201_v49 = vld [vmem:[#allocation2 + $0x4c] sm:$0xff]   ;;  %v23227_v44 = vld [vmem:[#allocation3 + $0x180] sm:$0xff]   ;;  %19107 = vmatpush3.bf16.msra.mxu1 %v22064_v34 }
  0xaa   : > { %v3017_v60 = vrot.slane %v3015_v51, 1  ;;  %19062 = vmatprep.mubr.bf16.mxu1 %v1152_v53  ;;  %v1161_v61 = vshrl.u32 %v22045_v46, 16  ;;  %v3031_v63 = vshll.u32 %v23201_v49, 16  ;;  %v1165_v0 = vshll.u32 %v22050_v59, 16  ;;  %v22052_v8 = vld [vmem:[#allocation2 + $0x50] sm:$0xff]  }
  0xab   : > { %v1159_v62 = vrot.slane %v1157_v58, 1  ;;  %v23204_v1 = vld [vmem:[#allocation2 + $0x54] sm:$0xff]   ;;  %v3029_v6 = vor.u32 %v3027_v47, %v3025_v54  ;;  %v3035_v7 = vshrl.u32 %v23201_v49, 16  ;;  %v1173_v19 = vshll.u32 %v22052_v8, 16  ;;  %v23212_v21 = vld [vmem:[#allocation2 + $0x5c] sm:$0xff]  }
  0xac   : > { %19363 = vmatpush3.bf16.msra.mxu0 %v22048_v16  ;;  %v3018_v3 = vsel %vm1092_vm3, %v3013_v50, %v3017_v60  ;;  %v3021_v5 = vor.u32 %v3019_v52, %v3017_v60  ;;  %v3033_v11 = vrot.slane %v3031_v63, 1  ;;  %v1167_v13 = vrot.slane %v1165_v0, 1  ;;  %v23217_v29 = vld [vmem:[#allocation2 + $0x58] sm:$0xff]   ;;  %v3508_v50 = vld [vmem:[#allocation2 + $0xc] sm:$0xe] }
  0xad   : > { %19364 = vmatprep.subr.bf16.mxu0 %v22049_v37  ;;  %19315 = vmatmul.mubr.bf16.gmra.mrb[8].mxu0 %v3018_v3  ;;  %v1160_v10 = vsel %vm1092_vm3, %v1155_v55, %v1159_v62  ;;  %v1163_v12 = vor.u32 %v1161_v61, %v1159_v62  ;;  %v3039_v15 = vshll.u32 %v23204_v1, 16  ;;  %v1169_v16 = vshrl.u32 %v22050_v59, 16  ;;  %v504_v60 = vld [vmem:[%s23098_s24 + $0x4c] sm:$0xf]  ;;  %v22068_v62 = vld [vmem:[#allocation3 + $0x28] sm:$0xff]  }
  0xae   : > { %v3026_v14 = vsel %vm1092_vm3, %v3021_v5, %v3025_v54  ;;  %v3037_v25 = vor.u32 %v3035_v7, %v3033_v11  ;;  %v1175_v32 = vrot.slane %v1173_v19, 1  ;;  %v3043_v35 = vshrl.u32 %v23204_v1, 16  ;;  %v503_v54 = vld [vmem:[%s23098_s24 + $0x48] sm:$0xf]  ;;  %v505_v3 = vld [vmem:[%s23098_s24 + $0x50] sm:$0xf]  ;;  %19108 = vmatprep.subr.bf16.mxu1 %v22068_v62 }
  0xaf   : > { %19063 = vmatmul.mubr.bf16.gmra.mrb[12].mxu1 %v1160_v10  ;;  %19318 = vmatprep.mubr.bf16.mxu0 %v3026_v14  ;;  %v1168_v24 = vsel %vm1092_vm3, %v1163_v12, %v1167_v13  ;;  %v3041_v30 = vrot.slane %v3039_v15, 1  ;;  %v1171_v31 = vor.u32 %v1169_v16, %v1167_v13  ;;  %v1177_v36 = vshrl.u32 %v22052_v8, 16  ;;  %v506_v14 = vld [vmem:[%s23098_s24 + $0x54] sm:$0xf] }
  0xb0   : > { %19365 = vmatpush3.bf16.msra.mxu0 %v22049_v37  ;;  %19066 = vmatprep.mubr.bf16.mxu1 %v1168_v24  ;;  %v1181_v37 = vshll.u32 %v23217_v29, 16  ;;  %v615_v38 = vrot.slane %v500_v9, 7  ;;  %v3034_v22 = vsel %vm1092_vm3, %v3029_v6, %v3033_v11  ;;  %v3047_v43 = vshll.u32 %v23212_v21, 16 }
  0xb1   : > { %19366 = vmatprep.subr.bf16.mxu0 %v22055_v48  ;;  %v3042_v28 = vsel %vm1092_vm3, %v3037_v25, %v3041_v30  ;;  %v1176_v41 = vsel %vm1092_vm3, %v1171_v31, %v1175_v32  ;;  %v1179_v45 = vor.u32 %v1177_v36, %v1175_v32  ;;  %v626_v51 = vrot.slane %v501_v33, 7  ;;  %19109 = vmatpush3.bf16.msra.mxu1 %v22068_v62  ;;  %v507_v36 = vld [vmem:[%s23098_s24 + $0x58] sm:$0xf] }
  0xb2   : > { %v1183_v46 = vrot.slane %v1181_v37, 1  ;;  %v616_v47 = vsel %vm23106_vm2, %v614_v27, %v615_v38  ;;  %v628_v53 = vrot.slane %v502_v39, 7  ;;  %v3045_v55 = vor.u32 %v3043_v35, %v3041_v30 }
  0xb3   : > { %622 = vst [vmem:[#allocation2 + $0x64] sm:$0xf] %v616_v47  ;;  %v3049_v58 = vrot.slane %v3047_v43, 1  ;;  %v627_v59 = vrot.slane %v626_v51, 4  ;;  %634 = vst [vmem:[#allocation2 + $0x6c] sm:$0xe] %v626_v51  ;;  %v17486_v6 = vcombine.low %v3508_v50, %v23129_v56 }
  0xb4   : > { %19367 = vmatpush3.bf16.msra.mxu0 %v22055_v48  ;;  %v617_v48 = vrot.slane %v615_v38, 4  ;;  %v1184_v52 = vsel %vm1092_vm3, %v1179_v45, %v1183_v46  ;;  %v639_v61 = vrot.slane %v503_v54, 7  ;;  %v3051_v63 = vshrl.u32 %v23212_v21, 16 }
  0xb5   : > { %19368 = vmatprep.subr.bf16.mxu0 %v22060_v2  ;;  %19319 = vmatmul.mubr.bf16.gmra.mrb[12].mxu0 %v3034_v22  ;;  %v630_v0 = vrot.slane %v628_v53, 4  ;;  %v629_v5 = vsel %vm23106_vm2, %v627_v59, %v628_v53  ;;  %v652_v8 = vrot.slane %v505_v3, 7  ;;  %v1185_v9 = vshrl.u32 %v23217_v29, 16  ;;  %v509_v3 = vld [vmem:[%s23098_s24 + $0x60] sm:$0xf] }
  0xb6   : > { %623 = vst [vmem:[#allocation2 + $0x68] sm:$0x1] %v617_v48  ;;  %19322 = vmatprep.mubr.bf16.mxu0 %v3042_v28  ;;  %v640_v7 = vrot.slane %v639_v61, 4  ;;  %647 = vst [vmem:[#allocation2 + $0x78] sm:$0xe] %v639_v61  ;;  %v3050_v11 = vsel %vm1092_vm3, %v3045_v55, %v3049_v58  ;;  %v3513_v12 = vrot.slane %v23131_v57, 1  ;;  %v3053_v25 = vor.u32 %v3051_v63, %v3049_v58 }
  0xb7   : > { %19067 = vmatmul.mubr.bf16.gmra.mrb[16].mxu1 %v1176_v41  ;;  %635 = vst [vmem:[#allocation2 + $0x70] sm:$0xf] %v629_v5  ;;  %636 = vst [vmem:[#allocation2 + $0x74] sm:$0x1] %v630_v0  ;;  %v653_v56 = vrot.slane %v652_v8, 4  ;;  %v654_v16 = vrot.slane %v506_v14, 7  ;;  %v1187_v27 = vor.u32 %v1185_v9, %v1183_v46 }
  0xb8   : > { %19369 = vmatpush3.bf16.msra.mxu0 %v22060_v2  ;;  %19070 = vmatprep.mubr.bf16.mxu1 %v1184_v52  ;;  %v641_v2 = vrot.slane %v504_v60, 7  ;;  %660 = vst [vmem:[#allocation2 + $0x84] sm:$0xe] %v652_v8  ;;  %v3512_v24 = vrot.slane %v17486_v6, 1  ;;  %v665_v22 = vrot.slane %v507_v36, 7  ;;  %v22074_v61 = vld [vmem:[#allocation3 + $0x30] sm:$0xff]  }
  0xb9   : > { %19418 = vmatprep.subr.bf16.mxu0 %v23227_v44  ;;  %v655_v31 = vsel %vm23106_vm2, %v653_v56, %v654_v16  ;;  %v656_v35 = vrot.slane %v654_v16, 4  ;;  %v508_v60 = vld [vmem:[%s23098_s24 + $0x5c] sm:$0xf]  ;;  %v3515_v63 = vrot.slane %v23141_v4, 1  ;;  %19110 = vmatprep.subr.bf16.mxu1 %v22074_v61 }
  0xba   : > { %v643_v10 = vrot.slane %v641_v2, 4  ;;  %v642_v13 = vsel %vm23106_vm2, %v640_v7, %v641_v2  ;;  %v23246_v15 = vld [vmem:[#allocation2 + $0x60] sm:$0xff]   ;;  %661 = vst [vmem:[#allocation2 + $0x88] sm:$0xf] %v655_v31  ;;  %673 = vst [vmem:[#allocation2 + $0x90] sm:$0xe] %v665_v22  ;;  %v3514_v5 = vsel %vm1887_vm4, %v3512_v24, %v3513_v12  ;;  %19111 = vmatpush3.bf16.msra.mxu1 %v22074_v61 }
  0xbb   : > { %648 = vst [vmem:[#allocation2 + $0x7c] sm:$0xf] %v642_v13  ;;  %v1189_v29 = vshll.u32 %v23246_v15, 16  ;;  %v1193_v34 = vshrl.u32 %v23246_v15, 16  ;;  %662 = vst [vmem:[#allocation2 + $0x8c] sm:$0x1] %v656_v35 }
  0xbc   : > { %649 = vst [vmem:[#allocation2 + $0x80] sm:$0x1] %v643_v10  ;;  %v666_v2 = vrot.slane %v665_v22, 4  ;;  %v667_v8 = vrot.slane %v508_v60, 7  ;;  %v510_v13 = vld [vmem:[%s23098_s24 + $0x64] sm:$0xf] }
  0xbd   : > { %v23248_v19 = vld [vmem:[#allocation2 + $0x64] sm:$0xff]   ;;  %19323 = vmatmul.mubr.bf16.gmra.mrb[16].mxu0 %v3050_v11  ;;  %v1191_v37 = vrot.slane %v1189_v29, 1  ;;  %v678_v11 = vrot.slane %v509_v3, 7  ;;  %v680_v31 = vrot.slane %v510_v13, 7 }
  0xbe   : > { %v23251_v30 = vld [vmem:[#allocation2 + $0x68] sm:$0xff]   ;;  %v3055_v32 = vshll.u32 %v23248_v19, 16  ;;  %v3059_v33 = vshrl.u32 %v23248_v19, 16  ;;  %v23264_v47 = vld [vmem:[#allocation2 + $0x70] sm:$0xff]   ;;  %v668_v24 = vsel %vm23106_vm2, %v666_v2, %v667_v8 }
  0xbf   : > { %v1197_v38 = vshll.u32 %v23251_v30, 16  ;;  %v1201_v39 = vshrl.u32 %v23251_v30, 16  ;;  %v23261_v41 = vld [vmem:[#allocation2 + $0x6c] sm:$0xff]   ;;  %v1192_v43 = vsel %vm1092_vm3, %v1187_v27, %v1191_v37  ;;  %v1195_v45 = vor.u32 %v1193_v34, %v1191_v37  ;;  %674 = vst [vmem:[#allocation2 + $0x94] sm:$0xf] %v668_v24 }
  0xc0   : > { %v3057_v28 = vrot.slane %v3055_v32, 1  ;;  %19071 = vmatmul.mubr.bf16.gmra.mrb[20].mxu1 %v1192_v43  ;;  %v3063_v51 = vshll.u32 %v23261_v41, 16  ;;  %v1205_v55 = vshll.u32 %v23264_v47, 16  ;;  %v1209_v58 = vshrl.u32 %v23264_v47, 16  ;;  %686 = vst [vmem:[#allocation2 + $0x9c] sm:$0xe] %v678_v11 }
  0xc1   : > { %v1199_v46 = vrot.slane %v1197_v38, 1  ;;  %v669_v27 = vrot.slane %v667_v8, 4  ;;  %v679_v29 = vrot.slane %v678_v11, 4  ;;  %v682_v37 = vrot.slane %v680_v31, 4  ;;  %v511_v38 = vld [vmem:[%s23098_s24 + $0x68] sm:$0xf] }
  0xc2   : > { %v3058_v48 = vsel %vm1092_vm3, %v3053_v25, %v3057_v28  ;;  %v3061_v50 = vor.u32 %v3059_v33, %v3057_v28  ;;  %v23268_v52 = vld [vmem:[#allocation2 + $0x78] sm:$0xff]   ;;  %v23276_v62 = vrot.slane %v3063_v51, 1  ;;  %v1207_v6 = vrot.slane %v1205_v55, 1  ;;  %v23290_v16 = vld [vmem:[#allocation2 + $0x88] sm:$0xff]  }
  0xc3   : > { %19326 = vmatprep.mubr.bf16.mxu0 %v3058_v48  ;;  %v1200_v53 = vsel %vm1092_vm3, %v1195_v45, %v1199_v46  ;;  %v1203_v54 = vor.u32 %v1201_v39, %v1199_v46  ;;  %v23273_v59 = vld [vmem:[#allocation2 + $0x80] sm:$0xff]   ;;  %v1213_v0 = vshll.u32 %v23268_v52, 16  ;;  %v1217_v14 = vshrl.u32 %v23268_v52, 16  ;;  %675 = vst [vmem:[#allocation2 + $0x98] sm:$0x1] %v669_v27  ;;  %v22078_v55 = vld [vmem:[#allocation3 + $0x38] sm:$0xff]  }
  0xc4   : > { %19074 = vmatprep.mubr.bf16.mxu1 %v1200_v53  ;;  %v1221_v7 = vshll.u32 %v23273_v59, 16  ;;  %v3066_v9 = vsel %vm1092_vm3, %v3061_v50, %v23276_v62  ;;  %v1211_v56 = vor.u32 %v1209_v58, %v1207_v6  ;;  %v1225_v25 = vshrl.u32 %v23273_v59, 16  ;;  %v512_v39 = vld [vmem:[%s23098_s24 + $0x6c] sm:$0xf]  ;;  %v22069_v28 = vld [vmem:[#allocation3 + $0x188] sm:$0xff]   ;;  %19112 = vmatprep.subr.bf16.mxu1 %v22078_v55  ;;  %v22079_v27 = vld [vmem:[#allocation3 + $0x198] sm:$0xff]  }
  0xc5   : > { %v1215_v10 = vrot.slane %v1213_v0, 1  ;;  %19327 = vmatmul.mubr.bf16.gmra.mrb[20].mxu0 %v3066_v9  ;;  %v1208_v4 = vsel %vm1092_vm3, %v1203_v54, %v1207_v6  ;;  %v3517_v33 = vrot.slane %v23146_v18, 1  ;;  %v1229_v34 = vshll.u32 %v23290_v16, 16  ;;  %v513_v46 = vld [vmem:[%s23098_s24 + $0x70] sm:$0xf]  ;;  %19113 = vmatpush3.bf16.msra.mxu1 %v22078_v55 }
  0xc6   : > { %19370 = vmatprep.mubr.bf16.mxu0 %v3514_v5  ;;  %v1223_v35 = vrot.slane %v1221_v7, 1  ;;  %v681_v36 = vsel %vm23106_vm2, %v679_v29, %v680_v31  ;;  %v691_v43 = vrot.slane %v511_v38, 7  ;;  %v693_v45 = vrot.slane %v512_v39, 7  ;;  %688 = vst [vmem:[#allocation2 + $0xa4] sm:$0x1] %v682_v37  ;;  %v23310_v2 = vld [vmem:[#allocation2 + $0x90] sm:$0xff]  }
  0xc7   : > { %v1216_v32 = vsel %vm1092_vm3, %v1211_v56, %v1215_v10  ;;  %v1219_v22 = vor.u32 %v1217_v14, %v1215_v10  ;;  %687 = vst [vmem:[#allocation2 + $0xa0] sm:$0xf] %v681_v36  ;;  %v3516_v18 = vsel %vm1887_vm4, %v3513_v12, %v3515_v63  ;;  %v1231_v50 = vrot.slane %v1229_v34, 1  ;;  %v514_v0 = vld [vmem:[%s23098_s24 + $0x74] sm:$0xf]  ;;  %v22075_v7 = vld [vmem:[#allocation3 + $0x190] sm:$0xff]  }
  0xc8   : > { %19075 = vmatmul.mubr.bf16.gmra.mrb[24].mxu1 %v1208_v4  ;;  %v1227_v48 = vor.u32 %v1225_v25, %v1223_v35  ;;  %v704_v51 = vrot.slane %v513_v46, 7  ;;  %v3518_v53 = vsel %vm1887_vm4, %v3515_v63, %v3517_v33  ;;  %v692_v54 = vrot.slane %v691_v43, 4  ;;  %699 = vst [vmem:[#allocation2 + $0xa8] sm:$0xe] %v691_v43  ;;  %v23330_v31 = vld [vmem:[#allocation3 + $0x80] sm:$0xff]  }
  0xc9   : > { %19078 = vmatprep.mubr.bf16.mxu1 %v1216_v32  ;;  %v1233_v58 = vshrl.u32 %v23290_v16, 16  ;;  %v695_v60 = vrot.slane %v693_v45, 4  ;;  %v1224_v57 = vsel %vm1092_vm3, %v1219_v22, %v1223_v35  ;;  %v706_v3 = vrot.slane %v514_v0, 7  ;;  %19162 = vmatprep.subr.bf16.mxu1 %v23330_v31 }
  0xca   : > { %v705_v61 = vrot.slane %v704_v51, 4  ;;  %712 = vst [vmem:[#allocation2 + $0xb4] sm:$0xe] %v704_v51  ;;  %v694_v12 = vsel %vm23106_vm2, %v692_v54, %v693_v45  ;;  %v3519_v63 = vrot.slane %v23148_v26, 1  ;;  %v1232_v5 = vsel %vm1092_vm3, %v1227_v48, %v1231_v50  ;;  %v23319_v9 = vld [vmem:[#allocation2 + $0x98] sm:$0xff]  }
  0xcb   : > { %v3521_v6 = vrot.slane %v23179_v23, 1  ;;  %700 = vst [vmem:[#allocation2 + $0xac] sm:$0xf] %v694_v12  ;;  %701 = vst [vmem:[#allocation2 + $0xb0] sm:$0x1] %v695_v60  ;;  %v1237_v8 = vshll.u32 %v23310_v2, 16  ;;  %v1235_v26 = vor.u32 %v1233_v58, %v1231_v50 }
  0xcc   : > { %v1241_v10 = vshrl.u32 %v23310_v2, 16  ;;  %v708_v11 = vrot.slane %v706_v3, 4  ;;  %v1245_v13 = vshll.u32 %v23319_v9, 16  ;;  %v3520_v56 = vsel %vm1887_vm4, %v3517_v33, %v3519_v63  ;;  %v22085_v45 = vld [vmem:[#allocation3 + $0x1a0] sm:$0xff]  }
  0xcd   : > { %19371 = vmatmul.mubr.bf16.vlgmr.msra.gmra.mrb[0].mxu0 %v3516_v18  ;;  %v1239_v23 = vrot.slane %v1237_v8, 1  ;;  %v3522_v14 = vsel %vm1887_vm4, %v3519_v63, %v3521_v6  ;;  %v1249_v34 = vshrl.u32 %v23319_v9, 16  ;;  %v3523_v33 = vrot.slane %v23194_v42, 1 }
  0xce   : > { %19419 = vmatpush3.bf16.msra.mxu0 %v23227_v44  ;;  %19374 = vmatprep.mubr.bf16.mxu0 %v3518_v53  ;;  %v707_v44 = vsel %vm23106_vm2, %v705_v61, %v706_v3  ;;  %v23325_v4 = vld [vmem:[#allocation2 + $0xa0] sm:$0xff]   ;;  %714 = vst [vmem:[#allocation2 + $0xbc] sm:$0x1] %v708_v11  ;;  %v1247_v25 = vrot.slane %v1245_v13, 1  ;;  %v3525_v38 = vrot.slane %v23191_v40, 1  ;;  %v3527_v50 = vrot.slane %v23201_v49, 1 }
  0xcf   : > { %19420 = vmatprep.subr.bf16.mxu0 %v22069_v28  ;;  %713 = vst [vmem:[#allocation2 + $0xb8] sm:$0xf] %v707_v44  ;;  %v1243_v24 = vor.u32 %v1241_v10, %v1239_v23  ;;  %v1253_v29 = vshll.u32 %v23325_v4, 16  ;;  %v1240_v32 = vsel %vm1092_vm3, %v1235_v26, %v1239_v23  ;;  %v1257_v37 = vshrl.u32 %v23325_v4, 16  ;;  %v22089_v61 = vld [vmem:[#allocation3 + $0x1a8] sm:$0xff]  }
  0xd0   : > { %19079 = vmatmul.mubr.bf16.gmra.mrb[28].mxu1 %v1224_v57  ;;  %v1251_v43 = vor.u32 %v1249_v34, %v1247_v25  ;;  %v3524_v42 = vsel %vm1887_vm4, %v3521_v6, %v3523_v33  ;;  %v3526_v40 = vsel %vm1887_vm4, %v3523_v33, %v3525_v38  ;;  %v3529_v0 = vrot.slane %v23204_v1, 1  ;;  %v22081_v57 = vld [vmem:[#allocation2 + $0xc0] ss:$0 sps:$4 sm:$0x11]   ;;  %v515_v44 = vld [vmem:[%s23098_s24 + $0x78] sm:$0xf] }
  0xd1   : > { %19082 = vmatprep.mubr.bf16.mxu1 %v1232_v5  ;;  %v1248_v36 = vsel %vm1092_vm3, %v1243_v24, %v1247_v25  ;;  %v1255_v22 = vrot.slane %v1253_v29, 1  ;;  %v3528_v3 = vsel %vm1887_vm4, %v3525_v38, %v3527_v50  ;;  %v1285_v10 = vshll.u32 %v22081_v57, 16  ;;  %v516_v24 = vld [vmem:[%s23098_s24 + $0x7c] sm:$0xf]  ;;  %v22082_v34 = vld [vmem:[#allocation2 + $0x74] sm:$0xff]   ;;  %s26054_s24 = scalar_lea.vmem [#allocation9], %s17368_s22 }
  0xd2   : > { %19421 = vmatpush3.bf16.msra.mxu0 %v22069_v28  ;;  %v23334_v35 = vld [vmem:[#allocation2 + $0xa8] sm:$0xff]   ;;  %v23342_v28 = vld [vmem:[#allocation2 + $0xb0] sm:$0xff]   ;;  %v3530_v6 = vsel %vm1887_vm4, %v3527_v50, %v3529_v0  ;;  %v3531_v11 = vrot.slane %v23212_v21, 1  ;;  %v717_v23 = vrot.slane %v515_v44, 7  ;;  %v3533_v13 = vrot.slane %v23248_v19, 1  ;;  %s17265_s17 = sshll.u32 %s26054_s24, 4  ;;  %s26196_s17 = int_to_ptr.vmem [resolvable:$true] %s17265_s17 }
  0xd3   : > { %19422 = vmatprep.subr.bf16.mxu0 %v22075_v7  ;;  %v1261_v39 = vshll.u32 %v23334_v35, 16  ;;  %v1259_v46 = vor.u32 %v1257_v37, %v1255_v22  ;;  %v1269_v51 = vshll.u32 %v23342_v28, 16  ;;  %v1256_v53 = vsel %vm1092_vm3, %v1251_v43, %v1255_v22  ;;  %v23370_v37 = vld [vmem:[#allocation3 + $0x1c0] sm:$0xff]   ;;  %v22086_v43 = vld [vmem:[#allocation2 + $0x84] sm:$0xff]   ;;  %v22113_v44 = vld [vmem:[#allocation3 + $0xb0] sm:$0xff]   ;;  %s22795_s14 = scalar_lea.vmem %s26196_s17, 4096  ;;  %p22802_p13 = scmp.lt.s32.totalorder %s26196_s17, %s22800_s19 }
  0xd4   : > { %v1265_v54 = vshrl.u32 %v23334_v35, 16  ;;  %v1273_v55 = vshrl.u32 %v23342_v28, 16  ;;  %725 = vst [vmem:[#allocation2 + $0xc0] sm:$0xe] %v717_v23  ;;  %v719_v29 = vrot.slane %v516_v24, 7  ;;  %v3534_v21 = vsel %vm1887_vm4, %v3531_v11, %v3533_v13  ;;  %v22084_v22 = vld [vmem:[#allocation2 + $0x7c] sm:$0xff]   ;;  %p22796_p4 = scmp.ne.s32.totalorder %s26196_s17, %s22795_s14  ;;  %p22803_p1 = scmp.lt.s32.totalorder %s22801_s12, %s22795_s14 }
  0xd5   : > { %19375 = vmatmul.mubr.bf16.gmra.mrb[4].mxu0 %v3520_v56  ;;  %v1263_v18 = vrot.slane %v1261_v39, 1  ;;  %v1271_v49 = vrot.slane %v1269_v51, 1  ;;  %v22099_v56 = vld [vmem:[#allocation3 + $0x1b8] sm:$0xff]   ;;  %v3535_v38 = vrot.slane %v23261_v41, 1  ;;  %v3537_v39 = vrot.slane %v22082_v34, 1  ;;  %v22093_v51 = vld [vmem:[#allocation3 + $0x90] sm:$0xff]  }
  0xd6   : > { %19378 = vmatprep.mubr.bf16.mxu0 %v3522_v14  ;;  %19423 = vmatpush3.bf16.msra.mxu0 %v22075_v7  ;;  %v23345_v48 = vld [vmem:[#allocation2 + $0xb8] sm:$0xff]   ;;  %v22095_v7 = vld [vmem:[#allocation3 + $0x1b0] sm:$0xff]   ;;  %v718_v14 = vrot.slane %v717_v23, 4  ;;  %v721_v33 = vrot.slane %v719_v29, 4  ;;  %v23405_v24 = vld [vmem:[#allocation2 + $0x40] sm:$0xff]   ;;  %p22797_p8 = pnand %p22796_p4, %p26510_p7  ;;  %p22804_p6 = por %p22803_p1, %p22802_p13 }
  0xd7   : > { %19424 = vmatprep.subr.bf16.mxu0 %v22079_v27  ;;  %v1264_v58 = vsel %vm1092_vm3, %v1259_v46, %v1263_v18  ;;  %v1277_v60 = vshll.u32 %v23345_v48, 16  ;;  %v1267_v12 = vor.u32 %v1265_v54, %v1263_v18  ;;  %v1275_v63 = vor.u32 %v1273_v55, %v1271_v49  ;;  %v22088_v46 = vld [vmem:[#allocation3 + $0x88] sm:$0xff]   ;;  %v23381_v41 = vld [vmem:[#allocation2 + $0x10] sm:$0xff]  }
  0xd8   : > { %19083 = vmatmul.mubr.bf16.gmra.mrb[32].mxu1 %v1240_v32  ;;  %v1281_v1 = vshrl.u32 %v23345_v48, 16  ;;  %v3532_v32 = vsel %vm1887_vm4, %v3529_v0, %v3531_v11  ;;  %v720_v19 = vsel %vm23106_vm2, %v718_v14, %v719_v29  ;;  %727 = vst [vmem:[#allocation2 + $0xc8] sm:$0x1] %v721_v33  ;;  %v3536_v20 = vsel %vm1887_vm4, %v3533_v13, %v3535_v38  ;;  %v22090_v54 = vld [vmem:[#allocation2 + $0x94] sm:$0xff]   ;;  %v22091_v0 = vld [vmem:[#allocation2 + $0x9c] sm:$0xff]   ;;  %v23413_v33 = vld [vmem:[#allocation2 + $0x48] sm:$0xff]   ;;  %p22798_p11 = pneg %p22797_p8 }
  0xd9   : > { %19086 = vmatprep.mubr.bf16.mxu1 %v1248_v36  ;;  %v1279_v5 = vrot.slane %v1277_v60, 1  ;;  %v1272_v8 = vsel %vm1092_vm3, %v1267_v12, %v1271_v49  ;;  %726 = vst [vmem:[#allocation2 + $0xc4] sm:$0xf] %v720_v19  ;;  %v3541_v18 = vrot.slane %v22086_v43, 1  ;;  %v3545_v60 = vrot.slane %v22090_v54, 1  ;;  %v22103_v49 = vld [vmem:[#allocation3 + $0xa0] sm:$0xff]  }
  0xda   : > { %19425 = vmatpush3.bf16.msra.mxu0 %v22079_v27  ;;  %v1287_v27 = vrot.slane %v1285_v10, 1  ;;  %v22118_v13 = vld [vmem:[#allocation3 + $0xb8] sm:$0xff]   ;;  %v23409_v29 = vld [vmem:[#allocation3 + $0xc0] sm:$0xff]   ;;  %p22805_p9 = pnand %p22804_p6, %p22798_p11 }
  0xdb   : > { %19426 = vmatprep.subr.bf16.mxu0 %v22085_v45  ;;  %v1280_v26 = vsel %vm1092_vm3, %v1275_v63, %v1279_v5  ;;  %v1283_v25 = vor.u32 %v1281_v1, %v1279_v5  ;;  %v3547_v63 = vrot.slane %v22091_v0, 1  ;;  %v22108_v5 = vld [vmem:[#allocation3 + $0xa8] sm:$0xff]   ;;  %v22094_v1 = vld [vmem:[#allocation2 + $0xac] sm:$0xff]   ;;  %v23402_v14 = vld [vmem:[#allocation2 + $0x38] sm:$0xff]  }
  0xdc   : > { %v3551_v23 = vrot.slane %v22094_v1, 1  ;;  %v23421_v43 = vld [vmem:[#allocation2 + $0x58] sm:$0xff]   ;;  %v22114_v54 = vld [vmem:[#allocation2 + $0x50] sm:$0xff]   ;;  %v22125_v1 = vld [vmem:[#allocation2 + $0x80] sm:$0xff]  }
  0xdd   : > { %19379 = vmatmul.mubr.bf16.gmra.mrb[8].mxu0 %v3524_v42  ;;  %v1288_v36 = vsel %vm1092_vm3, %v1283_v25, %v1287_v27  ;;  %v3539_v42 = vrot.slane %v22084_v22, 1  ;;  %v3548_v10 = vsel %vm1887_vm4, %v3545_v60, %v3547_v63  ;;  %v22097_v25 = vld [vmem:[#allocation2 + $0xbc] sm:$0xff]  }
  0xde   : > { %19382 = vmatprep.mubr.bf16.mxu0 %v3526_v40  ;;  %19427 = vmatpush3.bf16.msra.mxu0 %v22085_v45  ;;  %v3538_v45 = vsel %vm1887_vm4, %v3535_v38, %v3537_v39  ;;  %v23377_v40 = vld [vmem:[#allocation2 + $0x8] sm:$0xff]   ;;  %v3555_v34 = vrot.slane %v22097_v25, 1  ;;  %v23416_v38 = vld [vmem:[#allocation2 + $0x50] sm:$0xff]   ;;  %v23435_v0 = vld [vmem:[#allocation3 + $0x200] sm:$0xff]  }
  0xdf   : > { %19428 = vmatprep.subr.bf16.mxu0 %v22089_v61  ;;  %v3540_v50 = vsel %vm1887_vm4, %v3537_v39, %v3539_v42 }
  0xe0   : > { %19087 = vmatmul.mubr.bf16.gmra.mrb[36].mxu1 %v1256_v53  ;;  %v3542_v53 = vsel %vm1887_vm4, %v3539_v42, %v3541_v18  ;;  %v22102_v42 = vld [vmem:[#allocation2 + $0x18] sm:$0xff]  }
  0xe1   : > { %19090 = vmatprep.mubr.bf16.mxu1 %v1264_v58  ;;  %v22098_v58 = vld [vmem:[#allocation3 + $0x98] sm:$0xff]  }
  0xe2   : > { %19429 = vmatpush3.bf16.msra.mxu0 %v22089_v61  ;;  %v23389_v61 = vld [vmem:[#allocation2 + $0x20] sm:$0xff]  }
  0xe3   : > { %19430 = vmatprep.subr.bf16.mxu0 %v22095_v7 }
  0xe5   : > { %19383 = vmatmul.mubr.bf16.gmra.mrb[12].mxu0 %v3528_v3  ;;  %v22092_v3 = vld [vmem:[#allocation2 + $0xa4] sm:$0xff]  }
  0xe6   : > { %19386 = vmatprep.mubr.bf16.mxu0 %v3530_v6  ;;  %19431 = vmatpush3.bf16.msra.mxu0 %v22095_v7  ;;  %v3549_v6 = vrot.slane %v22092_v3, 1  ;;  %v23394_v7 = vld [vmem:[#allocation2 + $0x28] sm:$0xff]   ;;  %v22121_v3 = vld [vmem:[#allocation2 + $0x70] sm:$0xff]  }
  0xe7   : > { %19432 = vmatprep.subr.bf16.mxu0 %v22099_v56 }
  0xe8   : > { %19091 = vmatmul.mubr.bf16.gmra.mrb[40].mxu1 %v1272_v8  ;;  %v23397_v8 = vld [vmem:[#allocation2 + $0x30] sm:$0xff]   ;;  %v3550_v11 = vsel %vm1887_vm4, %v3547_v63, %v3549_v6  ;;  %v3552_v27 = vsel %vm1887_vm4, %v3549_v6, %v3551_v23  ;;  %v1891_v63 = vrot.slane %v23381_v41, 1  ;;  %v22129_v6 = vld [vmem:[#allocation3 + $0xc8] sm:$0xff]  }
  0xe9   : > { %19094 = vmatprep.mubr.bf16.mxu1 %v1280_v26  ;;  %v22096_v26 = vld [vmem:[#allocation2 + $0xb4] sm:$0xff]  }
  0xea   : > { %19433 = vmatpush3.bf16.msra.mxu0 %v22099_v56  ;;  %v3553_v56 = vrot.slane %v22096_v26, 1  ;;  %v22139_v26 = vld [vmem:[#allocation3 + $0xd8] sm:$0xff]  }
  0xeb   : > { %19482 = vmatprep.subr.bf16.mxu0 %v23370_v37 }
  0xec   : > { %v3556_v39 = vsel %vm1887_vm4, %v3553_v56, %v3555_v34 }
  0xed   : > { %19387 = vmatmul.mubr.bf16.gmra.mrb[16].mxu0 %v3532_v32  ;;  %v3554_v32 = vsel %vm1887_vm4, %v3551_v23, %v3553_v56  ;;  %v22128_v23 = vld [vmem:[#allocation2 + $0x90] sm:$0xff]   ;;  %v1901_v56 = vrot.slane %v23402_v14, 1 }
  0xee   : > { %19390 = vmatprep.mubr.bf16.mxu0 %v3534_v21  ;;  %v22100_v21 = vld [vmem:[#allocation2 + $0xc4] sm:$0xff]  }
  0xef   : > { %v3557_v19 = vrot.slane %v22100_v21, 1  ;;  %v22132_v21 = vld [vmem:[#allocation2 + $0xa0] sm:$0xff]  }
  0xf0   : > { %19095 = vmatmul.mubr.bf16.gmra.mrb[44].mxu1 %v1288_v36  ;;  %v22101_v36 = vld [vmem:[#allocation2 + $0xcc] ss:$0 sps:$4 sm:$0x11]  }
  0xf1   : > { %19114 = vmatprep.mubr.bf16.mxu1 %v23101_v17  ;;  %v22087_v17 = vld [vmem:[#allocation2 + $0x8c] sm:$0xff]   ;;  %v3558_v22 = vsel %vm1887_vm4, %v3555_v34, %v3557_v19  ;;  %v4419_v34 = vld [vmem:[#allocation2 + $0x18] sm:$0xf] }
  0xf2   : > { %v3543_v55 = vrot.slane %v22087_v17, 1  ;;  %v22109_v17 = vld [vmem:[#allocation3 + $0x1c8] sm:$0xff]  }
  0xf4   : > { %v3544_v57 = vsel %vm1887_vm4, %v3541_v18, %v3543_v55  ;;  %v3546_v12 = vsel %vm1887_vm4, %v3543_v55, %v3545_v60  ;;  %v22106_v18 = vld [vmem:[#allocation2 + $0x28] sm:$0xff]   ;;  %v22116_v55 = vld [vmem:[#allocation2 + $0x58] sm:$0xff]  }
  0xf5   : > { %19391 = vmatmul.mubr.bf16.gmra.mrb[20].mxu0 %v3536_v20  ;;  %v3559_v20 = vrot.slane %v22101_v36, 1  ;;  %v1905_v36 = vrot.slane %v23413_v33, 1 }
  0xf6   : > { %19394 = vmatprep.mubr.bf16.mxu0 %v3538_v45 }
  0xf7   : > { %v3560_v45 = vsel %vm1887_vm4, %v3557_v19, %v3559_v20  ;;  %v22133_v19 = vld [vmem:[#allocation2 + $0xa8] sm:$0xff]   ;;  %v730_v20 = vld [vmem:[%s26245_s1 + $0x10] sm:$0xff] }
  0xf8   : > { %19115 = vmatmul.mubr.bf16.vlgmr.msra.gmra.mrb[0].mxu1 %v23377_v40  ;;  %5700 = vperm.xlu1 %22006, %v730_v20  }
  0xf9   : > { %19163 = vmatpush3.bf16.msra.mxu1 %v23330_v31  ;;  %19118 = vmatprep.mubr.bf16.mxu1 %v23381_v41  ;;  %v23386_v31 = vld [vmem:[#allocation2 + $0x18] sm:$0xff]   ;;  %v22134_v41 = vld [vmem:[#allocation3 + $0xd0] sm:$0xff]  }
  0xfa   : > { %19164 = vmatprep.subr.bf16.mxu1 %v22088_v46 }
  0xfd   : > { %19395 = vmatmul.mubr.bf16.gmra.mrb[24].mxu0 %v3540_v50  ;;  %19165 = vmatpush3.bf16.msra.mxu1 %v22088_v46  ;;  %v22104_v46 = vld [vmem:[#allocation2 + $0x20] sm:$0xff]   ;;  %v22115_v50 = vld [vmem:[#allocation3 + $0x1d0] sm:$0xff]  }
  0xfe   : > { %19398 = vmatprep.mubr.bf16.mxu0 %v3542_v53  ;;  %19166 = vmatprep.subr.bf16.mxu1 %v22093_v51  ;;  %v22119_v53 = vld [vmem:[#allocation3 + $0x1d8] sm:$0xff]  }
 0x100   : > { %19119 = vmatmul.mubr.bf16.gmra.mrb[4].mxu1 %v23386_v31 }
 0x101   : > { %19122 = vmatprep.mubr.bf16.mxu1 %v23389_v61  ;;  %19167 = vmatpush3.bf16.msra.mxu1 %v22093_v51  ;;  %v22110_v51 = vld [vmem:[#allocation2 + $0x38] sm:$0xff]  }
 0x102   : > { %19168 = vmatprep.subr.bf16.mxu1 %v22098_v58 }
 0x105   : > { %19399 = vmatmul.mubr.bf16.gmra.mrb[28].mxu0 %v3544_v57  ;;  %19169 = vmatpush3.bf16.msra.mxu1 %v22098_v58  ;;  %v1883_v58 = vld [vmem:[#allocation2] sm:$0xe] }
 0x106   : > { %19402 = vmatprep.mubr.bf16.mxu0 %v3546_v12  ;;  %19170 = vmatprep.subr.bf16.mxu1 %v22103_v49  ;;  %v22117_v57 = vld [vmem:[#allocation2 + $0x60] sm:$0xff]  }
 0x108   : > { %19123 = vmatmul.mubr.bf16.gmra.mrb[8].mxu1 %v23394_v7 }
 0x109   : > { %19126 = vmatprep.mubr.bf16.mxu1 %v23397_v8  ;;  %19171 = vmatpush3.bf16.msra.mxu1 %v22103_v49 }
 0x10a   : > { %19172 = vmatprep.subr.bf16.mxu1 %v22108_v5 }
 0x10d   : > { %19403 = vmatmul.mubr.bf16.gmra.mrb[32].mxu0 %v3548_v10  ;;  %19173 = vmatpush3.bf16.msra.mxu1 %v22108_v5  ;;  %v22127_v10 = vld [vmem:[#allocation2 + $0x88] sm:$0xff]  }
 0x10e   : > { %19406 = vmatprep.mubr.bf16.mxu0 %v3550_v11  ;;  %19174 = vmatprep.subr.bf16.mxu1 %v22113_v44 }
 0x110   : > { %19127 = vmatmul.mubr.bf16.gmra.mrb[12].mxu1 %v23402_v14  ;;  %v4420_v14 = vld [vmem:[#allocation2 + $0x1c] sm:$0xf] }
 0x111   : > { %19130 = vmatprep.mubr.bf16.mxu1 %v23405_v24  ;;  %19175 = vmatpush3.bf16.msra.mxu1 %v22113_v44  ;;  %v1895_v44 = vrot.slane %v23389_v61, 1  ;;  %v1899_v61 = vrot.slane %v23397_v8, 1  ;;  %v728_v8 = vld [vmem:[%s26245_s1] sm:$0xff] }
 0x112   : > { %19176 = vmatprep.subr.bf16.mxu1 %v22118_v13  ;;  %5690 = vperm.xlu0 %22005, %v728_v8  }
 0x115   : > { %19407 = vmatmul.mubr.bf16.gmra.mrb[36].mxu0 %v3552_v27  ;;  %19177 = vmatpush3.bf16.msra.mxu1 %v22118_v13  ;;  %v22131_v13 = vld [vmem:[#allocation2 + $0x98] sm:$0xff]   ;;  %v1902_v27 = vsel %vm1887_vm4, %v1899_v61, %v1901_v56 }
 0x116   : > { %19410 = vmatprep.mubr.bf16.mxu0 %v3554_v32  ;;  %19226 = vmatprep.subr.bf16.mxu1 %v23409_v29  ;;  %v22150_v32 = vld [vmem:[#allocation3 + $0xe8] sm:$0xff]  }
 0x118   : > { %19131 = vmatmul.mubr.bf16.gmra.mrb[16].mxu1 %v23413_v33 }
 0x119   : > { %19134 = vmatprep.mubr.bf16.mxu1 %v23416_v38 }
 0x11d   : > { %19411 = vmatmul.mubr.bf16.gmra.mrb[40].mxu0 %v3556_v39  ;;  %v22155_v39 = vld [vmem:[#allocation3 + $0xf0] sm:$0xff]  }
 0x11e   : > { %19414 = vmatprep.mubr.bf16.mxu0 %v3558_v22  ;;  %v23461_v22 = vcombine.low %v4419_v34, %v4420_v14  ;;  %v22619_v14 = vld [vmem:[#allocation2 + $0x88] sm:$0xff]  }
 0x120   : > { %19135 = vmatmul.mubr.bf16.gmra.mrb[20].mxu1 %v23421_v43 }
 0x121   : > { %19138 = vmatprep.mubr.bf16.mxu1 %v23246_v15  ;;  %v22107_v15 = vld [vmem:[#allocation2 + $0x30] sm:$0xff]  }
 0x125   : > { %19415 = vmatmul.mubr.bf16.gmra.mrb[44].mxu0 %v3560_v45  ;;  %v729_v45 = vld [vmem:[%s26245_s1 + $0x8] sm:$0xff] }
 0x126   : > { %19434 = vmatprep.mubr.bf16.mxu0 %v22102_v42  ;;  %v1907_v42 = vrot.slane %v23416_v38, 1  ;;  %5695 = vperm.xlu0 %22005, %v729_v45   ;;  %v732_v38 = vld [vmem:[%s26245_s1 + $0x20] sm:$0xff] }
 0x128   : > { %19139 = vmatmul.mubr.bf16.gmra.mrb[24].mxu1 %v23251_v30  ;;  %v22126_v30 = vld [vmem:[#allocation3 + $0x1e0] sm:$0xff]  }
 0x129   : > { %19142 = vmatprep.mubr.bf16.mxu1 %v23264_v47  ;;  %v22111_v47 = vld [vmem:[#allocation2 + $0x40] sm:$0xff]  }
 0x12a   : > { %5710 = vperm.xlu0 %22005, %v732_v38  }
 0x12d   : > { %19435 = vmatmul.mubr.bf16.vlgmr.msra.gmra.mrb[0].mxu0 %v22104_v46  ;;  %v1909_v46 = vrot.slane %v23421_v43, 1  ;;  %v1908_v43 = vsel %vm1887_vm4, %v1905_v36, %v1907_v42 }
 0x12e   : > { %19483 = vmatpush3.bf16.msra.mxu0 %v23370_v37  ;;  %19438 = vmatprep.mubr.bf16.mxu0 %v22106_v18  ;;  %v22112_v37 = vld [vmem:[#allocation2 + $0x48] sm:$0xff]   ;;  %v22160_v18 = vld [vmem:[#allocation3 + $0xf8] sm:$0xff]  }
 0x12f   : > { %19484 = vmatprep.subr.bf16.mxu0 %v22109_v17 }
 0x130   : > { %19143 = vmatmul.mubr.bf16.gmra.mrb[28].mxu1 %v23268_v52  ;;  %v22130_v52 = vld [vmem:[#allocation3 + $0x1e8] sm:$0xff]  }
 0x131   : > { %19146 = vmatprep.mubr.bf16.mxu1 %v23273_v59  ;;  %v22136_v59 = vld [vmem:[#allocation3 + $0x1f0] sm:$0xff]  }
 0x132   : > { %19485 = vmatpush3.bf16.msra.mxu0 %v22109_v17  ;;  %v731_v17 = vld [vmem:[%s26245_s1 + $0x18] sm:$0xff] }
 0x133   : > { %19486 = vmatprep.subr.bf16.mxu0 %v22115_v50  ;;  %5705 = vperm.xlu1 %22006, %v731_v17   ;;  %v744_v17 = vld [vmem:[%s26245_s1 + $0x80] sm:$0xff] }
 0x135   : > { %19439 = vmatmul.mubr.bf16.gmra.mrb[4].mxu0 %v22107_v15  ;;  %v22137_v15 = vld [vmem:[#allocation2 + $0xb8] sm:$0xff]  }
 0x136   : > { %19442 = vmatprep.mubr.bf16.mxu0 %v22110_v51  ;;  %19487 = vmatpush3.bf16.msra.mxu0 %v22115_v50  ;;  %v22135_v50 = vld [vmem:[#allocation2 + $0xb0] sm:$0xff]   ;;  %v23476_v51 = vld [vmem:[#allocation2 + $0x20] sm:$0xff]  }
 0x137   : > { %19488 = vmatprep.subr.bf16.mxu0 %v22119_v53 }
 0x138   : > { %19147 = vmatmul.mubr.bf16.gmra.mrb[32].mxu1 %v23290_v16  ;;  %v22140_v16 = vld [vmem:[#allocation3 + $0x1f8] sm:$0xff]  }
 0x139   : > { %19150 = vmatprep.mubr.bf16.mxu1 %v23310_v2  ;;  %v22612_v2 = vld [vmem:[#allocation2 + $0x4] sm:$0xf] }
 0x13a   : > { %19489 = vmatpush3.bf16.msra.mxu0 %v22119_v53  ;;  %v17412_v60 = vcombine.low %v1883_v58, %v22612_v2  ;;  %v4594_v53 = vshll.u32 %v23461_v22, 16  ;;  %v4592_v58 = vshrl.u32 %v23461_v22, 16  ;;  %v23492_v2 = vld [vmem:[#allocation3 + $0x100] sm:$0xff]  }
 0x13b   : > { %19490 = vmatprep.subr.bf16.mxu0 %v22126_v30 }
 0x13c   : > { %v1888_v49 = vrot.slane %v17412_v60, 1  ;;  %v735_v60 = vld [vmem:[%s26245_s1 + $0x38] sm:$0xff] }
 0x13d   : > { %19443 = vmatmul.mubr.bf16.gmra.mrb[8].mxu0 %v22111_v47 }
 0x13e   : > { %19446 = vmatprep.mubr.bf16.mxu0 %v22112_v37  ;;  %19491 = vmatpush3.bf16.msra.mxu0 %v22126_v30  ;;  %v22613_v30 = vld [vmem:[#allocation2 + $0x60] sm:$0xff]   ;;  %v733_v37 = vld [vmem:[%s26245_s1 + $0x28] sm:$0xff] }
 0x13f   : > { %19492 = vmatprep.subr.bf16.mxu0 %v22130_v52  ;;  %v1911_v47 = vrot.slane %v22613_v30, 1  ;;  %5715 = vperm.xlu1 %22006, %v733_v37   ;;  %v22620_v37 = vld [vmem:[#allocation2 + $0x90] sm:$0xff]  }
 0x140   : > { %19151 = vmatmul.mubr.bf16.gmra.mrb[36].mxu1 %v23319_v9  ;;  %v1889_v9 = vrot.slane %v23377_v40, 1  ;;  %v1893_v40 = vrot.slane %v23386_v31, 1 }
 0x141   : > { %19154 = vmatprep.mubr.bf16.mxu1 %v23325_v4  ;;  %v22120_v4 = vld [vmem:[#allocation2 + $0x68] sm:$0xff]  }
 0x142   : > { %19493 = vmatpush3.bf16.msra.mxu0 %v22130_v52  ;;  %v1890_v12 = vsel %vm1887_vm4, %v1888_v49, %v1889_v9  ;;  %v1894_v5 = vsel %vm1887_vm4, %v1891_v63, %v1893_v40  ;;  %v1896_v31 = vsel %vm1887_vm4, %v1893_v40, %v1895_v44  ;;  %v734_v52 = vld [vmem:[%s26245_s1 + $0x30] sm:$0xff]  ;;  %v22146_v49 = vld [vmem:[#allocation2 + $0x28] sm:$0xff]  }
 0x143   : > { %19494 = vmatprep.subr.bf16.mxu0 %v22136_v59  ;;  %5720 = vperm.xlu0 %22005, %v734_v52   ;;  %v22616_v40 = vld [vmem:[#allocation2 + $0x70] sm:$0xff]   ;;  %v1923_v52 = vrot.slane %v22620_v37, 1 }
 0x144   : > { %5725 = vperm.xlu1 %22006, %v735_v60  }
 0x145   : > { %19447 = vmatmul.mubr.bf16.gmra.mrb[12].mxu0 %v22114_v54  ;;  %v22614_v54 = vld [vmem:[#allocation2 + $0x68] sm:$0xff]  }
 0x146   : > { %19450 = vmatprep.mubr.bf16.mxu0 %v22116_v55  ;;  %19495 = vmatpush3.bf16.msra.mxu0 %v22136_v59  ;;  %v1910_v59 = vsel %vm1887_vm4, %v1907_v42, %v1909_v46  ;;  %v1913_v55 = vrot.slane %v22614_v54, 1 }
 0x147   : > { %19496 = vmatprep.subr.bf16.mxu0 %v22140_v16 }
 0x148   : > { %19155 = vmatmul.mubr.bf16.gmra.mrb[40].mxu1 %v23334_v35  ;;  %v22123_v35 = vld [vmem:[#allocation2 + $0x78] sm:$0xff]  }
 0x149   : > { %19158 = vmatprep.mubr.bf16.mxu1 %v23342_v28  ;;  %v1892_v28 = vsel %vm1887_vm4, %v1889_v9, %v1891_v63  ;;  %v22141_v9 = vld [vmem:[#allocation2 + $0xc8] sm:$0xff]   ;;  %v1912_v63 = vsel %vm1887_vm4, %v1909_v46, %v1911_v47 }
 0x14a   : > { %19497 = vmatpush3.bf16.msra.mxu0 %v22140_v16  ;;  %v4599_v16 = vshll.u32 %v23476_v51, 16 }
 0x14b   : > { %19546 = vmatprep.subr.bf16.mxu0 %v23435_v0 }
 0x14d   : > { %19451 = vmatmul.mubr.bf16.gmra.mrb[16].mxu0 %v22117_v57  ;;  %v22138_v57 = vld [vmem:[#allocation2 + $0xc0] sm:$0xff]  }
 0x14e   : > { %19454 = vmatprep.mubr.bf16.mxu0 %v22120_v4  ;;  %v4596_v4 = vrot.slane %v4594_v53, 1 }
 0x150   : > { %19159 = vmatmul.mubr.bf16.gmra.mrb[44].mxu1 %v23345_v48  ;;  %v1897_v48 = vrot.slane %v23394_v7, 1  ;;  %v22145_v7 = vld [vmem:[#allocation3 + $0xe0] sm:$0xff]  }
 0x151   : > { %19178 = vmatprep.mubr.bf16.mxu1 %v1890_v12  ;;  %v736_v12 = vld [vmem:[%s26245_s1 + $0x40] sm:$0xff] }
 0x152   : > { %v1898_v11 = vsel %vm1887_vm4, %v1895_v44, %v1897_v48  ;;  %v1900_v25 = vsel %vm1887_vm4, %v1897_v48, %v1899_v61  ;;  %5730 = vperm.xlu0 %22005, %v736_v12   ;;  %v737_v44 = vld [vmem:[%s26245_s1 + $0x48] sm:$0xff]  ;;  %v738_v48 = vld [vmem:[%s26245_s1 + $0x50] sm:$0xff]  ;;  %v4597_v61 = vor.u32 %v4596_v4, %v4592_v58 }
 0x153   : > { %5735 = vperm.xlu1 %22006, %v737_v44   ;;  %v746_v58 = vld [vmem:[%s26245_s1 + $0x90] sm:$0xff] }
 0x154   : > { %v22157_v4 = vld [vmem:[#allocation3 + $0x210] sm:$0xff]  }
 0x155   : > { %19455 = vmatmul.mubr.bf16.gmra.mrb[20].mxu0 %v22121_v3  ;;  %v23501_v3 = vld [vmem:[#allocation2 + $0x30] sm:$0xff]  }
 0x156   : > { %19458 = vmatprep.mubr.bf16.mxu0 %v22123_v35  ;;  %v1914_v35 = vsel %vm1887_vm4, %v1911_v47, %v1913_v55  ;;  %5740 = vperm.xlu0 %22005, %v738_v48   ;;  %v22622_v48 = vld [vmem:[#allocation2 + $0xa0] sm:$0xff]  }
 0x158   : > { %19179 = vmatmul.mubr.bf16.vlgmr.msra.gmra.mrb[0].mxu1 %v1892_v28  ;;  %v1915_v28 = vrot.slane %v22616_v40, 1 }
 0x159   : > { %19227 = vmatpush3.bf16.msra.mxu1 %v23409_v29  ;;  %19182 = vmatprep.mubr.bf16.mxu1 %v1894_v5  ;;  %v1903_v29 = vrot.slane %v23405_v24, 1  ;;  %v22617_v5 = vld [vmem:[#allocation2 + $0x78] sm:$0xff]  }
 0x15a   : > { %19228 = vmatprep.subr.bf16.mxu1 %v22129_v6 }
 0x15b   : > { %v1904_v24 = vsel %vm1887_vm4, %v1901_v56, %v1903_v29  ;;  %v1906_v33 = vsel %vm1887_vm4, %v1903_v29, %v1905_v36  ;;  %v4615_v56 = vshll.u32 %v23501_v3, 16  ;;  %v741_v36 = vld [vmem:[%s26245_s1 + $0x68] sm:$0xff] }
 0x15d   : > { %19459 = vmatmul.mubr.bf16.gmra.mrb[24].mxu0 %v22125_v1  ;;  %19229 = vmatpush3.bf16.msra.mxu1 %v22129_v6  ;;  %v1917_v6 = vrot.slane %v22617_v5, 1  ;;  %v22618_v1 = vld [vmem:[#allocation2 + $0x80] sm:$0xff]   ;;  %v4617_v22 = vrot.slane %v4615_v56, 1 }
 0x15e   : > { %19462 = vmatprep.mubr.bf16.mxu0 %v22127_v10  ;;  %19230 = vmatprep.subr.bf16.mxu1 %v22134_v41  ;;  %v1919_v10 = vrot.slane %v22618_v1, 1 }
 0x15f   : > { %v1918_v34 = vsel %vm1887_vm4, %v1915_v28, %v1917_v6 }
 0x160   : > { %19183 = vmatmul.mubr.bf16.gmra.mrb[4].mxu1 %v1896_v31  ;;  %v4603_v31 = vshrl.u32 %v23476_v51, 16  ;;  %v23541_v51 = vld [vmem:[#allocation2 + $0x50] sm:$0xff]   ;;  %v1920_v38 = vsel %vm1887_vm4, %v1917_v6, %v1919_v10 }
 0x161   : > { %19186 = vmatprep.mubr.bf16.mxu1 %v1898_v11  ;;  %19231 = vmatpush3.bf16.msra.mxu1 %v22134_v41  ;;  %v4601_v41 = vrot.slane %v4599_v16, 1  ;;  %v4607_v11 = vshll.u32 %v22146_v49, 16 }
 0x162   : > { %19232 = vmatprep.subr.bf16.mxu1 %v22139_v26 }
 0x163   : > { %v4602_v29 = vsel %vm1092_vm3, %v4597_v61, %v4601_v41  ;;  %v4605_v8 = vor.u32 %v4603_v31, %v4601_v41  ;;  %v1927_v41 = vrot.slane %v22622_v48, 1  ;;  %v749_v31 = vld [vmem:[%s26245_s1 + $0xa8] sm:$0xff]  ;;  %v759_v48 = vld [vmem:[%s26245_s1 + $0xf8] sm:$0xff] }
 0x164   : > { %v22623_v61 = vld [vmem:[#allocation2 + $0xa8] sm:$0xff]  }
 0x165   : > { %19463 = vmatmul.mubr.bf16.gmra.mrb[28].mxu0 %v22128_v23  ;;  %19233 = vmatpush3.bf16.msra.mxu1 %v22139_v26  ;;  %v4611_v26 = vshrl.u32 %v22146_v49, 16  ;;  %v739_v23 = vld [vmem:[%s26245_s1 + $0x58] sm:$0xff]  ;;  %v1929_v56 = vrot.slane %v22623_v61, 1 }
 0x166   : > { %19466 = vmatprep.mubr.bf16.mxu0 %v22131_v13  ;;  %19234 = vmatprep.subr.bf16.mxu1 %v22145_v7  ;;  %v22142_v13 = vld [vmem:[#allocation2 + $0xd0] sm:$0xff]   ;;  %v747_v49 = vld [vmem:[%s26245_s1 + $0x98] sm:$0xff] }
 0x167   : > { %5745 = vperm.xlu1 %22006, %v739_v23   ;;  %v4651_v23 = vshrl.u32 %v23541_v51, 16 }
 0x168   : > { %19187 = vmatmul.mubr.bf16.gmra.mrb[8].mxu1 %v1900_v25  ;;  %v740_v25 = vld [vmem:[%s26245_s1 + $0x60] sm:$0xff] }
 0x169   : > { %19190 = vmatprep.mubr.bf16.mxu1 %v1902_v27  ;;  %19235 = vmatpush3.bf16.msra.mxu1 %v22145_v7  ;;  %v22149_v7 = vld [vmem:[#allocation2 + $0x38] sm:$0xff]   ;;  %v23519_v27 = vld [vmem:[#allocation2 + $0x40] sm:$0xff]  }
 0x16a   : > { %19236 = vmatprep.subr.bf16.mxu1 %v22150_v32  ;;  %5750 = vperm.xlu0 %22005, %v740_v25   ;;  %v4623_v20 = vshll.u32 %v22149_v7, 16  ;;  %v4627_v45 = vshrl.u32 %v22149_v7, 16  ;;  %v4631_v46 = vshll.u32 %v23519_v27, 16  ;;  %v4635_v60 = vshrl.u32 %v23519_v27, 16  ;;  %v22168_v7 = vld [vmem:[#allocation3 + $0x220] sm:$0xff]  }
 0x16b   : > { %5755 = vperm.xlu1 %22006, %v741_v36  }
 0x16c   : > { %v4625_v47 = vrot.slane %v4623_v20, 1  ;;  %v4633_v16 = vrot.slane %v4631_v46, 1  ;;  %v22624_v20 = vld [vmem:[#allocation2 + $0xb0] sm:$0xff]  }
 0x16d   : > { %19467 = vmatmul.mubr.bf16.gmra.mrb[32].mxu0 %v22132_v21  ;;  %19237 = vmatpush3.bf16.msra.mxu1 %v22150_v32  ;;  %v1916_v32 = vsel %vm1887_vm4, %v1913_v55, %v1915_v28  ;;  %v4609_v21 = vrot.slane %v4607_v11, 1  ;;  %v745_v55 = vld [vmem:[%s26245_s1 + $0x88] sm:$0xff]  ;;  %v23569_v28 = vld [vmem:[#allocation2 + $0x60] sm:$0xff]   ;;  %v750_v11 = vld [vmem:[%s26245_s1 + $0xb0] sm:$0xff] }
 0x16e   : > { %19470 = vmatprep.mubr.bf16.mxu0 %v22133_v19  ;;  %19238 = vmatprep.subr.bf16.mxu1 %v22155_v39  ;;  %v1921_v19 = vrot.slane %v22619_v14, 1  ;;  %v4629_v12 = vor.u32 %v4627_v45, %v4625_v47  ;;  %v1931_v45 = vrot.slane %v22624_v20, 1  ;;  %v754_v46 = vld [vmem:[%s26245_s1 + $0xd0] sm:$0xff]  ;;  %v763_v20 = vld [vmem:[%s26245_s1 + $0x118] sm:$0xff] }
 0x16f   : > { %v4613_v42 = vor.u32 %v4611_v26, %v4609_v21  ;;  %v4637_v26 = vor.u32 %v4635_v60, %v4633_v16 }
 0x170   : > { %19191 = vmatmul.mubr.bf16.gmra.mrb[12].mxu1 %v1904_v24  ;;  %v4619_v24 = vshrl.u32 %v23501_v3, 16  ;;  %v4647_v3 = vshll.u32 %v23541_v51, 16  ;;  %v4634_v5 = vsel %vm1092_vm3, %v4629_v12, %v4633_v16  ;;  %v1924_v6 = vsel %vm1887_vm4, %v1921_v19, %v1923_v52  ;;  %v23623_v16 = vld [vmem:[#allocation2 + $0x88] sm:$0xff]   ;;  %v22626_v12 = vld [vmem:[#allocation2 + $0xc0] ss:$0 sps:$4 sm:$0x11]  }
 0x171   : > { %19194 = vmatprep.mubr.bf16.mxu1 %v1906_v33  ;;  %19239 = vmatpush3.bf16.msra.mxu1 %v22155_v39  ;;  %v742_v39 = vld [vmem:[%s26245_s1 + $0x70] sm:$0xff]  ;;  %v743_v33 = vld [vmem:[%s26245_s1 + $0x78] sm:$0xff]  ;;  %v4618_v53 = vsel %vm1092_vm3, %v4613_v42, %v4617_v22  ;;  %v753_v42 = vld [vmem:[%s26245_s1 + $0xc8] sm:$0xff] }
 0x172   : > { %19240 = vmatprep.subr.bf16.mxu1 %v22160_v18  ;;  %5760 = vperm.xlu0 %22005, %v742_v39   ;;  %v4621_v30 = vor.u32 %v4619_v24, %v4617_v22  ;;  %v4649_v44 = vrot.slane %v4647_v3, 1  ;;  %v1935_v3 = vrot.slane %v22626_v12, 1  ;;  %v767_v12 = vld [vmem:[%s26245_s1 + $0x138] sm:$0xff] }
 0x173   : > { %5765 = vperm.xlu1 %22006, %v743_v33   ;;  %v4667_v33 = vshrl.u32 %v23569_v28, 16 }
 0x174   : > { %v4626_v40 = vsel %vm1092_vm3, %v4621_v30, %v4625_v47  ;;  %v4653_v22 = vor.u32 %v4651_v23, %v4649_v44  ;;  %v755_v47 = vld [vmem:[%s26245_s1 + $0xd8] sm:$0xff] }
 0x175   : > { %19471 = vmatmul.mubr.bf16.gmra.mrb[36].mxu0 %v22135_v50  ;;  %19241 = vmatpush3.bf16.msra.mxu1 %v22160_v18  ;;  %v23535_v18 = vld [vmem:[#allocation2 + $0x48] sm:$0xff]  }
 0x176   : > { %19474 = vmatprep.mubr.bf16.mxu0 %v22137_v15  ;;  %20762 = vmatprep.subr.bf16.mxu1 %v23492_v2  ;;  %v22151_v50 = vld [vmem:[#allocation3 + $0x208] sm:$0xff]   ;;  %v4610_v15 = vsel %vm1092_vm3, %v4605_v8, %v4609_v21 }
 0x177   : > { %5770 = vperm.xlu0 %22005, %v744_v17   ;;  %5775 = vperm.xlu1 %22006, %v745_v55   ;;  %v23589_v8 = vld [vmem:[#allocation2 + $0x68] sm:$0xff]   ;;  %v752_v21 = vld [vmem:[%s26245_s1 + $0xc0] sm:$0xff]  ;;  %v22187_v55 = vld [vmem:[#allocation3 + $0x238] sm:$0xff]  }
 0x178   : > { %19195 = vmatmul.mubr.bf16.gmra.mrb[16].mxu1 %v1908_v43  ;;  %v1922_v43 = vsel %vm1887_vm4, %v1919_v10, %v1921_v19  ;;  %v23595_v19 = vld [vmem:[#allocation2 + $0x70] sm:$0xff]   ;;  %v4675_v30 = vshrl.u32 %v23589_v8, 16 }
 0x179   : > { %19198 = vmatprep.mubr.bf16.mxu1 %v1910_v59  ;;  %v23546_v59 = vld [vmem:[#allocation2 + $0x98] sm:$0xff]   ;;  %v4679_v37 = vshll.u32 %v23595_v19, 16 }
 0x17a   : > { %v1925_v54 = vrot.slane %v23546_v59, 1  ;;  %v756_v59 = vld [vmem:[%s26245_s1 + $0xe0] sm:$0xff] }
 0x17b   : > { %5780 = vperm.xlu0 %22005, %v746_v58   ;;  %5785 = vperm.xlu1 %22006, %v747_v49  }
 0x17c   : > { %v1926_v10 = vsel %vm1887_vm4, %v1923_v52, %v1925_v54  ;;  %v1928_v39 = vsel %vm1887_vm4, %v1925_v54, %v1927_v41  ;;  %v23615_v52 = vld [vmem:[#allocation2 + $0x78] sm:$0xff]   ;;  %v23620_v54 = vld [vmem:[#allocation2 + $0x80] sm:$0xff]  }
 0x17d   : > { %19475 = vmatmul.mubr.bf16.gmra.mrb[40].mxu0 %v22138_v57  ;;  %v4639_v57 = vshll.u32 %v23535_v18, 16 }
 0x17e   : > { %19478 = vmatprep.mubr.bf16.mxu0 %v22141_v9  ;;  %v4643_v9 = vshrl.u32 %v23535_v18, 16  ;;  %v1930_v18 = vsel %vm1887_vm4, %v1927_v41, %v1929_v56  ;;  %v4703_v41 = vshll.u32 %v23623_v16, 16 }
 0x17f   : > { %v4641_v1 = vrot.slane %v4639_v57, 1  ;;  %5795 = vperm.xlu1 %22006, %v749_v31   ;;  %v1932_v57 = vsel %vm1887_vm4, %v1929_v56, %v1931_v45  ;;  %v23642_v31 = vld [vmem:[#allocation2 + $0x90] sm:$0xff]  }
 0x180   : > { %19199 = vmatmul.mubr.bf16.gmra.mrb[20].mxu1 %v1912_v63  ;;  %v748_v63 = vld [vmem:[%s26245_s1 + $0xa0] sm:$0xff] }
 0x181   : > { %19202 = vmatprep.mubr.bf16.mxu1 %v1914_v35  ;;  %v22161_v35 = vld [vmem:[#allocation3 + $0x218] sm:$0xff]   ;;  %5790 = vperm.xlu0 %22005, %v748_v63   ;;  %v4645_v25 = vor.u32 %v4643_v9, %v4641_v1  ;;  %v4642_v14 = vsel %vm1092_vm3, %v4637_v26, %v4641_v1  ;;  %v757_v63 = vld [vmem:[%s26245_s1 + $0xe8] sm:$0xff]  ;;  %v4691_v1 = vshrl.u32 %v23615_v52, 16 }
 0x182   : > { %v23647_v26 = vld [vmem:[#allocation2 + $0x98] sm:$0xff]  }
 0x183   : > { %v4650_v36 = vsel %vm1092_vm3, %v4645_v25, %v4649_v44  ;;  %v4695_v44 = vshll.u32 %v23620_v54, 16 }
 0x185   : > { %19479 = vmatmul.mubr.bf16.gmra.mrb[44].mxu0 %v22142_v13  ;;  %5800 = vperm.xlu0 %22005, %v750_v11   ;;  %v760_v11 = vld [vmem:[%s26245_s1 + $0x100] sm:$0xff] }
 0x186   : > { %19498 = vmatprep.mubr.bf16.mxu0 %v4602_v29  ;;  %v751_v29 = vld [vmem:[%s26245_s1 + $0xb8] sm:$0xff] }
 0x187   : > { %5805 = vperm.xlu1 %22006, %v751_v29   ;;  %v4697_v29 = vrot.slane %v4695_v44, 1  ;;  %v22174_v44 = vld [vmem:[#allocation2 + $0x2c] sm:$0xff]  }
 0x188   : > { %19203 = vmatmul.mubr.bf16.gmra.mrb[24].mxu1 %v1916_v32  ;;  %v4663_v32 = vshll.u32 %v23569_v28, 16 }
 0x189   : > { %19206 = vmatprep.mubr.bf16.mxu1 %v1918_v34  ;;  %v22173_v34 = vld [vmem:[#allocation3 + $0x228] sm:$0xff]   ;;  %5810 = vperm.xlu0 %22005, %v752_v21   ;;  %v762_v21 = vld [vmem:[%s26245_s1 + $0x110] sm:$0xff] }
 0x18a   : > { %v4665_v17 = vrot.slane %v4663_v32, 1  ;;  %v761_v32 = vld [vmem:[%s26245_s1 + $0x108] sm:$0xff] }
 0x18b   : > { %5815 = vperm.xlu1 %22006, %v753_v42   ;;  %v23670_v42 = vld [vmem:[#allocation2 + $0xb0] sm:$0xff]  }
 0x18c   : > { %v4669_v9 = vor.u32 %v4667_v33, %v4665_v17  ;;  %v23668_v33 = vld [vmem:[#allocation2 + $0xa8] sm:$0xff]  }
 0x18d   : > { %19499 = vmatmul.mubr.bf16.vlgmr.msra.gmra.mrb[0].mxu0 %v4610_v15  ;;  %v22625_v15 = vld [vmem:[#allocation2 + $0xb8] sm:$0xff]   ;;  %5820 = vperm.xlu0 %22005, %v754_v46   ;;  %v764_v46 = vld [vmem:[%s26245_s1 + $0x120] sm:$0xff] }
 0x18e   : > { %19547 = vmatpush3.bf16.msra.mxu0 %v23435_v0  ;;  %19502 = vmatprep.mubr.bf16.mxu0 %v4618_v53  ;;  %v23563_v0 = vld [vmem:[#allocation2 + $0x58] sm:$0xff]   ;;  %v1933_v53 = vrot.slane %v22625_v15, 1  ;;  %v23678_v15 = vld [vmem:[#allocation2 + $0xc0] sm:$0xff]  }
 0x18f   : > { %19548 = vmatprep.subr.bf16.mxu0 %v22151_v50  ;;  %v4655_v13 = vshll.u32 %v23563_v0, 16  ;;  %v4659_v27 = vshrl.u32 %v23563_v0, 16  ;;  %5825 = vperm.xlu1 %22006, %v755_v47   ;;  %v4715_v47 = vshrl.u32 %v23642_v31, 16 }
 0x190   : > { %19207 = vmatmul.mubr.bf16.gmra.mrb[28].mxu1 %v1920_v38  ;;  %v22182_v38 = vld [vmem:[#allocation3 + $0x230] sm:$0xff]   ;;  %v1934_v49 = vsel %vm1887_vm4, %v1931_v45, %v1933_v53  ;;  %v1936_v56 = vsel %vm1887_vm4, %v1933_v53, %v1935_v3  ;;  %v4759_v3 = vshll.u32 %v23678_v15, 16 }
 0x191   : > { %19210 = vmatprep.mubr.bf16.mxu1 %v1922_v43  ;;  %v4657_v24 = vrot.slane %v4655_v13, 1  ;;  %5830 = vperm.xlu0 %22005, %v756_v59   ;;  %v23650_v13 = vld [vmem:[#allocation2 + $0xa0] sm:$0xff]   ;;  %v765_v59 = vld [vmem:[%s26245_s1 + $0x128] sm:$0xff] }
 0x192   : > { %19549 = vmatpush3.bf16.msra.mxu0 %v22151_v50  ;;  %v4671_v50 = vshll.u32 %v23589_v8, 16  ;;  %v4727_v45 = vshll.u32 %v23650_v13, 16 }
 0x193   : > { %19550 = vmatprep.subr.bf16.mxu0 %v22157_v4  ;;  %v4661_v43 = vor.u32 %v4659_v27, %v4657_v24  ;;  %v4658_v58 = vsel %vm1092_vm3, %v4653_v22, %v4657_v24  ;;  %5835 = vperm.xlu1 %22006, %v757_v63   ;;  %v22164_v27 = vld [vmem:[#allocation2 + $0xc] sm:$0xff]   ;;  %v4719_v24 = vshll.u32 %v23647_v26, 16  ;;  %v768_v63 = vld [vmem:[%s26245_s1 + $0x140] sm:$0xff] }
 0x195   : > { %19503 = vmatmul.mubr.bf16.gmra.mrb[4].mxu0 %v4626_v40  ;;  %v4666_v60 = vsel %vm1092_vm3, %v4661_v43, %v4665_v17  ;;  %v4681_v40 = vrot.slane %v4679_v37, 1  ;;  %v22169_v43 = vld [vmem:[#allocation2 + $0x1c] sm:$0xff]   ;;  %v4721_v37 = vrot.slane %v4719_v24, 1  ;;  %v22176_v24 = vld [vmem:[#allocation2 + $0x34] sm:$0xff]  }
 0x196   : > { %19506 = vmatprep.mubr.bf16.mxu0 %v4634_v5  ;;  %19551 = vmatpush3.bf16.msra.mxu0 %v22157_v4  ;;  %v4673_v4 = vrot.slane %v4671_v50, 1  ;;  %v4683_v5 = vshrl.u32 %v23595_v19, 16  ;;  %v22166_v50 = vld [vmem:[#allocation2 + $0x14] sm:$0xff]  }
 0x197   : > { %19552 = vmatprep.subr.bf16.mxu0 %v22161_v35  ;;  %5845 = vperm.xlu1 %22006, %v759_v48  }
 0x198   : > { %19211 = vmatmul.mubr.bf16.gmra.mrb[32].mxu1 %v1924_v6  ;;  %v4687_v6 = vshll.u32 %v23615_v52, 16  ;;  %v4674_v23 = vsel %vm1092_vm3, %v4669_v9, %v4673_v4  ;;  %v4743_v9 = vshll.u32 %v23670_v42, 16 }
 0x199   : > { %19214 = vmatprep.mubr.bf16.mxu1 %v1926_v10  ;;  %v4677_v10 = vor.u32 %v4675_v30, %v4673_v4 }
 0x19a   : > { %19553 = vmatpush3.bf16.msra.mxu0 %v22161_v35  ;;  %v758_v35 = vld [vmem:[%s26245_s1 + $0xf0] sm:$0xff]  ;;  %v4689_v25 = vrot.slane %v4687_v6, 1  ;;  %v22627_v6 = vld [vmem:[#allocation3 + $0x108] sm:$0xff]  }
 0x19b   : > { %19554 = vmatprep.subr.bf16.mxu0 %v22168_v7  ;;  %5840 = vperm.xlu0 %22005, %v758_v35   ;;  %v4682_v61 = vsel %vm1092_vm3, %v4677_v10, %v4681_v40  ;;  %v23702_v35 = vld [vmem:[#allocation2 + $0xc8] sm:$0xff]  }
 0x19c   : > { %v4693_v22 = vor.u32 %v4691_v1, %v4689_v25  ;;  %5855 = vperm.xlu1 %22006, %v761_v32   ;;  %v23705_v1 = vld [vmem:[#allocation2 + $0xd0] sm:$0xff]   ;;  %v23718_v32 = vrot.slane %v4759_v3, 1 }
 0x19d   : > { %19507 = vmatmul.mubr.bf16.gmra.mrb[8].mxu0 %v4642_v14  ;;  %v4705_v14 = vrot.slane %v4703_v41, 1 }
 0x19e   : > { %19510 = vmatprep.mubr.bf16.mxu0 %v4650_v36  ;;  %19555 = vmatpush3.bf16.msra.mxu0 %v22168_v7  ;;  %v4685_v7 = vor.u32 %v4683_v5, %v4681_v40  ;;  %v4707_v36 = vshrl.u32 %v23623_v16, 16  ;;  %v4698_v53 = vsel %vm1092_vm3, %v4693_v22, %v4697_v29  ;;  %v22171_v5 = vld [vmem:[#allocation2 + $0x24] sm:$0xff]  }
 0x19f   : > { %19556 = vmatprep.subr.bf16.mxu0 %v22173_v34  ;;  %5850 = vperm.xlu0 %22005, %v760_v11   ;;  %v4739_v11 = vshrl.u32 %v23668_v33, 16 }
 0x1a0   : > { %19215 = vmatmul.mubr.bf16.gmra.mrb[36].mxu1 %v1928_v39  ;;  %v4711_v39 = vshll.u32 %v23642_v31, 16  ;;  %v4690_v17 = vsel %vm1092_vm3, %v4685_v7, %v4689_v25  ;;  %5865 = vperm.xlu1 %22006, %v763_v20   ;;  %v4709_v4 = vor.u32 %v4707_v36, %v4705_v14  ;;  %v22628_v7 = vld [vmem:[#allocation3 + $0x110] sm:$0xff]   ;;  %v4747_v25 = vshrl.u32 %v23670_v42, 16  ;;  %v22629_v20 = vld [vmem:[#allocation3 + $0x118] sm:$0xff]  }
 0x1a1   : > { %19218 = vmatprep.mubr.bf16.mxu1 %v1930_v18  ;;  %v23675_v18 = vld [vmem:[#allocation2 + $0xb8] sm:$0xff]   ;;  %v4775_v36 = vshll.u32 %v23705_v1, 16 }
 0x1a2   : > { %19557 = vmatpush3.bf16.msra.mxu0 %v22173_v34  ;;  %v4699_v34 = vshrl.u32 %v23620_v54, 16  ;;  %v4713_v30 = vrot.slane %v4711_v39, 1  ;;  %v772_v39 = vld [vmem:[%s26245_s1 + $0x160] sm:$0xff] }
 0x1a3   : > { %19558 = vmatprep.subr.bf16.mxu0 %v22182_v38  ;;  %5860 = vperm.xlu0 %22005, %v762_v21  }
 0x1a4   : > { %5875 = vperm.xlu1 %22006, %v765_v59   ;;  %v4714_v10 = vsel %vm1092_vm3, %v4709_v4, %v4713_v30  ;;  %v4717_v48 = vor.u32 %v4715_v47, %v4713_v30  ;;  %v774_v30 = vld [vmem:[%s26245_s1 + $0x170] sm:$0xff]  ;;  %v775_v59 = vld [vmem:[%s26245_s1 + $0x178] sm:$0xff] }
 0x1a5   : > { %19511 = vmatmul.mubr.bf16.gmra.mrb[12].mxu0 %v4658_v58  ;;  %v4723_v58 = vshrl.u32 %v23647_v26, 16 }
 0x1a6   : > { %19514 = vmatprep.mubr.bf16.mxu0 %v4666_v60  ;;  %19559 = vmatpush3.bf16.msra.mxu0 %v22182_v38  ;;  %v4701_v38 = vor.u32 %v4699_v34, %v4697_v29  ;;  %v23689_v60 = vrot.slane %v4727_v45, 1  ;;  %v4755_v29 = vshrl.u32 %v23675_v18, 16  ;;  %v4767_v34 = vshll.u32 %v23702_v35, 16 }
 0x1a7   : > { %19560 = vmatprep.subr.bf16.mxu0 %v22187_v55  ;;  %5870 = vperm.xlu0 %22005, %v764_v46   ;;  %v4725_v21 = vor.u32 %v4723_v58, %v4721_v37  ;;  %v4722_v22 = vsel %vm1092_vm3, %v4717_v48, %v4721_v37  ;;  %v22178_v46 = vld [vmem:[#allocation2 + $0x3c] sm:$0xff]  }
 0x1a8   : > { %19219 = vmatmul.mubr.bf16.gmra.mrb[40].mxu1 %v1932_v57  ;;  %v4735_v57 = vshll.u32 %v23668_v33, 16  ;;  %v4706_v40 = vsel %vm1092_vm3, %v4701_v38, %v4705_v14  ;;  %5885 = vperm.xlu1 %22006, %v767_v12   ;;  %v771_v14 = vld [vmem:[%s26245_s1 + $0x158] sm:$0xff]  ;;  %v4777_v38 = vrot.slane %v4775_v36, 1  ;;  %v22632_v12 = vld [vmem:[#allocation3 + $0x130] sm:$0xff]  }
 0x1a9   : > { %19222 = vmatprep.mubr.bf16.mxu1 %v1934_v49  ;;  %v4751_v49 = vshll.u32 %v23675_v18, 16  ;;  %v4730_v45 = vsel %vm1092_vm3, %v4725_v21, %v23689_v60  ;;  %v22630_v37 = vld [vmem:[#allocation3 + $0x120] sm:$0xff]  }
 0x1aa   : > { %19561 = vmatpush3.bf16.msra.mxu0 %v22187_v55  ;;  %v766_v55 = vld [vmem:[%s26245_s1 + $0x130] sm:$0xff]  ;;  %v4737_v41 = vrot.slane %v4735_v57, 1  ;;  %v22180_v57 = vld [vmem:[#allocation2 + $0x44] sm:$0xff]  }
 0x1ab   : > { %5880 = vperm.xlu0 %22005, %v766_v55  }
 0x1ac   : > { %v4741_v55 = vor.u32 %v4739_v11, %v4737_v41 }
 0x1ad   : > { %19515 = vmatmul.mubr.bf16.gmra.mrb[16].mxu0 %v4674_v23  ;;  %v4745_v23 = vrot.slane %v4743_v9, 1  ;;  %v22631_v9 = vld [vmem:[#allocation3 + $0x128] sm:$0xff]  }
 0x1ae   : > { %19518 = vmatprep.mubr.bf16.mxu0 %v4682_v61  ;;  %v769_v61 = vld [vmem:[%s26245_s1 + $0x148] sm:$0xff] }
 0x1af   : > { %5890 = vperm.xlu0 %22005, %v768_v63   ;;  %5895 = vperm.xlu1 %22006, %v769_v61   ;;  %v4746_v4 = vsel %vm1092_vm3, %v4741_v55, %v4745_v23 }
 0x1b0   : > { %19223 = vmatmul.mubr.bf16.gmra.mrb[44].mxu1 %v1936_v56  ;;  %v770_v56 = vld [vmem:[%s26245_s1 + $0x150] sm:$0xff] }
 0x1b1   : > { %19242 = vmatprep.mubr.bf16.mxu1 %v22164_v27  ;;  %v4753_v27 = vrot.slane %v4751_v49, 1  ;;  %v4749_v49 = vor.u32 %v4747_v25, %v4745_v23  ;;  %v4779_v23 = vshrl.u32 %v23705_v1, 16 }
 0x1b3   : > { %5900 = vperm.xlu0 %22005, %v770_v56   ;;  %5905 = vperm.xlu1 %22006, %v771_v14   ;;  %v4757_v3 = vor.u32 %v4755_v29, %v4753_v27  ;;  %v4754_v63 = vsel %vm1092_vm3, %v4749_v49, %v4753_v27  ;;  %v22190_v27 = vld [vmem:[#allocation2 + $0x64] sm:$0xff]   ;;  %v22192_v29 = vld [vmem:[#allocation2 + $0x6c] sm:$0xff]   ;;  %v4781_v21 = vor.u32 %v4779_v23, %v4777_v38 }
 0x1b4   : > { %v22635_v14 = vld [vmem:[#allocation2 + $0x20] sm:$0xff]   ;;  %v22641_v23 = vld [vmem:[#allocation2 + $0x6c] sm:$0xff]  }
 0x1b5   : > { %19519 = vmatmul.mubr.bf16.gmra.mrb[20].mxu0 %v4690_v17  ;;  %v4763_v17 = vshrl.u32 %v23678_v15, 16  ;;  %v5137_v36 = vrot.slane %v22635_v14, 1  ;;  %v5159_v14 = vrot.slane %v23615_v52, 1 }
 0x1b6   : > { %19522 = vmatprep.mubr.bf16.mxu0 %v4698_v53  ;;  %v4771_v53 = vshrl.u32 %v23702_v35, 16 }
 0x1b7   : > { %5910 = vperm.xlu0 %22005, %v772_v39   ;;  %v4765_v48 = vor.u32 %v4763_v17, %v23718_v32  ;;  %v22637_v17 = vld [vmem:[#allocation2 + $0x30] sm:$0xff]  }
 0x1b8   : > { %19243 = vmatmul.mubr.bf16.vlgmr.msra.gmra.mrb[0].mxu1 %v22166_v50  ;;  %v4769_v50 = vrot.slane %v4767_v34, 1 }
 0x1b9   : > { %20770 = vmatpush3.bf16.msra.mxu1 %v23492_v2  ;;  %19246 = vmatprep.mubr.bf16.mxu1 %v22169_v43  ;;  %v4731_v2 = vshrl.u32 %v23650_v13, 16  ;;  %v773_v43 = vld [vmem:[%s26245_s1 + $0x168] sm:$0xff] }
 0x1ba   : > { %20763 = vmatprep.subr.bf16.mxu1 %v22627_v6  ;;  %5915 = vperm.xlu1 %22006, %v773_v43   ;;  %v4770_v11 = vsel %vm1092_vm3, %v4765_v48, %v4769_v50  ;;  %v22196_v43 = vld [vmem:[#allocation2 + $0x84] sm:$0xff]  }
 0x1bb   : > { %v4733_v47 = vor.u32 %v4731_v2, %v23689_v60  ;;  %5920 = vperm.xlu0 %22005, %v774_v30   ;;  %v22183_v60 = vld [vmem:[#allocation2 + $0x4c] sm:$0xff]   ;;  %v4773_v2 = vor.u32 %v4771_v53, %v4769_v50  ;;  %v5141_v50 = vrot.slane %v22637_v17, 1 }
 0x1bc   : > { %v22197_v30 = vld [vmem:[#allocation2 + $0x8c] sm:$0xff]  }
 0x1bd   : > { %19523 = vmatmul.mubr.bf16.gmra.mrb[24].mxu0 %v4706_v40  ;;  %20771 = vmatpush3.bf16.msra.mxu1 %v22627_v6  ;;  %v4738_v58 = vsel %vm1092_vm3, %v4733_v47, %v4737_v41  ;;  %v22185_v40 = vld [vmem:[#allocation2 + $0x54] sm:$0xff]   ;;  %v4762_v6 = vsel %vm1092_vm3, %v4757_v3, %v23718_v32  ;;  %v4778_v56 = vsel %vm1092_vm3, %v4773_v2, %v4777_v38 }
 0x1be   : > { %19526 = vmatprep.mubr.bf16.mxu0 %v4714_v10  ;;  %20764 = vmatprep.subr.bf16.mxu1 %v22628_v7  ;;  %v22188_v10 = vld [vmem:[#allocation2 + $0x5c] sm:$0xff]   ;;  %v5132_v41 = vld [vmem:[#allocation2 + $0x18] sm:$0xe] }
 0x1bf   : > { %5925 = vperm.xlu1 %22006, %v775_v59   ;;  %v22638_v47 = vld [vmem:[#allocation2 + $0x38] sm:$0xff]   ;;  %v22639_v59 = vld [vmem:[#allocation2 + $0x40] sm:$0xff]  }
 0x1c0   : > { %19247 = vmatmul.mubr.bf16.gmra.mrb[4].mxu1 %v22171_v5  ;;  %v22633_v5 = vld [vmem:[#allocation3 + $0x138] sm:$0xff]   ;;  %v5145_v55 = vrot.slane %v22639_v59, 1 }
 0x1c1   : > { %19250 = vmatprep.mubr.bf16.mxu1 %v22174_v44  ;;  %20772 = vmatpush3.bf16.msra.mxu1 %v22628_v7  ;;  %v23748_v44 = vld [vmem:[#allocation2 + $0xd8] ss:$0 sps:$4 sm:$0x11]   ;;  %v22634_v7 = vld [vmem:[#allocation2 + $0x1c] sm:$0xf] }
 0x1c2   : > { %20765 = vmatprep.subr.bf16.mxu1 %v22629_v20  ;;  %v4783_v61 = vshll.u32 %v23748_v44, 16  ;;  %v17560_v25 = vcombine.low %v5132_v41, %v22634_v7  ;;  %v22202_v2 = vld [vmem:[#allocation2 + $0xb4] sm:$0xff]   ;;  %v22203_v41 = vld [vmem:[#allocation2 + $0xbc] sm:$0xff]  }
 0x1c4   : > { %v4785_v32 = vrot.slane %v4783_v61, 1  ;;  %v5136_v34 = vrot.slane %v17560_v25, 1  ;;  %v3067_v61 = vshrl.u32 %v22641_v23, 16 }
 0x1c5   : > { %19527 = vmatmul.mubr.bf16.gmra.mrb[28].mxu0 %v4722_v22  ;;  %20773 = vmatpush3.bf16.msra.mxu1 %v22629_v20  ;;  %v22195_v20 = vld [vmem:[#allocation2 + $0x7c] sm:$0xff]  }
 0x1c6   : > { %19530 = vmatprep.mubr.bf16.mxu0 %v4730_v45  ;;  %20766 = vmatprep.subr.bf16.mxu1 %v22630_v37  ;;  %v4786_v39 = vsel %vm1092_vm3, %v4781_v21, %v4785_v32  ;;  %v5138_v22 = vsel %vm1887_vm4, %v5136_v34, %v5137_v36  ;;  %v22636_v45 = vld [vmem:[#allocation2 + $0x28] sm:$0xff]   ;;  %v3069_v25 = vor.u32 %v3067_v61, %v23276_v62  ;;  %v22643_v32 = vld [vmem:[#allocation2 + $0x7c] sm:$0xff]  }
 0x1c7   : > { %v22204_v21 = vld [vmem:[#allocation2 + $0xc4] sm:$0xff]   ;;  %v3079_v34 = vshll.u32 %v22643_v32, 16 }
 0x1c8   : > { %19251 = vmatmul.mubr.bf16.gmra.mrb[8].mxu1 %v22176_v24  ;;  %v22194_v24 = vld [vmem:[#allocation2 + $0x74] sm:$0xff]  }
 0x1c9   : > { %19254 = vmatprep.mubr.bf16.mxu1 %v22178_v46  ;;  %20774 = vmatpush3.bf16.msra.mxu1 %v22630_v37  ;;  %v5139_v46 = vrot.slane %v22636_v45, 1  ;;  %v5143_v37 = vrot.slane %v22638_v47, 1  ;;  %v3081_v62 = vrot.slane %v3079_v34, 1 }
 0x1ca   : > { %20767 = vmatprep.subr.bf16.mxu1 %v22631_v9 }
 0x1cb   : > { %v5140_v53 = vsel %vm1887_vm4, %v5137_v36, %v5139_v46  ;;  %v5142_v38 = vsel %vm1887_vm4, %v5139_v46, %v5141_v50 }
 0x1cd   : > { %19531 = vmatmul.mubr.bf16.gmra.mrb[32].mxu0 %v4738_v58  ;;  %20775 = vmatpush3.bf16.msra.mxu1 %v22631_v9  ;;  %v5144_v58 = vsel %vm1887_vm4, %v5141_v50, %v5143_v37  ;;  %v22198_v9 = vld [vmem:[#allocation2 + $0x94] sm:$0xff]  }
 0x1ce   : > { %19534 = vmatprep.mubr.bf16.mxu0 %v4746_v4  ;;  %20768 = vmatprep.subr.bf16.mxu1 %v22632_v12  ;;  %v22199_v4 = vld [vmem:[#allocation2 + $0x9c] sm:$0xff]  }
 0x1d0   : > { %19255 = vmatmul.mubr.bf16.gmra.mrb[12].mxu1 %v22180_v57  ;;  %v5146_v57 = vsel %vm1887_vm4, %v5143_v37, %v5145_v55  ;;  %v22646_v37 = vld [vmem:[#allocation2 + $0x94] sm:$0xff]  }
 0x1d1   : > { %19258 = vmatprep.mubr.bf16.mxu1 %v22183_v60  ;;  %20776 = vmatpush3.bf16.msra.mxu1 %v22632_v12  ;;  %v22640_v60 = vld [vmem:[#allocation2 + $0x48] sm:$0xff]   ;;  %v5149_v12 = vrot.slane %v23541_v51, 1  ;;  %v3103_v59 = vshll.u32 %v22646_v37, 16 }
 0x1d2   : > { %20769 = vmatprep.subr.bf16.mxu1 %v22633_v5  ;;  %v5147_v49 = vrot.slane %v22640_v60, 1 }
 0x1d3   : > { %v3105_v60 = vrot.slane %v3103_v59, 1 }
 0x1d4   : > { %v5148_v3 = vsel %vm1887_vm4, %v5145_v55, %v5147_v49  ;;  %v5165_v55 = vrot.slane %v23642_v31, 1 }
 0x1d5   : > { %19535 = vmatmul.mubr.bf16.gmra.mrb[36].mxu0 %v4754_v63  ;;  %20777 = vmatpush3.bf16.msra.mxu1 %v22633_v5  ;;  %v5150_v63 = vsel %vm1887_vm4, %v5147_v49, %v5149_v12  ;;  %v22201_v5 = vld [vmem:[#allocation2 + $0xac] sm:$0xff]  }
 0x1d6   : > { %19538 = vmatprep.mubr.bf16.mxu0 %v4762_v6  ;;  %v5151_v6 = vrot.slane %v23563_v0, 1  ;;  %v5157_v0 = vrot.slane %v23595_v19, 1  ;;  %v3083_v19 = vshrl.u32 %v22643_v32, 16 }
 0x1d8   : > { %19259 = vmatmul.mubr.bf16.gmra.mrb[16].mxu1 %v22185_v40  ;;  %v22200_v40 = vld [vmem:[#allocation2 + $0xa4] sm:$0xff]   ;;  %v5152_v48 = vsel %vm1887_vm4, %v5149_v12, %v5151_v6  ;;  %v5160_v45 = vsel %vm1887_vm4, %v5157_v0, %v5159_v14  ;;  %v3085_v46 = vor.u32 %v3083_v19, %v3081_v62  ;;  %v22647_v12 = vld [vmem:[#allocation2 + $0x9c] sm:$0xff]  }
 0x1d9   : > { %19262 = vmatprep.mubr.bf16.mxu1 %v22188_v10  ;;  %v5153_v10 = vrot.slane %v23569_v28, 1 }
 0x1db   : > { %v5154_v51 = vsel %vm1887_vm4, %v5151_v6, %v5153_v10  ;;  %v22648_v6 = vld [vmem:[#allocation2 + $0xa4] sm:$0xff]  }
 0x1dd   : > { %19539 = vmatmul.mubr.bf16.gmra.mrb[40].mxu0 %v4770_v11  ;;  %v5155_v11 = vrot.slane %v23589_v8, 1 }
 0x1de   : > { %19542 = vmatprep.mubr.bf16.mxu0 %v4778_v56  ;;  %v22642_v56 = vld [vmem:[#allocation2 + $0x74] sm:$0xff]  }
 0x1df   : > { %v3071_v7 = vshll.u32 %v22642_v56, 16  ;;  %v5156_v28 = vsel %vm1887_vm4, %v5153_v10, %v5155_v11  ;;  %v3075_v8 = vshrl.u32 %v22642_v56, 16  ;;  %v3119_v10 = vshll.u32 %v22648_v6, 16  ;;  %v22649_v56 = vld [vmem:[#allocation2 + $0xac] sm:$0xff]  }
 0x1e0   : > { %19263 = vmatmul.mubr.bf16.gmra.mrb[20].mxu1 %v22190_v27 }
 0x1e1   : > { %19266 = vmatprep.mubr.bf16.mxu1 %v22192_v29  ;;  %v3073_v27 = vrot.slane %v3071_v7, 1  ;;  %v5158_v29 = vsel %vm1887_vm4, %v5155_v11, %v5157_v0  ;;  %v3121_v23 = vrot.slane %v3119_v10, 1  ;;  %v3127_v7 = vshll.u32 %v22649_v56, 16 }
 0x1e2   : > { %v3123_v0 = vshrl.u32 %v22648_v6, 16 }
 0x1e3   : > { %v3074_v36 = vsel %vm1092_vm3, %v3069_v25, %v3073_v27  ;;  %v3131_v25 = vshrl.u32 %v22649_v56, 16  ;;  %v3129_v32 = vrot.slane %v3127_v7, 1 }
 0x1e4   : > { %v3125_v34 = vor.u32 %v3123_v0, %v3121_v23 }
 0x1e5   : > { %19543 = vmatmul.mubr.bf16.gmra.mrb[44].mxu0 %v4786_v39  ;;  %v22644_v39 = vld [vmem:[#allocation2 + $0x84] sm:$0xff]  }
 0x1e6   : > { %19562 = vmatprep.mubr.bf16.mxu0 %v5138_v22  ;;  %v3087_v22 = vshll.u32 %v22644_v39, 16 }
 0x1e8   : > { %19267 = vmatmul.mubr.bf16.gmra.mrb[24].mxu1 %v22194_v24  ;;  %v5161_v24 = vrot.slane %v23620_v54, 1  ;;  %v3089_v17 = vrot.slane %v3087_v22, 1 }
 0x1e9   : > { %19270 = vmatprep.mubr.bf16.mxu1 %v22195_v20  ;;  %v3077_v20 = vor.u32 %v3075_v8, %v3073_v27  ;;  %v22650_v27 = vld [vmem:[#allocation2 + $0xb4] sm:$0xff]  }
 0x1ea   : > { %v5162_v50 = vsel %vm1887_vm4, %v5159_v14, %v5161_v24  ;;  %v3090_v54 = vsel %vm1092_vm3, %v3085_v46, %v3089_v17  ;;  %v3133_v14 = vor.u32 %v3131_v25, %v3129_v32 }
 0x1eb   : > { %v3082_v52 = vsel %vm1092_vm3, %v3077_v20, %v3081_v62  ;;  %v5175_v62 = vrot.slane %v23675_v18, 1 }
 0x1ed   : > { %19563 = vmatmul.mubr.bf16.vlgmr.msra.gmra.mrb[0].mxu0 %v5140_v53  ;;  %v22645_v53 = vld [vmem:[#allocation2 + $0x8c] sm:$0xff]  }
 0x1ee   : > { %19566 = vmatprep.mubr.bf16.mxu0 %v5142_v38  ;;  %v3095_v38 = vshll.u32 %v22645_v53, 16  ;;  %v3099_v47 = vshrl.u32 %v22645_v53, 16 }
 0x1f0   : > { %19271 = vmatmul.mubr.bf16.gmra.mrb[28].mxu1 %v22196_v43  ;;  %v3091_v43 = vshrl.u32 %v22644_v39, 16  ;;  %v22651_v39 = vld [vmem:[#allocation2 + $0xbc] sm:$0xff]  }
 0x1f1   : > { %19274 = vmatprep.mubr.bf16.mxu1 %v22197_v30  ;;  %v5163_v30 = vrot.slane %v23623_v16, 1  ;;  %v3143_v22 = vshll.u32 %v22651_v39, 16  ;;  %v3147_v20 = vshrl.u32 %v22651_v39, 16  ;;  %v6803_v39 = vld [vmem:[#allocation2] sm:$0xf] }
 0x1f3   : > { %v5166_v49 = vsel %vm1887_vm4, %v5163_v30, %v5165_v55  ;;  %v3145_v53 = vrot.slane %v3143_v22, 1  ;;  %v6804_v22 = vld [vmem:[#allocation2 + $0x4] sm:$0xf] }
 0x1f5   : > { %19567 = vmatmul.mubr.bf16.gmra.mrb[4].mxu0 %v5144_v58  ;;  %v3097_v58 = vrot.slane %v3095_v38, 1 }
 0x1f6   : > { %19570 = vmatprep.mubr.bf16.mxu0 %v5146_v57  ;;  %v3093_v57 = vor.u32 %v3091_v43, %v3089_v17  ;;  %v22205_v17 = vld [vmem:[#allocation6 + $0x40] sm:$0xff]   ;;  %v3149_v43 = vor.u32 %v3147_v20, %v3145_v53 }
 0x1f7   : > { %19610 = vmatprep.subr.bf16.mxu1 %v22205_v17 }
 0x1f8   : > { %19275 = vmatmul.mubr.bf16.gmra.mrb[32].mxu1 %v22198_v9  ;;  %v5164_v9 = vsel %vm1887_vm4, %v5161_v24, %v5163_v30  ;;  %v3098_v16 = vsel %vm1092_vm3, %v3093_v57, %v3097_v58  ;;  %v3139_v24 = vshrl.u32 %v22650_v27, 16  ;;  %v5181_v57 = vrot.slane %v23705_v1, 1  ;;  %v22207_v1 = vld [vmem:[#allocation6 + $0x50] sm:$0xff]  }
 0x1f9   : > { %19278 = vmatprep.mubr.bf16.mxu1 %v22199_v4  ;;  %v3101_v4 = vor.u32 %v3099_v47, %v3097_v58  ;;  %v22206_v58 = vld [vmem:[#allocation6 + $0x48] sm:$0xff]  }
 0x1fb   : > { %v3106_v31 = vsel %vm1092_vm3, %v3101_v4, %v3105_v60 }
 0x1fd   : > { %19571 = vmatmul.mubr.bf16.gmra.mrb[8].mxu0 %v5148_v3  ;;  %v3111_v3 = vshll.u32 %v22647_v12, 16 }
 0x1fe   : > { %19574 = vmatprep.mubr.bf16.mxu0 %v5150_v63  ;;  %v3107_v63 = vshrl.u32 %v22646_v37, 16  ;;  %v22653_v37 = vld [vmem:[#allocation2 + $0xcc] ss:$0 sps:$4 sm:$0x11]  }
 0x1ff   : > { %v3159_v59 = vshll.u32 %v22653_v37, 16 }
 0x200   : > { %19279 = vmatmul.mubr.bf16.gmra.mrb[36].mxu1 %v22200_v40  ;;  %v5167_v40 = vrot.slane %v23647_v26, 1 }
 0x201   : > { %19282 = vmatprep.mubr.bf16.mxu1 %v22201_v5  ;;  %v3115_v5 = vshrl.u32 %v22647_v12, 16  ;;  %v3161_v4 = vrot.slane %v3159_v59, 1 }
 0x205   : > { %19575 = vmatmul.mubr.bf16.gmra.mrb[12].mxu0 %v5152_v48  ;;  %v5169_v48 = vrot.slane %v23650_v13, 1 }
 0x206   : > { %19578 = vmatprep.mubr.bf16.mxu0 %v5154_v51  ;;  %v3113_v51 = vrot.slane %v3111_v3, 1 }
 0x207   : > { %v5170_v61 = vsel %vm1887_vm4, %v5167_v40, %v5169_v48 }
 0x208   : > { %19283 = vmatmul.mubr.bf16.gmra.mrb[40].mxu1 %v22202_v2  ;;  %v3109_v2 = vor.u32 %v3107_v63, %v3105_v60  ;;  %v3117_v11 = vor.u32 %v3115_v5, %v3113_v51  ;;  %v22209_v63 = vld [vmem:[#allocation6 + $0x60] sm:$0xff]  }
 0x209   : > { %19286 = vmatprep.mubr.bf16.mxu1 %v22203_v41  ;;  %v5168_v41 = vsel %vm1887_vm4, %v5165_v55, %v5167_v40  ;;  %v22210_v40 = vld [vmem:[#allocation6 + $0x68] sm:$0xff]   ;;  %v23811_v5 = vld [vmem:[#allocation6] sm:$0xff]  }
 0x20a   : > { %v3114_v26 = vsel %vm1092_vm3, %v3109_v2, %v3113_v51  ;;  %v3122_v13 = vsel %vm1092_vm3, %v3117_v11, %v3121_v23 }
 0x20d   : > { %19579 = vmatmul.mubr.bf16.gmra.mrb[16].mxu0 %v5156_v28  ;;  %v5171_v28 = vrot.slane %v23668_v33, 1  ;;  %v3130_v33 = vsel %vm1092_vm3, %v3125_v34, %v3129_v32 }
 0x20e   : > { %19582 = vmatprep.mubr.bf16.mxu0 %v5158_v29  ;;  %v3135_v29 = vshll.u32 %v22650_v27, 16 }
 0x20f   : > { %v5172_v8 = vsel %vm1887_vm4, %v5169_v48, %v5171_v28 }
 0x210   : > { %19287 = vmatmul.mubr.bf16.gmra.mrb[44].mxu1 %v22204_v21  ;;  %v5173_v21 = vrot.slane %v23670_v42, 1 }
 0x211   : > { %19330 = vmatprep.mubr.bf16.mxu1 %v3074_v36  ;;  %v3137_v36 = vrot.slane %v3135_v29, 1 }
 0x212   : > { %v5174_v19 = vsel %vm1887_vm4, %v5171_v28, %v5173_v21 }
 0x213   : > { %v3138_v42 = vsel %vm1092_vm3, %v3133_v14, %v3137_v36  ;;  %v3141_v38 = vor.u32 %v3139_v24, %v3137_v36 }
 0x215   : > { %19583 = vmatmul.mubr.bf16.gmra.mrb[20].mxu0 %v5160_v45  ;;  %v22652_v45 = vld [vmem:[#allocation2 + $0xc4] sm:$0xff]  }
 0x216   : > { %19586 = vmatprep.mubr.bf16.mxu0 %v5162_v50  ;;  %v3151_v46 = vshll.u32 %v22652_v45, 16  ;;  %v5177_v50 = vrot.slane %v23678_v15, 1  ;;  %v3155_v47 = vshrl.u32 %v22652_v45, 16  ;;  %v5179_v15 = vrot.slane %v23702_v35, 1 }
 0x217   : > { %v5183_v35 = vrot.slane %v23748_v44, 1  ;;  %v22212_v44 = vld [vmem:[#allocation6 + $0x78] sm:$0xff]  }
 0x218   : > { %19331 = vmatmul.mubr.bf16.vlgmr.msra.gmra.mrb[24].mxu1 %v3082_v52  ;;  %v5176_v52 = vsel %vm1887_vm4, %v5173_v21, %v5175_v62  ;;  %v3153_v30 = vrot.slane %v3151_v46, 1  ;;  %v5178_v18 = vsel %vm1887_vm4, %v5175_v62, %v5177_v50  ;;  %v5180_v60 = vsel %vm1887_vm4, %v5177_v50, %v5179_v15  ;;  %v23857_v62 = vld [vmem:[%s26249_s5] ss:$0 sm:$0xff]  ;;  %v23861_v46 = vpop.permute.xlu1 %5700 }
 0x219   : > { %19334 = vmatprep.mubr.bf16.mxu1 %v3090_v54  ;;  %19611 = vmatpush3.bf16.msra.mxu1 %v22205_v17  ;;  %v3146_v54 = vsel %vm1092_vm3, %v3141_v38, %v3145_v53  ;;  %v5184_v3 = vsel %vm1887_vm4, %v5181_v57, %v5183_v35  ;;  %26340 = vst [vmem:[#allocation22_spill] sm:$0xff] %v23861_v46  ;;  %v23866_v17 = vld [vmem:[%s26250_s6] ss:$0 sm:$0xff] }
 0x21a   : > { %v3154_v55 = vsel %vm1092_vm3, %v3149_v43, %v3153_v30  ;;  %19612 = vmatprep.subr.bf16.mxu1 %v22206_v58 }
 0x21d   : > { %19587 = vmatmul.mubr.bf16.gmra.mrb[24].mxu0 %v5164_v9  ;;  %v3157_v9 = vor.u32 %v3155_v47, %v3153_v30  ;;  %19613 = vmatpush3.bf16.msra.mxu1 %v22206_v58 }
 0x21e   : > { %19590 = vmatprep.mubr.bf16.mxu0 %v5166_v49  ;;  %v5182_v49 = vsel %vm1887_vm4, %v5179_v15, %v5181_v57  ;;  %19614 = vmatprep.subr.bf16.mxu1 %v22207_v1 }
 0x21f   : > { %v3162_v12 = vsel %vm1092_vm3, %v3157_v9, %v3161_v4 }
 0x220   : > { %19335 = vmatmul.mubr.bf16.gmra.mrb[28].mxu1 %v3098_v16  ;;  %v22208_v16 = vld [vmem:[#allocation6 + $0x58] sm:$0xff]  }
 0x221   : > { %19338 = vmatprep.mubr.bf16.mxu1 %v3106_v31  ;;  %19615 = vmatpush3.bf16.msra.mxu1 %v22207_v1  ;;  %v22211_v31 = vld [vmem:[#allocation6 + $0x70] sm:$0xff]  }
 0x222   : > { %19616 = vmatprep.subr.bf16.mxu1 %v22208_v16 }
 0x225   : > { %19591 = vmatmul.mubr.bf16.gmra.mrb[28].mxu0 %v5168_v41  ;;  %19617 = vmatpush3.bf16.msra.mxu1 %v22208_v16 }
 0x226   : > { %19594 = vmatprep.mubr.bf16.mxu0 %v5170_v61  ;;  %19618 = vmatprep.subr.bf16.mxu1 %v22209_v63 }
 0x228   : > { %19339 = vmatmul.mubr.bf16.gmra.mrb[32].mxu1 %v3114_v26 }
 0x229   : > { %19342 = vmatprep.mubr.bf16.mxu1 %v3122_v13  ;;  %19619 = vmatpush3.bf16.msra.mxu1 %v22209_v63 }
 0x22a   : > { %19620 = vmatprep.subr.bf16.mxu1 %v22210_v40 }
 0x22d   : > { %19595 = vmatmul.mubr.bf16.gmra.mrb[32].mxu0 %v5172_v8  ;;  %19621 = vmatpush3.bf16.msra.mxu1 %v22210_v40 }
 0x22e   : > { %19598 = vmatprep.mubr.bf16.mxu0 %v5174_v19  ;;  %19622 = vmatprep.subr.bf16.mxu1 %v22211_v31  ;;  %v23850_v19 = vpop.permute.xlu0 %5690 }
 0x22f   : > { %26337 = vst [vmem:[#allocation19_spill] sm:$0xff] %v23850_v19 }
 0x230   : > { %19343 = vmatmul.mubr.bf16.gmra.mrb[36].mxu1 %v3130_v33  ;;  %v23852_v33 = vcombine.low %v6803_v39, %v6804_v22 }
 0x231   : > { %19346 = vmatprep.mubr.bf16.mxu1 %v3138_v42  ;;  %19623 = vmatpush3.bf16.msra.mxu1 %v22211_v31 }
 0x232   : > { %19624 = vmatprep.subr.bf16.mxu1 %v22212_v44  ;;  %26338 = vst [vmem:[#allocation20_spill] sm:$0xff] %v23852_v33  ;;  %v23859_v42 = vpop.permute.xlu0 %5695  ;;  %v6978_v38 = vshll.u32 %v23852_v33, 16 }
 0x233   : > { %26339 = vst [vmem:[#allocation21_spill] sm:$0xff] %v23859_v42 }
 0x234   : > { %v6980_v58 = vrot.slane %v6978_v38, 1 }
 0x235   : > { %19599 = vmatmul.mubr.bf16.gmra.mrb[36].mxu0 %v5176_v52  ;;  %19625 = vmatpush3.bf16.msra.mxu1 %v22212_v44 }
 0x236   : > { %19602 = vmatprep.mubr.bf16.mxu0 %v5178_v18  ;;  %19674 = vmatprep.subr.bf16.mxu1 %v23811_v5  ;;  %v23876_v57 = vpop.permute.xlu0 %5710 }
 0x237   : > { %26341 = vst [vmem:[#allocation23_spill] sm:$0xff] %v23876_v57 }
 0x238   : > { %19347 = vmatmul.mubr.bf16.gmra.mrb[40].mxu1 %v3146_v54 }
 0x239   : > { %19350 = vmatprep.mubr.bf16.mxu1 %v3154_v55  ;;  %v6976_v55 = vshrl.u32 %v23852_v33, 16 }
 0x23d   : > { %19603 = vmatmul.mubr.bf16.gmra.mrb[40].mxu0 %v5180_v60  ;;  %v23879_v60 = vpop.permute.xlu1 %5705 }
 0x23e   : > { %19606 = vmatprep.mubr.bf16.mxu0 %v5182_v49  ;;  %26342 = vst [vmem:[#allocation24_spill] sm:$0xff] %v23879_v60 }
 0x240   : > { %19351 = vmatmul.mubr.bf16.gmra.mrb[44].mxu1 %v3162_v12 }
 0x245   : > { %19607 = vmatmul.mubr.bf16.gmra.mrb[44].mxu0 %v5184_v3 }
 0x28b   : > { %v19244_v6 = vpop.f32.mrb[0].mxu1 }
 0x28c   : > { %v2556_v10 = vpop.f32.mrb[1].mxu1 }
 0x28d   : > { %v19245_v48 = vpop.f32.mrb[2].mxu1 }
 0x28e   : > { %v2559_v51 = vpop.f32.mrb[3].mxu1 }
 0x293   : > { %v19248_v2 = vpop.f32.mrb[4].mxu1 }
 0x294   : > { %v2572_v41 = vpop.f32.mrb[5].mxu1 }
 0x295   : > { %v23814_v11 = vpop.f32.mrb[6].mxu1 }
 0x296   : > { %v23816_v23 = vpop.f32.mrb[7].mxu1 }
 0x29b   : > { %v23818_v61 = vpop.f32.mrb[8].mxu1 }
 0x29c   : > { %v23820_v56 = vpop.f32.mrb[9].mxu1 }
 0x29d   : > { %v23822_v7 = vpop.f32.mrb[10].mxu1 }
 0x29e   : > { %v23824_v26 = vpop.f32.mrb[11].mxu1 }
 0x2a3   : > { %v23826_v0 = vpop.f32.mrb[12].mxu1 }
 0x2a4   : > { %v23828_v28 = vpop.f32.mrb[13].mxu1 }
 0x2a5   : > { %v23830_v13 = vpop.f32.mrb[14].mxu1 }
 0x2a6   : > { %v23832_v25 = vpop.f32.mrb[15].mxu1 }
 0x2ab   : > { %v23834_v27 = vpop.f32.mrb[16].mxu1 }
 0x2ac   : > { %v23836_v29 = vpop.f32.mrb[17].mxu1 }
 0x2ad   : > { %v23838_v21 = vpop.f32.mrb[18].mxu1 }
 0x2ae   : > { %v23840_v32 = vpop.f32.mrb[19].mxu1 }
 0x2b3   : > { %v23842_v34 = vpop.f32.mrb[20].mxu1 }
 0x2b4   : > { %v23844_v8 = vpop.f32.mrb[21].mxu1 }
 0x2b5   : > { %v23846_v14 = vpop.f32.mrb[22].mxu1 }
 0x2b6   : > { %v23848_v36 = vpop.f32.mrb[23].mxu1 }
 0x2c0   : > { %v19564_v24 = vpop.f32.mrb[0].mxu0 }
 0x2c1   : > { %v20778_v20 = vadd.f32 %v19564_v24, %v19244_v6  ;;  %v5291_v45 = vpop.f32.mrb[1].mxu0 }
 0x2c2   : > { %v20779_v50 = vadd.f32 %v5291_v45, %v2556_v10  ;;  %v19565_v53 = vpop.f32.mrb[2].mxu0  ;;  %v23884_v10 = vor.u32 %v6980_v58, %v6976_v55 }
 0x2c3   : > { %v5539_v52 = vmul.f32 %v20778_v20, %v23857_v62  ;;  %v20780_v43 = vadd.f32 %v19565_v53, %v19245_v48  ;;  %v5294_v30 = vpop.f32.mrb[3].mxu0  ;;  %v23892_v53 = vpop.permute.xlu0 %5720 }
 0x2c4   : > { %v5537_v18 = vmul.f32 %v20779_v50, %v23857_v62  ;;  %v20781_v54 = vadd.f32 %v5294_v30, %v2559_v51  ;;  %26343 = vst [vmem:[#allocation25_spill] sm:$0xff] %v23892_v53  ;;  %v23895_v30 = vpop.permute.xlu1 %5715 }
 0x2c5   : > { %v5594_v47 = vadd.f32 %v23866_v17, %v5539_v52  ;;  %v5540_v37 = vmul.f32 %v20780_v43, %v23857_v62  ;;  %26344 = vst [vmem:[#allocation26_spill] sm:$0xff] %v23895_v30 }
 0x2c6   : > { %v5592_v59 = vadd.f32 %v23866_v17, %v5537_v18  ;;  %v5538_v15 = vmul.f32 %v20781_v54, %v23857_v62 }
 0x2c7   : > { %v5642_v9 = vmax.f32 %v5594_v47, 0.0  ;;  %v5595_v4 = vadd.f32 %v23866_v17, %v5540_v37 }
 0x2c8   : > { %v5640_v49 = vmax.f32 %v5592_v59, 0.0  ;;  %v5593_v12 = vadd.f32 %v23866_v17, %v5538_v15  ;;  %v19568_v35 = vpop.f32.mrb[4].mxu0 }
 0x2c9   : > { %v5930_v3 = vmul.f32 %v23861_v46, %v5642_v9  ;;  %v5643_v1 = vmax.f32 %v5595_v4, 0.0  ;;  %v20782_v16 = vadd.f32 %v19568_v35, %v19248_v2  ;;  %v5307_v63 = vpop.f32.mrb[5].mxu0 }
 0x2ca   : > { %v5928_v40 = vmul.f32 %v23850_v19, %v5640_v49  ;;  %v5641_v31 = vmax.f32 %v5593_v12, 0.0  ;;  %v20783_v44 = vadd.f32 %v5307_v63, %v2572_v41  ;;  %v19569_v6 = vpop.f32.mrb[6].mxu0 }
 0x2cb   : > { %v18075_v48 = vpack.c.bf16 %v5930_v3, %v5930_v3  ;;  %v5931_v51 = vmul.f32 %v23879_v60, %v5643_v1  ;;  %v5543_v39 = vmul.f32 %v20782_v16, %v23857_v62  ;;  %v20784_v22 = vadd.f32 %v19569_v6, %v23814_v11  ;;  %v5310_v24 = vpop.f32.mrb[7].mxu0 }
 0x2cc   : > { %v18073_v20 = vpack.c.bf16 %v5928_v40, %v5928_v40  ;;  %v5929_v45 = vmul.f32 %v23859_v42, %v5641_v31  ;;  %v5541_v2 = vmul.f32 %v20783_v44, %v23857_v62  ;;  %v20785_v50 = vadd.f32 %v5310_v24, %v23816_v23 }
 0x2cd   : > { %v6141_v41 = vshrl.u32 %v18075_v48, 16  ;;  %v6144_v38 = vshll.u32 %v18075_v48, 16  ;;  %v18076_v52 = vpack.c.bf16 %v5931_v51, %v5931_v51  ;;  %v5598_v43 = vadd.f32 %v23866_v17, %v5543_v39  ;;  %v23912_v39 = vpop.permute.xlu0 %5730 }
 0x2ce   : > { %v6124_v18 = vshrl.u32 %v18073_v20, 16  ;;  %v6127_v54 = vshll.u32 %v18073_v20, 16  ;;  %v18074_v11 = vpack.c.bf16 %v5929_v45, %v5929_v45  ;;  %v5596_v47 = vadd.f32 %v23866_v17, %v5541_v2  ;;  %26350 = vst [vmem:[#allocation28_spill] sm:$0xff] %v23912_v39 }
 0x2cf   : > { %v6143_v37 = vrot.slane %v6141_v41, 7  ;;  %v6150_v59 = vshrl.u32 %v18076_v52, 16  ;;  %v6153_v15 = vshll.u32 %v18076_v52, 16  ;;  %v5646_v55 = vmax.f32 %v5598_v43, 0.0  ;;  %v22654_v52 = vld [vmem:[#allocation2 + $0xc] sm:$0xf] }
 0x2d0   : > { %v6126_v58 = vrot.slane %v6124_v18, 7  ;;  %v6132_v23 = vshrl.u32 %v18074_v11, 16  ;;  %v6135_v9 = vshll.u32 %v18074_v11, 16  ;;  %v5644_v4 = vmax.f32 %v5596_v47, 0.0  ;;  %v19572_v49 = vpop.f32.mrb[8].mxu0 }
 0x2d1   : > { %v6146_v12 = vor.u32 %v6144_v38, %v6143_v37  ;;  %v6148_v35 = vrot.slane %v6143_v37, 4  ;;  %v26345_v3 = vmov 0  ;;  %v6152_v1 = vrot.slane %v6150_v59, 7  ;;  %v5323_v63 = vpop.f32.mrb[9].mxu0  ;;  %v23915_v38 = vpop.permute.xlu1 %5725 }
 0x2d2   : > { %v26346_v3 = vsel %vm23900_vm9, 4294967295, %v26345_v3  ;;  %v5934_v16 = vmul.f32 %v23892_v53, %v5646_v55  ;;  %v6129_v40 = vor.u32 %v6127_v54, %v6126_v58  ;;  %v6130_v31 = vrot.slane %v6126_v58, 4  ;;  %v19573_v51 = vpop.f32.mrb[10].mxu0  ;;  %26351 = vst [vmem:[#allocation29_spill] sm:$0xff] %v23915_v38 }
 0x2d3   : > { %26347 = vst [vmem:[#allocation27_spill] sm:$0xff] %v26346_v3  ;;  %v6134_v6 = vrot.slane %v6132_v23, 7  ;;  %v5932_v48 = vmul.f32 %v23876_v57, %v5644_v4  ;;  %v6155_v24 = vor.u32 %v6153_v15, %v6152_v1  ;;  %v6157_v20 = vrot.slane %v6152_v1, 4  ;;  %v5326_v41 = vpop.f32.mrb[11].mxu0 }
 0x2d4   : > { %v18079_v45 = vpack.c.bf16 %v5934_v16, %v5934_v16  ;;  %v5544_v2 = vmul.f32 %v20784_v22, %v23857_v62  ;;  %v6606_v43 = vsel %vm23900_vm9, %v6129_v40, %v22654_v52  ;;  %v5542_v1 = vmul.f32 %v20785_v50, %v23857_v62 }
 0x2d5   : > { %v6137_v18 = vor.u32 %v6135_v9, %v6134_v6  ;;  %v6139_v54 = vrot.slane %v6134_v6, 4  ;;  %v18077_v11 = vpack.c.bf16 %v5932_v48, %v5932_v48  ;;  %6607 = vst [vmem:[#allocation2 + $0xc] sm:$0xf] %v6606_v43  ;;  %v6156_v47 = vsel %vm23907_vm10, %v6148_v35, %v6155_v24 }
 0x2d6   : > { %v6177_v37 = vshrl.u32 %v18079_v45, 16  ;;  %v6180_v59 = vshll.u32 %v18079_v45, 16  ;;  %v5599_v15 = vadd.f32 %v23866_v17, %v5544_v2  ;;  %6610 = vst [vmem:[#allocation2 + $0x18] sm:$0xf] %v6156_v47  ;;  %v20786_v35 = vadd.f32 %v19572_v49, %v23818_v61  ;;  %v23939_v61 = vpop.permute.xlu1 %5735 }
 0x2d7   : > { %v6138_v22 = vsel %vm23907_vm10, %v6130_v31, %v6137_v18  ;;  %v6147_v55 = vsel %vm23907_vm10, %v6139_v54, %v6146_v12  ;;  %v6159_v58 = vshrl.u32 %v18077_v11, 16  ;;  %v6162_v23 = vshll.u32 %v18077_v11, 16  ;;  %v23933_v12 = vpop.permute.xlu0 %5740  ;;  %26353 = vst [vmem:[#allocation31_spill] sm:$0xff] %v23939_v61 }
 0x2d8   : > { %6608 = vst [vmem:[#allocation2 + $0x10] sm:$0xf] %v6138_v22  ;;  %6609 = vst [vmem:[#allocation2 + $0x14] sm:$0xf] %v6147_v55  ;;  %v6179_v9 = vrot.slane %v6177_v37, 7  ;;  %v5647_v4 = vmax.f32 %v5599_v15, 0.0  ;;  %v20787_v40 = vadd.f32 %v5323_v63, %v23820_v56  ;;  %v20788_v6 = vadd.f32 %v19573_v51, %v23822_v7 }
 0x2d9   : > { %v23928_v16 = vrot.slane %v6159_v58, 7  ;;  %v20789_v31 = vadd.f32 %v5326_v41, %v23824_v26  ;;  %v19576_v48 = vpop.f32.mrb[12].mxu0  ;;  %26352 = vst [vmem:[#allocation30_spill] sm:$0xff] %v23933_v12  ;;  %v5597_v50 = vadd.f32 %v23866_v17, %v5542_v1  ;;  %v5547_v7 = vmul.f32 %v20786_v35, %v23857_v62 }
 0x2da   : > { %v23935_v24 = vor.u32 %v6180_v59, %v6179_v9  ;;  %v6184_v45 = vrot.slane %v6179_v9, 4  ;;  %v5935_v2 = vmul.f32 %v23915_v38, %v5647_v4  ;;  %v5339_v52 = vpop.f32.mrb[13].mxu0  ;;  %v5545_v26 = vmul.f32 %v20787_v40, %v23857_v62 }
 0x2db   : > { %v6164_v49 = vor.u32 %v6162_v23, %v23928_v16  ;;  %v6166_v56 = vrot.slane %v23928_v16, 4  ;;  %v23945_v63 = vpop.f32.mrb[14].mxu0  ;;  %v5645_v41 = vmax.f32 %v5597_v50, 0.0  ;;  %v5548_v43 = vmul.f32 %v20788_v6, %v23857_v62 }
 0x2dc   : > { %v18080_v51 = vpack.c.bf16 %v5935_v2, %v5935_v2  ;;  %v5546_v18 = vmul.f32 %v20789_v31, %v23857_v62  ;;  %v23949_v54 = vpop.f32.mrb[15].mxu0  ;;  %v5602_v47 = vadd.f32 %v23866_v17, %v5547_v7  ;;  %v5600_v37 = vadd.f32 %v23866_v17, %v5545_v26  ;;  %v23963_v31 = vpop.permute.xlu1 %5745 }
 0x2dd   : > { %v6165_v11 = vsel %vm23907_vm10, %v6157_v20, %v6164_v49  ;;  %v20790_v59 = vadd.f32 %v19576_v48, %v23826_v0  ;;  %v5933_v55 = vmul.f32 %v23895_v30, %v5645_v41  ;;  %v5603_v58 = vadd.f32 %v23866_v17, %v5548_v43  ;;  %v23960_v20 = vpop.permute.xlu0 %5750  ;;  %26355 = vst [vmem:[#allocation33_spill] sm:$0xff] %v23963_v31 }
 0x2de   : > { %6611 = vst [vmem:[#allocation2 + $0x1c] sm:$0xf] %v6165_v11  ;;  %v6186_v15 = vshrl.u32 %v18080_v51, 16  ;;  %v6189_v22 = vshll.u32 %v18080_v51, 16  ;;  %v5650_v23 = vmax.f32 %v5602_v47, 0.0  ;;  %v5648_v9 = vmax.f32 %v5600_v37, 0.0 }
 0x2df   : > { %v5601_v4 = vadd.f32 %v23866_v17, %v5546_v18  ;;  %v5551_v1 = vmul.f32 %v20790_v59, %v23857_v62  ;;  %26354 = vst [vmem:[#allocation32_spill] sm:$0xff] %v23960_v20  ;;  %v18078_v40 = vpack.c.bf16 %v5933_v55, %v5933_v55  ;;  %v5651_v6 = vmax.f32 %v5603_v58, 0.0 }
 0x2e0   : > { %v6188_v35 = vrot.slane %v6186_v15, 7  ;;  %v20791_v0 = vadd.f32 %v5339_v52, %v23828_v28  ;;  %v5938_v48 = vmul.f32 %v23933_v12, %v5650_v23  ;;  %v5936_v2 = vmul.f32 %v23912_v39, %v5648_v9  ;;  %v23968_v7 = vpop.f32.mrb[16].mxu0 }
 0x2e1   : > { %v5649_v50 = vmax.f32 %v5601_v4, 0.0  ;;  %v5606_v49 = vadd.f32 %v23866_v17, %v5551_v1  ;;  %v6168_v41 = vshrl.u32 %v18078_v40, 16  ;;  %v6171_v43 = vshll.u32 %v18078_v40, 16  ;;  %v23970_v18 = vpop.f32.mrb[17].mxu0 }
 0x2e2   : > { %v6191_v26 = vor.u32 %v6189_v22, %v6188_v35  ;;  %v6193_v51 = vrot.slane %v6188_v35, 4  ;;  %v18083_v11 = vpack.c.bf16 %v5938_v48, %v5938_v48  ;;  %v18081_v47 = vpack.c.bf16 %v5936_v2, %v5936_v2  ;;  %v23974_v37 = vpop.f32.mrb[18].mxu0  ;;  %v23981_v35 = vpop.permute.xlu0 %5760 }
 0x2e3   : > { %v5939_v28 = vmul.f32 %v23963_v31, %v5651_v6  ;;  %v5937_v52 = vmul.f32 %v23939_v61, %v5649_v50  ;;  %v6170_v15 = vrot.slane %v6168_v41, 7  ;;  %v5654_v55 = vmax.f32 %v5606_v49, 0.0  ;;  %v23979_v58 = vpop.f32.mrb[19].mxu0  ;;  %26356 = vst [vmem:[#allocation34_spill] sm:$0xff] %v23981_v35  ;;  %v23983_v50 = vpop.permute.xlu1 %5755 }
 0x2e4   : > { %v6192_v59 = vsel %vm23907_vm10, %v6184_v45, %v6191_v26  ;;  %v5549_v22 = vmul.f32 %v20791_v0, %v23857_v62  ;;  %v6213_v23 = vshrl.u32 %v18083_v11, 16  ;;  %v6216_v9 = vshll.u32 %v18083_v11, 16  ;;  %26357 = vst [vmem:[#allocation35_spill] sm:$0xff] %v23983_v50 }
 0x2e5   : > { %6614 = vst [vmem:[#allocation2 + $0x28] sm:$0xf] %v6192_v59  ;;  %v6195_v4 = vshrl.u32 %v18081_v47, 16  ;;  %v6198_v1 = vshll.u32 %v18081_v47, 16  ;;  %v6173_v40 = vor.u32 %v6171_v43, %v6170_v15  ;;  %v6175_v6 = vrot.slane %v6170_v15, 4  ;;  %v22217_v3 = vld [vmem:[#allocation2 + $0x18] sm:$0xff]  }
 0x2e6   : > { %v18084_v48 = vpack.c.bf16 %v5939_v28, %v5939_v28  ;;  %v18082_v2 = vpack.c.bf16 %v5937_v52, %v5937_v52  ;;  %v6215_v45 = vrot.slane %v6213_v23, 7  ;;  %v5942_v49 = vmul.f32 %v23981_v35, %v5654_v55 }
 0x2e7   : > { %v6197_v26 = vrot.slane %v6195_v4, 7  ;;  %v5604_v0 = vadd.f32 %v23866_v17, %v5549_v22  ;;  %v6174_v41 = vsel %vm23907_vm10, %v6166_v56, %v6173_v40  ;;  %v6183_v43 = vsel %vm23907_vm10, %v6175_v6, %v23935_v24 }
 0x2e8   : > { %v6222_v11 = vshrl.u32 %v18084_v48, 16  ;;  %v6225_v47 = vshll.u32 %v18084_v48, 16  ;;  %6612 = vst [vmem:[#allocation2 + $0x20] sm:$0xf] %v6174_v41  ;;  %6613 = vst [vmem:[#allocation2 + $0x24] sm:$0xf] %v6183_v43  ;;  %v6218_v28 = vor.u32 %v6216_v9, %v6215_v45  ;;  %v18087_v4 = vpack.c.bf16 %v5942_v49, %v5942_v49 }
 0x2e9   : > { %v6220_v52 = vrot.slane %v6215_v45, 4  ;;  %v6200_v59 = vor.u32 %v6198_v1, %v6197_v26  ;;  %v6202_v15 = vrot.slane %v6197_v26, 4  ;;  %v23994_v55 = vpop.f32.mrb[20].mxu0  ;;  %v6204_v16 = vshrl.u32 %v18082_v2, 16 }
 0x2ea   : > { %v23996_v22 = vrot.slane %v6222_v11, 7  ;;  %v6207_v23 = vshll.u32 %v18082_v2, 16  ;;  %v23998_v56 = vpop.f32.mrb[21].mxu0  ;;  %v5652_v40 = vmax.f32 %v5604_v0, 0.0  ;;  %v20792_v6 = vadd.f32 %v23945_v63, %v23830_v13 }
 0x2eb   : > { %v6201_v24 = vsel %vm23907_vm10, %v6193_v51, %v6200_v59  ;;  %v20793_v9 = vadd.f32 %v23949_v54, %v23832_v25  ;;  %v24006_v1 = vpop.f32.mrb[22].mxu0  ;;  %v6206_v45 = vrot.slane %v6204_v16, 7  ;;  %v6249_v26 = vshrl.u32 %v18087_v4, 16  ;;  %v24012_v41 = vpop.f32.mrb[24].mxu1 }
 0x2ec   : > { %6615 = vst [vmem:[#allocation2 + $0x2c] sm:$0xf] %v6201_v24  ;;  %v6227_v48 = vor.u32 %v6225_v47, %v23996_v22  ;;  %v24010_v49 = vpop.f32.mrb[23].mxu0  ;;  %v24014_v51 = vpop.permute.xlu1 %5765  ;;  %v6252_v0 = vshll.u32 %v18087_v4, 16  ;;  %v5940_v13 = vmul.f32 %v23960_v20, %v5652_v40  ;;  %v5552_v25 = vmul.f32 %v20792_v6, %v23857_v62 }
 0x2ed   : > { %26358 = vst [vmem:[#allocation36_spill] sm:$0xff] %v24014_v51  ;;  %v5550_v63 = vmul.f32 %v20793_v9, %v23857_v62  ;;  %v24019_v54 = vpop.f32.mrb[25].mxu1  ;;  %v6209_v11 = vor.u32 %v6207_v23, %v6206_v45  ;;  %v6211_v47 = vrot.slane %v6206_v45, 4  ;;  %v24023_v59 = vrot.slane %v6249_v26, 7  ;;  %v24031_v9 = vld [vmem:[#allocation2 + $0x8] sm:$0xff]   ;;  %v24043_v26 = vpop.permute.xlu0 %5770 }
 0x2ee   : > { %v6228_v43 = vsel %vm23907_vm10, %v6220_v52, %v6227_v48  ;;  %v24025_v16 = vpop.f32.mrb[26].mxu1  ;;  %v18085_v24 = vpack.c.bf16 %v5940_v13, %v5940_v13  ;;  %v5607_v4 = vadd.f32 %v23866_v17, %v5552_v25  ;;  %v20794_v6 = vadd.f32 %v23968_v7, %v23834_v27  ;;  %26359 = vst [vmem:[#allocation37_spill] sm:$0xff] %v24043_v26 }
 0x2ef   : > { %6618 = vst [vmem:[#allocation2 + $0x38] sm:$0xf] %v6228_v43  ;;  %v5605_v40 = vadd.f32 %v23866_v17, %v5550_v63  ;;  %v24033_v2 = vpop.f32.mrb[27].mxu1  ;;  %v6210_v52 = vsel %vm23907_vm10, %v6202_v15, %v6209_v11  ;;  %v6219_v23 = vsel %vm23907_vm10, %v6211_v47, %v6218_v28  ;;  %v24040_v48 = vor.u32 %v6252_v0, %v24023_v59 }
 0x2f0   : > { %6616 = vst [vmem:[#allocation2 + $0x30] sm:$0xf] %v6210_v52  ;;  %6617 = vst [vmem:[#allocation2 + $0x34] sm:$0xf] %v6219_v23  ;;  %v6231_v27 = vshrl.u32 %v18085_v24, 16  ;;  %v6234_v7 = vshll.u32 %v18085_v24, 16  ;;  %v5555_v15 = vmul.f32 %v20794_v6, %v23857_v62  ;;  %v20795_v28 = vadd.f32 %v23970_v18, %v23836_v29  ;;  %v24056_v47 = vpop.permute.xlu1 %5775 }
 0x2f1   : > { %v5655_v13 = vmax.f32 %v5607_v4, 0.0  ;;  %v5653_v25 = vmax.f32 %v5605_v40, 0.0  ;;  %v24045_v63 = vpop.f32.mrb[24].mxu0  ;;  %v20796_v0 = vadd.f32 %v23974_v37, %v23838_v21  ;;  %v20797_v43 = vadd.f32 %v23979_v58, %v23840_v32  ;;  %26360 = vst [vmem:[#allocation38_spill] sm:$0xff] %v24056_v47 }
 0x2f2   : > { %v24054_v11 = vpop.f32.mrb[25].mxu0  ;;  %v6233_v24 = vrot.slane %v6231_v27, 7  ;;  %v6983_v6 = vshll.u32 %v24031_v9, 16  ;;  %v5610_v29 = vadd.f32 %v23866_v17, %v5555_v15  ;;  %v5553_v21 = vmul.f32 %v20795_v28, %v23857_v62 }
 0x2f3   : > { %v5943_v4 = vmul.f32 %v24014_v51, %v5655_v13  ;;  %v5941_v40 = vmul.f32 %v23983_v50, %v5653_v25  ;;  %v24061_v52 = vpop.f32.mrb[26].mxu0  ;;  %v5556_v18 = vmul.f32 %v20796_v0, %v23857_v62  ;;  %v5554_v32 = vmul.f32 %v20797_v43, %v23857_v62  ;;  %v24069_v58 = vpop.f32.mrb[28].mxu1 }
 0x2f4   : > { %v24067_v37 = vpop.f32.mrb[27].mxu0  ;;  %v6236_v23 = vor.u32 %v6234_v7, %v6233_v24  ;;  %v6238_v27 = vrot.slane %v6233_v24, 4  ;;  %v24071_v45 = vpop.f32.mrb[29].mxu1  ;;  %v5658_v50 = vmax.f32 %v5610_v29, 0.0  ;;  %v5608_v51 = vadd.f32 %v23866_v17, %v5553_v21 }
 0x2f5   : > { %v18088_v13 = vpack.c.bf16 %v5943_v4, %v5943_v4  ;;  %v18086_v25 = vpack.c.bf16 %v5941_v40, %v5941_v40  ;;  %v5611_v15 = vadd.f32 %v23866_v17, %v5556_v18  ;;  %v5609_v28 = vadd.f32 %v23866_v17, %v5554_v32  ;;  %v24076_v0 = vpop.f32.mrb[30].mxu1  ;;  %v24078_v43 = vpop.permute.xlu0 %5780 }
 0x2f6   : > { %26361 = vst [vmem:[#allocation39_spill] sm:$0xff] %v24078_v43  ;;  %v26362_v20 = vrot.slane %v23996_v22, 4  ;;  %v24084_v35 = vpop.f32.mrb[31].mxu1  ;;  %v5946_v21 = vmul.f32 %v24078_v43, %v5658_v50  ;;  %v5656_v18 = vmax.f32 %v5608_v51, 0.0  ;;  %v24087_v61 = vpop.permute.xlu1 %5785  ;;  %v6985_v12 = vrot.slane %v6983_v6, 1 }
 0x2f7   : > { %v6258_v24 = vshrl.u32 %v18088_v13, 16  ;;  %v6261_v4 = vshll.u32 %v18088_v13, 16  ;;  %v6240_v40 = vshrl.u32 %v18086_v25, 16  ;;  %v6243_v29 = vshll.u32 %v18086_v25, 16  ;;  %26363 = vst [vmem:[#allocation40_spill] sm:$0xff] %v24087_v61 }
 0x2f8   : > { %v6237_v7 = vsel %vm23907_vm10, %v26362_v20, %v6236_v23  ;;  %v5659_v32 = vmax.f32 %v5611_v15, 0.0  ;;  %v5657_v22 = vmax.f32 %v5609_v28, 0.0  ;;  %v18091_v30 = vpack.c.bf16 %v5946_v21, %v5946_v21 }
 0x2f9   : > { %6619 = vst [vmem:[#allocation2 + $0x3c] sm:$0xf] %v6237_v7  ;;  %v24089_v31 = vrot.slane %v6258_v24, 7  ;;  %v6242_v39 = vrot.slane %v6240_v40, 7  ;;  %v5944_v20 = vmul.f32 %v24043_v26, %v5656_v18  ;;  %v6987_v13 = vshrl.u32 %v24031_v9, 16  ;;  %v24094_v7 = vpop.f32.mrb[28].mxu0 }
 0x2fa   : > { %v5947_v23 = vmul.f32 %v24087_v61, %v5659_v32  ;;  %v24098_v24 = vld [vmem:[#allocation2 + $0x10] sm:$0xff]   ;;  %v24100_v40 = vpop.f32.mrb[29].mxu0  ;;  %v6285_v6 = vshrl.u32 %v18091_v30, 16  ;;  %v6288_v28 = vshll.u32 %v18091_v30, 16  ;;  %v26364_v9 = vrot.slane %v24023_v59, 4 }
 0x2fb   : > { %v6263_v50 = vor.u32 %v6261_v4, %v24089_v31  ;;  %v6265_v51 = vrot.slane %v24089_v31, 4  ;;  %v6245_v25 = vor.u32 %v6243_v29, %v6242_v39  ;;  %v6247_v15 = vrot.slane %v6242_v39, 4  ;;  %v24102_v26 = vpop.f32.mrb[30].mxu0  ;;  %v24104_v32 = vpop.f32.mrb[32].mxu1 }
 0x2fc   : > { %v18089_v21 = vpack.c.bf16 %v5944_v20, %v5944_v20  ;;  %v18092_v18 = vpack.c.bf16 %v5947_v23, %v5947_v23  ;;  %v5945_v30 = vmul.f32 %v24056_v47, %v5657_v22  ;;  %v24116_v29 = vpop.f32.mrb[31].mxu0  ;;  %v24118_v20 = vpop.f32.mrb[33].mxu1  ;;  %v6287_v59 = vrot.slane %v6285_v6, 7 }
 0x2fd   : > { %v6264_v4 = vsel %vm23907_vm10, %v26364_v9, %v6263_v50  ;;  %v6246_v39 = vsel %vm23907_vm10, %v6238_v27, %v6245_v25  ;;  %v6255_v31 = vsel %vm23907_vm10, %v6247_v15, %v24040_v48  ;;  %v24120_v9 = vpop.f32.mrb[34].mxu1  ;;  %v6986_v48 = vsel %vm1092_vm3, %v23884_v10, %v6985_v12  ;;  %v24128_v6 = vpop.permute.xlu0 %5790 }
 0x2fe   : > { %6622 = vst [vmem:[#allocation2 + $0x48] sm:$0xf] %v6264_v4  ;;  %6620 = vst [vmem:[#allocation2 + $0x40] sm:$0xf] %v6246_v39  ;;  %v6267_v23 = vshrl.u32 %v18089_v21, 16  ;;  %v6270_v61 = vshll.u32 %v18089_v21, 16  ;;  %v18090_v25 = vpack.c.bf16 %v5945_v30, %v5945_v30  ;;  %v6989_v15 = vor.u32 %v6987_v13, %v6985_v12  ;;  %19626 = vmatprep.mubr.bf16.mxu1 %v6986_v48 }
 0x2ff   : > { %6621 = vst [vmem:[#allocation2 + $0x44] sm:$0xf] %v6255_v31  ;;  %v6294_v50 = vshrl.u32 %v18092_v18, 16  ;;  %v6297_v27 = vshll.u32 %v18092_v18, 16  ;;  %v24124_v22 = vpop.f32.mrb[35].mxu1  ;;  %v6290_v47 = vor.u32 %v6288_v28, %v6287_v59  ;;  %v6292_v43 = vrot.slane %v6287_v59, 4 }
 0x300   : > { %v6269_v38 = vrot.slane %v6267_v23, 7  ;;  %26365 = vst [vmem:[#allocation41_spill] sm:$0xff] %v24128_v6  ;;  %v6276_v21 = vshrl.u32 %v18090_v25, 16  ;;  %v6279_v39 = vshll.u32 %v18090_v25, 16  ;;  %v6991_v31 = vshll.u32 %v24098_v24, 16  ;;  %v24133_v30 = vpop.f32.mrb[32].mxu0 }
 0x301   : > { %v24126_v4 = vrot.slane %v6294_v50, 7  ;;  %v20798_v18 = vadd.f32 %v23994_v55, %v23842_v34  ;;  %v24137_v59 = vpop.f32.mrb[33].mxu0  ;;  %v20799_v25 = vadd.f32 %v23998_v56, %v23844_v8  ;;  %v20801_v55 = vadd.f32 %v24010_v49, %v23848_v36  ;;  %v24156_v8 = vpop.permute.xlu1 %5795 }
 0x302   : > { %v6272_v10 = vor.u32 %v6270_v61, %v6269_v38  ;;  %v6274_v12 = vrot.slane %v6269_v38, 4  ;;  %v6278_v23 = vrot.slane %v6276_v21, 7  ;;  %v6993_v50 = vrot.slane %v6991_v31, 1  ;;  %v24142_v57 = vpop.f32.mrb[34].mxu0  ;;  %26366 = vst [vmem:[#allocation42_spill] sm:$0xff] %v24156_v8 }
 0x303   : > { %v6299_v13 = vor.u32 %v6297_v27, %v24126_v4  ;;  %v5559_v48 = vmul.f32 %v20798_v18, %v23857_v62  ;;  %v20800_v61 = vadd.f32 %v24006_v1, %v23846_v14  ;;  %v22219_v27 = vld [vmem:[#allocation6 + $0x8] sm:$0xff]   ;;  %v24152_v21 = vpop.f32.mrb[35].mxu0  ;;  %v24154_v31 = vpop.f32.mrb[36].mxu1  ;;  %v5557_v14 = vmul.f32 %v20799_v25, %v23857_v62 }
 0x304   : > { %v6273_v34 = vsel %vm23907_vm10, %v6265_v51, %v6272_v10  ;;  %v6281_v56 = vor.u32 %v6279_v39, %v6278_v23  ;;  %v6283_v51 = vrot.slane %v6278_v23, 4  ;;  %v6994_v18 = vsel %vm1092_vm3, %v6989_v15, %v6993_v50  ;;  %v24160_v10 = vld [vmem:[#allocation2 + $0x20] sm:$0xff]  }
 0x305   : > { %v6300_v38 = vsel %vm23907_vm10, %v6292_v43, %v6299_v13  ;;  %6623 = vst [vmem:[#allocation2 + $0x4c] sm:$0xf] %v6273_v34  ;;  %v5614_v43 = vadd.f32 %v23866_v17, %v5559_v48  ;;  %19627 = vmatmul.mubr.bf16.vlgmr.msra.gmra.mrb[48].mxu1 %v6994_v18  ;;  %v5560_v36 = vmul.f32 %v20800_v61, %v23857_v62  ;;  %v6995_v49 = vshrl.u32 %v24098_v24, 16  ;;  %v24166_v13 = vpop.f32.mrb[37].mxu1  ;;  %v24168_v34 = vpop.permute.xlu0 %5800  ;;  %v22224_v18 = vld [vmem:[#allocation6 + $0x10] sm:$0xff]  }
 0x306   : > { %6626 = vst [vmem:[#allocation2 + $0x58] sm:$0xf] %v6300_v38  ;;  %v5558_v1 = vmul.f32 %v20801_v55, %v23857_v62  ;;  %26367 = vst [vmem:[#allocation43_spill] sm:$0xff] %v24168_v34  ;;  %v6282_v15 = vsel %vm23907_vm10, %v6274_v12, %v6281_v56  ;;  %v6291_v39 = vsel %vm23907_vm10, %v6283_v51, %v6290_v47  ;;  %19675 = vmatpush3.bf16.msra.mxu1 %v23811_v5  ;;  %v24175_v25 = vpop.f32.mrb[38].mxu1 }
 0x307   : > { %v5662_v23 = vmax.f32 %v5614_v43, 0.0  ;;  %v6999_v48 = vshll.u32 %v22217_v3, 16  ;;  %6624 = vst [vmem:[#allocation2 + $0x50] sm:$0xf] %v6282_v15  ;;  %6625 = vst [vmem:[#allocation2 + $0x54] sm:$0xf] %v6291_v39  ;;  %v5612_v24 = vadd.f32 %v23866_v17, %v5557_v14  ;;  %v5615_v38 = vadd.f32 %v23866_v17, %v5560_v36  ;;  %19676 = vmatprep.subr.bf16.mxu1 %v22219_v27 }
 0x308   : > { %v5613_v61 = vadd.f32 %v23866_v17, %v5558_v1  ;;  %v6997_v55 = vor.u32 %v6995_v49, %v6993_v50  ;;  %v24180_v12 = vpop.f32.mrb[39].mxu1  ;;  %v7003_v5 = vshrl.u32 %v22217_v3, 16  ;;  %v7007_v51 = vshll.u32 %v24160_v10, 16  ;;  %v24184_v43 = vpop.f32.mrb[36].mxu0 }
 0x309   : > { %v5950_v47 = vmul.f32 %v24168_v34, %v5662_v23  ;;  %v7001_v56 = vrot.slane %v6999_v48, 1  ;;  %v5660_v15 = vmax.f32 %v5612_v24, 0.0  ;;  %v5663_v39 = vmax.f32 %v5615_v38, 0.0  ;;  %v24188_v1 = vpop.f32.mrb[37].mxu0  ;;  %v24190_v50 = vpop.permute.xlu1 %5805 }
 0x30a   : > { %v5661_v14 = vmax.f32 %v5613_v61, 0.0  ;;  %v20802_v36 = vadd.f32 %v24045_v63, %v24012_v41  ;;  %26368 = vst [vmem:[#allocation44_spill] sm:$0xff] %v24190_v50  ;;  %v24193_v3 = vrot.slane %v7007_v51, 1  ;;  %19677 = vmatpush3.bf16.msra.mxu1 %v22219_v27  ;;  %v24195_v28 = vpop.f32.mrb[38].mxu0  ;;  %v22227_v63 = vld [vmem:[#allocation6 + $0x18] sm:$0xff]   ;;  %v7011_v60 = vshrl.u32 %v24160_v10, 16 }
 0x30b   : > { %v18095_v49 = vpack.c.bf16 %v5950_v47, %v5950_v47  ;;  %v7002_v23 = vsel %vm1092_vm3, %v6997_v55, %v7001_v56  ;;  %v7005_v48 = vor.u32 %v7003_v5, %v7001_v56  ;;  %v5948_v24 = vmul.f32 %v24128_v6, %v5660_v15  ;;  %v24201_v34 = vpop.f32.mrb[39].mxu0  ;;  %v24203_v47 = vpop.permute.xlu0 %5810  ;;  %19678 = vmatprep.subr.bf16.mxu1 %v22224_v18 }
 0x30c   : > { %v5951_v38 = vmul.f32 %v24190_v50, %v5663_v39  ;;  %v5949_v61 = vmul.f32 %v24156_v8, %v5661_v14  ;;  %19630 = vmatprep.mubr.bf16.mxu1 %v7002_v23  ;;  %v5563_v41 = vmul.f32 %v20802_v36, %v23857_v62  ;;  %26369 = vst [vmem:[#allocation45_spill] sm:$0xff] %v24203_v47  ;;  %v24209_v51 = vpop.f32.mrb[40].mxu1 }
 0x30d   : > { %v6321_v55 = vshrl.u32 %v18095_v49, 16  ;;  %v6324_v56 = vshll.u32 %v18095_v49, 16  ;;  %v7010_v27 = vsel %vm1092_vm3, %v7005_v48, %v24193_v3  ;;  %v20803_v5 = vadd.f32 %v24054_v11, %v24019_v54  ;;  %v24212_v23 = vpop.f32.mrb[41].mxu1 }
 0x30e   : > { %v18093_v15 = vpack.c.bf16 %v5948_v24, %v5948_v24  ;;  %v18096_v39 = vpack.c.bf16 %v5951_v38, %v5951_v38  ;;  %v18094_v14 = vpack.c.bf16 %v5949_v61, %v5949_v61  ;;  %19631 = vmatmul.mubr.bf16.gmra.mrb[52].mxu1 %v7010_v27  ;;  %v5618_v36 = vadd.f32 %v23866_v17, %v5563_v41  ;;  %v24219_v61 = vpop.f32.mrb[42].mxu1  ;;  %v22232_v41 = vld [vmem:[#allocation6 + $0x20] sm:$0xff]  }
 0x30f   : > { %v6323_v8 = vrot.slane %v6321_v55, 7  ;;  %v5561_v49 = vmul.f32 %v20803_v5, %v23857_v62  ;;  %v20804_v48 = vadd.f32 %v24061_v52, %v24025_v16  ;;  %v20805_v54 = vadd.f32 %v24067_v37, %v24033_v2  ;;  %19679 = vmatpush3.bf16.msra.mxu1 %v22224_v18  ;;  %v24223_v42 = vpop.f32.mrb[43].mxu1  ;;  %v24225_v16 = vpop.permute.xlu1 %5815 }
 0x310   : > { %v6303_v11 = vshrl.u32 %v18093_v15, 16  ;;  %v6306_v50 = vshll.u32 %v18093_v15, 16  ;;  %v6330_v24 = vshrl.u32 %v18096_v39, 16  ;;  %v6333_v38 = vshll.u32 %v18096_v39, 16  ;;  %19680 = vmatprep.subr.bf16.mxu1 %v22227_v63  ;;  %v24221_v5 = vpop.f32.mrb[40].mxu0  ;;  %26370 = vst [vmem:[#allocation46_spill] sm:$0xff] %v24225_v16  ;;  %v24232_v39 = vpop.permute.xlu0 %5820 }
 0x311   : > { %v6326_v27 = vor.u32 %v6324_v56, %v6323_v8  ;;  %v6328_v6 = vrot.slane %v6323_v8, 4  ;;  %v6312_v55 = vshrl.u32 %v18094_v14, 16  ;;  %v6315_v53 = vshll.u32 %v18094_v14, 16  ;;  %v24230_v15 = vpop.f32.mrb[41].mxu0  ;;  %26371 = vst [vmem:[#allocation47_spill] sm:$0xff] %v24232_v39 }
 0x312   : > { %v6305_v2 = vrot.slane %v6303_v11, 7  ;;  %v24227_v52 = vrot.slane %v6330_v24, 7  ;;  %v5666_v37 = vmax.f32 %v5618_v36, 0.0  ;;  %v5616_v18 = vadd.f32 %v23866_v17, %v5561_v49  ;;  %v24237_v19 = vpop.f32.mrb[42].mxu0  ;;  %v22220_v49 = vld [vmem:[#allocation2 + $0x28] sm:$0xff]  }
 0x313   : > { %v6314_v56 = vrot.slane %v6312_v55, 7  ;;  %v5564_v8 = vmul.f32 %v20804_v48, %v23857_v62  ;;  %v5562_v14 = vmul.f32 %v20805_v54, %v23857_v62  ;;  %19681 = vmatpush3.bf16.msra.mxu1 %v22227_v63  ;;  %v24241_v46 = vpop.f32.mrb[43].mxu0  ;;  %v24243_v55 = vpop.f32.mrb[44].mxu1  ;;  %v22235_v48 = vld [vmem:[#allocation6 + $0x28] sm:$0xff]   ;;  %v24257_v17 = vld [vmem:[%s26250_s6] ss:$0 sm:$0xff] }
 0x314   : > { %v6308_v11 = vor.u32 %v6306_v50, %v6305_v2  ;;  %v6310_v24 = vrot.slane %v6305_v2, 4  ;;  %v6335_v36 = vor.u32 %v6333_v38, %v24227_v52  ;;  %19682 = vmatprep.subr.bf16.mxu1 %v22232_v41  ;;  %v5954_v10 = vmul.f32 %v24232_v39, %v5666_v37  ;;  %v24246_v54 = vpop.f32.mrb[45].mxu1 }
 0x315   : > { %v6317_v33 = vor.u32 %v6315_v53, %v6314_v56  ;;  %v6319_v62 = vrot.slane %v6314_v56, 4  ;;  %v5664_v63 = vmax.f32 %v5616_v18, 0.0  ;;  %26372 = vst [vmem:[#allocation48_spill] sm:$0xff] %v24246_v54  ;;  %v26373_v50 = vrot.slane %v24126_v4, 4  ;;  %v24261_v18 = vld [vmem:[#allocation2 + $0x30] sm:$0xff]   ;;  %v24263_v56 = vpop.f32.mrb[46].mxu1 }
 0x316   : > { %v6336_v2 = vsel %vm23907_vm10, %v6328_v6, %v6335_v36  ;;  %v5619_v53 = vadd.f32 %v24257_v17, %v5564_v8  ;;  %v5617_v37 = vadd.f32 %v24257_v17, %v5562_v14  ;;  %26374 = vst [vmem:[#allocation49_spill] sm:$0xff] %v24263_v56  ;;  %v7013_v39 = vor.u32 %v7011_v60, %v24193_v3  ;;  %v24273_v56 = vpop.permute.xlu1 %5825 }
 0x317   : > { %v6309_v38 = vsel %vm23907_vm10, %v26373_v50, %v6308_v11  ;;  %6630 = vst [vmem:[#allocation2 + $0x68] sm:$0xf] %v6336_v2  ;;  %v6318_v4 = vsel %vm23907_vm10, %v6310_v24, %v6317_v33  ;;  %v6327_v6 = vsel %vm23907_vm10, %v6319_v62, %v6326_v27  ;;  %v18099_v11 = vpack.c.bf16 %v5954_v10, %v5954_v10  ;;  %v24270_v50 = vpop.f32.mrb[47].mxu1  ;;  %v22240_v2 = vld [vmem:[#allocation6 + $0x30] sm:$0xff]  }
 0x318   : > { %6627 = vst [vmem:[#allocation2 + $0x5c] sm:$0xf] %v6309_v38  ;;  %v5952_v36 = vmul.f32 %v24203_v47, %v5664_v63  ;;  %19683 = vmatpush3.bf16.msra.mxu1 %v22232_v41  ;;  %26375 = vst [vmem:[#allocation50_spill] sm:$0xff] %v24270_v50  ;;  %v5667_v8 = vmax.f32 %v5619_v53, 0.0  ;;  %v5665_v14 = vmax.f32 %v5617_v37, 0.0  ;;  %v7015_v38 = vshll.u32 %v22220_v49, 16 }
 0x319   : > { %6628 = vst [vmem:[#allocation2 + $0x60] sm:$0xf] %v6318_v4  ;;  %6629 = vst [vmem:[#allocation2 + $0x64] sm:$0xf] %v6327_v6  ;;  %19684 = vmatprep.subr.bf16.mxu1 %v22235_v48  ;;  %v6357_v33 = vshrl.u32 %v18099_v11, 16  ;;  %v6360_v24 = vshll.u32 %v18099_v11, 16  ;;  %v20806_v47 = vadd.f32 %v24094_v7, %v24069_v58 }
 0x31a   : > { %26376 = vst [vmem:[#allocation51_spill] sm:$0xff] %v24273_v56  ;;  %v18097_v27 = vpack.c.bf16 %v5952_v36, %v5952_v36  ;;  %v7019_v62 = vshrl.u32 %v22220_v49, 16  ;;  %v24275_v10 = vpop.f32.mrb[44].mxu0  ;;  %v5955_v41 = vmul.f32 %v24273_v56, %v5667_v8  ;;  %v5953_v63 = vmul.f32 %v24225_v16, %v5665_v14  ;;  %v24286_v49 = vpop.permute.xlu0 %5830  ;;  %v22243_v56 = vld [vmem:[#allocation6 + $0x38] sm:$0xff]  }
 0x31b   : > { %26377 = vst [vmem:[#allocation52_spill] sm:$0xff] %v24275_v10  ;;  %v7017_v4 = vrot.slane %v7015_v38, 1  ;;  %v7023_v53 = vshll.u32 %v24261_v18, 16  ;;  %v24280_v37 = vpop.f32.mrb[45].mxu0  ;;  %v6359_v60 = vrot.slane %v6357_v33, 7 }
 0x31c   : > { %26378 = vst [vmem:[#allocation53_spill] sm:$0xff] %v24280_v37  ;;  %v6339_v3 = vshrl.u32 %v18097_v27, 16  ;;  %v6342_v6 = vshll.u32 %v18097_v27, 16  ;;  %v24284_v11 = vpop.f32.mrb[46].mxu0  ;;  %19685 = vmatpush3.bf16.msra.mxu1 %v22235_v48  ;;  %v18100_v36 = vpack.c.bf16 %v5955_v41, %v5955_v41  ;;  %v18098_v8 = vpack.c.bf16 %v5953_v63, %v5953_v63 }
 0x31d   : > { %26379 = vst [vmem:[#allocation54_spill] sm:$0xff] %v24284_v11  ;;  %v7018_v14 = vsel %vm1092_vm3, %v7013_v39, %v7017_v4  ;;  %v7021_v38 = vor.u32 %v7019_v62, %v7017_v4  ;;  %v24289_v16 = vpop.f32.mrb[47].mxu0  ;;  %19686 = vmatprep.subr.bf16.mxu1 %v22240_v2  ;;  %v6362_v33 = vor.u32 %v6360_v24, %v6359_v60  ;;  %v6364_v50 = vrot.slane %v6359_v60, 4  ;;  %v24295_v39 = vld [vmem:[%s26249_s5] ss:$0 sm:$0xff]  ;;  %v22222_v60 = vld [vmem:[#allocation2 + $0x38] sm:$0xff]  }
 0x31e   : > { %v6341_v27 = vrot.slane %v6339_v3, 7  ;;  %19634 = vmatprep.mubr.bf16.mxu1 %v7018_v14  ;;  %v7025_v37 = vrot.slane %v7023_v53, 1  ;;  %v6366_v58 = vshrl.u32 %v18100_v36, 16  ;;  %v6369_v7 = vshll.u32 %v18100_v36, 16  ;;  %v22246_v3 = vld [vmem:[#allocation6 + $0x80] sm:$0xff]  }
 0x31f   : > { %v6348_v11 = vshrl.u32 %v18098_v8, 16  ;;  %v6351_v48 = vshll.u32 %v18098_v8, 16  ;;  %v5567_v62 = vmul.f32 %v24295_v39, %v20806_v47  ;;  %v20807_v4 = vadd.f32 %v24100_v40, %v24071_v45  ;;  %v24312_v8 = vld [vmem:[#allocation2 + $0x40] sm:$0xff]   ;;  %v24314_v45 = vpop.permute.xlu1 %5835 }
 0x320   : > { %v6344_v54 = vor.u32 %v6342_v6, %v6341_v27  ;;  %v6346_v10 = vrot.slane %v6341_v27, 4  ;;  %v7026_v41 = vsel %vm1092_vm3, %v7021_v38, %v7025_v37  ;;  %19687 = vmatpush3.bf16.msra.mxu1 %v22240_v2  ;;  %v24298_v24 = vrot.slane %v6366_v58, 7 }
 0x321   : > { %v6350_v63 = vrot.slane %v6348_v11, 7  ;;  %19635 = vmatmul.mubr.bf16.gmra.mrb[56].mxu1 %v7026_v41  ;;  %v20808_v53 = vadd.f32 %v24102_v26, %v24076_v0  ;;  %19688 = vmatprep.subr.bf16.mxu1 %v22243_v56  ;;  %v26380_v6 = vrot.slane %v24227_v52, 4  ;;  %v5622_v47 = vadd.f32 %v24257_v17, %v5567_v62  ;;  %v24316_v26 = vpop.permute.xlu0 %5840 }
 0x322   : > { %v20809_v2 = vadd.f32 %v24116_v29, %v24084_v35  ;;  %v7027_v11 = vshrl.u32 %v24261_v18, 16  ;;  %v6371_v0 = vor.u32 %v6369_v7, %v24298_v24  ;;  %v6373_v40 = vrot.slane %v24298_v24, 4 }
 0x323   : > { %v6345_v36 = vsel %vm23907_vm10, %v26380_v6, %v6344_v54  ;;  %v6353_v52 = vor.u32 %v6351_v48, %v6350_v63  ;;  %v6355_v54 = vrot.slane %v6350_v63, 4  ;;  %v5670_v14 = vmax.f32 %v5622_v47, 0.0  ;;  %v24336_v6 = vpop.permute.xlu1 %5845 }
 0x324   : > { %6631 = vst [vmem:[#allocation2 + $0x6c] sm:$0xf] %v6345_v36  ;;  %v5565_v38 = vmul.f32 %v24295_v39, %v20807_v4  ;;  %v5568_v35 = vmul.f32 %v24295_v39, %v20808_v53  ;;  %v5566_v29 = vmul.f32 %v24295_v39, %v20809_v2  ;;  %19689 = vmatpush3.bf16.msra.mxu1 %v22243_v56  ;;  %v7035_v63 = vshrl.u32 %v22222_v60, 16 }
 0x325   : > { %v6372_v18 = vsel %vm23907_vm10, %v6364_v50, %v6371_v0  ;;  %v6354_v27 = vsel %vm23907_vm10, %v6346_v10, %v6353_v52  ;;  %v6363_v58 = vsel %vm23907_vm10, %v6355_v54, %v6362_v33  ;;  %v7029_v7 = vor.u32 %v7027_v11, %v7025_v37  ;;  %19738 = vmatprep.subr.bf16.mxu1 %v22246_v3  ;;  %v24338_v36 = vpop.permute.xlu0 %5850 }
 0x326   : > { %6634 = vst [vmem:[#allocation2 + $0x78] sm:$0xf] %v6372_v18  ;;  %6632 = vst [vmem:[#allocation2 + $0x70] sm:$0xf] %v6354_v27  ;;  %v5958_v48 = vmul.f32 %v24316_v26, %v5670_v14  ;;  %v5620_v41 = vadd.f32 %v24257_v17, %v5565_v38  ;;  %v5623_v56 = vadd.f32 %v24257_v17, %v5568_v35  ;;  %v7031_v50 = vshll.u32 %v22222_v60, 16 }
 0x327   : > { %6633 = vst [vmem:[#allocation2 + $0x74] sm:$0xf] %v6363_v58  ;;  %v5621_v62 = vadd.f32 %v24257_v17, %v5566_v29  ;;  %v7039_v10 = vshll.u32 %v24312_v8, 16  ;;  %v20810_v33 = vadd.f32 %v24133_v30, %v24104_v32  ;;  %v20811_v60 = vadd.f32 %v24137_v59, %v24118_v20 }
 0x328   : > { %v18103_v37 = vpack.c.bf16 %v5958_v48, %v5958_v48  ;;  %v5668_v4 = vmax.f32 %v5620_v41, 0.0  ;;  %v5671_v53 = vmax.f32 %v5623_v56, 0.0  ;;  %v7033_v47 = vrot.slane %v7031_v50, 1 }
 0x329   : > { %v5669_v3 = vmax.f32 %v5621_v62, 0.0  ;;  %v24340_v2 = vrot.slane %v7039_v10, 1  ;;  %v5571_v11 = vmul.f32 %v24295_v39, %v20810_v33  ;;  %v5569_v58 = vmul.f32 %v24295_v39, %v20811_v60  ;;  %v24360_v60 = vpop.permute.xlu1 %5855 }
 0x32a   : > { %v6393_v0 = vshrl.u32 %v18103_v37, 16  ;;  %v6396_v52 = vshll.u32 %v18103_v37, 16  ;;  %v5956_v32 = vmul.f32 %v24286_v49, %v5668_v4  ;;  %v5959_v30 = vmul.f32 %v24336_v6, %v5671_v53 }
 0x32b   : > { %v5957_v54 = vmul.f32 %v24314_v45, %v5669_v3  ;;  %v7034_v14 = vsel %vm1092_vm3, %v7029_v7, %v7033_v47  ;;  %v7037_v38 = vor.u32 %v7035_v63, %v7033_v47  ;;  %v5626_v35 = vadd.f32 %v24257_v17, %v5571_v11  ;;  %v24355_v63 = vpop.permute.xlu0 %5860 }
 0x32c   : > { %v6395_v29 = vrot.slane %v6393_v0, 7  ;;  %v18101_v18 = vpack.c.bf16 %v5956_v32, %v5956_v32  ;;  %v18104_v27 = vpack.c.bf16 %v5959_v30, %v5959_v30  ;;  %19638 = vmatprep.mubr.bf16.mxu1 %v7034_v14  ;;  %v20812_v41 = vadd.f32 %v24142_v57, %v24120_v9 }
 0x32d   : > { %v18102_v20 = vpack.c.bf16 %v5957_v54, %v5957_v54  ;;  %v7042_v59 = vsel %vm1092_vm3, %v7037_v38, %v24340_v2  ;;  %v5674_v48 = vmax.f32 %v5626_v35, 0.0  ;;  %v5624_v47 = vadd.f32 %v24257_v17, %v5569_v58  ;;  %v24371_v58 = vld [vmem:[#allocation2 + $0x50] sm:$0xff]  }
 0x32e   : > { %v6398_v56 = vor.u32 %v6396_v52, %v6395_v29  ;;  %v6400_v62 = vrot.slane %v6395_v29, 4  ;;  %v6375_v7 = vshrl.u32 %v18101_v18, 16  ;;  %v6378_v50 = vshll.u32 %v18101_v18, 16  ;;  %19639 = vmatmul.mubr.bf16.gmra.mrb[60].mxu1 %v7042_v59 }
 0x32f   : > { %v6402_v10 = vshrl.u32 %v18104_v27, 16  ;;  %v6405_v33 = vshll.u32 %v18104_v27, 16  ;;  %v6384_v37 = vshrl.u32 %v18102_v20, 16  ;;  %v6387_v4 = vshll.u32 %v18102_v20, 16  ;;  %v24369_v27 = vld [vmem:[#allocation2 + $0x48] sm:$0xff]  }
 0x330   : > { %v6377_v53 = vrot.slane %v6375_v7, 7  ;;  %v5962_v3 = vmul.f32 %v24355_v63, %v5674_v48  ;;  %v5572_v11 = vmul.f32 %v24295_v39, %v20812_v41  ;;  %v20813_v0 = vadd.f32 %v24152_v21, %v24124_v22 }
 0x331   : > { %v24362_v57 = vrot.slane %v6402_v10, 7  ;;  %v6386_v9 = vrot.slane %v6384_v37, 7  ;;  %v7043_v52 = vshrl.u32 %v24312_v8, 16  ;;  %v5672_v14 = vmax.f32 %v5624_v47, 0.0 }
 0x332   : > { %v6380_v32 = vor.u32 %v6378_v50, %v6377_v53  ;;  %v6382_v30 = vrot.slane %v6377_v53, 4  ;;  %v18107_v54 = vpack.c.bf16 %v5962_v3, %v5962_v3  ;;  %v5627_v7 = vadd.f32 %v24257_v17, %v5572_v11 }
 0x333   : > { %v6407_v38 = vor.u32 %v6405_v33, %v24362_v57  ;;  %v6409_v35 = vrot.slane %v24362_v57, 4  ;;  %v6389_v29 = vor.u32 %v6387_v4, %v6386_v9  ;;  %v6391_v18 = vrot.slane %v6386_v9, 4  ;;  %v24389_v33 = vpop.permute.xlu1 %5865 }
 0x334   : > { %v6381_v22 = vsel %vm23907_vm10, %v6373_v40, %v6380_v32  ;;  %v6429_v21 = vshrl.u32 %v18107_v54, 16  ;;  %v6432_v8 = vshll.u32 %v18107_v54, 16  ;;  %v5960_v20 = vmul.f32 %v24338_v36, %v5672_v14  ;;  %v24408_v14 = vpop.permute.xlu0 %5870 }
 0x335   : > { %6635 = vst [vmem:[#allocation2 + $0x7c] sm:$0xf] %v6381_v22  ;;  %v6408_v59 = vsel %vm23907_vm10, %v6400_v62, %v6407_v38  ;;  %v6390_v48 = vsel %vm23907_vm10, %v6382_v30, %v6389_v29  ;;  %v6399_v41 = vsel %vm23907_vm10, %v6391_v18, %v6398_v56  ;;  %v5570_v50 = vmul.f32 %v24295_v39, %v20813_v0 }
 0x336   : > { %6638 = vst [vmem:[#allocation2 + $0x88] sm:$0xf] %v6408_v59  ;;  %6636 = vst [vmem:[#allocation2 + $0x80] sm:$0xf] %v6390_v48  ;;  %v24385_v24 = vrot.slane %v6429_v21, 7  ;;  %v18105_v40 = vpack.c.bf16 %v5960_v20, %v5960_v20  ;;  %v7045_v10 = vor.u32 %v7043_v52, %v24340_v2  ;;  %v5675_v62 = vmax.f32 %v5627_v7, 0.0 }
 0x337   : > { %6637 = vst [vmem:[#allocation2 + $0x84] sm:$0xf] %v6399_v41  ;;  %v7047_v37 = vshll.u32 %v24369_v27, 16  ;;  %v7051_v4 = vshrl.u32 %v24369_v27, 16  ;;  %v7055_v56 = vshll.u32 %v24371_v58, 16  ;;  %v5625_v2 = vadd.f32 %v24257_v17, %v5570_v50 }
 0x338   : > { %v24395_v53 = vor.u32 %v6432_v8, %v24385_v24  ;;  %v6436_v3 = vrot.slane %v24385_v24, 4  ;;  %v6411_v47 = vshrl.u32 %v18105_v40, 16  ;;  %v6414_v11 = vshll.u32 %v18105_v40, 16 }
 0x339   : > { %v5963_v57 = vmul.f32 %v24389_v33, %v5675_v62  ;;  %v7049_v9 = vrot.slane %v7047_v37, 1  ;;  %v7057_v0 = vrot.slane %v7055_v56, 1  ;;  %v20814_v32 = vadd.f32 %v24184_v43, %v24154_v31 }
 0x33a   : > { %v24400_v52 = vrot.slane %v6411_v47, 7  ;;  %v20815_v30 = vadd.f32 %v24188_v1, %v24166_v13  ;;  %v20816_v54 = vadd.f32 %v24195_v28, %v24175_v25  ;;  %v5673_v29 = vmax.f32 %v5625_v2, 0.0  ;;  %v24415_v13 = vld [vmem:[#allocation2 + $0x58] sm:$0xff]   ;;  %v24417_v1 = vpop.permute.xlu1 %5875  ;;  %v24431_v47 = vpop.permute.xlu0 %5880 }
 0x33b   : > { %v18108_v38 = vpack.c.bf16 %v5963_v57, %v5963_v57  ;;  %v7050_v18 = vsel %vm1092_vm3, %v7045_v10, %v7049_v9  ;;  %v7053_v22 = vor.u32 %v7051_v4, %v7049_v9  ;;  %v5575_v31 = vmul.f32 %v24295_v39, %v20814_v32 }
 0x33c   : > { %v6416_v21 = vor.u32 %v6414_v11, %v24400_v52  ;;  %v6418_v8 = vrot.slane %v24400_v52, 4  ;;  %19642 = vmatprep.mubr.bf16.mxu1 %v7050_v18  ;;  %v5573_v43 = vmul.f32 %v24295_v39, %v20815_v30  ;;  %v5961_v20 = vmul.f32 %v24360_v60, %v5673_v29 }
 0x33d   : > { %v6438_v28 = vshrl.u32 %v18108_v38, 16  ;;  %v6441_v25 = vshll.u32 %v18108_v38, 16  ;;  %v7058_v59 = vsel %vm1092_vm3, %v7053_v22, %v7057_v0  ;;  %v5630_v41 = vadd.f32 %v24257_v17, %v5575_v31  ;;  %v24440_v22 = vld [vmem:[#allocation2 + $0x60] sm:$0xff]  }
 0x33e   : > { %v6417_v48 = vsel %vm23907_vm10, %v6409_v35, %v6416_v21  ;;  %19643 = vmatmul.mubr.bf16.gmra.mrb[64].mxu1 %v7058_v59  ;;  %v5628_v7 = vadd.f32 %v24257_v17, %v5573_v43  ;;  %v5576_v24 = vmul.f32 %v24295_v39, %v20816_v54  ;;  %v18106_v50 = vpack.c.bf16 %v5961_v20, %v5961_v20 }
 0x33f   : > { %6639 = vst [vmem:[#allocation2 + $0x8c] sm:$0xf] %v6417_v48  ;;  %v6440_v40 = vrot.slane %v6438_v28, 7  ;;  %v20817_v10 = vadd.f32 %v24201_v34, %v24180_v12  ;;  %v7059_v62 = vshrl.u32 %v24371_v58, 16  ;;  %v5678_v37 = vmax.f32 %v5630_v41, 0.0  ;;  %v24436_v12 = vpop.permute.xlu1 %5885 }
 0x340   : > { %v5676_v4 = vmax.f32 %v5628_v7, 0.0  ;;  %v5631_v56 = vadd.f32 %v24257_v17, %v5576_v24  ;;  %v7063_v35 = vshll.u32 %v24415_v13, 16  ;;  %v6420_v2 = vshrl.u32 %v18106_v50, 16 }
 0x341   : > { %v6443_v11 = vor.u32 %v6441_v25, %v6440_v40  ;;  %v6445_v57 = vrot.slane %v6440_v40, 4  ;;  %v6423_v9 = vshll.u32 %v18106_v50, 16  ;;  %v5966_v52 = vmul.f32 %v24431_v47, %v5678_v37 }
 0x342   : > { %v5964_v32 = vmul.f32 %v24408_v14, %v5676_v4  ;;  %v5679_v30 = vmax.f32 %v5631_v56, 0.0  ;;  %v5574_v34 = vmul.f32 %v24295_v39, %v20817_v10  ;;  %v6422_v38 = vrot.slane %v6420_v2, 7 }
 0x343   : > { %v6444_v54 = vsel %vm23907_vm10, %v6436_v3, %v6443_v11  ;;  %v7061_v29 = vor.u32 %v7059_v62, %v7057_v0  ;;  %v7065_v18 = vrot.slane %v7063_v35, 1  ;;  %v18111_v21 = vpack.c.bf16 %v5966_v52, %v5966_v52 }
 0x344   : > { %6642 = vst [vmem:[#allocation2 + $0x98] sm:$0xf] %v6444_v54  ;;  %v18109_v31 = vpack.c.bf16 %v5964_v32, %v5964_v32  ;;  %v5967_v43 = vmul.f32 %v24436_v12, %v5679_v30  ;;  %v5629_v28 = vadd.f32 %v24257_v17, %v5574_v34  ;;  %v6425_v25 = vor.u32 %v6423_v9, %v6422_v38  ;;  %v24455_v30 = vpop.permute.xlu0 %5890 }
 0x345   : > { %v6427_v20 = vrot.slane %v6422_v38, 4  ;;  %v7066_v59 = vsel %vm1092_vm3, %v7061_v29, %v7065_v18  ;;  %v7067_v48 = vshrl.u32 %v24415_v13, 16  ;;  %v6465_v41 = vshrl.u32 %v18111_v21, 16 }
 0x346   : > { %v6468_v3 = vshll.u32 %v18111_v21, 16  ;;  %v6447_v7 = vshrl.u32 %v18109_v31, 16  ;;  %v6450_v0 = vshll.u32 %v18109_v31, 16  ;;  %19646 = vmatprep.mubr.bf16.mxu1 %v7066_v59  ;;  %v6426_v24 = vsel %vm23907_vm10, %v6418_v8, %v6425_v25  ;;  %v24468_v31 = vld [vmem:[#allocation2 + $0x68] sm:$0xff]  }
 0x347   : > { %v6435_v40 = vsel %vm23907_vm10, %v6427_v20, %v24395_v53  ;;  %v18112_v50 = vpack.c.bf16 %v5967_v43, %v5967_v43  ;;  %v5677_v10 = vmax.f32 %v5629_v28, 0.0  ;;  %6640 = vst [vmem:[#allocation2 + $0x90] sm:$0xf] %v6426_v24  ;;  %v6467_v62 = vrot.slane %v6465_v41, 7  ;;  %v24470_v43 = vpop.permute.xlu1 %5895 }
 0x348   : > { %6641 = vst [vmem:[#allocation2 + $0x94] sm:$0xf] %v6435_v40  ;;  %v6449_v37 = vrot.slane %v6447_v7, 7  ;;  %v7069_v4 = vor.u32 %v7067_v48, %v7065_v18  ;;  %v7071_v56 = vshll.u32 %v24440_v22, 16  ;;  %v20818_v8 = vadd.f32 %v24221_v5, %v24209_v51  ;;  %v24485_v24 = vpop.permute.xlu0 %5900 }
 0x349   : > { %v6474_v35 = vshrl.u32 %v18112_v50, 16  ;;  %v6477_v11 = vshll.u32 %v18112_v50, 16  ;;  %v5965_v2 = vmul.f32 %v24417_v1, %v5677_v10  ;;  %v6470_v9 = vor.u32 %v6468_v3, %v6467_v62 }
 0x34a   : > { %v6472_v52 = vrot.slane %v6467_v62, 4  ;;  %v6452_v32 = vor.u32 %v6450_v0, %v6449_v37  ;;  %v6454_v53 = vrot.slane %v6449_v37, 4  ;;  %v7073_v38 = vrot.slane %v7071_v56, 1  ;;  %v24488_v37 = vld [vmem:[#allocation2 + $0x70] sm:$0xff]  }
 0x34b   : > { %v24457_v34 = vrot.slane %v6474_v35, 7  ;;  %v18110_v54 = vpack.c.bf16 %v5965_v2, %v5965_v2  ;;  %v5579_v29 = vmul.f32 %v24295_v39, %v20818_v8  ;;  %v20819_v21 = vadd.f32 %v24230_v15, %v24212_v23  ;;  %v24491_v2 = vpop.permute.xlu1 %5905 }
 0x34c   : > { %v6453_v18 = vsel %vm23907_vm10, %v6445_v57, %v6452_v32  ;;  %v20820_v51 = vadd.f32 %v24237_v19, %v24219_v61  ;;  %v20821_v5 = vadd.f32 %v24241_v46, %v24223_v42  ;;  %v7074_v59 = vsel %vm1092_vm3, %v7069_v4, %v7073_v38 }
 0x34d   : > { %6643 = vst [vmem:[#allocation2 + $0x9c] sm:$0xf] %v6453_v18  ;;  %v6479_v28 = vor.u32 %v6477_v11, %v24457_v34  ;;  %v6481_v25 = vrot.slane %v24457_v34, 4  ;;  %v6456_v20 = vshrl.u32 %v18110_v54, 16  ;;  %v6459_v57 = vshll.u32 %v18110_v54, 16  ;;  %19647 = vmatmul.mubr.bf16.gmra.mrb[68].mxu1 %v7074_v59 }
 0x34e   : > { %v5634_v23 = vadd.f32 %v24257_v17, %v5579_v29  ;;  %v5577_v19 = vmul.f32 %v24295_v39, %v20819_v21  ;;  %v5580_v61 = vmul.f32 %v24295_v39, %v20820_v51  ;;  %v5578_v15 = vmul.f32 %v24295_v39, %v20821_v5 }
 0x34f   : > { %v6480_v42 = vsel %vm23907_vm10, %v6472_v52, %v6479_v28  ;;  %v6458_v46 = vrot.slane %v6456_v20, 7  ;;  %v7075_v48 = vshrl.u32 %v24440_v22, 16  ;;  %v7079_v0 = vshll.u32 %v24468_v31, 16 }
 0x350   : > { %6646 = vst [vmem:[#allocation2 + $0xa8] sm:$0xf] %v6480_v42  ;;  %v5682_v41 = vmax.f32 %v5634_v23, 0.0  ;;  %v5632_v3 = vadd.f32 %v24257_v17, %v5577_v19  ;;  %v5635_v7 = vadd.f32 %v24257_v17, %v5580_v61  ;;  %v5633_v10 = vadd.f32 %v24257_v17, %v5578_v15  ;;  %v26383_v15 = vld [vmem:[#allocation53_spill] sm:$0xff] }
 0x351   : > { %v6461_v40 = vor.u32 %v6459_v57, %v6458_v46  ;;  %v6463_v50 = vrot.slane %v6458_v46, 4  ;;  %v7077_v62 = vor.u32 %v7075_v48, %v7073_v38  ;;  %v7081_v11 = vrot.slane %v7079_v0, 1  ;;  %v26382_v46 = vld [vmem:[#allocation48_spill] sm:$0xff] }
 0x352   : > { %v5970_v4 = vmul.f32 %v24485_v24, %v5682_v41  ;;  %v5680_v56 = vmax.f32 %v5632_v3, 0.0  ;;  %v5683_v35 = vmax.f32 %v5635_v7, 0.0  ;;  %v5681_v32 = vmax.f32 %v5633_v10, 0.0  ;;  %v24508_v41 = vpop.permute.xlu0 %5910 }
 0x353   : > { %v6462_v8 = vsel %vm23907_vm10, %v6454_v53, %v6461_v40  ;;  %v6471_v52 = vsel %vm23907_vm10, %v6463_v50, %v6470_v9  ;;  %v7083_v54 = vshrl.u32 %v24468_v31, 16  ;;  %v7082_v21 = vsel %vm1092_vm3, %v7077_v62, %v7081_v11  ;;  %v26381_v9 = vld [vmem:[#allocation52_spill] sm:$0xff] }
 0x354   : > { %6644 = vst [vmem:[#allocation2 + $0xa0] sm:$0xf] %v6462_v8  ;;  %6645 = vst [vmem:[#allocation2 + $0xa4] sm:$0xf] %v6471_v52  ;;  %v18115_v38 = vpack.c.bf16 %v5970_v4, %v5970_v4  ;;  %v5968_v29 = vmul.f32 %v24455_v30, %v5680_v56  ;;  %v5971_v18 = vmul.f32 %v24491_v2, %v5683_v35  ;;  %19650 = vmatprep.mubr.bf16.mxu1 %v7082_v21 }
 0x355   : > { %v5969_v51 = vmul.f32 %v24470_v43, %v5681_v32  ;;  %v7085_v5 = vor.u32 %v7083_v54, %v7081_v11  ;;  %v7087_v53 = vshll.u32 %v24488_v37, 16  ;;  %v20822_v28 = vadd.f32 %v26381_v9, %v24243_v55  ;;  %26384 = vst [vmem:[#allocation52_spill] sm:$0xff] %v24508_v41  ;;  %v26385_v54 = vld [vmem:[#allocation49_spill] sm:$0xff]  ;;  %v24521_v9 = vld [vmem:[#allocation2 + $0x80] sm:$0xff]  }
 0x356   : > { %v6501_v20 = vshrl.u32 %v18115_v38, 16  ;;  %v6504_v57 = vshll.u32 %v18115_v38, 16  ;;  %v18113_v59 = vpack.c.bf16 %v5968_v29, %v5968_v29  ;;  %v18116_v23 = vpack.c.bf16 %v5971_v18, %v5971_v18  ;;  %v26386_v38 = vld [vmem:[#allocation54_spill] sm:$0xff] }
 0x357   : > { %v18114_v19 = vpack.c.bf16 %v5969_v51, %v5969_v51  ;;  %v7089_v61 = vrot.slane %v7087_v53, 1  ;;  %v5583_v42 = vmul.f32 %v24295_v39, %v20822_v28  ;;  %v20823_v48 = vadd.f32 %v26383_v15, %v26382_v46  ;;  %v24519_v53 = vld [vmem:[#allocation2 + $0x78] sm:$0xff]   ;;  %v24523_v28 = vpop.permute.xlu1 %5915 }
 0x358   : > { %v6503_v3 = vrot.slane %v6501_v20, 7  ;;  %v6483_v7 = vshrl.u32 %v18113_v59, 16  ;;  %v6486_v0 = vshll.u32 %v18113_v59, 16  ;;  %v6510_v40 = vshrl.u32 %v18116_v23, 16  ;;  %26387 = vst [vmem:[#allocation48_spill] sm:$0xff] %v24523_v28 }
 0x359   : > { %v6513_v50 = vshll.u32 %v18116_v23, 16  ;;  %v6492_v10 = vshrl.u32 %v18114_v19, 16  ;;  %v6495_v55 = vshll.u32 %v18114_v19, 16  ;;  %v7090_v62 = vsel %vm1092_vm3, %v7085_v5, %v7089_v61  ;;  %v24526_v19 = vpop.permute.xlu0 %5920 }
 0x35a   : > { %v6506_v4 = vor.u32 %v6504_v57, %v6503_v3  ;;  %v6508_v56 = vrot.slane %v6503_v3, 4  ;;  %v6485_v35 = vrot.slane %v6483_v7, 7  ;;  %v24511_v11 = vrot.slane %v6510_v40, 7  ;;  %19651 = vmatmul.mubr.bf16.gmra.mrb[72].mxu1 %v7090_v62 }
 0x35b   : > { %v6494_v8 = vrot.slane %v6492_v10, 7  ;;  %v5638_v52 = vadd.f32 %v24257_v17, %v5583_v42  ;;  %v5581_v32 = vmul.f32 %v24295_v39, %v20823_v48  ;;  %v20824_v29 = vadd.f32 %v26386_v38, %v26385_v54  ;;  %v26388_v48 = vld [vmem:[#allocation50_spill] sm:$0xff]  ;;  %v24552_v38 = vpop.permute.xlu1 %5925 }
 0x35c   : > { %v6488_v18 = vor.u32 %v6486_v0, %v6485_v35  ;;  %v6490_v21 = vrot.slane %v6485_v35, 4  ;;  %v6515_v51 = vor.u32 %v6513_v50, %v24511_v11  ;;  %v6517_v5 = vrot.slane %v24511_v11, 4  ;;  %26389 = vst [vmem:[#allocation53_spill] sm:$0xff] %v24552_v38 }
 0x35d   : > { %v6497_v20 = vor.u32 %v6495_v55, %v6494_v8  ;;  %v6499_v57 = vrot.slane %v6494_v8, 4  ;;  %v5686_v59 = vmax.f32 %v5638_v52, 0.0  ;;  %v5636_v23 = vadd.f32 %v24257_v17, %v5581_v32  ;;  %v24546_v55 = vld [vmem:[#allocation2 + $0x88] sm:$0xff]  }
 0x35e   : > { %v6489_v42 = vsel %vm23907_vm10, %v6481_v25, %v6488_v18  ;;  %v6516_v46 = vsel %vm23907_vm10, %v6508_v56, %v6515_v51  ;;  %v5584_v15 = vmul.f32 %v24295_v39, %v20824_v29  ;;  %v20825_v3 = vadd.f32 %v24289_v16, %v26388_v48 }
 0x35f   : > { %6647 = vst [vmem:[#allocation2 + $0xac] sm:$0xf] %v6489_v42  ;;  %6650 = vst [vmem:[#allocation2 + $0xb8] sm:$0xf] %v6516_v46  ;;  %v6498_v7 = vsel %vm23907_vm10, %v6490_v21, %v6497_v20  ;;  %v6507_v0 = vsel %vm23907_vm10, %v6499_v57, %v6506_v4  ;;  %v5974_v34 = vmul.f32 %v24526_v19, %v5686_v59  ;;  %v5684_v40 = vmax.f32 %v5636_v23, 0.0 }
 0x360   : > { %6648 = vst [vmem:[#allocation2 + $0xb0] sm:$0xf] %v6498_v7  ;;  %6649 = vst [vmem:[#allocation2 + $0xb4] sm:$0xf] %v6507_v0  ;;  %v5639_v25 = vadd.f32 %v24257_v17, %v5584_v15  ;;  %v5582_v50 = vmul.f32 %v24295_v39, %v20825_v3  ;;  %v7091_v10 = vshrl.u32 %v24488_v37, 16  ;;  %v7095_v16 = vshll.u32 %v24519_v53, 16 }
 0x361   : > { %v18119_v62 = vpack.c.bf16 %v5974_v34, %v5974_v34  ;;  %v5972_v56 = vmul.f32 %v24508_v41, %v5684_v40  ;;  %v7099_v4 = vshrl.u32 %v24519_v53, 16  ;;  %v7103_v35 = vshll.u32 %v24521_v9, 16 }
 0x362   : > { %v5687_v8 = vmax.f32 %v5639_v25, 0.0  ;;  %v5637_v52 = vadd.f32 %v24257_v17, %v5582_v50  ;;  %v7093_v32 = vor.u32 %v7091_v10, %v7089_v61  ;;  %v7097_v54 = vrot.slane %v7095_v16, 1  ;;  %v24557_v61 = vld [vmem:[#allocation2 + $0x90] sm:$0xff]  }
 0x363   : > { %v6537_v39 = vshrl.u32 %v18119_v62, 16  ;;  %v6540_v29 = vshll.u32 %v18119_v62, 16  ;;  %v18117_v18 = vpack.c.bf16 %v5972_v56, %v5972_v56  ;;  %v7105_v21 = vrot.slane %v7103_v35, 1  ;;  %v24562_v62 = vld [vmem:[#allocation2 + $0x98] sm:$0xff]   ;;  %v6656_v35 = vld [vmem:[#allocation2 + $0xcc] sm:$0x1] }
 0x364   : > { %v5975_v51 = vmul.f32 %v24552_v38, %v5687_v8  ;;  %v5685_v20 = vmax.f32 %v5637_v52, 0.0  ;;  %v7098_v57 = vsel %vm1092_vm3, %v7093_v32, %v7097_v54  ;;  %v7101_v59 = vor.u32 %v7099_v4, %v7097_v54  ;;  %v24566_v32 = vld [vmem:[#allocation2 + $0xa0] sm:$0xff]  }
 0x365   : > { %v6539_v23 = vrot.slane %v6537_v39, 7  ;;  %v6519_v42 = vshrl.u32 %v18117_v18, 16  ;;  %v6522_v46 = vshll.u32 %v18117_v18, 16  ;;  %19654 = vmatprep.mubr.bf16.mxu1 %v7098_v57  ;;  %v7107_v17 = vshrl.u32 %v24521_v9, 16 }
 0x366   : > { %v18120_v15 = vpack.c.bf16 %v5975_v51, %v5975_v51  ;;  %v5973_v48 = vmul.f32 %v24523_v28, %v5685_v20  ;;  %v7106_v3 = vsel %vm1092_vm3, %v7101_v59, %v7105_v21  ;;  %v7111_v7 = vshll.u32 %v24546_v55, 16  ;;  %v24569_v51 = vld [vmem:[#allocation2 + $0xa8] sm:$0xff]  }
 0x367   : > { %v6542_v0 = vor.u32 %v6540_v29, %v6539_v23  ;;  %v6544_v34 = vrot.slane %v6539_v23, 4  ;;  %v6521_v40 = vrot.slane %v6519_v42, 7  ;;  %19655 = vmatmul.mubr.bf16.gmra.mrb[76].mxu1 %v7106_v3  ;;  %v7109_v10 = vor.u32 %v7107_v17, %v7105_v21 }
 0x368   : > { %v6546_v25 = vshrl.u32 %v18120_v15, 16  ;;  %v18118_v50 = vpack.c.bf16 %v5973_v48, %v5973_v48  ;;  %v7113_v16 = vrot.slane %v7111_v7, 1  ;;  %v6549_v4 = vshll.u32 %v18120_v15, 16 }
 0x369   : > { %v6524_v56 = vor.u32 %v6522_v46, %v6521_v40  ;;  %v7115_v8 = vshrl.u32 %v24546_v55, 16  ;;  %v7119_v52 = vshll.u32 %v24557_v61, 16  ;;  %v26390_v20 = vmov 0 }
 0x36a   : > { %v6548_v54 = vrot.slane %v6546_v25, 7  ;;  %v6528_v39 = vshrl.u32 %v18118_v50, 16  ;;  %v6531_v29 = vshll.u32 %v18118_v50, 16  ;;  %v7114_v18 = vsel %vm1092_vm3, %v7109_v10, %v7113_v16 }
 0x36b   : > { %v6525_v21 = vsel %vm23907_vm10, %v6517_v5, %v6524_v56  ;;  %v26391_v20 = vsel %vm24577_vm11, 4294967295, %v26390_v20  ;;  %19658 = vmatprep.mubr.bf16.mxu1 %v7114_v18  ;;  %v7117_v57 = vor.u32 %v7115_v8, %v7113_v16  ;;  %v7121_v59 = vrot.slane %v7119_v52, 1  ;;  %v24591_v8 = vld [vmem:[#allocation2 + $0xb0] sm:$0xff]  }
 0x36c   : > { %26392 = vst [vmem:[#allocation49_spill] sm:$0xff] %v26391_v20  ;;  %v7123_v23 = vshrl.u32 %v24557_v61, 16  ;;  %6651 = vst [vmem:[#allocation2 + $0xbc] sm:$0xf] %v6525_v21  ;;  %v6551_v42 = vor.u32 %v6549_v4, %v6548_v54  ;;  %v6553_v46 = vrot.slane %v6548_v54, 4  ;;  %v6530_v17 = vrot.slane %v6528_v39, 7 }
 0x36d   : > { %v7127_v11 = vshll.u32 %v24562_v62, 16  ;;  %v6526_v15 = vrot.slane %v6521_v40, 4  ;;  %v7122_v5 = vsel %vm1092_vm3, %v7117_v57, %v7121_v59  ;;  %v7135_v3 = vshll.u32 %v24566_v32, 16 }
 0x36e   : > { %v7125_v48 = vor.u32 %v7123_v23, %v7121_v59  ;;  %v6552_v7 = vsel %vm23907_vm10, %v6544_v34, %v6551_v42  ;;  %v6657_v25 = vsel %vm24577_vm11, %v6553_v46, %v6656_v35  ;;  %v6533_v50 = vor.u32 %v6531_v29, %v6530_v17 }
 0x36f   : > { %v6535_v10 = vrot.slane %v6530_v17, 4  ;;  %6654 = vst [vmem:[#allocation2 + $0xc8] sm:$0xf] %v6552_v7  ;;  %6658 = vst [vmem:[#allocation2 + $0xcc] sm:$0x1] %v6657_v25  ;;  %19659 = vmatmul.mubr.bf16.gmra.mrb[80].mxu1 %v7122_v5  ;;  %v7129_v16 = vrot.slane %v7127_v11, 1 }
 0x370   : > { %v7131_v56 = vshrl.u32 %v24562_v62, 16  ;;  %v7137_v40 = vrot.slane %v7135_v3, 1  ;;  %v7143_v4 = vshll.u32 %v24569_v51, 16  ;;  %v6534_v52 = vsel %vm23907_vm10, %v6526_v15, %v6533_v50 }
 0x371   : > { %v6543_v34 = vsel %vm23907_vm10, %v6535_v10, %v6542_v0  ;;  %6652 = vst [vmem:[#allocation2 + $0xc0] sm:$0xf] %v6534_v52  ;;  %v7130_v35 = vsel %vm1092_vm3, %v7125_v48, %v7129_v16  ;;  %v7139_v39 = vshrl.u32 %v24566_v32, 16  ;;  %v7151_v21 = vshll.u32 %v24591_v8, 16  ;;  %v24615_v52 = vld [vmem:[#allocation2 + $0x8] sm:$0xff]  }
 0x372   : > { %6653 = vst [vmem:[#allocation2 + $0xc4] sm:$0xf] %v6543_v34  ;;  %v7133_v54 = vor.u32 %v7131_v56, %v7129_v16  ;;  %v7145_v29 = vrot.slane %v7143_v4, 1  ;;  %19662 = vmatprep.mubr.bf16.mxu1 %v7130_v35  ;;  %v7147_v42 = vshrl.u32 %v24569_v51, 16  ;;  %v7155_v15 = vshrl.u32 %v24591_v8, 16  ;;  %v22247_v4 = vld [vmem:[#allocation6 + $0x88] sm:$0xff]  }
 0x373   : > { %v7141_v18 = vor.u32 %v7139_v39, %v7137_v40  ;;  %v24600_v57 = vld [vmem:[#allocation2 + $0xb8] sm:$0xff]   ;;  %v7153_v46 = vrot.slane %v7151_v21, 1  ;;  %v24618_v34 = vld [vmem:[#allocation2 + $0x10] sm:$0xff]  }
 0x374   : > { %v7138_v59 = vsel %vm1092_vm3, %v7133_v54, %v7137_v40  ;;  %v7159_v0 = vshll.u32 %v24600_v57, 16  ;;  %v7149_v17 = vor.u32 %v7147_v42, %v7145_v29  ;;  %v7163_v50 = vshrl.u32 %v24600_v57, 16  ;;  %v26393_v40 = vld [vmem:[#allocation20_spill] sm:$0xff]  ;;  %v22659_v35 = vld [vmem:[#allocation6 + $0x80] sm:$0xff]   ;;  %v22248_v54 = vld [vmem:[#allocation6 + $0x90] sm:$0xff]  }
 0x375   : > { %v7146_v23 = vsel %vm1092_vm3, %v7141_v18, %v7145_v29  ;;  %v7157_v48 = vor.u32 %v7155_v15, %v7153_v46  ;;  %v22249_v39 = vld [vmem:[#allocation6 + $0x98] sm:$0xff]   ;;  %v24624_v18 = vld [vmem:[#allocation2 + $0x20] sm:$0xff]   ;;  %v22252_v42 = vld [vmem:[#allocation6 + $0xb0] sm:$0xff]  }
 0x376   : > { %v7161_v5 = vrot.slane %v7159_v0, 1  ;;  %v7154_v3 = vsel %vm1092_vm3, %v7149_v17, %v7153_v46  ;;  %v24621_v29 = vld [vmem:[#allocation2 + $0x18] sm:$0xff]   ;;  %v24630_v0 = vld [vmem:[#allocation2 + $0x30] sm:$0xff]   ;;  %v24636_v15 = vld [vmem:[#allocation2 + $0x40] sm:$0xff]  }
 0x377   : > { %19663 = vmatmul.mubr.bf16.gmra.mrb[84].mxu1 %v7138_v59  ;;  %v22250_v21 = vld [vmem:[#allocation6 + $0xa0] sm:$0xff]   ;;  %v22251_v59 = vld [vmem:[#allocation6 + $0xa8] sm:$0xff]   ;;  %v22253_v46 = vld [vmem:[#allocation6 + $0xb8] sm:$0xff]  }
 0x378   : > { %19666 = vmatprep.mubr.bf16.mxu1 %v7146_v23  ;;  %v24606_v11 = vld [vmem:[#allocation2 + $0xc0] ss:$0 sps:$4 sm:$0x11]   ;;  %v7162_v25 = vsel %vm1092_vm3, %v7157_v48, %v7161_v5  ;;  %v7165_v10 = vor.u32 %v7163_v50, %v7161_v5  ;;  %v24627_v23 = vld [vmem:[#allocation2 + $0x28] sm:$0xff]   ;;  %v24633_v17 = vld [vmem:[#allocation2 + $0x38] sm:$0xff]   ;;  %v7772_v50 = vrot.slane %v24618_v34, 1 }
 0x379   : > { %v7167_v7 = vshll.u32 %v24606_v11, 16  ;;  %v22255_v5 = vld [vmem:[#allocation6 + $0xc0] sm:$0xff]  }
 0x37b   : > { %v7169_v16 = vrot.slane %v7167_v7, 1  ;;  %v7770_v7 = vrot.slane %v24615_v52, 1 }
 0x37d   : > { %v7170_v56 = vsel %vm1092_vm3, %v7165_v10, %v7169_v16  ;;  %v7774_v10 = vrot.slane %v24621_v29, 1  ;;  %v22256_v16 = vld [vmem:[#allocation6 + $0xc8] sm:$0xff]  }
 0x37f   : > { %19667 = vmatmul.mubr.bf16.gmra.mrb[88].mxu1 %v7154_v3 }
 0x380   : > { %19670 = vmatprep.mubr.bf16.mxu1 %v7162_v25 }
 0x387   : > { %19671 = vmatmul.mubr.bf16.gmra.mrb[92].mxu1 %v7170_v56  ;;  %v7773_v56 = vsel %vm1887_vm4, %v7770_v7, %v7772_v50 }
 0x388   : > { %19690 = vmatprep.mubr.bf16.mxu1 %v26393_v40  ;;  %v7775_v40 = vsel %vm1887_vm4, %v7772_v50, %v7774_v10  ;;  %v7790_v50 = vrot.slane %v24415_v13, 1 }
 0x38f   : > { %19691 = vmatmul.mubr.bf16.vlgmr.msra.gmra.mrb[48].mxu1 %v24615_v52  ;;  %v7776_v52 = vrot.slane %v24624_v18, 1 }
 0x390   : > { %19694 = vmatprep.mubr.bf16.mxu1 %v24618_v34  ;;  %19739 = vmatpush3.bf16.msra.mxu1 %v22659_v35  ;;  %v7778_v35 = vrot.slane %v24627_v23, 1 }
 0x391   : > { %19740 = vmatprep.subr.bf16.mxu1 %v22247_v4  ;;  %v7777_v34 = vsel %vm1887_vm4, %v7774_v10, %v7776_v52 }
 0x394   : > { %19741 = vmatpush3.bf16.msra.mxu1 %v22247_v4  ;;  %v22257_v4 = vld [vmem:[#allocation6 + $0xd0] sm:$0xff]  }
 0x395   : > { %19742 = vmatprep.subr.bf16.mxu1 %v22248_v54 }
 0x397   : > { %19695 = vmatmul.mubr.bf16.gmra.mrb[52].mxu1 %v24621_v29  ;;  %v22259_v29 = vld [vmem:[#allocation6 + $0xe0] sm:$0xff]  }
 0x398   : > { %19698 = vmatprep.mubr.bf16.mxu1 %v24624_v18  ;;  %19743 = vmatpush3.bf16.msra.mxu1 %v22248_v54  ;;  %v22258_v54 = vld [vmem:[#allocation6 + $0xd8] sm:$0xff]   ;;  %v22260_v18 = vld [vmem:[#allocation6 + $0xe8] sm:$0xff]  }
 0x399   : > { %19744 = vmatprep.subr.bf16.mxu1 %v22249_v39 }
 0x39c   : > { %19745 = vmatpush3.bf16.msra.mxu1 %v22249_v39  ;;  %v7779_v39 = vsel %vm1887_vm4, %v7776_v52, %v7778_v35  ;;  %v7798_v52 = vrot.slane %v24519_v53, 1 }
 0x39d   : > { %19746 = vmatprep.subr.bf16.mxu1 %v22250_v21 }
 0x39f   : > { %19699 = vmatmul.mubr.bf16.gmra.mrb[56].mxu1 %v24627_v23 }
 0x3a0   : > { %19702 = vmatprep.mubr.bf16.mxu1 %v24630_v0  ;;  %19747 = vmatpush3.bf16.msra.mxu1 %v22250_v21  ;;  %v7780_v21 = vrot.slane %v24630_v0, 1  ;;  %v22262_v0 = vld [vmem:[#allocation6 + $0xf8] sm:$0xff]  }
 0x3a1   : > { %19748 = vmatprep.subr.bf16.mxu1 %v22251_v59 }
 0x3a2   : > { %v7781_v23 = vsel %vm1887_vm4, %v7778_v35, %v7780_v21 }
 0x3a4   : > { %19749 = vmatpush3.bf16.msra.mxu1 %v22251_v59  ;;  %v7782_v59 = vrot.slane %v24633_v17, 1 }
 0x3a5   : > { %19750 = vmatprep.subr.bf16.mxu1 %v22252_v42 }
 0x3a7   : > { %19703 = vmatmul.mubr.bf16.gmra.mrb[60].mxu1 %v24633_v17 }
 0x3a8   : > { %19706 = vmatprep.mubr.bf16.mxu1 %v24636_v15  ;;  %19751 = vmatpush3.bf16.msra.mxu1 %v22252_v42  ;;  %v7783_v42 = vsel %vm1887_vm4, %v7780_v21, %v7782_v59 }
 0x3a9   : > { %19752 = vmatprep.subr.bf16.mxu1 %v22253_v46 }
 0x3ac   : > { %19753 = vmatpush3.bf16.msra.mxu1 %v22253_v46  ;;  %v22261_v46 = vld [vmem:[#allocation6 + $0xf0] sm:$0xff]  }
 0x3ad   : > { %19802 = vmatprep.subr.bf16.mxu1 %v22255_v5 }
 0x3af   : > { %19707 = vmatmul.mubr.bf16.gmra.mrb[64].mxu1 %v24369_v27  ;;  %v7765_v27 = vld [vmem:[#allocation2] sm:$0xe] }
 0x3b0   : > { %19710 = vmatprep.mubr.bf16.mxu1 %v24371_v58  ;;  %v22666_v58 = vld [vmem:[#allocation2 + $0x4] sm:$0xf] }
 0x3b1   : > { %v17660_v48 = vcombine.low %v7765_v27, %v22666_v58  ;;  %v22667_v27 = vld [vmem:[#allocation2 + $0x48] sm:$0xff]  }
 0x3b2   : > { %v7786_v58 = vrot.slane %v22667_v27, 1  ;;  %v22269_v27 = vld [vmem:[#allocation6 + $0x108] sm:$0xff]  }
 0x3b3   : > { %v7769_v3 = vrot.slane %v17660_v48, 1 }
 0x3b5   : > { %v7771_v25 = vsel %vm1887_vm4, %v7769_v3, %v7770_v7  ;;  %v22265_v3 = vld [vmem:[#allocation6 + $0x100] sm:$0xff]   ;;  %v22668_v7 = vld [vmem:[#allocation2 + $0x50] sm:$0xff]  }
 0x3b7   : > { %19711 = vmatmul.mubr.bf16.gmra.mrb[68].mxu1 %v24415_v13  ;;  %v7796_v13 = vrot.slane %v24488_v37, 1 }
 0x3b8   : > { %19714 = vmatprep.mubr.bf16.mxu1 %v24440_v22 }
 0x3bf   : > { %19715 = vmatmul.mubr.bf16.gmra.mrb[72].mxu1 %v24468_v31 }
 0x3c0   : > { %19718 = vmatprep.mubr.bf16.mxu1 %v24488_v37  ;;  %v7804_v37 = vrot.slane %v24557_v61, 1 }
 0x3c7   : > { %19719 = vmatmul.mubr.bf16.gmra.mrb[76].mxu1 %v24519_v53  ;;  %v7806_v53 = vrot.slane %v24562_v62, 1 }
 0x3c8   : > { %19722 = vmatprep.mubr.bf16.mxu1 %v24521_v9 }
 0x3c9   : > { %v7807_v21 = vsel %vm1887_vm4, %v7804_v37, %v7806_v53 }
 0x3cf   : > { %19723 = vmatmul.mubr.bf16.gmra.mrb[80].mxu1 %v24546_v55 }
 0x3d0   : > { %19726 = vmatprep.mubr.bf16.mxu1 %v24557_v61  ;;  %v7812_v61 = vrot.slane %v24591_v8, 1 }
 0x3d7   : > { %19727 = vmatmul.mubr.bf16.gmra.mrb[84].mxu1 %v24562_v62  ;;  %v7814_v62 = vrot.slane %v24600_v57, 1 }
 0x3d8   : > { %19730 = vmatprep.mubr.bf16.mxu1 %v24566_v32 }
 0x3df   : > { %19731 = vmatmul.mubr.bf16.gmra.mrb[88].mxu1 %v24569_v51 }
 0x3e0   : > { %19734 = vmatprep.mubr.bf16.mxu1 %v24591_v8  ;;  %v22273_v8 = vld [vmem:[#allocation6 + $0x110] sm:$0xff]  }
 0x3e7   : > { %19735 = vmatmul.mubr.bf16.gmra.mrb[92].mxu1 %v24600_v57  ;;  %v22267_v57 = vld [vmem:[#allocation2 + $0x24] sm:$0xff]  }
 0x3e8   : > { %19754 = vmatprep.mubr.bf16.mxu1 %v7771_v25  ;;  %v7788_v25 = vrot.slane %v22668_v7, 1  ;;  %v22285_v7 = vld [vmem:[#allocation6 + $0x128] sm:$0xff]  }
 0x3ea   : > { %v7791_v10 = vsel %vm1887_vm4, %v7788_v25, %v7790_v50 }
 0x3ef   : > { %19755 = vmatmul.mubr.bf16.vlgmr.msra.gmra.mrb[48].mxu1 %v7773_v56  ;;  %v7794_v56 = vrot.slane %v24468_v31, 1  ;;  %v7802_v31 = vrot.slane %v24546_v55, 1  ;;  %v7810_v55 = vrot.slane %v24569_v51, 1 }
 0x3f0   : > { %19758 = vmatprep.mubr.bf16.mxu1 %v7775_v40  ;;  %19803 = vmatpush3.bf16.msra.mxu1 %v22255_v5  ;;  %v7784_v5 = vrot.slane %v24636_v15, 1  ;;  %v7789_v15 = vsel %vm1887_vm4, %v7786_v58, %v7788_v25  ;;  %v22271_v25 = vld [vmem:[#allocation2 + $0x3c] sm:$0xff]  }
 0x3f1   : > { %19804 = vmatprep.subr.bf16.mxu1 %v22256_v16  ;;  %v7797_v35 = vsel %vm1887_vm4, %v7794_v56, %v7796_v13 }
 0x3f2   : > { %v7785_v17 = vsel %vm1887_vm4, %v7782_v59, %v7784_v5  ;;  %v7787_v48 = vsel %vm1887_vm4, %v7784_v5, %v7786_v58  ;;  %v22264_v5 = vld [vmem:[#allocation2 + $0x14] sm:$0xff]   ;;  %v22266_v58 = vld [vmem:[#allocation2 + $0x1c] sm:$0xff]  }
 0x3f4   : > { %19805 = vmatpush3.bf16.msra.mxu1 %v22256_v16  ;;  %v7792_v16 = vrot.slane %v24440_v22, 1  ;;  %v7800_v22 = vrot.slane %v24521_v9, 1  ;;  %v7808_v9 = vrot.slane %v24566_v32, 1  ;;  %v7816_v32 = vrot.slane %v24606_v11, 1  ;;  %v22281_v11 = vld [vmem:[#allocation6 + $0x120] sm:$0xff]  }
 0x3f5   : > { %19806 = vmatprep.subr.bf16.mxu1 %v22257_v4 }
 0x3f6   : > { %v7793_v40 = vsel %vm1887_vm4, %v7790_v50, %v7792_v16  ;;  %v7809_v59 = vsel %vm1887_vm4, %v7806_v53, %v7808_v9  ;;  %v7817_v51 = vsel %vm1887_vm4, %v7814_v62, %v7816_v32  ;;  %v22272_v50 = vld [vmem:[#allocation2 + $0x44] sm:$0xff]   ;;  %v22290_v53 = vld [vmem:[#allocation2 + $0xac] sm:$0xff]  }
 0x3f7   : > { %19759 = vmatmul.mubr.bf16.gmra.mrb[52].mxu1 %v7777_v34  ;;  %v7801_v34 = vsel %vm1887_vm4, %v7798_v52, %v7800_v22 }
 0x3f8   : > { %19762 = vmatprep.mubr.bf16.mxu1 %v7779_v39  ;;  %19807 = vmatpush3.bf16.msra.mxu1 %v22257_v4  ;;  %v7795_v4 = vsel %vm1887_vm4, %v7792_v16, %v7794_v56  ;;  %v7803_v39 = vsel %vm1887_vm4, %v7800_v22, %v7802_v31  ;;  %v24700_v16 = vld [vmem:[#allocation6 + $0x140] sm:$0xff]   ;;  %v22275_v56 = vld [vmem:[#allocation2 + $0x54] sm:$0xff]   ;;  %v22284_v22 = vld [vmem:[#allocation2 + $0x8c] sm:$0xff]  }
 0x3f9   : > { %19808 = vmatprep.subr.bf16.mxu1 %v22258_v54 }
 0x3fc   : > { %19809 = vmatpush3.bf16.msra.mxu1 %v22258_v54  ;;  %v7799_v54 = vsel %vm1887_vm4, %v7796_v13, %v7798_v52  ;;  %v22279_v13 = vld [vmem:[#allocation2 + $0x6c] sm:$0xff]   ;;  %v22280_v52 = vld [vmem:[#allocation2 + $0x74] sm:$0xff]  }
 0x3fd   : > { %19810 = vmatprep.subr.bf16.mxu1 %v22259_v29 }
 0x3ff   : > { %19763 = vmatmul.mubr.bf16.gmra.mrb[56].mxu1 %v7781_v23  ;;  %v7813_v23 = vsel %vm1887_vm4, %v7810_v55, %v7812_v61 }
 0x400   : > { %19766 = vmatprep.mubr.bf16.mxu1 %v7783_v42  ;;  %19811 = vmatpush3.bf16.msra.mxu1 %v22259_v29  ;;  %v7805_v29 = vsel %vm1887_vm4, %v7802_v31, %v7804_v37  ;;  %v7815_v42 = vsel %vm1887_vm4, %v7812_v61, %v7814_v62  ;;  %v22286_v31 = vld [vmem:[#allocation2 + $0x94] sm:$0xff]   ;;  %v22288_v37 = vld [vmem:[#allocation2 + $0xa4] sm:$0xff]   ;;  %v24708_v62 = vld [vmem:[#allocation2 + $0x1c] sm:$0xff]  }
 0x401   : > { %19812 = vmatprep.subr.bf16.mxu1 %v22260_v18 }
 0x404   : > { %19813 = vmatpush3.bf16.msra.mxu1 %v22260_v18  ;;  %v7811_v18 = vsel %vm1887_vm4, %v7808_v9, %v7810_v55  ;;  %v22291_v55 = vld [vmem:[#allocation2 + $0xb4] sm:$0xff]  }
 0x405   : > { %19814 = vmatprep.subr.bf16.mxu1 %v22261_v46 }
 0x407   : > { %19767 = vmatmul.mubr.bf16.gmra.mrb[60].mxu1 %v7785_v17  ;;  %v22268_v17 = vld [vmem:[#allocation2 + $0x2c] sm:$0xff]  }
 0x408   : > { %19770 = vmatprep.mubr.bf16.mxu1 %v7787_v48  ;;  %19815 = vmatpush3.bf16.msra.mxu1 %v22261_v46  ;;  %v22263_v46 = vld [vmem:[#allocation2 + $0xc] sm:$0xff]   ;;  %v22270_v48 = vld [vmem:[#allocation2 + $0x34] sm:$0xff]  }
 0x409   : > { %19816 = vmatprep.subr.bf16.mxu1 %v22262_v0 }
 0x40c   : > { %19817 = vmatpush3.bf16.msra.mxu1 %v22262_v0  ;;  %v22277_v0 = vld [vmem:[#allocation6 + $0x118] sm:$0xff]  }
 0x40d   : > { %19866 = vmatprep.subr.bf16.mxu1 %v22265_v3 }
 0x40f   : > { %19771 = vmatmul.mubr.bf16.gmra.mrb[64].mxu1 %v7789_v15  ;;  %v22293_v15 = vld [vmem:[#allocation6 + $0x138] sm:$0xff]  }
 0x410   : > { %19774 = vmatprep.mubr.bf16.mxu1 %v7791_v10  ;;  %v22274_v10 = vld [vmem:[#allocation2 + $0x4c] sm:$0xff]  }
 0x417   : > { %19775 = vmatmul.mubr.bf16.gmra.mrb[68].mxu1 %v7793_v40  ;;  %v22276_v40 = vld [vmem:[#allocation2 + $0x5c] sm:$0xff]  }
 0x418   : > { %19778 = vmatprep.mubr.bf16.mxu1 %v7795_v4  ;;  %v22278_v4 = vld [vmem:[#allocation2 + $0x64] sm:$0xff]  }
 0x41f   : > { %19779 = vmatmul.mubr.bf16.gmra.mrb[72].mxu1 %v7797_v35  ;;  %v22282_v35 = vld [vmem:[#allocation2 + $0x7c] sm:$0xff]  }
 0x420   : > { %19782 = vmatprep.mubr.bf16.mxu1 %v7799_v54  ;;  %v22283_v54 = vld [vmem:[#allocation2 + $0x84] sm:$0xff]  }
 0x427   : > { %19783 = vmatmul.mubr.bf16.gmra.mrb[76].mxu1 %v7801_v34  ;;  %v22287_v34 = vld [vmem:[#allocation2 + $0x9c] sm:$0xff]  }
 0x428   : > { %19786 = vmatprep.mubr.bf16.mxu1 %v7803_v39  ;;  %v24703_v39 = vld [vmem:[#allocation2 + $0x10] sm:$0xf] }
 0x42f   : > { %19787 = vmatmul.mubr.bf16.gmra.mrb[80].mxu1 %v7805_v29  ;;  %v8676_v29 = vld [vmem:[#allocation2 + $0xc] sm:$0xf] }
 0x430   : > { %19790 = vmatprep.mubr.bf16.mxu1 %v7807_v21  ;;  %v17701_v21 = vcombine.low %v8676_v29, %v24703_v39  ;;  %v22310_v29 = vld [vmem:[#allocation6 + $0x158] sm:$0xff]  }
 0x432   : > { %v8851_v9 = vshll.u32 %v17701_v21, 16 }
 0x434   : > { %v8853_v61 = vrot.slane %v8851_v9, 1 }
 0x437   : > { %19791 = vmatmul.mubr.bf16.gmra.mrb[84].mxu1 %v7809_v59  ;;  %v24706_v59 = vld [vmem:[#allocation2 + $0x14] sm:$0xff]  }
 0x438   : > { %19794 = vmatprep.mubr.bf16.mxu1 %v7811_v18  ;;  %v22292_v18 = vld [vmem:[#allocation2 + $0xbc] sm:$0xff]  }
 0x43f   : > { %19795 = vmatmul.mubr.bf16.gmra.mrb[88].mxu1 %v7813_v23  ;;  %v8849_v23 = vshrl.u32 %v17701_v21, 16 }
 0x440   : > { %19798 = vmatprep.mubr.bf16.mxu1 %v7815_v42  ;;  %v8856_v42 = vshll.u32 %v24706_v59, 16 }
 0x441   : > { %v8854_v32 = vor.u32 %v8853_v61, %v8849_v23  ;;  %v22314_v23 = vld [vmem:[#allocation6 + $0x160] sm:$0xff]  }
 0x447   : > { %19799 = vmatmul.mubr.bf16.gmra.mrb[92].mxu1 %v7817_v51  ;;  %v8864_v51 = vshll.u32 %v24708_v62, 16 }
 0x448   : > { %19818 = vmatprep.mubr.bf16.mxu1 %v22263_v46  ;;  %v22294_v46 = vld [vmem:[#allocation2 + $0xc4] sm:$0xff]  }
 0x44f   : > { %19819 = vmatmul.mubr.bf16.vlgmr.msra.gmra.mrb[48].mxu1 %v22264_v5  ;;  %v8858_v5 = vrot.slane %v8856_v42, 1 }
 0x450   : > { %19822 = vmatprep.mubr.bf16.mxu1 %v22266_v58  ;;  %19867 = vmatpush3.bf16.msra.mxu1 %v22265_v3  ;;  %v22289_v3 = vld [vmem:[#allocation6 + $0x130] sm:$0xff]  }
 0x451   : > { %19868 = vmatprep.subr.bf16.mxu1 %v22269_v27  ;;  %v8859_v58 = vsel %vm1092_vm3, %v8854_v32, %v8858_v5 }
 0x454   : > { %19869 = vmatpush3.bf16.msra.mxu1 %v22269_v27  ;;  %v24712_v27 = vld [vmem:[#allocation2 + $0x24] sm:$0xff]  }
 0x455   : > { %19870 = vmatprep.subr.bf16.mxu1 %v22273_v8 }
 0x457   : > { %19823 = vmatmul.mubr.bf16.gmra.mrb[52].mxu1 %v22267_v57  ;;  %v24715_v57 = vld [vmem:[#allocation2 + $0x2c] sm:$0xff]  }
 0x458   : > { %19826 = vmatprep.mubr.bf16.mxu1 %v22268_v17  ;;  %19871 = vmatpush3.bf16.msra.mxu1 %v22273_v8  ;;  %v8866_v8 = vrot.slane %v8864_v51, 1  ;;  %v8872_v17 = vshll.u32 %v24712_v27, 16 }
 0x459   : > { %19872 = vmatprep.subr.bf16.mxu1 %v22277_v0 }
 0x45c   : > { %19873 = vmatpush3.bf16.msra.mxu1 %v22277_v0  ;;  %v8868_v0 = vshrl.u32 %v24708_v62, 16 }
 0x45d   : > { %19874 = vmatprep.subr.bf16.mxu1 %v22281_v11 }
 0x45f   : > { %19827 = vmatmul.mubr.bf16.gmra.mrb[56].mxu1 %v22270_v48  ;;  %v8870_v48 = vor.u32 %v8868_v0, %v8866_v8 }
 0x460   : > { %19830 = vmatprep.mubr.bf16.mxu1 %v22271_v25  ;;  %19875 = vmatpush3.bf16.msra.mxu1 %v22281_v11  ;;  %v8860_v11 = vshrl.u32 %v24706_v59, 16 }
 0x461   : > { %19876 = vmatprep.subr.bf16.mxu1 %v22285_v7 }
 0x462   : > { %v8862_v25 = vor.u32 %v8860_v11, %v8858_v5 }
 0x464   : > { %19877 = vmatpush3.bf16.msra.mxu1 %v22285_v7  ;;  %v8880_v7 = vshll.u32 %v24715_v57, 16 }
 0x465   : > { %19878 = vmatprep.subr.bf16.mxu1 %v22289_v3 }
 0x467   : > { %19831 = vmatmul.mubr.bf16.gmra.mrb[60].mxu1 %v22272_v50  ;;  %v24721_v50 = vld [vmem:[#allocation2 + $0x34] sm:$0xff]  }
 0x468   : > { %19834 = vmatprep.mubr.bf16.mxu1 %v22274_v10  ;;  %19879 = vmatpush3.bf16.msra.mxu1 %v22289_v3  ;;  %v8874_v3 = vrot.slane %v8872_v17, 1  ;;  %v8867_v10 = vsel %vm1092_vm3, %v8862_v25, %v8866_v8  ;;  %v8892_v42 = vshrl.u32 %v24721_v50, 16  ;;  %v22318_v8 = vld [vmem:[#allocation6 + $0x168] sm:$0xff]  }
 0x469   : > { %19880 = vmatprep.subr.bf16.mxu1 %v22293_v15 }
 0x46c   : > { %19881 = vmatpush3.bf16.msra.mxu1 %v22293_v15  ;;  %v22302_v15 = vld [vmem:[#allocation6 + $0x148] sm:$0xff]  }
 0x46d   : > { %19930 = vmatprep.subr.bf16.mxu1 %v24700_v16 }
 0x46f   : > { %19835 = vmatmul.mubr.bf16.gmra.mrb[64].mxu1 %v22275_v56  ;;  %v8875_v56 = vsel %vm1092_vm3, %v8870_v48, %v8874_v3  ;;  %v24746_v48 = vld [vmem:[#allocation2 + $0x5c] sm:$0xff]  }
 0x470   : > { %19838 = vmatprep.mubr.bf16.mxu1 %v22276_v40  ;;  %v8882_v40 = vrot.slane %v8880_v7, 1 }
 0x477   : > { %19839 = vmatmul.mubr.bf16.gmra.mrb[68].mxu1 %v22278_v4  ;;  %v24725_v4 = vld [vmem:[#allocation2 + $0x3c] sm:$0xff]  }
 0x478   : > { %19842 = vmatprep.mubr.bf16.mxu1 %v22279_v13  ;;  %v8884_v13 = vshrl.u32 %v24715_v57, 16 }
 0x47f   : > { %19843 = vmatmul.mubr.bf16.gmra.mrb[72].mxu1 %v22280_v52  ;;  %v8888_v52 = vshll.u32 %v24721_v50, 16 }
 0x480   : > { %19846 = vmatprep.mubr.bf16.mxu1 %v22282_v35  ;;  %v22306_v35 = vld [vmem:[#allocation6 + $0x150] sm:$0xff]  }
 0x487   : > { %19847 = vmatmul.mubr.bf16.gmra.mrb[76].mxu1 %v22283_v54  ;;  %v8876_v54 = vshrl.u32 %v24712_v27, 16 }
 0x488   : > { %19850 = vmatprep.mubr.bf16.mxu1 %v22284_v22  ;;  %v8886_v22 = vor.u32 %v8884_v13, %v8882_v40 }
 0x48f   : > { %19851 = vmatmul.mubr.bf16.gmra.mrb[80].mxu1 %v22286_v31  ;;  %v8896_v31 = vshll.u32 %v24725_v4, 16 }
 0x490   : > { %19854 = vmatprep.mubr.bf16.mxu1 %v22287_v34  ;;  %v8878_v34 = vor.u32 %v8876_v54, %v8874_v3  ;;  %v22322_v3 = vld [vmem:[#allocation6 + $0x170] sm:$0xff]  }
 0x491   : > { %v8898_v9 = vrot.slane %v8896_v31, 1 }
 0x497   : > { %19855 = vmatmul.mubr.bf16.gmra.mrb[84].mxu1 %v22288_v37  ;;  %v8890_v37 = vrot.slane %v8888_v52, 1  ;;  %v24752_v52 = vld [vmem:[#allocation2 + $0x64] sm:$0xff]  }
 0x498   : > { %19858 = vmatprep.mubr.bf16.mxu1 %v22290_v53  ;;  %v24732_v53 = vld [vmem:[#allocation2 + $0x44] sm:$0xff]  }
 0x499   : > { %v8891_v21 = vsel %vm1092_vm3, %v8886_v22, %v8890_v37  ;;  %v8904_v61 = vshll.u32 %v24732_v53, 16 }
 0x49b   : > { %v8906_v5 = vrot.slane %v8904_v61, 1 }
 0x49f   : > { %19859 = vmatmul.mubr.bf16.gmra.mrb[88].mxu1 %v22291_v55  ;;  %v24736_v55 = vld [vmem:[#allocation2 + $0x4c] sm:$0xff]  }
 0x4a0   : > { %19862 = vmatprep.mubr.bf16.mxu1 %v22292_v18  ;;  %v8900_v18 = vshrl.u32 %v24725_v4, 16  ;;  %v8912_v51 = vshll.u32 %v24736_v55, 16  ;;  %v8916_v7 = vshrl.u32 %v24736_v55, 16 }
 0x4a2   : > { %v8902_v32 = vor.u32 %v8900_v18, %v8898_v9  ;;  %v8914_v11 = vrot.slane %v8912_v51, 1 }
 0x4a4   : > { %v8907_v17 = vsel %vm1092_vm3, %v8902_v32, %v8906_v5 }
 0x4a7   : > { %19863 = vmatmul.mubr.bf16.gmra.mrb[92].mxu1 %v22294_v46  ;;  %v8894_v46 = vor.u32 %v8892_v42, %v8890_v37  ;;  %v8932_v37 = vshrl.u32 %v24746_v48, 16  ;;  %v24764_v42 = vld [vmem:[#allocation2 + $0x74] sm:$0xff]  }
 0x4a8   : > { %19882 = vmatprep.mubr.bf16.mxu1 %v8859_v58  ;;  %v24742_v58 = vld [vmem:[#allocation2 + $0x54] sm:$0xff]  }
 0x4a9   : > { %v8899_v0 = vsel %vm1092_vm3, %v8894_v46, %v8898_v9  ;;  %v8920_v25 = vshll.u32 %v24742_v58, 16 }
 0x4ab   : > { %v8922_v13 = vrot.slane %v8920_v25, 1 }
 0x4af   : > { %19883 = vmatmul.mubr.bf16.vlgmr.msra.gmra.mrb[48].mxu1 %v8867_v10  ;;  %v8918_v10 = vor.u32 %v8916_v7, %v8914_v11 }
 0x4b0   : > { %19886 = vmatprep.mubr.bf16.mxu1 %v8875_v56  ;;  %19931 = vmatpush3.bf16.msra.mxu1 %v24700_v16  ;;  %v8883_v16 = vsel %vm1092_vm3, %v8878_v34, %v8882_v40  ;;  %v8928_v56 = vshll.u32 %v24746_v48, 16  ;;  %v24756_v34 = vld [vmem:[#allocation2 + $0x6c] sm:$0xff]  }
 0x4b1   : > { %19932 = vmatprep.subr.bf16.mxu1 %v22302_v15  ;;  %v8923_v22 = vsel %vm1092_vm3, %v8918_v10, %v8922_v13  ;;  %v8944_v18 = vshll.u32 %v24756_v34, 16 }
 0x4b2   : > { %v8930_v31 = vrot.slane %v8928_v56, 1 }
 0x4b3   : > { %v8946_v46 = vrot.slane %v8944_v18, 1 }
 0x4b4   : > { %19933 = vmatpush3.bf16.msra.mxu1 %v22302_v15  ;;  %v8908_v15 = vshrl.u32 %v24732_v53, 16  ;;  %v8934_v9 = vor.u32 %v8932_v37, %v8930_v31 }
 0x4b5   : > { %19934 = vmatprep.subr.bf16.mxu1 %v22306_v35 }
 0x4b6   : > { %v8910_v40 = vor.u32 %v8908_v15, %v8906_v5  ;;  %v24769_v5 = vld [vmem:[#allocation2 + $0x7c] sm:$0xff]   ;;  %v24775_v15 = vld [vmem:[#allocation2 + $0x84] sm:$0xff]  }
 0x4b7   : > { %19887 = vmatmul.mubr.bf16.gmra.mrb[52].mxu1 %v8883_v16  ;;  %v24760_v16 = vld [vmem:[#allocation6 + $0x180] sm:$0xff]   ;;  %v8960_v7 = vshll.u32 %v24769_v5, 16 }
 0x4b8   : > { %19890 = vmatprep.mubr.bf16.mxu1 %v8891_v21  ;;  %19935 = vmatpush3.bf16.msra.mxu1 %v22306_v35  ;;  %v22326_v35 = vld [vmem:[#allocation6 + $0x178] sm:$0xff]   ;;  %v8915_v54 = vsel %vm1092_vm3, %v8910_v40, %v8914_v11  ;;  %v8924_v21 = vshrl.u32 %v24742_v58, 16 }
 0x4b9   : > { %19936 = vmatprep.subr.bf16.mxu1 %v22310_v29  ;;  %v8962_v40 = vrot.slane %v8960_v7, 1 }
 0x4ba   : > { %v8926_v61 = vor.u32 %v8924_v21, %v8922_v13  ;;  %v24779_v13 = vld [vmem:[#allocation2 + $0x8c] sm:$0xff]  }
 0x4bb   : > { %v8976_v37 = vshll.u32 %v24779_v13, 16 }
 0x4bc   : > { %19937 = vmatpush3.bf16.msra.mxu1 %v22310_v29  ;;  %v8936_v29 = vshll.u32 %v24752_v52, 16  ;;  %v8931_v32 = vsel %vm1092_vm3, %v8926_v61, %v8930_v31 }
 0x4bd   : > { %19938 = vmatprep.subr.bf16.mxu1 %v22314_v23 }
 0x4bf   : > { %19891 = vmatmul.mubr.bf16.gmra.mrb[56].mxu1 %v8899_v0  ;;  %v8952_v0 = vshll.u32 %v24764_v42, 16 }
 0x4c0   : > { %19894 = vmatprep.mubr.bf16.mxu1 %v8907_v17  ;;  %19939 = vmatpush3.bf16.msra.mxu1 %v22314_v23  ;;  %v8938_v23 = vrot.slane %v8936_v29, 1  ;;  %v8940_v17 = vshrl.u32 %v24752_v52, 16 }
 0x4c1   : > { %19940 = vmatprep.subr.bf16.mxu1 %v22318_v8 }
 0x4c2   : > { %v8939_v51 = vsel %vm1092_vm3, %v8934_v9, %v8938_v23  ;;  %v8942_v25 = vor.u32 %v8940_v17, %v8938_v23  ;;  %v24785_v9 = vld [vmem:[#allocation2 + $0x94] sm:$0xff]   ;;  %v8978_v23 = vrot.slane %v8976_v37, 1 }
 0x4c4   : > { %19941 = vmatpush3.bf16.msra.mxu1 %v22318_v8  ;;  %v8948_v8 = vshrl.u32 %v24756_v34, 16  ;;  %v8947_v10 = vsel %vm1092_vm3, %v8942_v25, %v8946_v46  ;;  %v24795_v25 = vld [vmem:[#allocation2 + $0xa4] sm:$0xff]  }
 0x4c5   : > { %19942 = vmatprep.subr.bf16.mxu1 %v22322_v3 }
 0x4c6   : > { %v8950_v11 = vor.u32 %v8948_v8, %v8946_v46  ;;  %v8984_v46 = vshll.u32 %v24785_v9, 16  ;;  %v8972_v8 = vshrl.u32 %v24775_v15, 16 }
 0x4c7   : > { %19895 = vmatmul.mubr.bf16.gmra.mrb[60].mxu1 %v8915_v54  ;;  %v8968_v54 = vshll.u32 %v24775_v15, 16 }
 0x4c8   : > { %19898 = vmatprep.mubr.bf16.mxu1 %v8923_v22  ;;  %19943 = vmatpush3.bf16.msra.mxu1 %v22322_v3  ;;  %v8954_v3 = vrot.slane %v8952_v0, 1  ;;  %v8956_v22 = vshrl.u32 %v24764_v42, 16  ;;  %v8986_v7 = vrot.slane %v8984_v46, 1  ;;  %v24809_v46 = vld [vmem:[#allocation2 + $0xbc] sm:$0xff]  }
 0x4c9   : > { %19944 = vmatprep.subr.bf16.mxu1 %v22326_v35  ;;  %v8970_v21 = vrot.slane %v8968_v54, 1  ;;  %v9000_v54 = vshll.u32 %v24795_v25, 16 }
 0x4ca   : > { %v8955_v56 = vsel %vm1092_vm3, %v8950_v11, %v8954_v3  ;;  %v8958_v29 = vor.u32 %v8956_v22, %v8954_v3  ;;  %v8988_v22 = vshrl.u32 %v24785_v9, 16 }
 0x4cb   : > { %v8974_v11 = vor.u32 %v8972_v8, %v8970_v21 }
 0x4cc   : > { %19945 = vmatpush3.bf16.msra.mxu1 %v22326_v35  ;;  %v8964_v35 = vshrl.u32 %v24769_v5, 16  ;;  %v8963_v18 = vsel %vm1092_vm3, %v8958_v29, %v8962_v40  ;;  %v8990_v29 = vor.u32 %v8988_v22, %v8986_v7 }
 0x4cd   : > { %19994 = vmatprep.subr.bf16.mxu1 %v24760_v16  ;;  %v8979_v3 = vsel %vm1092_vm3, %v8974_v11, %v8978_v23 }
 0x4ce   : > { %v8966_v31 = vor.u32 %v8964_v35, %v8962_v40  ;;  %v24799_v40 = vld [vmem:[#allocation2 + $0xac] sm:$0xff]  }
 0x4cf   : > { %19899 = vmatmul.mubr.bf16.gmra.mrb[64].mxu1 %v8931_v32  ;;  %v24789_v32 = vld [vmem:[#allocation2 + $0x9c] sm:$0xff]   ;;  %v9008_v37 = vshll.u32 %v24799_v40, 16  ;;  %v9012_v8 = vshrl.u32 %v24799_v40, 16 }
 0x4d0   : > { %19902 = vmatprep.mubr.bf16.mxu1 %v8939_v51  ;;  %v8971_v61 = vsel %vm1092_vm3, %v8966_v31, %v8970_v21  ;;  %v8980_v51 = vshrl.u32 %v24779_v13, 16  ;;  %v8992_v17 = vshll.u32 %v24789_v32, 16  ;;  %v8996_v35 = vshrl.u32 %v24789_v32, 16 }
 0x4d1   : > { %v9002_v21 = vrot.slane %v9000_v54, 1 }
 0x4d2   : > { %v8982_v0 = vor.u32 %v8980_v51, %v8978_v23  ;;  %v9010_v51 = vrot.slane %v9008_v37, 1 }
 0x4d4   : > { %v9014_v11 = vor.u32 %v9012_v8, %v9010_v51  ;;  %v24822_v8 = vld [vmem:[#allocation2 + $0xcc] ss:$0 sps:$4 sm:$0x11]  }
 0x4d7   : > { %19903 = vmatmul.mubr.bf16.gmra.mrb[68].mxu1 %v8947_v10  ;;  %v8987_v10 = vsel %vm1092_vm3, %v8982_v0, %v8986_v7  ;;  %v9024_v7 = vshll.u32 %v24809_v46, 16 }
 0x4d8   : > { %19906 = vmatprep.mubr.bf16.mxu1 %v8955_v56  ;;  %v8994_v56 = vrot.slane %v8992_v17, 1  ;;  %v9004_v17 = vshrl.u32 %v24795_v25, 16 }
 0x4d9   : > { %v9026_v22 = vrot.slane %v9024_v7, 1 }
 0x4da   : > { %v8998_v31 = vor.u32 %v8996_v35, %v8994_v56  ;;  %v24815_v35 = vld [vmem:[#allocation2 + $0xc4] sm:$0xff]  }
 0x4db   : > { %v9032_v37 = vshll.u32 %v24815_v35, 16  ;;  %v9036_v7 = vshrl.u32 %v24815_v35, 16 }
 0x4dc   : > { %v9003_v23 = vsel %vm1092_vm3, %v8998_v31, %v9002_v21  ;;  %v9028_v31 = vshrl.u32 %v24809_v46, 16 }
 0x4df   : > { %19907 = vmatmul.mubr.bf16.gmra.mrb[72].mxu1 %v8963_v18  ;;  %v24805_v18 = vld [vmem:[#allocation2 + $0xb4] sm:$0xff]  }
 0x4e0   : > { %19910 = vmatprep.mubr.bf16.mxu1 %v8971_v61  ;;  %v8995_v61 = vsel %vm1092_vm3, %v8990_v29, %v8994_v56  ;;  %v9016_v0 = vshll.u32 %v24805_v18, 16  ;;  %v9020_v29 = vshrl.u32 %v24805_v18, 16 }
 0x4e7   : > { %19911 = vmatmul.mubr.bf16.gmra.mrb[76].mxu1 %v8979_v3  ;;  %v9006_v3 = vor.u32 %v9004_v17, %v9002_v21  ;;  %v9034_v21 = vrot.slane %v9032_v37, 1  ;;  %v9389_v17 = vld [vmem:[#allocation2 + $0xc] sm:$0xe] }
 0x4e8   : > { %19914 = vmatprep.mubr.bf16.mxu1 %v8987_v10  ;;  %v9018_v10 = vrot.slane %v9016_v0, 1 }
 0x4e9   : > { %v9011_v56 = vsel %vm1092_vm3, %v9006_v3, %v9010_v51  ;;  %v9040_v3 = vshll.u32 %v24822_v8, 16 }
 0x4ea   : > { %v9019_v54 = vsel %vm1092_vm3, %v9014_v11, %v9018_v10  ;;  %v17734_v11 = vcombine.low %v9389_v17, %v24703_v39  ;;  %v9398_v39 = vrot.slane %v24712_v27, 1  ;;  %v9402_v17 = vrot.slane %v24721_v50, 1 }
 0x4ef   : > { %19915 = vmatmul.mubr.bf16.gmra.mrb[80].mxu1 %v8995_v61  ;;  %v9030_v61 = vor.u32 %v9028_v31, %v9026_v22  ;;  %v9042_v31 = vrot.slane %v9040_v3, 1 }
 0x4f0   : > { %19918 = vmatprep.mubr.bf16.mxu1 %v9003_v23  ;;  %v9022_v23 = vor.u32 %v9020_v29, %v9018_v10  ;;  %v9394_v10 = vrot.slane %v24706_v59, 1  ;;  %v9396_v29 = vrot.slane %v24708_v62, 1  ;;  %v22331_v59 = vld [vmem:[#allocation6 + $0x190] sm:$0xff]   ;;  %v22332_v62 = vld [vmem:[#allocation6 + $0x198] sm:$0xff]  }
 0x4f1   : > { %v9035_v51 = vsel %vm1092_vm3, %v9030_v61, %v9034_v21  ;;  %v22330_v61 = vld [vmem:[#allocation6 + $0x188] sm:$0xff]  }
 0x4f2   : > { %v9027_v0 = vsel %vm1092_vm3, %v9022_v23, %v9026_v22  ;;  %v9397_v23 = vsel %vm1887_vm4, %v9394_v10, %v9396_v29 }
 0x4f7   : > { %19919 = vmatmul.mubr.bf16.gmra.mrb[84].mxu1 %v9011_v56  ;;  %v9038_v56 = vor.u32 %v9036_v7, %v9034_v21  ;;  %v9399_v21 = vsel %vm1887_vm4, %v9396_v29, %v9398_v39  ;;  %v9406_v7 = vrot.slane %v24732_v53, 1  ;;  %v9414_v29 = vrot.slane %v24752_v52, 1 }
 0x4f8   : > { %19922 = vmatprep.mubr.bf16.mxu1 %v9019_v54  ;;  %v9393_v54 = vrot.slane %v17734_v11, 1  ;;  %v22333_v11 = vld [vmem:[#allocation6 + $0x1a0] sm:$0xff]   ;;  %v9422_v52 = vrot.slane %v24775_v15, 1  ;;  %v9430_v15 = vrot.slane %v24795_v25, 1  ;;  %v9438_v25 = vrot.slane %v24815_v35, 1  ;;  %v22341_v35 = vld [vmem:[#allocation2 + $0x30] sm:$0xff]  }
 0x4f9   : > { %v9043_v37 = vsel %vm1092_vm3, %v9038_v56, %v9042_v31  ;;  %v22335_v56 = vld [vmem:[#allocation6 + $0x1b0] sm:$0xff]  }
 0x4fa   : > { %v9395_v22 = vsel %vm1887_vm4, %v9393_v54, %v9394_v10  ;;  %v9408_v54 = vrot.slane %v24736_v55, 1  ;;  %v9410_v10 = vrot.slane %v24742_v58, 1 }
 0x4fc   : > { %v9409_v53 = vsel %vm1887_vm4, %v9406_v7, %v9408_v54  ;;  %v9411_v31 = vsel %vm1887_vm4, %v9408_v54, %v9410_v10  ;;  %v22340_v54 = vld [vmem:[#allocation2 + $0x28] sm:$0xff]  }
 0x4ff   : > { %19923 = vmatmul.mubr.bf16.gmra.mrb[88].mxu1 %v9027_v0  ;;  %v9400_v0 = vrot.slane %v24715_v57, 1  ;;  %v22334_v57 = vld [vmem:[#allocation6 + $0x1a8] sm:$0xff]  }
 0x500   : > { %19926 = vmatprep.mubr.bf16.mxu1 %v9035_v51 }
 0x501   : > { %v9401_v27 = vsel %vm1887_vm4, %v9398_v39, %v9400_v0  ;;  %v9403_v51 = vsel %vm1887_vm4, %v9400_v0, %v9402_v17  ;;  %v9416_v39 = vrot.slane %v24756_v34, 1  ;;  %v9424_v34 = vrot.slane %v24779_v13, 1 }
 0x502   : > { %v9432_v13 = vrot.slane %v24799_v40, 1  ;;  %v9440_v40 = vrot.slane %v24822_v8, 1  ;;  %v22355_v8 = vld [vmem:[#allocation6 + $0x1e0] sm:$0xff]  }
 0x507   : > { %19927 = vmatmul.mubr.bf16.gmra.mrb[92].mxu1 %v9043_v37  ;;  %v22339_v37 = vld [vmem:[#allocation6 + $0x1c0] sm:$0xff]  }
 0x508   : > { %19946 = vmatprep.mubr.bf16.mxu1 %v9395_v22  ;;  %v9412_v22 = vrot.slane %v24746_v48, 1  ;;  %v9420_v48 = vrot.slane %v24769_v5, 1  ;;  %v9428_v5 = vrot.slane %v24789_v32, 1  ;;  %v9436_v32 = vrot.slane %v24809_v46, 1  ;;  %v22347_v46 = vld [vmem:[#allocation6 + $0x1d0] sm:$0xff]  }
 0x50a   : > { %v9413_v55 = vsel %vm1887_vm4, %v9410_v10, %v9412_v22  ;;  %v9415_v58 = vsel %vm1887_vm4, %v9412_v22, %v9414_v29  ;;  %v9423_v0 = vsel %vm1887_vm4, %v9420_v48, %v9422_v52  ;;  %v22351_v10 = vld [vmem:[#allocation6 + $0x1d8] sm:$0xff]   ;;  %v22345_v22 = vld [vmem:[#allocation2 + $0x48] sm:$0xff]  }
 0x50f   : > { %19947 = vmatmul.mubr.bf16.vlgmr.msra.gmra.mrb[48].mxu1 %v9397_v23  ;;  %v9417_v23 = vsel %vm1887_vm4, %v9414_v29, %v9416_v39  ;;  %v22346_v29 = vld [vmem:[#allocation2 + $0x50] sm:$0xff]  }
 0x510   : > { %19950 = vmatprep.mubr.bf16.mxu1 %v9399_v21  ;;  %19995 = vmatpush3.bf16.msra.mxu1 %v24760_v16  ;;  %v9404_v16 = vrot.slane %v24725_v4, 1  ;;  %v22336_v4 = vld [vmem:[#allocation6 + $0x1b8] sm:$0xff]  }
 0x511   : > { %19996 = vmatprep.subr.bf16.mxu1 %v22330_v61 }
 0x512   : > { %v9405_v50 = vsel %vm1887_vm4, %v9402_v17, %v9404_v16  ;;  %v9407_v3 = vsel %vm1887_vm4, %v9404_v16, %v9406_v7  ;;  %v9425_v17 = vsel %vm1887_vm4, %v9422_v52, %v9424_v34  ;;  %v22354_v52 = vld [vmem:[#allocation2 + $0x80] sm:$0xff]  }
 0x514   : > { %19997 = vmatpush3.bf16.msra.mxu1 %v22330_v61  ;;  %v9418_v61 = vrot.slane %v24764_v42, 1  ;;  %v9426_v42 = vrot.slane %v24785_v9, 1  ;;  %v9434_v9 = vrot.slane %v24805_v18, 1  ;;  %v9441_v18 = vsel %vm1887_vm4, %v9438_v25, %v9440_v40  ;;  %v22368_v40 = vld [vmem:[#allocation2 + $0xd0] sm:$0xff]  }
 0x515   : > { %19998 = vmatprep.subr.bf16.mxu1 %v22331_v59 }
 0x516   : > { %v9419_v21 = vsel %vm1887_vm4, %v9416_v39, %v9418_v61  ;;  %v9435_v16 = vsel %vm1887_vm4, %v9432_v13, %v9434_v9  ;;  %v9437_v7 = vsel %vm1887_vm4, %v9434_v9, %v9436_v32  ;;  %v24879_v39 = vld [vmem:[#allocation6 + $0x200] sm:$0xff]  }
 0x517   : > { %19951 = vmatmul.mubr.bf16.gmra.mrb[52].mxu1 %v9401_v27  ;;  %v9429_v27 = vsel %vm1887_vm4, %v9426_v42, %v9428_v5 }
 0x518   : > { %19954 = vmatprep.mubr.bf16.mxu1 %v9403_v51  ;;  %19999 = vmatpush3.bf16.msra.mxu1 %v22331_v59  ;;  %v9421_v59 = vsel %vm1887_vm4, %v9418_v61, %v9420_v48  ;;  %v9431_v51 = vsel %vm1887_vm4, %v9428_v5, %v9430_v15  ;;  %v22349_v61 = vld [vmem:[#allocation2 + $0x60] sm:$0xff]   ;;  %v22353_v48 = vld [vmem:[#allocation2 + $0x78] sm:$0xff]   ;;  %v22362_v5 = vld [vmem:[#allocation2 + $0xb0] sm:$0xff]  }
 0x519   : > { %20000 = vmatprep.subr.bf16.mxu1 %v22332_v62 }
 0x51c   : > { %20001 = vmatpush3.bf16.msra.mxu1 %v22332_v62  ;;  %v9427_v62 = vsel %vm1887_vm4, %v9424_v34, %v9426_v42  ;;  %v22358_v34 = vld [vmem:[#allocation2 + $0x98] sm:$0xff]   ;;  %v22360_v42 = vld [vmem:[#allocation2 + $0xa0] sm:$0xff]  }
 0x51d   : > { %20002 = vmatprep.subr.bf16.mxu1 %v22333_v11 }
 0x51f   : > { %19955 = vmatmul.mubr.bf16.gmra.mrb[56].mxu1 %v9405_v50  ;;  %v22337_v50 = vld [vmem:[#allocation2 + $0x18] sm:$0xff]  }
 0x520   : > { %19958 = vmatprep.mubr.bf16.mxu1 %v9407_v3  ;;  %20003 = vmatpush3.bf16.msra.mxu1 %v22333_v11  ;;  %v9433_v11 = vsel %vm1887_vm4, %v9430_v15, %v9432_v13  ;;  %v22338_v3 = vld [vmem:[#allocation2 + $0x20] sm:$0xff]   ;;  %v22364_v15 = vld [vmem:[#allocation2 + $0xb8] sm:$0xff]  }
 0x521   : > { %20004 = vmatprep.subr.bf16.mxu1 %v22334_v57  ;;  %v24885_v13 = vld [vmem:[#allocation2 + $0x20] sm:$0xff]  }
 0x524   : > { %20005 = vmatpush3.bf16.msra.mxu1 %v22334_v57  ;;  %v9439_v57 = vsel %vm1887_vm4, %v9436_v32, %v9438_v25  ;;  %v10480_v25 = vshll.u32 %v24885_v13, 16 }
 0x525   : > { %20006 = vmatprep.subr.bf16.mxu1 %v22335_v56 }
 0x527   : > { %19959 = vmatmul.mubr.bf16.gmra.mrb[60].mxu1 %v9409_v53  ;;  %v22344_v53 = vld [vmem:[#allocation2 + $0x40] sm:$0xff]  }
 0x528   : > { %19962 = vmatprep.mubr.bf16.mxu1 %v9411_v31  ;;  %20007 = vmatpush3.bf16.msra.mxu1 %v22335_v56  ;;  %v22343_v56 = vld [vmem:[#allocation6 + $0x1c8] sm:$0xff]  }
 0x529   : > { %20008 = vmatprep.subr.bf16.mxu1 %v22336_v4  ;;  %v22359_v31 = vld [vmem:[#allocation6 + $0x1e8] sm:$0xff]  }
 0x52c   : > { %20009 = vmatpush3.bf16.msra.mxu1 %v22336_v4  ;;  %v22342_v4 = vld [vmem:[#allocation2 + $0x38] sm:$0xff]  }
 0x52d   : > { %20058 = vmatprep.subr.bf16.mxu1 %v22339_v37 }
 0x52f   : > { %19963 = vmatmul.mubr.bf16.gmra.mrb[64].mxu1 %v9413_v55  ;;  %v22367_v55 = vld [vmem:[#allocation6 + $0x1f8] sm:$0xff]  }
 0x530   : > { %19966 = vmatprep.mubr.bf16.mxu1 %v9415_v58  ;;  %v22348_v58 = vld [vmem:[#allocation2 + $0x58] sm:$0xff]  }
 0x537   : > { %19967 = vmatmul.mubr.bf16.gmra.mrb[68].mxu1 %v9417_v23  ;;  %v22350_v23 = vld [vmem:[#allocation2 + $0x68] sm:$0xff]  }
 0x538   : > { %19970 = vmatprep.mubr.bf16.mxu1 %v9419_v21  ;;  %v22352_v21 = vld [vmem:[#allocation2 + $0x70] sm:$0xff]  }
 0x53f   : > { %19971 = vmatmul.mubr.bf16.gmra.mrb[72].mxu1 %v9421_v59  ;;  %v22356_v59 = vld [vmem:[#allocation2 + $0x88] sm:$0xff]  }
 0x540   : > { %19974 = vmatprep.mubr.bf16.mxu1 %v9423_v0  ;;  %v22357_v0 = vld [vmem:[#allocation2 + $0x90] sm:$0xff]  }
 0x547   : > { %19975 = vmatmul.mubr.bf16.gmra.mrb[76].mxu1 %v9425_v17  ;;  %v22361_v17 = vld [vmem:[#allocation2 + $0xa8] sm:$0xff]  }
 0x548   : > { %19978 = vmatprep.mubr.bf16.mxu1 %v9427_v62  ;;  %v24882_v62 = vld [vmem:[#allocation2 + $0x1c] sm:$0xf] }
 0x54f   : > { %19979 = vmatmul.mubr.bf16.gmra.mrb[80].mxu1 %v9429_v27  ;;  %v10300_v27 = vld [vmem:[#allocation2 + $0x18] sm:$0xf] }
 0x550   : > { %19982 = vmatprep.mubr.bf16.mxu1 %v9431_v51  ;;  %v17775_v51 = vcombine.low %v10300_v27, %v24882_v62  ;;  %v22384_v27 = vld [vmem:[#allocation6 + $0x218] sm:$0xff]  }
 0x552   : > { %v10475_v9 = vshll.u32 %v17775_v51, 16 }
 0x554   : > { %v10477_v32 = vrot.slane %v10475_v9, 1 }
 0x557   : > { %19983 = vmatmul.mubr.bf16.gmra.mrb[84].mxu1 %v9433_v11  ;;  %v22365_v11 = vld [vmem:[#allocation2 + $0xc0] sm:$0xff]  }
 0x558   : > { %19986 = vmatprep.mubr.bf16.mxu1 %v9435_v16  ;;  %v22366_v16 = vld [vmem:[#allocation2 + $0xc8] sm:$0xff]  }
 0x55f   : > { %19987 = vmatmul.mubr.bf16.gmra.mrb[88].mxu1 %v9437_v7  ;;  %v24888_v7 = vld [vmem:[#allocation2 + $0x28] sm:$0xff]  }
 0x560   : > { %19990 = vmatprep.mubr.bf16.mxu1 %v9439_v57  ;;  %v10473_v57 = vshrl.u32 %v17775_v51, 16 }
 0x567   : > { %19991 = vmatmul.mubr.bf16.gmra.mrb[92].mxu1 %v9441_v18  ;;  %v10478_v18 = vor.u32 %v10477_v32, %v10473_v57 }
 0x568   : > { %20010 = vmatprep.mubr.bf16.mxu1 %v22337_v50  ;;  %v10482_v50 = vrot.slane %v10480_v25, 1  ;;  %v22388_v25 = vld [vmem:[#allocation6 + $0x220] sm:$0xff]  }
 0x56f   : > { %20011 = vmatmul.mubr.bf16.vlgmr.msra.gmra.mrb[48].mxu1 %v22338_v3  ;;  %v10488_v3 = vshll.u32 %v24888_v7, 16 }
 0x570   : > { %20014 = vmatprep.mubr.bf16.mxu1 %v22340_v54  ;;  %20059 = vmatpush3.bf16.msra.mxu1 %v22339_v37  ;;  %v22363_v37 = vld [vmem:[#allocation6 + $0x1f0] sm:$0xff]   ;;  %v10483_v54 = vsel %vm1092_vm3, %v10478_v18, %v10482_v50 }
 0x571   : > { %20060 = vmatprep.subr.bf16.mxu1 %v22343_v56 }
 0x574   : > { %20061 = vmatpush3.bf16.msra.mxu1 %v22343_v56  ;;  %v24891_v56 = vld [vmem:[#allocation2 + $0x30] sm:$0xff]  }
 0x575   : > { %20062 = vmatprep.subr.bf16.mxu1 %v22347_v46 }
 0x577   : > { %20015 = vmatmul.mubr.bf16.gmra.mrb[52].mxu1 %v22341_v35  ;;  %v10496_v35 = vshll.u32 %v24891_v56, 16 }
 0x578   : > { %20018 = vmatprep.mubr.bf16.mxu1 %v22342_v4  ;;  %20063 = vmatpush3.bf16.msra.mxu1 %v22347_v46  ;;  %v10490_v46 = vrot.slane %v10488_v3, 1  ;;  %v10492_v4 = vshrl.u32 %v24888_v7, 16  ;;  %v24921_v3 = vld [vmem:[#allocation2 + $0x60] sm:$0xff]  }
 0x579   : > { %20064 = vmatprep.subr.bf16.mxu1 %v22351_v10 }
 0x57c   : > { %20065 = vmatpush3.bf16.msra.mxu1 %v22351_v10  ;;  %v24895_v10 = vld [vmem:[#allocation2 + $0x38] sm:$0xff]  }
 0x57d   : > { %20066 = vmatprep.subr.bf16.mxu1 %v22355_v8 }
 0x57f   : > { %20019 = vmatmul.mubr.bf16.gmra.mrb[56].mxu1 %v22344_v53  ;;  %v10494_v53 = vor.u32 %v10492_v4, %v10490_v46 }
 0x580   : > { %20022 = vmatprep.mubr.bf16.mxu1 %v22345_v22  ;;  %20067 = vmatpush3.bf16.msra.mxu1 %v22355_v8  ;;  %v10484_v8 = vshrl.u32 %v24885_v13, 16  ;;  %v10504_v22 = vshll.u32 %v24895_v10, 16 }
 0x581   : > { %20068 = vmatprep.subr.bf16.mxu1 %v22359_v31 }
 0x584   : > { %20069 = vmatpush3.bf16.msra.mxu1 %v22359_v31  ;;  %v10498_v31 = vrot.slane %v10496_v35, 1 }
 0x585   : > { %20070 = vmatprep.subr.bf16.mxu1 %v22363_v37 }
 0x587   : > { %20023 = vmatmul.mubr.bf16.gmra.mrb[60].mxu1 %v22346_v29  ;;  %v10486_v29 = vor.u32 %v10484_v8, %v10482_v50 }
 0x588   : > { %20026 = vmatprep.mubr.bf16.mxu1 %v22348_v58  ;;  %20071 = vmatpush3.bf16.msra.mxu1 %v22363_v37  ;;  %v24900_v37 = vld [vmem:[#allocation2 + $0x40] sm:$0xff]  }
 0x589   : > { %20072 = vmatprep.subr.bf16.mxu1 %v22367_v55  ;;  %v10491_v58 = vsel %vm1092_vm3, %v10486_v29, %v10490_v46  ;;  %v10516_v57 = vshrl.u32 %v24900_v37, 16  ;;  %v22392_v46 = vld [vmem:[#allocation6 + $0x228] sm:$0xff]   ;;  %v22396_v29 = vld [vmem:[#allocation6 + $0x230] sm:$0xff]  }
 0x58c   : > { %20073 = vmatpush3.bf16.msra.mxu1 %v22367_v55  ;;  %v22376_v55 = vld [vmem:[#allocation6 + $0x208] sm:$0xff]  }
 0x58d   : > { %20122 = vmatprep.subr.bf16.mxu1 %v24879_v39 }
 0x58f   : > { %20027 = vmatmul.mubr.bf16.gmra.mrb[64].mxu1 %v22349_v61  ;;  %v10499_v61 = vsel %vm1092_vm3, %v10494_v53, %v10498_v31  ;;  %v10544_v53 = vshll.u32 %v24921_v3, 16 }
 0x590   : > { %20030 = vmatprep.mubr.bf16.mxu1 %v22350_v23  ;;  %v10506_v23 = vrot.slane %v10504_v22, 1 }
 0x597   : > { %20031 = vmatmul.mubr.bf16.gmra.mrb[68].mxu1 %v22352_v21  ;;  %v10512_v21 = vshll.u32 %v24900_v37, 16 }
 0x598   : > { %20034 = vmatprep.mubr.bf16.mxu1 %v22353_v48  ;;  %v24905_v48 = vld [vmem:[#allocation2 + $0x48] sm:$0xff]  }
 0x599   : > { %v10524_v32 = vshrl.u32 %v24905_v48, 16 }
 0x59f   : > { %20035 = vmatmul.mubr.bf16.gmra.mrb[72].mxu1 %v22354_v52  ;;  %v10508_v52 = vshrl.u32 %v24895_v10, 16 }
 0x5a0   : > { %20038 = vmatprep.mubr.bf16.mxu1 %v22356_v59  ;;  %v22380_v59 = vld [vmem:[#allocation6 + $0x210] sm:$0xff]  }
 0x5a7   : > { %20039 = vmatmul.mubr.bf16.gmra.mrb[76].mxu1 %v22357_v0  ;;  %v10500_v0 = vshrl.u32 %v24891_v56, 16 }
 0x5a8   : > { %20042 = vmatprep.mubr.bf16.mxu1 %v22358_v34  ;;  %v10510_v34 = vor.u32 %v10508_v52, %v10506_v23 }
 0x5af   : > { %20043 = vmatmul.mubr.bf16.gmra.mrb[80].mxu1 %v22360_v42  ;;  %v10514_v42 = vrot.slane %v10512_v21, 1  ;;  %v24931_v21 = vld [vmem:[#allocation2 + $0x70] sm:$0xff]  }
 0x5b0   : > { %20046 = vmatprep.mubr.bf16.mxu1 %v22361_v17  ;;  %v10520_v17 = vshll.u32 %v24905_v48, 16 }
 0x5b2   : > { %v10522_v9 = vrot.slane %v10520_v17, 1  ;;  %v10560_v17 = vshll.u32 %v24931_v21, 16 }
 0x5b7   : > { %20047 = vmatmul.mubr.bf16.gmra.mrb[84].mxu1 %v22362_v5  ;;  %v24911_v5 = vld [vmem:[#allocation2 + $0x50] sm:$0xff]  }
 0x5b8   : > { %20050 = vmatprep.mubr.bf16.mxu1 %v22364_v15  ;;  %v10502_v15 = vor.u32 %v10500_v0, %v10498_v31  ;;  %v24926_v31 = vld [vmem:[#allocation2 + $0x68] sm:$0xff]  }
 0x5ba   : > { %v10507_v51 = vsel %vm1092_vm3, %v10502_v15, %v10506_v23  ;;  %v10552_v23 = vshll.u32 %v24926_v31, 16  ;;  %v24936_v15 = vld [vmem:[#allocation2 + $0x78] sm:$0xff]  }
 0x5bf   : > { %20051 = vmatmul.mubr.bf16.gmra.mrb[88].mxu1 %v22365_v11  ;;  %v10528_v11 = vshll.u32 %v24911_v5, 16 }
 0x5c0   : > { %20054 = vmatprep.mubr.bf16.mxu1 %v22366_v16  ;;  %v24916_v16 = vld [vmem:[#allocation2 + $0x58] sm:$0xff]  }
 0x5c1   : > { %v10530_v18 = vrot.slane %v10528_v11, 1  ;;  %v10536_v50 = vshll.u32 %v24916_v16, 16  ;;  %v10540_v22 = vshrl.u32 %v24916_v16, 16  ;;  %v10568_v11 = vshll.u32 %v24936_v15, 16 }
 0x5c3   : > { %v10538_v8 = vrot.slane %v10536_v50, 1 }
 0x5c7   : > { %20055 = vmatmul.mubr.bf16.gmra.mrb[92].mxu1 %v22368_v40  ;;  %v10526_v40 = vor.u32 %v10524_v32, %v10522_v9  ;;  %v24941_v32 = vld [vmem:[#allocation2 + $0x80] sm:$0xff]  }
 0x5c8   : > { %20074 = vmatprep.mubr.bf16.mxu1 %v10483_v54  ;;  %v10518_v54 = vor.u32 %v10516_v57, %v10514_v42  ;;  %v10576_v50 = vshll.u32 %v24941_v32, 16 }
 0x5c9   : > { %v10531_v4 = vsel %vm1092_vm3, %v10526_v40, %v10530_v18 }
 0x5ca   : > { %v10523_v35 = vsel %vm1092_vm3, %v10518_v54, %v10522_v9  ;;  %v10562_v9 = vrot.slane %v10560_v17, 1  ;;  %v24946_v54 = vld [vmem:[#allocation2 + $0x88] sm:$0xff]  }
 0x5cf   : > { %20075 = vmatmul.mubr.bf16.vlgmr.msra.gmra.mrb[48].mxu1 %v10491_v58  ;;  %v10542_v58 = vor.u32 %v10540_v22, %v10538_v8  ;;  %v24951_v22 = vld [vmem:[#allocation2 + $0x90] sm:$0xff]  }
 0x5d0   : > { %20078 = vmatprep.mubr.bf16.mxu1 %v10499_v61  ;;  %20123 = vmatpush3.bf16.msra.mxu1 %v24879_v39  ;;  %v10515_v39 = vsel %vm1092_vm3, %v10510_v34, %v10514_v42  ;;  %v10546_v61 = vrot.slane %v10544_v53, 1  ;;  %v10554_v42 = vrot.slane %v10552_v23, 1  ;;  %v10584_v53 = vshll.u32 %v24946_v54, 16 }
 0x5d1   : > { %20124 = vmatprep.subr.bf16.mxu1 %v22376_v55  ;;  %v10592_v23 = vshll.u32 %v24951_v22, 16 }
 0x5d2   : > { %v10547_v34 = vsel %vm1092_vm3, %v10542_v58, %v10546_v61 }
 0x5d4   : > { %20125 = vmatpush3.bf16.msra.mxu1 %v22376_v55  ;;  %v10532_v55 = vshrl.u32 %v24911_v5, 16 }
 0x5d5   : > { %20126 = vmatprep.subr.bf16.mxu1 %v22380_v59 }
 0x5d6   : > { %v10534_v52 = vor.u32 %v10532_v55, %v10530_v18  ;;  %v10570_v18 = vrot.slane %v10568_v11, 1 }
 0x5d7   : > { %20079 = vmatmul.mubr.bf16.gmra.mrb[52].mxu1 %v10507_v51  ;;  %v10548_v51 = vshrl.u32 %v24921_v3, 16 }
 0x5d8   : > { %20082 = vmatprep.mubr.bf16.mxu1 %v10515_v39  ;;  %20127 = vmatpush3.bf16.msra.mxu1 %v22380_v59  ;;  %v22400_v59 = vld [vmem:[#allocation6 + $0x238] sm:$0xff]   ;;  %v10539_v0 = vsel %vm1092_vm3, %v10534_v52, %v10538_v8  ;;  %v10578_v8 = vrot.slane %v10576_v50, 1 }
 0x5d9   : > { %20128 = vmatprep.subr.bf16.mxu1 %v22384_v27  ;;  %v24956_v52 = vld [vmem:[#allocation2 + $0x98] sm:$0xff]  }
 0x5da   : > { %v10600_v17 = vshll.u32 %v24956_v52, 16 }
 0x5dc   : > { %20129 = vmatpush3.bf16.msra.mxu1 %v22384_v27  ;;  %v10556_v27 = vshrl.u32 %v24926_v31, 16  ;;  %v10602_v11 = vrot.slane %v10600_v17, 1 }
 0x5dd   : > { %20130 = vmatprep.subr.bf16.mxu1 %v22388_v25 }
 0x5de   : > { %v10558_v39 = vor.u32 %v10556_v27, %v10554_v42  ;;  %v24961_v27 = vld [vmem:[#allocation2 + $0xa0] sm:$0xff]  }
 0x5df   : > { %20083 = vmatmul.mubr.bf16.gmra.mrb[56].mxu1 %v10523_v35  ;;  %v10564_v35 = vshrl.u32 %v24931_v21, 16 }
 0x5e0   : > { %20086 = vmatprep.mubr.bf16.mxu1 %v10531_v4  ;;  %20131 = vmatpush3.bf16.msra.mxu1 %v22388_v25  ;;  %v10550_v25 = vor.u32 %v10548_v51, %v10546_v61  ;;  %v10563_v40 = vsel %vm1092_vm3, %v10558_v39, %v10562_v9  ;;  %v10586_v61 = vrot.slane %v10584_v53, 1 }
 0x5e1   : > { %20132 = vmatprep.subr.bf16.mxu1 %v22392_v46 }
 0x5e2   : > { %v10555_v57 = vsel %vm1092_vm3, %v10550_v25, %v10554_v42  ;;  %v10594_v42 = vrot.slane %v10592_v23, 1  ;;  %v10608_v25 = vshll.u32 %v24961_v27, 16  ;;  %v22403_v23 = vld [vmem:[#allocation8 + $0x40] sm:$0xff]  }
 0x5e3   : > { %20186 = vmatprep.subr.bf16.mxu0 %v22403_v23 }
 0x5e4   : > { %20133 = vmatpush3.bf16.msra.mxu1 %v22392_v46  ;;  %v10572_v46 = vshrl.u32 %v24936_v15, 16  ;;  %20187 = vmatpush3.bf16.msra.mxu0 %v22403_v23  ;;  %v22407_v23 = vld [vmem:[#allocation8 + $0x60] sm:$0xff]  }
 0x5e5   : > { %20134 = vmatprep.subr.bf16.mxu1 %v22396_v29 }
 0x5e6   : > { %v10574_v4 = vor.u32 %v10572_v46, %v10570_v18  ;;  %v10610_v46 = vrot.slane %v10608_v25, 1 }
 0x5e7   : > { %20087 = vmatmul.mubr.bf16.gmra.mrb[60].mxu1 %v10539_v0  ;;  %v10580_v0 = vshrl.u32 %v24941_v32, 16 }
 0x5e8   : > { %20090 = vmatprep.mubr.bf16.mxu1 %v10547_v34  ;;  %20135 = vmatpush3.bf16.msra.mxu1 %v22396_v29  ;;  %v10566_v29 = vor.u32 %v10564_v35, %v10562_v9  ;;  %v10579_v58 = vsel %vm1092_vm3, %v10574_v4, %v10578_v8  ;;  %v24971_v4 = vld [vmem:[#allocation2 + $0xb0] sm:$0xff]  }
 0x5e9   : > { %20136 = vmatprep.subr.bf16.mxu1 %v22400_v59  ;;  %v10582_v51 = vor.u32 %v10580_v0, %v10578_v8 }
 0x5ea   : > { %v10571_v55 = vsel %vm1092_vm3, %v10566_v29, %v10570_v18  ;;  %v10596_v18 = vshrl.u32 %v24951_v22, 16 }
 0x5eb   : > { %v10587_v39 = vsel %vm1092_vm3, %v10582_v51, %v10586_v61 }
 0x5ec   : > { %20137 = vmatpush3.bf16.msra.mxu1 %v22400_v59  ;;  %v10588_v59 = vshrl.u32 %v24946_v54, 16  ;;  %v10598_v8 = vor.u32 %v10596_v18, %v10594_v42 }
 0x5ee   : > { %v10590_v34 = vor.u32 %v10588_v59, %v10586_v61  ;;  %v10603_v53 = vsel %vm1092_vm3, %v10598_v8, %v10602_v11  ;;  %v24976_v61 = vld [vmem:[#allocation2 + $0xb8] sm:$0xff]   ;;  %v22404_v59 = vld [vmem:[#allocation8 + $0x48] sm:$0xff]  }
 0x5ef   : > { %20091 = vmatmul.mubr.bf16.gmra.mrb[64].mxu1 %v10555_v57  ;;  %v24966_v57 = vld [vmem:[#allocation2 + $0xa8] sm:$0xff]   ;;  %v10632_v51 = vshll.u32 %v24976_v61, 16  ;;  %20188 = vmatprep.subr.bf16.mxu0 %v22404_v59  ;;  %v22406_v8 = vld [vmem:[#allocation8 + $0x58] sm:$0xff]  }
 0x5f0   : > { %20094 = vmatprep.mubr.bf16.mxu1 %v10563_v40  ;;  %v10595_v9 = vsel %vm1092_vm3, %v10590_v34, %v10594_v42  ;;  %v10604_v40 = vshrl.u32 %v24956_v52, 16  ;;  %v10616_v35 = vshll.u32 %v24966_v57, 16  ;;  %v10620_v0 = vshrl.u32 %v24966_v57, 16  ;;  %20189 = vmatpush3.bf16.msra.mxu0 %v22404_v59 }
 0x5f1   : > { %v10612_v34 = vshrl.u32 %v24961_v27, 16  ;;  %v10634_v18 = vrot.slane %v10632_v51, 1 }
 0x5f2   : > { %v10606_v50 = vor.u32 %v10604_v40, %v10602_v11 }
 0x5f3   : > { %v10614_v11 = vor.u32 %v10612_v34, %v10610_v46 }
 0x5f4   : > { %v10611_v29 = vsel %vm1092_vm3, %v10606_v50, %v10610_v46 }
 0x5f7   : > { %20095 = vmatmul.mubr.bf16.gmra.mrb[68].mxu1 %v10571_v55  ;;  %v10618_v55 = vrot.slane %v10616_v35, 1  ;;  %v24986_v35 = vld [vmem:[#allocation2 + $0xc8] sm:$0xff]  }
 0x5f8   : > { %20098 = vmatprep.mubr.bf16.mxu1 %v10579_v58  ;;  %v10624_v58 = vshll.u32 %v24971_v4, 16 }
 0x5f9   : > { %v10622_v42 = vor.u32 %v10620_v0, %v10618_v55  ;;  %v10619_v25 = vsel %vm1092_vm3, %v10614_v11, %v10618_v55  ;;  %v10648_v55 = vshll.u32 %v24986_v35, 16  ;;  %v24991_v0 = vld [vmem:[#allocation2 + $0xd0] sm:$0xff]  }
 0x5fa   : > { %v10626_v17 = vrot.slane %v10624_v58, 1  ;;  %v10656_v11 = vshll.u32 %v24991_v0, 16 }
 0x5fb   : > { %v10650_v51 = vrot.slane %v10648_v55, 1 }
 0x5fc   : > { %v10627_v40 = vsel %vm1092_vm3, %v10622_v42, %v10626_v17 }
 0x5ff   : > { %20099 = vmatmul.mubr.bf16.gmra.mrb[72].mxu1 %v10587_v39  ;;  %v24981_v39 = vld [vmem:[#allocation2 + $0xc0] sm:$0xff]  }
 0x600   : > { %20102 = vmatprep.mubr.bf16.mxu1 %v10595_v9  ;;  %v22405_v9 = vld [vmem:[#allocation8 + $0x50] sm:$0xff]   ;;  %v10640_v50 = vshll.u32 %v24981_v39, 16 }
 0x601   : > { %20190 = vmatprep.subr.bf16.mxu0 %v22405_v9 }
 0x602   : > { %20191 = vmatpush3.bf16.msra.mxu0 %v22405_v9  ;;  %v10642_v58 = vrot.slane %v10640_v50, 1  ;;  %v10644_v9 = vshrl.u32 %v24981_v39, 16 }
 0x603   : > { %20192 = vmatprep.subr.bf16.mxu0 %v22406_v8 }
 0x606   : > { %20193 = vmatpush3.bf16.msra.mxu0 %v22406_v8 }
 0x607   : > { %20103 = vmatmul.mubr.bf16.gmra.mrb[76].mxu1 %v10603_v53  ;;  %v10636_v53 = vshrl.u32 %v24976_v61, 16  ;;  %20194 = vmatprep.subr.bf16.mxu0 %v22407_v23 }
 0x608   : > { %20106 = vmatprep.mubr.bf16.mxu1 %v10611_v29  ;;  %v10628_v29 = vshrl.u32 %v24971_v4, 16 }
 0x609   : > { %v10638_v46 = vor.u32 %v10636_v53, %v10634_v18  ;;  %v10658_v53 = vrot.slane %v10656_v11, 1 }
 0x60a   : > { %v10630_v59 = vor.u32 %v10628_v29, %v10626_v17  ;;  %v10646_v17 = vor.u32 %v10644_v9, %v10642_v58  ;;  %20195 = vmatpush3.bf16.msra.mxu0 %v22407_v23  ;;  %v11022_v9 = vrot.slane %v24891_v56, 1  ;;  %v11030_v56 = vrot.slane %v24911_v5, 1 }
 0x60b   : > { %v10643_v42 = vsel %vm1092_vm3, %v10638_v46, %v10642_v58  ;;  %v11013_v46 = vld [vmem:[#allocation2 + $0x18] sm:$0xe]  ;;  %v11018_v58 = vrot.slane %v24885_v13, 1  ;;  %v11026_v13 = vrot.slane %v24900_v37, 1  ;;  %v11034_v37 = vrot.slane %v24921_v3, 1 }
 0x60c   : > { %v10635_v34 = vsel %vm1092_vm3, %v10630_v59, %v10634_v18  ;;  %v10660_v18 = vshrl.u32 %v24991_v0, 16  ;;  %v10651_v29 = vsel %vm1092_vm3, %v10646_v17, %v10650_v51  ;;  %v17808_v59 = vcombine.low %v11013_v46, %v24882_v62 }
 0x60d   : > { %v11024_v17 = vrot.slane %v24895_v10, 1  ;;  %v11032_v10 = vrot.slane %v24916_v16, 1  ;;  %v11038_v5 = vrot.slane %v24931_v21, 1  ;;  %v11040_v16 = vrot.slane %v24936_v15, 1 }
 0x60e   : > { %v11017_v20 = vrot.slane %v17808_v59, 1  ;;  %v11042_v3 = vrot.slane %v24941_v32, 1  ;;  %v11046_v21 = vrot.slane %v24951_v22, 1  ;;  %v11048_v15 = vrot.slane %v24956_v52, 1 }
 0x60f   : > { %20107 = vmatmul.mubr.bf16.gmra.mrb[80].mxu1 %v10619_v25  ;;  %v24997_v25 = vld [vmem:[#allocation2 + $0xd8] ss:$0 sps:$4 sm:$0x11]   ;;  %v11041_v59 = vsel %vm1887_vm4, %v11038_v5, %v11040_v16  ;;  %v11050_v32 = vrot.slane %v24961_v27, 1  ;;  %v11054_v22 = vrot.slane %v24971_v4, 1  ;;  %v11056_v52 = vrot.slane %v24976_v61, 1 }
 0x610   : > { %20110 = vmatprep.mubr.bf16.mxu1 %v10627_v40  ;;  %v10652_v40 = vshrl.u32 %v24986_v35, 16  ;;  %v10664_v8 = vshll.u32 %v24997_v25, 16  ;;  %v11019_v11 = vsel %vm1887_vm4, %v11017_v20, %v11018_v58  ;;  %v11027_v20 = vsel %vm1887_vm4, %v11024_v17, %v11026_v13 }
 0x611   : > { %v11058_v27 = vrot.slane %v24981_v39, 1  ;;  %v11062_v4 = vrot.slane %v24991_v0, 1  ;;  %v11064_v61 = vrot.slane %v24997_v25, 1  ;;  %v25054_v0 = vld [vmem:[#allocation8] sm:$0xff]  }
 0x612   : > { %v10654_v50 = vor.u32 %v10652_v40, %v10650_v51  ;;  %v11020_v51 = vrot.slane %v24888_v7, 1  ;;  %v11028_v7 = vrot.slane %v24905_v48, 1  ;;  %v11036_v48 = vrot.slane %v24926_v31, 1  ;;  %v25060_v25 = vld [vmem:[%s26251_s7] ss:$0 sm:$0xff] }
 0x613   : > { %v11044_v31 = vrot.slane %v24946_v54, 1  ;;  %v11052_v54 = vrot.slane %v24966_v57, 1  ;;  %v11060_v57 = vrot.slane %v24986_v35, 1  ;;  %v11065_v39 = vsel %vm1887_vm4, %v11062_v4, %v11064_v61  ;;  %v22410_v35 = vld [vmem:[#allocation8 + $0x78] sm:$0xff]  }
 0x614   : > { %v10659_v55 = vsel %vm1092_vm3, %v10654_v50, %v10658_v53  ;;  %v11021_v40 = vsel %vm1887_vm4, %v11018_v58, %v11020_v51  ;;  %v11023_v62 = vsel %vm1887_vm4, %v11020_v51, %v11022_v9  ;;  %v11025_v50 = vsel %vm1887_vm4, %v11022_v9, %v11024_v17 }
 0x615   : > { %v11037_v46 = vsel %vm1887_vm4, %v11034_v37, %v11036_v48  ;;  %v11047_v58 = vsel %vm1887_vm4, %v11044_v31, %v11046_v21  ;;  %v11053_v51 = vsel %vm1887_vm4, %v11050_v32, %v11052_v54  ;;  %v11055_v9 = vsel %vm1887_vm4, %v11052_v54, %v11054_v22  ;;  %v26396_v54 = vld [vmem:[#allocation19_spill] sm:$0xff] }
 0x616   : > { %v11061_v17 = vsel %vm1887_vm4, %v11058_v27, %v11060_v57 }
 0x617   : > { %20111 = vmatmul.mubr.bf16.gmra.mrb[84].mxu1 %v10635_v34  ;;  %v10662_v34 = vor.u32 %v10660_v18, %v10658_v53  ;;  %v11029_v53 = vsel %vm1887_vm4, %v11026_v13, %v11028_v7  ;;  %v11031_v18 = vsel %vm1887_vm4, %v11028_v7, %v11030_v56  ;;  %v11063_v13 = vsel %vm1887_vm4, %v11060_v57, %v11062_v4  ;;  %v12437_v7 = vld [vmem:[#allocation2] sm:$0xf] }
 0x618   : > { %20114 = vmatprep.mubr.bf16.mxu1 %v10643_v42  ;;  %v10666_v42 = vrot.slane %v10664_v8, 1  ;;  %v11033_v8 = vsel %vm1887_vm4, %v11030_v56, %v11032_v10  ;;  %v12438_v56 = vld [vmem:[#allocation2 + $0x4] sm:$0xf] }
 0x61a   : > { %v10667_v23 = vsel %vm1092_vm3, %v10662_v34, %v10666_v42  ;;  %v11043_v34 = vsel %vm1887_vm4, %v11040_v16, %v11042_v3  ;;  %v11045_v42 = vsel %vm1887_vm4, %v11042_v3, %v11044_v31 }
 0x61f   : > { %20115 = vmatmul.mubr.bf16.gmra.mrb[88].mxu1 %v10651_v29  ;;  %v11035_v29 = vsel %vm1887_vm4, %v11032_v10, %v11034_v37  ;;  %v25067_v10 = vld [vmem:[%s26252_s8] ss:$0 sm:$0xff] }
 0x620   : > { %20118 = vmatprep.mubr.bf16.mxu1 %v10659_v55  ;;  %v11039_v55 = vsel %vm1887_vm4, %v11036_v48, %v11038_v5 }
 0x627   : > { %20119 = vmatmul.mubr.bf16.gmra.mrb[92].mxu1 %v10667_v23  ;;  %v11049_v23 = vsel %vm1887_vm4, %v11046_v21, %v11048_v15 }
 0x628   : > { %20138 = vmatprep.mubr.bf16.mxu1 %v11019_v11  ;;  %v11051_v11 = vsel %vm1887_vm4, %v11048_v15, %v11050_v32 }
 0x62f   : > { %20139 = vmatmul.mubr.bf16.vlgmr.msra.gmra.mrb[48].mxu1 %v11021_v40  ;;  %v11057_v40 = vsel %vm1887_vm4, %v11054_v22, %v11056_v52 }
 0x630   : > { %20142 = vmatprep.mubr.bf16.mxu1 %v11023_v62  ;;  %v11059_v62 = vsel %vm1887_vm4, %v11056_v52, %v11058_v27  ;;  %v26397_v27 = vld [vmem:[#allocation24_spill] sm:$0xff] }
 0x637   : > { %20143 = vmatmul.mubr.bf16.gmra.mrb[52].mxu1 %v11025_v50  ;;  %v22408_v50 = vld [vmem:[#allocation8 + $0x68] sm:$0xff]  }
 0x638   : > { %20146 = vmatprep.mubr.bf16.mxu1 %v11027_v20  ;;  %20196 = vmatprep.subr.bf16.mxu0 %v22408_v50  ;;  %v22409_v20 = vld [vmem:[#allocation8 + $0x70] sm:$0xff]  }
 0x639   : > { %20197 = vmatpush3.bf16.msra.mxu0 %v22408_v50 }
 0x63a   : > { %20198 = vmatprep.subr.bf16.mxu0 %v22409_v20 }
 0x63d   : > { %20199 = vmatpush3.bf16.msra.mxu0 %v22409_v20 }
 0x63e   : > { %20200 = vmatprep.subr.bf16.mxu0 %v22410_v35 }
 0x63f   : > { %20147 = vmatmul.mubr.bf16.gmra.mrb[56].mxu1 %v11029_v53  ;;  %v25062_v53 = vcombine.low %v12437_v7, %v12438_v56 }
 0x640   : > { %20150 = vmatprep.mubr.bf16.mxu1 %v11031_v18 }
 0x641   : > { %20201 = vmatpush3.bf16.msra.mxu0 %v22410_v35  ;;  %26394 = vst [vmem:[#allocation54_spill] sm:$0xff] %v25062_v53  ;;  %v12612_v16 = vshll.u32 %v25062_v53, 16 }
 0x642   : > { %20250 = vmatprep.subr.bf16.mxu0 %v25054_v0 }
 0x647   : > { %20151 = vmatmul.mubr.bf16.gmra.mrb[60].mxu1 %v11033_v8 }
 0x648   : > { %20154 = vmatprep.mubr.bf16.mxu1 %v11035_v29 }
 0x64f   : > { %20155 = vmatmul.mubr.bf16.gmra.mrb[64].mxu1 %v11037_v46 }
 0x650   : > { %20158 = vmatprep.mubr.bf16.mxu1 %v11039_v55 }
 0x657   : > { %20159 = vmatmul.mubr.bf16.gmra.mrb[68].mxu1 %v11041_v59 }
 0x658   : > { %20162 = vmatprep.mubr.bf16.mxu1 %v11043_v34 }
 0x65f   : > { %20163 = vmatmul.mubr.bf16.gmra.mrb[72].mxu1 %v11045_v42 }
 0x660   : > { %20166 = vmatprep.mubr.bf16.mxu1 %v11047_v58  ;;  %v26395_v58 = vld [vmem:[#allocation22_spill] sm:$0xff] }
 0x667   : > { %20167 = vmatmul.mubr.bf16.gmra.mrb[76].mxu1 %v11049_v23  ;;  %v12610_v23 = vshrl.u32 %v25062_v53, 16  ;;  %v22425_v53 = vld [vmem:[#allocation8 + $0x18] sm:$0xff]  }
 0x668   : > { %20170 = vmatprep.mubr.bf16.mxu1 %v11051_v11  ;;  %v12614_v11 = vrot.slane %v12612_v16, 1 }
 0x66a   : > { %v25086_v56 = vor.u32 %v12614_v11, %v12610_v23 }
 0x66f   : > { %20171 = vmatmul.mubr.bf16.gmra.mrb[80].mxu1 %v11053_v51 }
 0x670   : > { %20174 = vmatprep.mubr.bf16.mxu1 %v11055_v9 }
 0x677   : > { %20175 = vmatmul.mubr.bf16.gmra.mrb[84].mxu1 %v11057_v40 }
 0x678   : > { %20178 = vmatprep.mubr.bf16.mxu1 %v11059_v62 }
 0x67f   : > { %20179 = vmatmul.mubr.bf16.gmra.mrb[88].mxu1 %v11061_v17  ;;  %v26398_v17 = vld [vmem:[#allocation21_spill] sm:$0xff] }
 0x680   : > { %20182 = vmatprep.mubr.bf16.mxu1 %v11063_v13 }
 0x687   : > { %20183 = vmatmul.mubr.bf16.gmra.mrb[92].mxu1 %v11065_v39 }
 0x702   : > { %v20140_v18 = vpop.f32.mrb[48].mxu1 }
 0x703   : > { %v11420_v37 = vmul.f32 %v20140_v18, %v25060_v25  ;;  %v11172_v8 = vpop.f32.mrb[49].mxu1 }
 0x704   : > { %v11418_v29 = vmul.f32 %v25060_v25, %v11172_v8  ;;  %v20141_v48 = vpop.f32.mrb[50].mxu1 }
 0x705   : > { %v11475_v5 = vadd.f32 %v25067_v10, %v11420_v37  ;;  %v11421_v46 = vmul.f32 %v20141_v48, %v25060_v25  ;;  %v11175_v55 = vpop.f32.mrb[51].mxu1 }
 0x706   : > { %v11473_v3 = vadd.f32 %v25067_v10, %v11418_v29  ;;  %v11419_v59 = vmul.f32 %v25060_v25, %v11175_v55 }
 0x707   : > { %v11523_v34 = vmax.f32 %v11475_v5, 0.0  ;;  %v11476_v31 = vadd.f32 %v25067_v10, %v11421_v46 }
 0x708   : > { %v11521_v21 = vmax.f32 %v11473_v3, 0.0  ;;  %v11474_v42 = vadd.f32 %v25067_v10, %v11419_v59 }
 0x709   : > { %v11571_v15 = vmul.f32 %v11523_v34, %v26395_v58  ;;  %v11524_v32 = vmax.f32 %v11476_v31, 0.0  ;;  %v26399_v58 = vld [vmem:[#allocation25_spill] sm:$0xff] }
 0x70a   : > { %v11569_v22 = vmul.f32 %v11521_v21, %v26396_v54  ;;  %v11522_v51 = vmax.f32 %v11474_v42, 0.0  ;;  %v20144_v9 = vpop.f32.mrb[52].mxu1  ;;  %v26400_v54 = vld [vmem:[#allocation23_spill] sm:$0xff] }
 0x70b   : > { %v18123_v52 = vpack.c.bf16 %v11571_v15, %v11571_v15  ;;  %v11572_v40 = vmul.f32 %v11524_v32, %v26397_v27  ;;  %v11424_v62 = vmul.f32 %v20144_v9, %v25060_v25  ;;  %v11188_v57 = vpop.f32.mrb[53].mxu1 }
 0x70c   : > { %v18121_v4 = vpack.c.bf16 %v11569_v22, %v11569_v22  ;;  %v11570_v13 = vmul.f32 %v11522_v51, %v26398_v17  ;;  %v11422_v61 = vmul.f32 %v25060_v25, %v11188_v57  ;;  %v20145_v39 = vpop.f32.mrb[54].mxu1  ;;  %v22669_v57 = vld [vmem:[#allocation2 + $0xc] sm:$0xf] }
 0x70d   : > { %v11779_v50 = vshrl.u32 %v18123_v52, 16  ;;  %v18124_v20 = vpack.c.bf16 %v11572_v40, %v11572_v40  ;;  %v11479_v35 = vadd.f32 %v25067_v10, %v11424_v62  ;;  %v11191_v7 = vpop.f32.mrb[55].mxu1  ;;  %v11782_v18 = vshll.u32 %v18123_v52, 16 }
 0x70e   : > { %v11762_v37 = vshrl.u32 %v18121_v4, 16  ;;  %v18122_v8 = vpack.c.bf16 %v11570_v13, %v11570_v13  ;;  %v11477_v29 = vadd.f32 %v25067_v10, %v11422_v61  ;;  %v11765_v5 = vshll.u32 %v18121_v4, 16 }
 0x70f   : > { %v11781_v48 = vrot.slane %v11779_v50, 7  ;;  %v11788_v46 = vshrl.u32 %v18124_v20, 16  ;;  %v11527_v55 = vmax.f32 %v11479_v35, 0.0  ;;  %v11791_v3 = vshll.u32 %v18124_v20, 16 }
 0x710   : > { %v11764_v16 = vrot.slane %v11762_v37, 7  ;;  %v11770_v59 = vshrl.u32 %v18122_v8, 16  ;;  %v11525_v34 = vmax.f32 %v11477_v29, 0.0  ;;  %v11773_v42 = vshll.u32 %v18122_v8, 16 }
 0x711   : > { %v11784_v31 = vor.u32 %v11782_v18, %v11781_v48  ;;  %v11790_v21 = vrot.slane %v11788_v46, 7  ;;  %v11575_v15 = vmul.f32 %v11527_v55, %v26399_v58  ;;  %v11786_v32 = vrot.slane %v11781_v48, 4 }
 0x712   : > { %v11767_v23 = vor.u32 %v11765_v5, %v11764_v16  ;;  %v11772_v11 = vrot.slane %v11770_v59, 7  ;;  %v11573_v22 = vmul.f32 %v11525_v34, %v26400_v54  ;;  %v20148_v51 = vpop.f32.mrb[56].mxu1  ;;  %v11768_v9 = vrot.slane %v11764_v16, 4 }
 0x713   : > { %v11793_v52 = vor.u32 %v11791_v3, %v11790_v21  ;;  %v18127_v27 = vpack.c.bf16 %v11575_v15, %v11575_v15  ;;  %v11425_v40 = vmul.f32 %v20145_v39, %v25060_v25  ;;  %v11204_v62 = vpop.f32.mrb[57].mxu1  ;;  %v11423_v3 = vmul.f32 %v25060_v25, %v11191_v7 }
 0x714   : > { %v12241_v17 = vsel %vm23900_vm9, %v11767_v23, %v22669_v57  ;;  %v11775_v13 = vor.u32 %v11773_v42, %v11772_v11  ;;  %v11777_v61 = vrot.slane %v11772_v11, 4  ;;  %v18125_v50 = vpack.c.bf16 %v11573_v22, %v11573_v22  ;;  %v20149_v20 = vpop.f32.mrb[58].mxu1  ;;  %v26402_v23 = vld [vmem:[#allocation29_spill] sm:$0xff] }
 0x715   : > { %12242 = vst [vmem:[#allocation2 + $0xc] sm:$0xf] %v12241_v17  ;;  %v11794_v35 = vsel %vm23907_vm10, %v11786_v32, %v11793_v52  ;;  %v11815_v18 = vshrl.u32 %v18127_v27, 16  ;;  %v11818_v37 = vshll.u32 %v18127_v27, 16  ;;  %v11480_v8 = vadd.f32 %v25067_v10, %v11425_v40  ;;  %v11207_v29 = vpop.f32.mrb[59].mxu1 }
 0x716   : > { %12245 = vst [vmem:[#allocation2 + $0x18] sm:$0xf] %v11794_v35  ;;  %v11776_v39 = vsel %vm23907_vm10, %v11768_v9, %v11775_v13  ;;  %v11785_v48 = vsel %vm23907_vm10, %v11777_v61, %v11784_v31  ;;  %v11797_v5 = vshrl.u32 %v18125_v50, 16  ;;  %v11800_v46 = vshll.u32 %v18125_v50, 16 }
 0x717   : > { %12243 = vst [vmem:[#allocation2 + $0x10] sm:$0xf] %v11776_v39  ;;  %12244 = vst [vmem:[#allocation2 + $0x14] sm:$0xf] %v11785_v48  ;;  %v11817_v55 = vrot.slane %v11815_v18, 7  ;;  %v11528_v16 = vmax.f32 %v11480_v8, 0.0  ;;  %v11428_v59 = vmul.f32 %v20148_v51, %v25060_v25  ;;  %v11426_v42 = vmul.f32 %v25060_v25, %v11204_v62 }
 0x718   : > { %v25103_v34 = vrot.slane %v11797_v5, 7  ;;  %v11429_v58 = vmul.f32 %v20149_v20, %v25060_v25  ;;  %v11427_v15 = vmul.f32 %v25060_v25, %v11207_v29  ;;  %v11795_v32 = vrot.slane %v11790_v21, 4  ;;  %v26403_v18 = vld [vmem:[#allocation26_spill] sm:$0xff]  ;;  %v26405_v5 = vld [vmem:[#allocation28_spill] sm:$0xff] }
 0x719   : > { %v25108_v31 = vor.u32 %v11818_v37, %v11817_v55  ;;  %v11576_v11 = vmul.f32 %v11528_v16, %v26402_v23  ;;  %v11478_v54 = vadd.f32 %v25067_v10, %v11423_v3  ;;  %v11822_v22 = vrot.slane %v11817_v55, 4  ;;  %v26404_v39 = vld [vmem:[#allocation30_spill] sm:$0xff] }
 0x71a   : > { %v11802_v7 = vor.u32 %v11800_v46, %v25103_v34  ;;  %v11483_v51 = vadd.f32 %v25067_v10, %v11428_v59  ;;  %v11481_v9 = vadd.f32 %v25067_v10, %v11426_v42  ;;  %v20152_v52 = vpop.f32.mrb[60].mxu1  ;;  %v11484_v62 = vadd.f32 %v25067_v10, %v11429_v58  ;;  %v26406_v42 = vld [vmem:[#allocation33_spill] sm:$0xff] }
 0x71b   : > { %v18128_v27 = vpack.c.bf16 %v11576_v11, %v11576_v11  ;;  %v11526_v40 = vmax.f32 %v11478_v54, 0.0  ;;  %v11482_v21 = vadd.f32 %v25067_v10, %v11427_v15  ;;  %v11220_v57 = vpop.f32.mrb[61].mxu1  ;;  %v11432_v61 = vmul.f32 %v20152_v52, %v25060_v25  ;;  %v26407_v11 = vld [vmem:[#allocation31_spill] sm:$0xff] }
 0x71c   : > { %v11803_v4 = vsel %vm23907_vm10, %v11795_v32, %v11802_v7  ;;  %v11531_v17 = vmax.f32 %v11483_v51, 0.0  ;;  %v11529_v13 = vmax.f32 %v11481_v9, 0.0  ;;  %v20153_v50 = vpop.f32.mrb[62].mxu1  ;;  %v11532_v8 = vmax.f32 %v11484_v62, 0.0 }
 0x71d   : > { %12246 = vst [vmem:[#allocation2 + $0x1c] sm:$0xf] %v11803_v4  ;;  %v11824_v20 = vshrl.u32 %v18128_v27, 16  ;;  %v11827_v35 = vshll.u32 %v18128_v27, 16  ;;  %v11574_v37 = vmul.f32 %v11526_v40, %v26403_v18  ;;  %v11223_v29 = vpop.f32.mrb[63].mxu1  ;;  %v11530_v55 = vmax.f32 %v11482_v21, 0.0 }
 0x71e   : > { %v11579_v48 = vmul.f32 %v11531_v17, %v26404_v39  ;;  %v11577_v46 = vmul.f32 %v11529_v13, %v26405_v5  ;;  %v11487_v16 = vadd.f32 %v25067_v10, %v11432_v61  ;;  %v11580_v58 = vmul.f32 %v11532_v8, %v26406_v42  ;;  %v26408_v39 = vld [vmem:[#allocation34_spill] sm:$0xff] }
 0x71f   : > { %v11826_v3 = vrot.slane %v11824_v20, 7  ;;  %v18126_v59 = vpack.c.bf16 %v11574_v37, %v11574_v37  ;;  %v11430_v15 = vmul.f32 %v25060_v25, %v11220_v57  ;;  %v11578_v54 = vmul.f32 %v11530_v55, %v26407_v11 }
 0x720   : > { %v18131_v32 = vpack.c.bf16 %v11579_v48, %v11579_v48  ;;  %v18129_v23 = vpack.c.bf16 %v11577_v46, %v11577_v46  ;;  %v11535_v7 = vmax.f32 %v11487_v16, 0.0  ;;  %v11804_v51 = vrot.slane %v25103_v34, 4 }
 0x721   : > { %v11829_v9 = vor.u32 %v11827_v35, %v11826_v3  ;;  %v11806_v52 = vshrl.u32 %v18126_v59, 16  ;;  %v11809_v27 = vshll.u32 %v18126_v59, 16  ;;  %v18132_v57 = vpack.c.bf16 %v11580_v58, %v11580_v58 }
 0x722   : > { %v11851_v40 = vshrl.u32 %v18131_v32, 16  ;;  %v11854_v62 = vshll.u32 %v18131_v32, 16  ;;  %v11833_v21 = vshrl.u32 %v18129_v23, 16  ;;  %v11836_v4 = vshll.u32 %v18129_v23, 16  ;;  %v20156_v17 = vpop.f32.mrb[64].mxu1 }
 0x723   : > { %v11830_v13 = vsel %vm23907_vm10, %v11822_v22, %v11829_v9  ;;  %v11808_v61 = vrot.slane %v11806_v52, 7  ;;  %v18130_v20 = vpack.c.bf16 %v11578_v54, %v11578_v54  ;;  %v11236_v18 = vpop.f32.mrb[65].mxu1  ;;  %v11583_v34 = vmul.f32 %v11535_v7, %v26408_v39 }
 0x724   : > { %12249 = vst [vmem:[#allocation2 + $0x28] sm:$0xf] %v11830_v13  ;;  %v11853_v37 = vrot.slane %v11851_v40, 7  ;;  %v11835_v8 = vrot.slane %v11833_v21, 7  ;;  %v11485_v35 = vadd.f32 %v25067_v10, %v11430_v15  ;;  %v20157_v48 = vpop.f32.mrb[66].mxu1  ;;  %v11831_v5 = vrot.slane %v11826_v3, 4 }
 0x725   : > { %v11811_v46 = vor.u32 %v11809_v27, %v11808_v61  ;;  %v11813_v55 = vrot.slane %v11808_v61, 4  ;;  %v11860_v16 = vshrl.u32 %v18132_v57, 16  ;;  %v25132_v59 = vpop.f32.mrb[67].mxu1  ;;  %v11863_v58 = vshll.u32 %v18132_v57, 16  ;;  %v25147_v57 = vld [vmem:[#allocation2 + $0x8] sm:$0xff]  }
 0x726   : > { %v11856_v42 = vor.u32 %v11854_v62, %v11853_v37  ;;  %v11858_v22 = vrot.slane %v11853_v37, 4  ;;  %v11838_v32 = vor.u32 %v11836_v4, %v11835_v8  ;;  %v11842_v15 = vshrl.u32 %v18130_v20, 16  ;;  %v26409_v4 = vld [vmem:[#allocation32_spill] sm:$0xff] }
 0x727   : > { %v11812_v23 = vsel %vm23907_vm10, %v11804_v51, %v11811_v46  ;;  %v11821_v11 = vsel %vm23907_vm10, %v11813_v55, %v25108_v31  ;;  %v25139_v54 = vrot.slane %v11860_v16, 7  ;;  %v11840_v7 = vrot.slane %v11835_v8, 4 }
 0x728   : > { %12247 = vst [vmem:[#allocation2 + $0x20] sm:$0xf] %v11812_v23  ;;  %12248 = vst [vmem:[#allocation2 + $0x24] sm:$0xf] %v11821_v11  ;;  %v11839_v3 = vsel %vm23907_vm10, %v11831_v5, %v11838_v32  ;;  %v18135_v9 = vpack.c.bf16 %v11583_v34, %v11583_v34  ;;  %v11533_v52 = vmax.f32 %v11485_v35, 0.0  ;;  %v11844_v40 = vrot.slane %v11842_v15, 7 }
 0x729   : > { %12250 = vst [vmem:[#allocation2 + $0x2c] sm:$0xf] %v11839_v3  ;;  %v11865_v27 = vor.u32 %v11863_v58, %v25139_v54  ;;  %v11845_v51 = vshll.u32 %v18130_v20, 16  ;;  %v11433_v62 = vmul.f32 %v20153_v50, %v25060_v25  ;;  %v11431_v61 = vmul.f32 %v25060_v25, %v11223_v29 }
 0x72a   : > { %v11887_v21 = vshrl.u32 %v18135_v9, 16  ;;  %v11890_v31 = vshll.u32 %v18135_v9, 16  ;;  %v11581_v13 = vmul.f32 %v11533_v52, %v26409_v4  ;;  %v25149_v37 = vpop.f32.mrb[68].mxu1  ;;  %v11849_v34 = vrot.slane %v11844_v40, 4  ;;  %v26410_v9 = vld [vmem:[#allocation36_spill] sm:$0xff] }
 0x72b   : > { %v11866_v8 = vsel %vm23907_vm10, %v11858_v22, %v11865_v27  ;;  %v11847_v39 = vor.u32 %v11845_v51, %v11844_v40  ;;  %v11488_v35 = vadd.f32 %v25067_v10, %v11433_v62  ;;  %v25154_v20 = vpop.f32.mrb[69].mxu1  ;;  %v11486_v46 = vadd.f32 %v25067_v10, %v11431_v61 }
 0x72c   : > { %12253 = vst [vmem:[#allocation2 + $0x38] sm:$0xf] %v11866_v8  ;;  %v25156_v50 = vrot.slane %v11887_v21, 7  ;;  %v18133_v5 = vpack.c.bf16 %v11581_v13, %v11581_v13  ;;  %v11436_v29 = vmul.f32 %v20156_v17, %v25060_v25  ;;  %v25160_v55 = vpop.f32.mrb[70].mxu1  ;;  %v11857_v22 = vsel %vm23907_vm10, %v11849_v34, %v11856_v42  ;;  %v26411_v21 = vld [vmem:[#allocation35_spill] sm:$0xff] }
 0x72d   : > { %v11848_v16 = vsel %vm23907_vm10, %v11840_v7, %v11847_v39  ;;  %v11536_v32 = vmax.f32 %v11488_v35, 0.0  ;;  %v11434_v58 = vmul.f32 %v25060_v25, %v11236_v18  ;;  %v25167_v23 = vpop.f32.mrb[71].mxu1  ;;  %v11867_v11 = vrot.slane %v25139_v54, 4  ;;  %12252 = vst [vmem:[#allocation2 + $0x34] sm:$0xf] %v11857_v22 }
 0x72e   : > { %12251 = vst [vmem:[#allocation2 + $0x30] sm:$0xf] %v11848_v16  ;;  %v25171_v15 = vor.u32 %v11890_v31, %v25156_v50  ;;  %v11894_v17 = vrot.slane %v25156_v50, 4  ;;  %v11869_v3 = vshrl.u32 %v18133_v5, 16  ;;  %v11534_v52 = vmax.f32 %v11486_v46, 0.0 }
 0x72f   : > { %v11584_v7 = vmul.f32 %v11536_v32, %v26410_v9  ;;  %v11491_v42 = vadd.f32 %v25067_v10, %v11436_v29  ;;  %v11489_v27 = vadd.f32 %v25067_v10, %v11434_v58  ;;  %v11872_v40 = vshll.u32 %v18133_v5, 16  ;;  %v26412_v29 = vld [vmem:[#allocation39_spill] sm:$0xff]  ;;  %v26413_v32 = vld [vmem:[#allocation37_spill] sm:$0xff] }
 0x730   : > { %v11871_v18 = vrot.slane %v11869_v3, 7  ;;  %v11437_v51 = vmul.f32 %v20157_v48, %v25060_v25  ;;  %v12617_v54 = vshll.u32 %v25147_v57, 16  ;;  %v11582_v31 = vmul.f32 %v11534_v52, %v26411_v21 }
 0x731   : > { %v18136_v62 = vpack.c.bf16 %v11584_v7, %v11584_v7  ;;  %v11539_v4 = vmax.f32 %v11491_v42, 0.0  ;;  %v11537_v13 = vmax.f32 %v11489_v27, 0.0  ;;  %v12621_v34 = vshrl.u32 %v25147_v57, 16 }
 0x732   : > { %v11874_v61 = vor.u32 %v11872_v40, %v11871_v18  ;;  %v11492_v8 = vadd.f32 %v25067_v10, %v11437_v51  ;;  %v12619_v39 = vrot.slane %v12617_v54, 1  ;;  %v25182_v35 = vpop.f32.mrb[72].mxu1  ;;  %v11876_v50 = vrot.slane %v11871_v18, 4  ;;  %v26414_v54 = vld [vmem:[#allocation40_spill] sm:$0xff] }
 0x733   : > { %v11896_v46 = vshrl.u32 %v18136_v62, 16  ;;  %v18134_v5 = vpack.c.bf16 %v11582_v31, %v11582_v31  ;;  %v11587_v48 = vmul.f32 %v11539_v4, %v26412_v29  ;;  %v25185_v16 = vpop.f32.mrb[73].mxu1  ;;  %v11585_v58 = vmul.f32 %v11537_v13, %v26413_v32  ;;  %v22413_v32 = vld [vmem:[#allocation2 + $0x10] sm:$0xff]  }
 0x734   : > { %v11875_v22 = vsel %vm23907_vm10, %v11867_v11, %v11874_v61  ;;  %v11540_v3 = vmax.f32 %v11492_v8, 0.0  ;;  %v12620_v9 = vsel %vm1092_vm3, %v25086_v56, %v12619_v39  ;;  %v25192_v7 = vpop.f32.mrb[74].mxu1  ;;  %v11899_v52 = vshll.u32 %v18136_v62, 16 }
 0x735   : > { %12254 = vst [vmem:[#allocation2 + $0x3c] sm:$0xf] %v11875_v22  ;;  %v11898_v57 = vrot.slane %v11896_v46, 7  ;;  %v11878_v42 = vshrl.u32 %v18134_v5, 16  ;;  %v18139_v27 = vpack.c.bf16 %v11587_v48, %v11587_v48  ;;  %20202 = vmatprep.mubr.bf16.mxu0 %v12620_v9  ;;  %v25194_v18 = vpop.f32.mrb[75].mxu1  ;;  %v11881_v40 = vshll.u32 %v18134_v5, 16 }
 0x736   : > { %v18137_v51 = vpack.c.bf16 %v11585_v58, %v11585_v58  ;;  %v11588_v11 = vmul.f32 %v11540_v3, %v26414_v54  ;;  %v11435_v21 = vmul.f32 %v25060_v25, %v25132_v59  ;;  %v12623_v13 = vor.u32 %v12621_v34, %v12619_v39 }
 0x737   : > { %v11901_v31 = vor.u32 %v11899_v52, %v11898_v57  ;;  %v11880_v4 = vrot.slane %v11878_v42, 7  ;;  %v11923_v56 = vshrl.u32 %v18139_v27, 16  ;;  %v11903_v61 = vrot.slane %v11898_v57, 4  ;;  %v25204_v52 = vld [vmem:[#allocation2 + $0x18] sm:$0xff]  }
 0x738   : > { %v11926_v8 = vshll.u32 %v18139_v27, 16  ;;  %v11905_v46 = vshrl.u32 %v18137_v51, 16  ;;  %v18140_v62 = vpack.c.bf16 %v11588_v11, %v11588_v11  ;;  %v11908_v3 = vshll.u32 %v18137_v51, 16 }
 0x739   : > { %v11902_v29 = vsel %vm23907_vm10, %v11894_v17, %v11901_v31  ;;  %v11883_v48 = vor.u32 %v11881_v40, %v11880_v4  ;;  %v11885_v22 = vrot.slane %v11880_v4, 4  ;;  %v11925_v5 = vrot.slane %v11923_v56, 7 }
 0x73a   : > { %12257 = vst [vmem:[#allocation2 + $0x48] sm:$0xf] %v11902_v29  ;;  %v25201_v58 = vrot.slane %v11905_v46, 7  ;;  %v11932_v59 = vshrl.u32 %v18140_v62, 16  ;;  %v11490_v9 = vadd.f32 %v25067_v10, %v11435_v21  ;;  %v25206_v39 = vpop.f32.mrb[76].mxu1  ;;  %v11935_v42 = vshll.u32 %v18140_v62, 16 }
 0x73b   : > { %v11884_v34 = vsel %vm23907_vm10, %v11876_v50, %v11883_v48  ;;  %v11893_v17 = vsel %vm23907_vm10, %v11885_v22, %v25171_v15  ;;  %v25213_v57 = vor.u32 %v11926_v8, %v11925_v5  ;;  %v25215_v27 = vpop.f32.mrb[77].mxu1  ;;  %v11930_v40 = vrot.slane %v11925_v5, 4  ;;  %v26415_v29 = vld [vmem:[#allocation38_spill] sm:$0xff] }
 0x73c   : > { %12255 = vst [vmem:[#allocation2 + $0x40] sm:$0xf] %v11884_v34  ;;  %12256 = vst [vmem:[#allocation2 + $0x44] sm:$0xf] %v11893_v17  ;;  %v11910_v51 = vor.u32 %v11908_v3, %v25201_v58  ;;  %v25218_v54 = vrot.slane %v11932_v59, 7  ;;  %v11538_v11 = vmax.f32 %v11490_v9, 0.0  ;;  %v11440_v31 = vmul.f32 %v25149_v37, %v25060_v25 }
 0x73d   : > { %v25220_v21 = vpop.f32.mrb[78].mxu1  ;;  %v12625_v50 = vshll.u32 %v22413_v32, 16  ;;  %v11438_v15 = vmul.f32 %v25060_v25, %v25154_v20  ;;  %v11441_v4 = vmul.f32 %v25160_v55, %v25060_v25  ;;  %v11912_v46 = vrot.slane %v25201_v58, 4  ;;  %v25241_v58 = vld [vmem:[#allocation2 + $0x20] sm:$0xff]  }
 0x73e   : > { %v25228_v56 = vpop.f32.mrb[79].mxu1  ;;  %v11911_v8 = vsel %vm23907_vm10, %v11903_v61, %v11910_v51  ;;  %v11937_v62 = vor.u32 %v11935_v42, %v25218_v54  ;;  %v11586_v48 = vmul.f32 %v11538_v11, %v26415_v29  ;;  %v11495_v37 = vadd.f32 %v25067_v10, %v11440_v31  ;;  %v22417_v9 = vld [vmem:[#allocation8 + $0x8] sm:$0xff]  }
 0x73f   : > { %12258 = vst [vmem:[#allocation2 + $0x4c] sm:$0xf] %v11911_v8  ;;  %v12627_v22 = vrot.slane %v12625_v50, 1  ;;  %v11493_v20 = vadd.f32 %v25067_v10, %v11438_v15  ;;  %v11496_v5 = vadd.f32 %v25067_v10, %v11441_v4  ;;  %v12629_v59 = vshrl.u32 %v22413_v32, 16  ;;  %v26416_v32 = vld [vmem:[#allocation43_spill] sm:$0xff]  ;;  %v26417_v8 = vld [vmem:[#allocation41_spill] sm:$0xff] }
 0x740   : > { %v11938_v55 = vsel %vm23907_vm10, %v11930_v40, %v11937_v62  ;;  %v18138_v3 = vpack.c.bf16 %v11586_v48, %v11586_v48  ;;  %v12633_v61 = vshll.u32 %v25204_v52, 16  ;;  %v11543_v17 = vmax.f32 %v11495_v37, 0.0  ;;  %v26418_v29 = vld [vmem:[#allocation44_spill] sm:$0xff]  ;;  %v22422_v37 = vld [vmem:[#allocation8 + $0x10] sm:$0xff]  }
 0x741   : > { %12261 = vst [vmem:[#allocation2 + $0x58] sm:$0xf] %v11938_v55  ;;  %v12628_v34 = vsel %vm1092_vm3, %v12623_v13, %v12627_v22  ;;  %v11541_v42 = vmax.f32 %v11493_v20, 0.0  ;;  %v11544_v51 = vmax.f32 %v11496_v5, 0.0  ;;  %v12631_v31 = vor.u32 %v12629_v59, %v12627_v22 }
 0x742   : > { %v11914_v11 = vshrl.u32 %v18138_v3, 16  ;;  %v11917_v50 = vshll.u32 %v18138_v3, 16  ;;  %20203 = vmatmul.mubr.bf16.vlgmr.msra.gmra.mrb[48].mxu0 %v12628_v34  ;;  %v12635_v15 = vrot.slane %v12633_v61, 1  ;;  %v25244_v4 = vpop.f32.mrb[80].mxu1  ;;  %v11591_v40 = vmul.f32 %v11543_v17, %v26416_v32 }
 0x743   : > { %20251 = vmatpush3.bf16.msra.mxu0 %v25054_v0  ;;  %v11589_v62 = vmul.f32 %v11541_v42, %v26417_v8  ;;  %v11592_v48 = vmul.f32 %v11544_v51, %v26418_v29  ;;  %v11439_v13 = vmul.f32 %v25060_v25, %v25167_v23  ;;  %v25252_v20 = vpop.f32.mrb[81].mxu1  ;;  %v12637_v55 = vshrl.u32 %v25204_v52, 16 }
 0x744   : > { %v11916_v5 = vrot.slane %v11914_v11, 7  ;;  %v12636_v22 = vsel %vm1092_vm3, %v12631_v31, %v12635_v15  ;;  %v12641_v3 = vshll.u32 %v25241_v58, 16  ;;  %20252 = vmatprep.subr.bf16.mxu0 %v22417_v9  ;;  %v25257_v0 = vpop.f32.mrb[82].mxu1  ;;  %v18143_v59 = vpack.c.bf16 %v11591_v40, %v11591_v40 }
 0x745   : > { %v18141_v61 = vpack.c.bf16 %v11589_v62, %v11589_v62  ;;  %v18144_v34 = vpack.c.bf16 %v11592_v48, %v11592_v48  ;;  %20206 = vmatprep.mubr.bf16.mxu0 %v12636_v22  ;;  %v11494_v17 = vadd.f32 %v25067_v10, %v11439_v13  ;;  %v25260_v23 = vpop.f32.mrb[83].mxu1  ;;  %v12639_v11 = vor.u32 %v12637_v55, %v12635_v15 }
 0x746   : > { %v11919_v42 = vor.u32 %v11917_v50, %v11916_v5  ;;  %v11921_v51 = vrot.slane %v11916_v5, 4  ;;  %v12643_v32 = vrot.slane %v12641_v3, 1  ;;  %v11959_v31 = vshrl.u32 %v18143_v59, 16  ;;  %v22418_v3 = vld [vmem:[#allocation2 + $0x28] sm:$0xff]  }
 0x747   : > { %v11962_v8 = vshll.u32 %v18143_v59, 16  ;;  %v11941_v52 = vshrl.u32 %v18141_v61, 16  ;;  %v11944_v29 = vshll.u32 %v18141_v61, 16  ;;  %20253 = vmatpush3.bf16.msra.mxu0 %v22417_v9  ;;  %v11968_v48 = vshrl.u32 %v18144_v34, 16 }
 0x748   : > { %v11920_v40 = vsel %vm23907_vm10, %v11912_v46, %v11919_v42  ;;  %v11929_v62 = vsel %vm23907_vm10, %v11921_v51, %v25213_v57  ;;  %v11971_v13 = vshll.u32 %v18144_v34, 16  ;;  %20254 = vmatprep.subr.bf16.mxu0 %v22422_v37  ;;  %v11961_v50 = vrot.slane %v11959_v31, 7  ;;  %v26419_v31 = vld [vmem:[#allocation42_spill] sm:$0xff] }
 0x749   : > { %12259 = vst [vmem:[#allocation2 + $0x50] sm:$0xf] %v11920_v40  ;;  %12260 = vst [vmem:[#allocation2 + $0x54] sm:$0xf] %v11929_v62  ;;  %v25267_v15 = vrot.slane %v11941_v52, 7  ;;  %v11542_v5 = vmax.f32 %v11494_v17, 0.0  ;;  %v12644_v22 = vsel %vm1092_vm3, %v12639_v11, %v12643_v32  ;;  %v11444_v46 = vmul.f32 %v25182_v35, %v25060_v25 }
 0x74a   : > { %v25270_v9 = vrot.slane %v11968_v48, 7  ;;  %20207 = vmatmul.mubr.bf16.gmra.mrb[52].mxu0 %v12644_v22  ;;  %v11442_v57 = vmul.f32 %v25060_v25, %v25185_v16  ;;  %v11445_v55 = vmul.f32 %v25192_v7, %v25060_v25  ;;  %v25278_v59 = vpop.f32.mrb[84].mxu1  ;;  %v11939_v61 = vrot.slane %v25218_v54, 4  ;;  %v22430_v35 = vld [vmem:[#allocation8 + $0x20] sm:$0xff]  }
 0x74b   : > { %v25281_v34 = vor.u32 %v11962_v8, %v11961_v50  ;;  %v11966_v17 = vrot.slane %v11961_v50, 4  ;;  %v11946_v42 = vor.u32 %v11944_v29, %v25267_v15  ;;  %20255 = vmatpush3.bf16.msra.mxu0 %v22422_v37  ;;  %v25284_v51 = vpop.f32.mrb[85].mxu1  ;;  %v11948_v11 = vrot.slane %v25267_v15, 4 }
 0x74c   : > { %v11973_v16 = vor.u32 %v11971_v13, %v25270_v9  ;;  %v11590_v7 = vmul.f32 %v11542_v5, %v26419_v31  ;;  %v11499_v52 = vadd.f32 %v25067_v10, %v11444_v46  ;;  %20256 = vmatprep.subr.bf16.mxu0 %v22425_v53  ;;  %v25290_v40 = vpop.f32.mrb[86].mxu1  ;;  %v11497_v8 = vadd.f32 %v25067_v10, %v11442_v57  ;;  %v25301_v5 = vld [vmem:[#allocation2 + $0x30] sm:$0xff]  }
 0x74d   : > { %v11947_v54 = vsel %vm23907_vm10, %v11939_v61, %v11946_v42  ;;  %v11500_v37 = vadd.f32 %v25067_v10, %v11445_v55  ;;  %v12645_v29 = vshrl.u32 %v25241_v58, 16  ;;  %v25297_v62 = vpop.f32.mrb[87].mxu1  ;;  %v12649_v15 = vshll.u32 %v22418_v3, 16  ;;  %v26420_v42 = vld [vmem:[#allocation47_spill] sm:$0xff] }
 0x74e   : > { %12262 = vst [vmem:[#allocation2 + $0x5c] sm:$0xf] %v11947_v54  ;;  %v11974_v48 = vsel %vm23907_vm10, %v11966_v17, %v11973_v16  ;;  %v18142_v13 = vpack.c.bf16 %v11590_v7, %v11590_v7  ;;  %v11547_v50 = vmax.f32 %v11499_v52, 0.0  ;;  %v11545_v22 = vmax.f32 %v11497_v8, 0.0  ;;  %v22433_v17 = vld [vmem:[#allocation8 + $0x28] sm:$0xff]   ;;  %v26421_v16 = vld [vmem:[#allocation45_spill] sm:$0xff] }
 0x74f   : > { %12265 = vst [vmem:[#allocation2 + $0x68] sm:$0xf] %v11974_v48  ;;  %v11548_v46 = vmax.f32 %v11500_v37, 0.0  ;;  %v12647_v61 = vor.u32 %v12645_v29, %v12643_v32  ;;  %v11443_v57 = vmul.f32 %v25060_v25, %v25194_v18  ;;  %20257 = vmatpush3.bf16.msra.mxu0 %v22425_v53  ;;  %v12651_v54 = vrot.slane %v12649_v15, 1  ;;  %v26422_v52 = vld [vmem:[#allocation51_spill] sm:$0xff] }
 0x750   : > { %v11950_v58 = vshrl.u32 %v18142_v13, 16  ;;  %v11953_v55 = vshll.u32 %v18142_v13, 16  ;;  %v11595_v31 = vmul.f32 %v11547_v50, %v26420_v42  ;;  %20258 = vmatprep.subr.bf16.mxu0 %v22430_v35  ;;  %v11593_v7 = vmul.f32 %v11545_v22, %v26421_v16  ;;  %v22438_v13 = vld [vmem:[#allocation8 + $0x30] sm:$0xff]  }
 0x751   : > { %v11596_v28 = vmul.f32 %v11548_v46, %v26422_v52  ;;  %v11498_v48 = vadd.f32 %v25067_v10, %v11443_v57  ;;  %v12653_v8 = vshrl.u32 %v22418_v3, 16  ;;  %v12652_v29 = vsel %vm1092_vm3, %v12647_v61, %v12651_v54 }
 0x752   : > { %v11952_v37 = vrot.slane %v11950_v58, 7  ;;  %v18147_v32 = vpack.c.bf16 %v11595_v31, %v11595_v31  ;;  %v12657_v53 = vshll.u32 %v25301_v5, 16  ;;  %v25311_v18 = vpop.f32.mrb[88].mxu1  ;;  %v18145_v50 = vpack.c.bf16 %v11593_v7, %v11593_v7  ;;  %20210 = vmatprep.mubr.bf16.mxu0 %v12652_v29 }
 0x753   : > { %v18148_v15 = vpack.c.bf16 %v11596_v28, %v11596_v28  ;;  %v11546_v42 = vmax.f32 %v11498_v48, 0.0  ;;  %v12655_v38 = vor.u32 %v12653_v8, %v12651_v54  ;;  %v25313_v22 = vpop.f32.mrb[89].mxu1  ;;  %20259 = vmatpush3.bf16.msra.mxu0 %v22430_v35  ;;  %v26423_v35 = vld [vmem:[#allocation46_spill] sm:$0xff]  ;;  %v11448_v29 = vmul.f32 %v25206_v39, %v25060_v25 }
 0x754   : > { %v11955_v46 = vor.u32 %v11953_v55, %v11952_v37  ;;  %v11957_v57 = vrot.slane %v11952_v37, 4  ;;  %v11995_v3 = vshrl.u32 %v18147_v32, 16  ;;  %v11998_v58 = vshll.u32 %v18147_v32, 16  ;;  %v25315_v31 = vpop.f32.mrb[90].mxu1  ;;  %20260 = vmatprep.subr.bf16.mxu0 %v22433_v17 }
 0x755   : > { %v11977_v61 = vshrl.u32 %v18145_v50, 16  ;;  %v11980_v16 = vshll.u32 %v18145_v50, 16  ;;  %v12004_v52 = vshrl.u32 %v18148_v15, 16  ;;  %v12007_v41 = vshll.u32 %v18148_v15, 16  ;;  %v25323_v48 = vpop.f32.mrb[91].mxu1 }
 0x756   : > { %v11956_v28 = vsel %vm23907_vm10, %v11948_v11, %v11955_v46  ;;  %v11965_v54 = vsel %vm23907_vm10, %v11957_v57, %v25281_v34  ;;  %v11997_v7 = vrot.slane %v11995_v3, 7  ;;  %v11594_v55 = vmul.f32 %v11546_v42, %v26423_v35  ;;  %v22441_v11 = vld [vmem:[#allocation8 + $0x38] sm:$0xff]  }
 0x757   : > { %12263 = vst [vmem:[#allocation2 + $0x60] sm:$0xf] %v11956_v28  ;;  %12264 = vst [vmem:[#allocation2 + $0x64] sm:$0xf] %v11965_v54  ;;  %v11979_v8 = vrot.slane %v11977_v61, 7  ;;  %v25325_v37 = vrot.slane %v12004_v52, 7  ;;  %20261 = vmatpush3.bf16.msra.mxu0 %v22433_v17  ;;  %v11446_v42 = vmul.f32 %v25060_v25, %v25215_v27  ;;  %v11503_v17 = vadd.f32 %v25067_v10, %v11448_v29 }
 0x758   : > { %v12659_v32 = vrot.slane %v12657_v53, 1  ;;  %v11975_v50 = vrot.slane %v25270_v9, 4  ;;  %v12000_v15 = vor.u32 %v11998_v58, %v11997_v7  ;;  %v18146_v34 = vpack.c.bf16 %v11594_v55, %v11594_v55  ;;  %v22420_v46 = vld [vmem:[#allocation2 + $0x38] sm:$0xff]   ;;  %20262 = vmatprep.subr.bf16.mxu0 %v22438_v13 }
 0x759   : > { %v12002_v57 = vrot.slane %v11997_v7, 4  ;;  %v11982_v3 = vor.u32 %v11980_v16, %v11979_v8  ;;  %v11984_v61 = vrot.slane %v11979_v8, 4  ;;  %v12009_v52 = vor.u32 %v12007_v41, %v25325_v37  ;;  %v25345_v41 = vld [vmem:[%s26251_s7] ss:$0 sm:$0xff] }
 0x75a   : > { %v11986_v53 = vshrl.u32 %v18146_v34, 16  ;;  %v11989_v28 = vshll.u32 %v18146_v34, 16  ;;  %v12660_v39 = vsel %vm1092_vm3, %v12655_v38, %v12659_v32  ;;  %v25335_v54 = vpop.f32.mrb[92].mxu1  ;;  %v11501_v27 = vadd.f32 %v25067_v10, %v11446_v42  ;;  %v25352_v8 = vld [vmem:[#allocation2 + $0x40] sm:$0xff]  }
 0x75b   : > { %v11983_v9 = vsel %vm23907_vm10, %v11975_v50, %v11982_v3  ;;  %v12010_v25 = vsel %vm23907_vm10, %v12002_v57, %v12009_v52  ;;  %20211 = vmatmul.mubr.bf16.gmra.mrb[56].mxu0 %v12660_v39  ;;  %v11449_v38 = vmul.f32 %v25345_v41, %v25220_v21  ;;  %v25349_v58 = vpop.f32.mrb[93].mxu1  ;;  %v11551_v7 = vmax.f32 %v11503_v17, 0.0  ;;  %v25359_v50 = vld [vmem:[%s26252_s8] ss:$0 sm:$0xff] }
 0x75c   : > { %12266 = vst [vmem:[#allocation2 + $0x6c] sm:$0xf] %v11983_v9  ;;  %12269 = vst [vmem:[#allocation2 + $0x78] sm:$0xf] %v12010_v25  ;;  %v11988_v16 = vrot.slane %v11986_v53, 7  ;;  %v12661_v35 = vshrl.u32 %v25301_v5, 16  ;;  %20263 = vmatpush3.bf16.msra.mxu0 %v22438_v13  ;;  %v11447_v34 = vmul.f32 %v25345_v41, %v25228_v56 }
 0x75d   : > { %v12665_v55 = vshll.u32 %v22420_v46, 16  ;;  %v25354_v10 = vpop.f32.mrb[94].mxu1  ;;  %v11549_v29 = vmax.f32 %v11501_v27, 0.0  ;;  %v11504_v21 = vadd.f32 %v25359_v50, %v11449_v38  ;;  %v12669_v42 = vshrl.u32 %v22420_v46, 16  ;;  %20264 = vmatprep.subr.bf16.mxu0 %v22441_v11  ;;  %v22444_v5 = vld [vmem:[#allocation8 + $0x80] sm:$0xff]  }
 0x75e   : > { %v25364_v57 = vpop.f32.mrb[95].mxu1  ;;  %v11991_v3 = vor.u32 %v11989_v28, %v11988_v16  ;;  %v11993_v52 = vrot.slane %v11988_v16, 4  ;;  %v11599_v13 = vmul.f32 %v11551_v7, %v24316_v26  ;;  %v12663_v53 = vor.u32 %v12661_v35, %v12659_v32 }
 0x75f   : > { %v11597_v39 = vmul.f32 %v11549_v29, %v24286_v49  ;;  %v11552_v17 = vmax.f32 %v11504_v21, 0.0  ;;  %v12667_v9 = vrot.slane %v12665_v55, 1  ;;  %v11502_v25 = vadd.f32 %v25359_v50, %v11447_v34 }
 0x760   : > { %v11992_v27 = vsel %vm23907_vm10, %v11984_v61, %v11991_v3  ;;  %v12001_v56 = vsel %vm23907_vm10, %v11993_v52, %v12000_v15  ;;  %v18151_v46 = vpack.c.bf16 %v11599_v13, %v11599_v13  ;;  %v12673_v38 = vshll.u32 %v25352_v8, 16  ;;  %20265 = vmatpush3.bf16.msra.mxu0 %v22441_v11 }
 0x761   : > { %12267 = vst [vmem:[#allocation2 + $0x70] sm:$0xf] %v11992_v27  ;;  %12268 = vst [vmem:[#allocation2 + $0x74] sm:$0xf] %v12001_v56  ;;  %v18149_v26 = vpack.c.bf16 %v11597_v39, %v11597_v39  ;;  %v11600_v32 = vmul.f32 %v11552_v17, %v24336_v6  ;;  %v12668_v49 = vsel %vm1092_vm3, %v12663_v53, %v12667_v9  ;;  %v11550_v28 = vmax.f32 %v11502_v25, 0.0  ;;  %v22423_v56 = vld [vmem:[#allocation2 + $0x48] sm:$0xff]  }
 0x762   : > { %20314 = vmatprep.subr.bf16.mxu0 %v22444_v5  ;;  %v12011_v16 = vrot.slane %v25325_v37, 4  ;;  %v12031_v7 = vshrl.u32 %v18151_v46, 16  ;;  %20214 = vmatprep.mubr.bf16.mxu0 %v12668_v49  ;;  %v12671_v61 = vor.u32 %v12669_v42, %v12667_v9  ;;  %v12675_v35 = vrot.slane %v12673_v38, 1 }
 0x763   : > { %v12034_v15 = vshll.u32 %v18151_v46, 16  ;;  %v12013_v55 = vshrl.u32 %v18149_v26, 16  ;;  %v18152_v29 = vpack.c.bf16 %v11600_v32, %v11600_v32  ;;  %v11598_v11 = vmul.f32 %v11550_v28, %v24314_v45 }
 0x764   : > { %v12033_v21 = vrot.slane %v12031_v7, 7  ;;  %v12676_v34 = vsel %vm1092_vm3, %v12671_v61, %v12675_v35  ;;  %v11452_v6 = vmul.f32 %v25345_v41, %v25244_v4  ;;  %v11450_v5 = vmul.f32 %v25345_v41, %v25252_v20 }
 0x765   : > { %v12015_v3 = vrot.slane %v12013_v55, 7  ;;  %v12016_v37 = vshll.u32 %v18149_v26, 16  ;;  %v12040_v52 = vshrl.u32 %v18152_v29, 16  ;;  %v18150_v13 = vpack.c.bf16 %v11598_v11, %v11598_v11  ;;  %20215 = vmatmul.mubr.bf16.gmra.mrb[60].mxu0 %v12676_v34 }
 0x766   : > { %v12036_v42 = vor.u32 %v12034_v15, %v12033_v21  ;;  %v12043_v53 = vshll.u32 %v18152_v29, 16  ;;  %v11507_v39 = vadd.f32 %v25359_v50, %v11452_v6  ;;  %v11505_v45 = vadd.f32 %v25359_v50, %v11450_v5 }
 0x767   : > { %v12038_v17 = vrot.slane %v12033_v21, 4  ;;  %v12018_v9 = vor.u32 %v12016_v37, %v12015_v3  ;;  %v12042_v25 = vrot.slane %v12040_v52, 7  ;;  %v12022_v27 = vshrl.u32 %v18150_v13, 16 }
 0x768   : > { %v12020_v4 = vrot.slane %v12015_v3, 4  ;;  %v11555_v46 = vmax.f32 %v11507_v39, 0.0  ;;  %v11553_v38 = vmax.f32 %v11505_v45, 0.0  ;;  %v11453_v20 = vmul.f32 %v25345_v41, %v25257_v0  ;;  %v22424_v3 = vld [vmem:[#allocation2 + $0x50] sm:$0xff]  }
 0x769   : > { %v12019_v26 = vsel %vm23907_vm10, %v12011_v16, %v12018_v9  ;;  %v12045_v32 = vor.u32 %v12043_v53, %v12042_v25  ;;  %v12024_v49 = vrot.slane %v12022_v27, 7  ;;  %v12025_v28 = vshll.u32 %v18150_v13, 16 }
 0x76a   : > { %12270 = vst [vmem:[#allocation2 + $0x7c] sm:$0xf] %v12019_v26  ;;  %v11603_v7 = vmul.f32 %v11555_v46, %v24355_v63  ;;  %v11601_v61 = vmul.f32 %v11553_v38, %v24338_v36  ;;  %v11508_v15 = vadd.f32 %v25359_v50, %v11453_v20  ;;  %v12677_v55 = vshrl.u32 %v25352_v8, 16 }
 0x76b   : > { %v12046_v29 = vsel %vm23907_vm10, %v12038_v17, %v12045_v32  ;;  %v12027_v11 = vor.u32 %v12025_v28, %v12024_v49  ;;  %v12029_v0 = vrot.slane %v12024_v49, 4  ;;  %v12681_v21 = vshll.u32 %v22423_v56, 16 }
 0x76c   : > { %12273 = vst [vmem:[#allocation2 + $0x88] sm:$0xf] %v12046_v29  ;;  %v18155_v16 = vpack.c.bf16 %v11603_v7, %v11603_v7  ;;  %v18153_v34 = vpack.c.bf16 %v11601_v61, %v11601_v61  ;;  %v11556_v6 = vmax.f32 %v11508_v15, 0.0  ;;  %v12679_v5 = vor.u32 %v12677_v55, %v12675_v35  ;;  %v25408_v7 = vld [vmem:[#allocation2 + $0x58] sm:$0xff]  }
 0x76d   : > { %v12028_v63 = vsel %vm23907_vm10, %v12020_v4, %v12027_v11  ;;  %v12037_v36 = vsel %vm23907_vm10, %v12029_v0, %v12036_v42  ;;  %v12683_v37 = vrot.slane %v12681_v21, 1  ;;  %v11451_v8 = vmul.f32 %v25345_v41, %v25260_v23 }
 0x76e   : > { %12271 = vst [vmem:[#allocation2 + $0x80] sm:$0xf] %v12028_v63  ;;  %12272 = vst [vmem:[#allocation2 + $0x84] sm:$0xf] %v12037_v36  ;;  %v12067_v52 = vshrl.u32 %v18155_v16, 16  ;;  %v12070_v13 = vshll.u32 %v18155_v16, 16  ;;  %v11604_v45 = vmul.f32 %v11556_v6, %v24389_v33  ;;  %v11456_v23 = vmul.f32 %v25345_v41, %v25278_v59 }
 0x76f   : > { %v12049_v53 = vshrl.u32 %v18153_v34, 16  ;;  %v12052_v39 = vshll.u32 %v18153_v34, 16  ;;  %v12684_v35 = vsel %vm1092_vm3, %v12679_v5, %v12683_v37  ;;  %v11506_v17 = vadd.f32 %v25359_v50, %v11451_v8 }
 0x770   : > { %v12685_v9 = vshrl.u32 %v22423_v56, 16  ;;  %v12069_v27 = vrot.slane %v12067_v52, 7  ;;  %20218 = vmatprep.mubr.bf16.mxu0 %v12684_v35  ;;  %v12689_v42 = vshll.u32 %v22424_v3, 16  ;;  %v18156_v46 = vpack.c.bf16 %v11604_v45, %v11604_v45 }
 0x771   : > { %v12051_v4 = vrot.slane %v12049_v53, 7  ;;  %v11554_v38 = vmax.f32 %v11506_v17, 0.0  ;;  %v11454_v26 = vmul.f32 %v25345_v41, %v25284_v51  ;;  %v12047_v32 = vrot.slane %v12042_v25, 4 }
 0x772   : > { %v12687_v20 = vor.u32 %v12685_v9, %v12683_v37  ;;  %v12072_v33 = vor.u32 %v12070_v13, %v12069_v27  ;;  %v12074_v49 = vrot.slane %v12069_v27, 4  ;;  %v12076_v56 = vshrl.u32 %v18156_v46, 16 }
 0x773   : > { %v12054_v28 = vor.u32 %v12052_v39, %v12051_v4  ;;  %v12079_v61 = vshll.u32 %v18156_v46, 16  ;;  %v11602_v15 = vmul.f32 %v11554_v38, %v24360_v60  ;;  %v12691_v55 = vrot.slane %v12689_v42, 1  ;;  %v25427_v42 = vld [vmem:[#allocation2 + $0x60] sm:$0xff]  }
 0x774   : > { %v11511_v29 = vadd.f32 %v25359_v50, %v11456_v23  ;;  %v11509_v11 = vadd.f32 %v25359_v50, %v11454_v26  ;;  %v11457_v51 = vmul.f32 %v25345_v41, %v25290_v40  ;;  %v12078_v25 = vrot.slane %v12076_v56, 7 }
 0x775   : > { %v12055_v59 = vsel %vm23907_vm10, %v12047_v32, %v12054_v28  ;;  %v18154_v0 = vpack.c.bf16 %v11602_v15, %v11602_v15  ;;  %v12692_v21 = vsel %vm1092_vm3, %v12687_v20, %v12691_v55  ;;  %v12693_v16 = vshrl.u32 %v22424_v3, 16 }
 0x776   : > { %12274 = vst [vmem:[#allocation2 + $0x8c] sm:$0xf] %v12055_v59  ;;  %20219 = vmatmul.mubr.bf16.gmra.mrb[64].mxu0 %v12692_v21  ;;  %v11559_v34 = vmax.f32 %v11511_v29, 0.0  ;;  %v11557_v60 = vmax.f32 %v11509_v11, 0.0  ;;  %v11512_v6 = vadd.f32 %v25359_v50, %v11457_v51  ;;  %v12697_v5 = vshll.u32 %v25408_v7, 16 }
 0x777   : > { %v12056_v63 = vrot.slane %v12051_v4, 4  ;;  %v12081_v36 = vor.u32 %v12079_v61, %v12078_v25  ;;  %v12058_v37 = vshrl.u32 %v18154_v0, 16  ;;  %v12061_v8 = vshll.u32 %v18154_v0, 16 }
 0x778   : > { %v11607_v52 = vmul.f32 %v11559_v34, %v24431_v47  ;;  %v11605_v40 = vmul.f32 %v11557_v60, %v24408_v14  ;;  %v11560_v13 = vmax.f32 %v11512_v6, 0.0  ;;  %v12695_v53 = vor.u32 %v12693_v16, %v12691_v55  ;;  %v25440_v16 = vld [vmem:[#allocation2 + $0x68] sm:$0xff]  }
 0x779   : > { %v12082_v3 = vsel %vm23907_vm10, %v12074_v49, %v12081_v36  ;;  %v12060_v39 = vrot.slane %v12058_v37, 7  ;;  %v12699_v45 = vrot.slane %v12697_v5, 1  ;;  %v11455_v35 = vmul.f32 %v25345_v41, %v25297_v62 }
 0x77a   : > { %v12083_v17 = vrot.slane %v12078_v25, 4  ;;  %12277 = vst [vmem:[#allocation2 + $0x98] sm:$0xf] %v12082_v3  ;;  %v18159_v9 = vpack.c.bf16 %v11607_v52, %v11607_v52  ;;  %v18157_v27 = vpack.c.bf16 %v11605_v40, %v11605_v40  ;;  %v11608_v4 = vmul.f32 %v11560_v13, %v24436_v12 }
 0x77b   : > { %v12063_v47 = vor.u32 %v12061_v8, %v12060_v39  ;;  %v12065_v14 = vrot.slane %v12060_v39, 4  ;;  %v12700_v23 = vsel %vm1092_vm3, %v12695_v53, %v12699_v45  ;;  %v11510_v46 = vadd.f32 %v25359_v50, %v11455_v35 }
 0x77c   : > { %v12103_v38 = vshrl.u32 %v18159_v9, 16  ;;  %v12106_v20 = vshll.u32 %v18159_v9, 16  ;;  %v12085_v26 = vshrl.u32 %v18157_v27, 16  ;;  %20222 = vmatprep.mubr.bf16.mxu0 %v12700_v23  ;;  %v12701_v62 = vshrl.u32 %v25408_v7, 16 }
 0x77d   : > { %v12064_v32 = vsel %vm23907_vm10, %v12056_v63, %v12063_v47  ;;  %v12073_v12 = vsel %vm23907_vm10, %v12065_v14, %v12072_v33  ;;  %v18160_v49 = vpack.c.bf16 %v11608_v4, %v11608_v4  ;;  %v11558_v28 = vmax.f32 %v11510_v46, 0.0  ;;  %v25462_v46 = vld [vmem:[#allocation2 + $0x70] sm:$0xff]  }
 0x77e   : > { %12275 = vst [vmem:[#allocation2 + $0x90] sm:$0xf] %v12064_v32  ;;  %12276 = vst [vmem:[#allocation2 + $0x94] sm:$0xf] %v12073_v12  ;;  %v12105_v56 = vrot.slane %v12103_v38, 7  ;;  %v12087_v61 = vrot.slane %v12085_v26, 7  ;;  %v12703_v11 = vor.u32 %v12701_v62, %v12699_v45  ;;  %v11460_v51 = vmul.f32 %v25345_v41, %v25311_v18 }
 0x77f   : > { %v12088_v15 = vshll.u32 %v18157_v27, 16  ;;  %v12705_v55 = vshll.u32 %v25427_v42, 16  ;;  %v12112_v59 = vshrl.u32 %v18160_v49, 16  ;;  %v11606_v29 = vmul.f32 %v11558_v28, %v24417_v1 }
 0x780   : > { %v12108_v25 = vor.u32 %v12106_v20, %v12105_v56  ;;  %v12110_v0 = vrot.slane %v12105_v56, 4  ;;  %v12115_v33 = vshll.u32 %v18160_v49, 16  ;;  %v11515_v5 = vadd.f32 %v25359_v50, %v11460_v51 }
 0x781   : > { %v12090_v21 = vor.u32 %v12088_v15, %v12087_v61  ;;  %v25442_v34 = vrot.slane %v12112_v59, 7  ;;  %v18158_v60 = vpack.c.bf16 %v11606_v29, %v11606_v29  ;;  %v12707_v6 = vrot.slane %v12705_v55, 1 }
 0x782   : > { %v12092_v1 = vrot.slane %v12087_v61, 4  ;;  %v11458_v36 = vmul.f32 %v25345_v41, %v25313_v22  ;;  %v11461_v18 = vmul.f32 %v25345_v41, %v25315_v31  ;;  %v12709_v40 = vshrl.u32 %v25427_v42, 16 }
 0x783   : > { %v12091_v63 = vsel %vm23907_vm10, %v12083_v17, %v12090_v21  ;;  %v12117_v37 = vor.u32 %v12115_v33, %v25442_v34  ;;  %v12094_v8 = vshrl.u32 %v18158_v60, 16  ;;  %v12097_v52 = vshll.u32 %v18158_v60, 16 }
 0x784   : > { %12278 = vst [vmem:[#allocation2 + $0x9c] sm:$0xf] %v12091_v63  ;;  %v12708_v13 = vsel %vm1092_vm3, %v12703_v11, %v12707_v6  ;;  %v11563_v53 = vmax.f32 %v11515_v5, 0.0  ;;  %v11513_v3 = vadd.f32 %v25359_v50, %v11458_v36  ;;  %v11516_v39 = vadd.f32 %v25359_v50, %v11461_v18 }
 0x785   : > { %v12118_v22 = vsel %vm23907_vm10, %v12110_v0, %v12117_v37  ;;  %v12096_v45 = vrot.slane %v12094_v8, 7  ;;  %20223 = vmatmul.mubr.bf16.gmra.mrb[68].mxu0 %v12708_v13  ;;  %v12711_v31 = vor.u32 %v12709_v40, %v12707_v6  ;;  %v12713_v35 = vshll.u32 %v25440_v16, 16 }
 0x786   : > { %12281 = vst [vmem:[#allocation2 + $0xa8] sm:$0xf] %v12118_v22  ;;  %v11611_v17 = vmul.f32 %v11563_v53, %v24485_v24  ;;  %v11561_v9 = vmax.f32 %v11513_v3, 0.0  ;;  %v11564_v27 = vmax.f32 %v11516_v39, 0.0  ;;  %v11459_v4 = vmul.f32 %v25345_v41, %v25323_v48 }
 0x787   : > { %v12099_v47 = vor.u32 %v12097_v52, %v12096_v45  ;;  %v12101_v14 = vrot.slane %v12096_v45, 4  ;;  %v12715_v23 = vrot.slane %v12713_v35, 1  ;;  %v12717_v38 = vshrl.u32 %v25440_v16, 16  ;;  %v26424_v45 = vld [vmem:[#allocation52_spill] sm:$0xff] }
 0x788   : > { %v18163_v20 = vpack.c.bf16 %v11611_v17, %v11611_v17  ;;  %v11609_v26 = vmul.f32 %v11561_v9, %v24455_v30  ;;  %v11612_v62 = vmul.f32 %v11564_v27, %v24491_v2  ;;  %v11514_v32 = vadd.f32 %v25359_v50, %v11459_v4  ;;  %v25498_v17 = vld [vmem:[#allocation2 + $0x80] sm:$0xff]  }
 0x789   : > { %v12100_v24 = vsel %vm23907_vm10, %v12092_v1, %v12099_v47  ;;  %v12109_v48 = vsel %vm23907_vm10, %v12101_v14, %v12108_v25  ;;  %v12716_v12 = vsel %vm1092_vm3, %v12711_v31, %v12715_v23  ;;  %v12719_v61 = vor.u32 %v12717_v38, %v12715_v23 }
 0x78a   : > { %12279 = vst [vmem:[#allocation2 + $0xa0] sm:$0xf] %v12100_v24  ;;  %12280 = vst [vmem:[#allocation2 + $0xa4] sm:$0xf] %v12109_v48  ;;  %v12139_v49 = vshrl.u32 %v18163_v20, 16  ;;  %v18161_v28 = vpack.c.bf16 %v11609_v26, %v11609_v26  ;;  %v18164_v56 = vpack.c.bf16 %v11612_v62, %v11612_v62  ;;  %20226 = vmatprep.mubr.bf16.mxu0 %v12716_v12  ;;  %v11562_v30 = vmax.f32 %v11514_v32, 0.0 }
 0x78b   : > { %v12721_v2 = vshll.u32 %v25462_v46, 16  ;;  %v11464_v15 = vmul.f32 %v25345_v41, %v25335_v54  ;;  %v11462_v55 = vmul.f32 %v25345_v41, %v25349_v58  ;;  %v25484_v58 = vld [vmem:[#allocation2 + $0x78] sm:$0xff]   ;;  %v12119_v36 = vrot.slane %v25442_v34, 4 }
 0x78c   : > { %v12141_v59 = vrot.slane %v12139_v49, 7  ;;  %v12121_v29 = vshrl.u32 %v18161_v28, 16  ;;  %v12148_v11 = vshrl.u32 %v18164_v56, 16  ;;  %v11610_v51 = vmul.f32 %v11562_v30, %v24470_v43 }
 0x78d   : > { %v12723_v25 = vrot.slane %v12721_v2, 1  ;;  %v11519_v0 = vadd.f32 %v25359_v50, %v11464_v15  ;;  %v12124_v33 = vshll.u32 %v18161_v28, 16  ;;  %v12151_v6 = vshll.u32 %v18164_v56, 16 }
 0x78e   : > { %v12123_v21 = vrot.slane %v12121_v29, 7  ;;  %v25480_v60 = vrot.slane %v12148_v11, 7  ;;  %v18162_v5 = vpack.c.bf16 %v11610_v51, %v11610_v51  ;;  %v11517_v1 = vadd.f32 %v25359_v50, %v11462_v55 }
 0x78f   : > { %v12724_v63 = vsel %vm1092_vm3, %v12719_v61, %v12723_v25  ;;  %v11567_v54 = vmax.f32 %v11519_v0, 0.0  ;;  %v12146_v18 = vrot.slane %v12141_v59, 4  ;;  %v12142_v8 = vshll.u32 %v18163_v20, 16  ;;  %v26426_v0 = vld [vmem:[#allocation48_spill] sm:$0xff] }
 0x790   : > { %v12126_v43 = vor.u32 %v12124_v33, %v12123_v21  ;;  %v12153_v37 = vor.u32 %v12151_v6, %v25480_v60  ;;  %20227 = vmatmul.mubr.bf16.gmra.mrb[72].mxu0 %v12724_v63  ;;  %v12130_v52 = vshrl.u32 %v18162_v5, 16  ;;  %v11565_v13 = vmax.f32 %v11517_v1, 0.0 }
 0x791   : > { %v11615_v40 = vmul.f32 %v11567_v54, %v24526_v19  ;;  %v12133_v39 = vshll.u32 %v18162_v5, 16  ;;  %v11465_v34 = vmul.f32 %v25345_v41, %v25354_v10  ;;  %v12725_v35 = vshrl.u32 %v25462_v46, 16 }
 0x792   : > { %v12127_v53 = vsel %vm23907_vm10, %v12119_v36, %v12126_v43  ;;  %v12154_v3 = vsel %vm23907_vm10, %v12146_v18, %v12153_v37  ;;  %v12132_v22 = vrot.slane %v12130_v52, 7  ;;  %v11613_v31 = vmul.f32 %v11565_v13, %v26424_v45  ;;  %v25526_v36 = vld [vmem:[#allocation2 + $0x98] sm:$0xff]  }
 0x793   : > { %12282 = vst [vmem:[#allocation2 + $0xac] sm:$0xf] %v12127_v53  ;;  %12285 = vst [vmem:[#allocation2 + $0xb8] sm:$0xf] %v12154_v3  ;;  %v12729_v19 = vshll.u32 %v25484_v58, 16  ;;  %v12144_v9 = vor.u32 %v12142_v8, %v12141_v59  ;;  %v25500_v27 = vpack.c.bf16 %v11615_v40, %v11615_v40  ;;  %v11520_v4 = vadd.f32 %v25359_v50, %v11465_v34  ;;  %v25531_v3 = vld [vmem:[#allocation2 + $0xa0] sm:$0xff]  }
 0x794   : > { %v11463_v47 = vmul.f32 %v25345_v41, %v25364_v57  ;;  %v12128_v10 = vrot.slane %v12123_v21, 4  ;;  %v12135_v14 = vor.u32 %v12133_v39, %v12132_v22  ;;  %v12137_v23 = vrot.slane %v12132_v22, 4  ;;  %v25512_v41 = vld [vmem:[#allocation2 + $0x88] sm:$0xff]   ;;  %v25514_v57 = vld [vmem:[#allocation2 + $0x90] sm:$0xff]  }
 0x795   : > { %v12727_v38 = vor.u32 %v12725_v35, %v12723_v25  ;;  %v18165_v20 = vpack.c.bf16 %v11613_v31, %v11613_v31  ;;  %v11568_v26 = vmax.f32 %v11520_v4, 0.0  ;;  %v12731_v62 = vrot.slane %v12729_v19, 1 }
 0x796   : > { %v11518_v32 = vadd.f32 %v25359_v50, %v11463_v47  ;;  %v12136_v24 = vsel %vm23907_vm10, %v12128_v10, %v12135_v14  ;;  %v12145_v48 = vsel %vm23907_vm10, %v12137_v23, %v12144_v9  ;;  %v12733_v12 = vshrl.u32 %v25484_v58, 16  ;;  %v26425_v50 = vld [vmem:[#allocation53_spill] sm:$0xff] }
 0x797   : > { %v12737_v49 = vshll.u32 %v25498_v17, 16  ;;  %12283 = vst [vmem:[#allocation2 + $0xb0] sm:$0xf] %v12136_v24  ;;  %12284 = vst [vmem:[#allocation2 + $0xb4] sm:$0xf] %v12145_v48  ;;  %v12175_v28 = vshrl.u32 %v25500_v27, 16  ;;  %v11616_v61 = vmul.f32 %v11568_v26, %v26425_v50  ;;  %v12732_v30 = vsel %vm1092_vm3, %v12727_v38, %v12731_v62 }
 0x798   : > { %v12157_v56 = vshrl.u32 %v18165_v20, 16  ;;  %v12155_v2 = vrot.slane %v25480_v60, 4  ;;  %v12178_v15 = vshll.u32 %v25500_v27, 16  ;;  %20230 = vmatprep.mubr.bf16.mxu0 %v12732_v30  ;;  %v11566_v55 = vmax.f32 %v11518_v32, 0.0  ;;  %v12290_v47 = vld [vmem:[#allocation2 + $0xcc] sm:$0x1] }
 0x799   : > { %v12735_v59 = vor.u32 %v12733_v12, %v12731_v62  ;;  %v12160_v11 = vshll.u32 %v18165_v20, 16  ;;  %v18168_v51 = vpack.c.bf16 %v11616_v61, %v11616_v61  ;;  %v12739_v25 = vrot.slane %v12737_v49, 1  ;;  %v25592_v20 = vld [vmem:[#allocation2 + $0x34] sm:$0xff]  }
 0x79a   : > { %v12159_v29 = vrot.slane %v12157_v56, 7  ;;  %v11614_v21 = vmul.f32 %v11566_v55, %v26426_v0  ;;  %v12741_v33 = vshrl.u32 %v25498_v17, 16  ;;  %v12745_v6 = vshll.u32 %v25512_v41, 16  ;;  %v25536_v27 = vld [vmem:[#allocation2 + $0xa8] sm:$0xff]  }
 0x79b   : > { %v12753_v5 = vshll.u32 %v25514_v57, 16  ;;  %v12177_v63 = vrot.slane %v12175_v28, 7  ;;  %v12184_v60 = vshrl.u32 %v18168_v51, 16  ;;  %v12749_v1 = vshrl.u32 %v25512_v41, 16 }
 0x79c   : > { %v12162_v54 = vor.u32 %v12160_v11, %v12159_v29  ;;  %v18166_v18 = vpack.c.bf16 %v11614_v21, %v11614_v21  ;;  %v12740_v43 = vsel %vm1092_vm3, %v12735_v59, %v12739_v25  ;;  %v12743_v37 = vor.u32 %v12741_v33, %v12739_v25 }
 0x79d   : > { %v12747_v8 = vrot.slane %v12745_v6, 1  ;;  %v12186_v40 = vrot.slane %v12184_v60, 7  ;;  %v12187_v13 = vshll.u32 %v18168_v51, 16  ;;  %20231 = vmatmul.mubr.bf16.gmra.mrb[76].mxu0 %v12740_v43  ;;  %v12755_v53 = vrot.slane %v12753_v5, 1 }
 0x79e   : > { %v12163_v52 = vsel %vm23907_vm10, %v12155_v2, %v12162_v54  ;;  %v12166_v39 = vshrl.u32 %v18166_v18, 16  ;;  %v12757_v45 = vshrl.u32 %v25514_v57, 16  ;;  %v12182_v31 = vrot.slane %v12177_v63, 4 }
 0x79f   : > { %12286 = vst [vmem:[#allocation2 + $0xbc] sm:$0xf] %v12163_v52  ;;  %v12748_v34 = vsel %vm1092_vm3, %v12743_v37, %v12747_v8  ;;  %v12751_v22 = vor.u32 %v12749_v1, %v12747_v8  ;;  %v12189_v35 = vor.u32 %v12187_v13, %v12186_v40  ;;  %v12191_v19 = vrot.slane %v12186_v40, 4 }
 0x7a0   : > { %20234 = vmatprep.mubr.bf16.mxu0 %v12748_v34  ;;  %v12761_v9 = vshll.u32 %v25526_v36, 16  ;;  %v12180_v4 = vor.u32 %v12178_v15, %v12177_v63  ;;  %v12168_v10 = vrot.slane %v12166_v39, 7  ;;  %v12169_v14 = vshll.u32 %v18166_v18, 16  ;;  %v25551_v15 = vld [vmem:[#allocation2 + $0xb0] sm:$0xff]   ;;  %v22445_v39 = vld [vmem:[#allocation8 + $0x88] sm:$0xff]  }
 0x7a1   : > { %v12759_v23 = vor.u32 %v12757_v45, %v12755_v53  ;;  %v12190_v38 = vsel %vm23907_vm10, %v12182_v31, %v12189_v35  ;;  %v12291_v26 = vsel %vm24577_vm11, %v12191_v19, %v12290_v47  ;;  %v12769_v32 = vshll.u32 %v25531_v3, 16  ;;  %v25570_v34 = vld [vmem:[#allocation2 + $0x8] sm:$0xff]   ;;  %v22674_v45 = vld [vmem:[#allocation8 + $0x80] sm:$0xff]   ;;  %v22447_v35 = vld [vmem:[#allocation8 + $0x98] sm:$0xff]  }
 0x7a2   : > { %v12763_v62 = vrot.slane %v12761_v9, 1  ;;  %v12164_v24 = vrot.slane %v12159_v29, 4  ;;  %12289 = vst [vmem:[#allocation2 + $0xc8] sm:$0xf] %v12190_v38  ;;  %12292 = vst [vmem:[#allocation2 + $0xcc] sm:$0x1] %v12291_v26  ;;  %v12171_v48 = vor.u32 %v12169_v14, %v12168_v10  ;;  %v12756_v49 = vsel %vm1092_vm3, %v12751_v22, %v12755_v53 }
 0x7a3   : > { %v12173_v12 = vrot.slane %v12168_v10, 4  ;;  %v12777_v56 = vshll.u32 %v25536_v27, 16  ;;  %v12765_v30 = vshrl.u32 %v25526_v36, 16  ;;  %v12771_v2 = vrot.slane %v12769_v32, 1  ;;  %v26428_v53 = vld [vmem:[#allocation54_spill] sm:$0xff]  ;;  %v22446_v31 = vld [vmem:[#allocation8 + $0x90] sm:$0xff]  }
 0x7a4   : > { %v12764_v28 = vsel %vm1092_vm3, %v12759_v23, %v12763_v62  ;;  %v12172_v50 = vsel %vm23907_vm10, %v12164_v24, %v12171_v48  ;;  %v12773_v59 = vshrl.u32 %v25531_v3, 16  ;;  %v12785_v25 = vshll.u32 %v25551_v15, 16  ;;  %v25573_v22 = vld [vmem:[#allocation2 + $0x10] sm:$0xff]   ;;  %v25576_v19 = vld [vmem:[#allocation2 + $0x18] sm:$0xff]   ;;  %v25579_v9 = vld [vmem:[#allocation2 + $0x20] sm:$0xff]  }
 0x7a5   : > { %v12181_v61 = vsel %vm23907_vm10, %v12173_v12, %v12180_v4  ;;  %12287 = vst [vmem:[#allocation2 + $0xc0] sm:$0xf] %v12172_v50  ;;  %20235 = vmatmul.mubr.bf16.gmra.mrb[80].mxu0 %v12756_v49  ;;  %v12767_v55 = vor.u32 %v12765_v30, %v12763_v62  ;;  %v12779_v29 = vrot.slane %v12777_v56, 1  ;;  %v12781_v33 = vshrl.u32 %v25536_v27, 16  ;;  %v25582_v4 = vld [vmem:[#allocation2 + $0x14] sm:$0xff]   ;;  %v22448_v47 = vld [vmem:[#allocation8 + $0xa0] sm:$0xff]  }
 0x7a6   : > { %12288 = vst [vmem:[#allocation2 + $0xc4] sm:$0xf] %v12181_v61  ;;  %20238 = vmatprep.mubr.bf16.mxu0 %v12764_v28  ;;  %v25554_v11 = vld [vmem:[#allocation2 + $0xb8] sm:$0xff]   ;;  %v12775_v51 = vor.u32 %v12773_v59, %v12771_v2  ;;  %v12787_v6 = vrot.slane %v12785_v25, 1  ;;  %v12789_v54 = vshrl.u32 %v25551_v15, 16  ;;  %v25588_v23 = vld [vmem:[#allocation2 + $0x24] sm:$0xff]  }
 0x7a7   : > { %v12772_v44 = vsel %vm1092_vm3, %v12767_v55, %v12771_v2  ;;  %v12793_v21 = vshll.u32 %v25554_v11, 16  ;;  %v12783_v5 = vor.u32 %v12781_v33, %v12779_v29  ;;  %v12797_v8 = vshrl.u32 %v25554_v11, 16  ;;  %v25584_v10 = vld [vmem:[#allocation2 + $0x10] sm:$0xf]  ;;  %v25586_v14 = vld [vmem:[#allocation2 + $0x1c] sm:$0xff]   ;;  %v25596_v32 = vld [vmem:[#allocation2 + $0x44] sm:$0xff]  }
 0x7a8   : > { %v12780_v0 = vsel %vm1092_vm3, %v12775_v51, %v12779_v29  ;;  %v12791_v1 = vor.u32 %v12789_v54, %v12787_v6  ;;  %v25590_v38 = vld [vmem:[#allocation2 + $0x2c] sm:$0xff]   ;;  %v25594_v26 = vld [vmem:[#allocation2 + $0x3c] sm:$0xff]   ;;  %v15028_v48 = vrot.slane %v25582_v4, 1  ;;  %v22449_v12 = vld [vmem:[#allocation8 + $0xa8] sm:$0xff]   ;;  %v15030_v28 = vrot.slane %v25586_v14, 1 }
 0x7a9   : > { %v12795_v60 = vrot.slane %v12793_v21, 1  ;;  %v12788_v18 = vsel %vm1092_vm3, %v12783_v5, %v12787_v6  ;;  %v15023_v62 = vld [vmem:[#allocation2 + $0xc] sm:$0xe]  ;;  %v25603_v56 = vld [vmem:[#allocation2 + $0x54] sm:$0xff]   ;;  %v25605_v50 = vld [vmem:[#allocation2 + $0x5c] sm:$0xff]   ;;  %v15032_v2 = vrot.slane %v25588_v23, 1 }
 0x7aa   : > { %v17982_v24 = vcombine.low %v15023_v62, %v25584_v10  ;;  %v25600_v49 = vld [vmem:[#allocation2 + $0x4c] sm:$0xff]   ;;  %v25607_v61 = vld [vmem:[#allocation2 + $0x64] sm:$0xff]   ;;  %v15034_v55 = vrot.slane %v25590_v38, 1  ;;  %v25616_v51 = vld [vmem:[#allocation2 + $0x74] sm:$0xff]   ;;  %v15038_v21 = vrot.slane %v25594_v26, 1 }
 0x7ab   : > { %v12796_v37 = vsel %vm1092_vm3, %v12791_v1, %v12795_v60  ;;  %v12799_v52 = vor.u32 %v12797_v8, %v12795_v60  ;;  %v25611_v59 = vld [vmem:[#allocation2 + $0x28] sm:$0xff]   ;;  %v25618_v25 = vld [vmem:[#allocation2 + $0x7c] sm:$0xff]   ;;  %v25625_v33 = vld [vmem:[#allocation2 + $0x30] sm:$0xff]   ;;  %v25634_v54 = vsel %vm1887_vm4, %v15030_v28, %v15032_v2  ;;  %v15040_v60 = vrot.slane %v25596_v32, 1 }
 0x7ac   : > { %v25561_v63 = vld [vmem:[#allocation2 + $0xc0] ss:$0 sps:$4 sm:$0x11]   ;;  %v15027_v30 = vrot.slane %v17982_v24, 1  ;;  %v25614_v29 = vld [vmem:[#allocation2 + $0x6c] sm:$0xff]   ;;  %v25628_v6 = vld [vmem:[#allocation2 + $0x84] sm:$0xff]  }
 0x7ad   : > { %20239 = vmatmul.mubr.bf16.gmra.mrb[84].mxu0 %v12772_v44  ;;  %v12801_v43 = vshll.u32 %v25561_v63, 16  ;;  %v25621_v44 = vsel %vm1887_vm4, %v15028_v48, %v15030_v28  ;;  %26431 = vst [vmem:[#allocation22_spill] sm:$0xff] %v25634_v54  ;;  %v22450_v1 = vld [vmem:[#allocation8 + $0xb0] sm:$0xff]   ;;  %v25663_v62 = vld [vmem:[#allocation2 + $0xb4] sm:$0xff]   ;;  %v25665_v24 = vld [vmem:[#allocation2 + $0xbc] sm:$0xff]   ;;  %v15050_v28 = vrot.slane %v25614_v29, 1 }
 0x7ae   : > { %20242 = vmatprep.mubr.bf16.mxu0 %v12780_v0  ;;  %26429 = vst [vmem:[#allocation50_spill] sm:$0xff] %v25621_v44  ;;  %v15036_v0 = vrot.slane %v25592_v20, 1  ;;  %v25631_v5 = vsel %vm1887_vm4, %v15027_v30, %v15028_v48  ;;  %26441 = vst [vmem:[#allocation28_spill] sm:$0xff] %v25663_v62  ;;  %v15052_v30 = vrot.slane %v25616_v51, 1 }
 0x7af   : > { %v12803_v40 = vrot.slane %v12801_v43, 1  ;;  %26430 = vst [vmem:[#allocation20_spill] sm:$0xff] %v25631_v5  ;;  %v25640_v43 = vsel %vm1887_vm4, %v15032_v2, %v15034_v55  ;;  %26442 = vst [vmem:[#allocation33_spill] sm:$0xff] %v25665_v24  ;;  %v15054_v2 = vrot.slane %v25618_v25, 1 }
 0x7b0   : > { %26433 = vst [vmem:[#allocation24_spill] sm:$0xff] %v25640_v43  ;;  %v25646_v8 = vsel %vm1887_vm4, %v15036_v0, %v15038_v21  ;;  %v25703_v43 = vld [vmem:[#allocation2 + $0x38] sm:$0xff]  }
 0x7b1   : > { %v12804_v13 = vsel %vm1092_vm3, %v12799_v52, %v12803_v40  ;;  %26435 = vst [vmem:[#allocation25_spill] sm:$0xff] %v25646_v8  ;;  %v15042_v52 = vrot.slane %v25600_v49, 1  ;;  %v25649_v40 = vld [vmem:[#allocation2 + $0x94] sm:$0xff]   ;;  %v25685_v8 = vld [vmem:[#allocation2 + $0xcc] ss:$0 sps:$4 sm:$0x11]  }
 0x7b2   : > { %26436 = vst [vmem:[#allocation23_spill] sm:$0xff] %v25649_v40  ;;  %26448 = vst [vmem:[#allocation39_spill] sm:$0xff] %v25685_v8 }
 0x7b3   : > { %v25668_v48 = vsel %vm1887_vm4, %v15040_v60, %v15042_v52 }
 0x7b4   : > { %26443 = vst [vmem:[#allocation31_spill] sm:$0xff] %v25668_v48  ;;  %v22451_v48 = vld [vmem:[#allocation8 + $0xb8] sm:$0xff]  }
 0x7b5   : > { %20243 = vmatmul.mubr.bf16.gmra.mrb[88].mxu0 %v12788_v18  ;;  %v25637_v18 = vld [vmem:[#allocation2 + $0x8c] sm:$0xff]  }
 0x7b6   : > { %20246 = vmatprep.mubr.bf16.mxu0 %v12796_v37  ;;  %26432 = vst [vmem:[#allocation19_spill] sm:$0xff] %v25637_v18  ;;  %v25643_v37 = vsel %vm1887_vm4, %v15034_v55, %v15036_v0  ;;  %v25673_v55 = vld [vmem:[#allocation2 + $0xc4] sm:$0xff]  }
 0x7b7   : > { %26434 = vst [vmem:[#allocation21_spill] sm:$0xff] %v25643_v37  ;;  %26444 = vst [vmem:[#allocation34_spill] sm:$0xff] %v25673_v55 }
 0x7bd   : > { %20247 = vmatmul.mubr.bf16.gmra.mrb[92].mxu0 %v12804_v13  ;;  %v25651_v13 = vld [vmem:[#allocation2 + $0x9c] sm:$0xff]  }
 0x7be   : > { %20266 = vmatprep.mubr.bf16.mxu0 %v26428_v53  ;;  %26437 = vst [vmem:[#allocation27_spill] sm:$0xff] %v25651_v13  ;;  %v25653_v53 = vld [vmem:[#allocation2 + $0xa4] sm:$0xff]  }
 0x7bf   : > { %26438 = vst [vmem:[#allocation29_spill] sm:$0xff] %v25653_v53 }
 0x7c5   : > { %20267 = vmatmul.mubr.bf16.vlgmr.msra.gmra.mrb[48].mxu0 %v25570_v34 }
 0x7c6   : > { %20270 = vmatprep.mubr.bf16.mxu0 %v25573_v22  ;;  %20315 = vmatpush3.bf16.msra.mxu0 %v22674_v45  ;;  %v15044_v45 = vrot.slane %v25603_v56, 1 }
 0x7c7   : > { %20316 = vmatprep.subr.bf16.mxu0 %v22445_v39 }
 0x7c8   : > { %v25676_v0 = vsel %vm1887_vm4, %v15042_v52, %v15044_v45  ;;  %v25694_v52 = vsel %vm1887_vm4, %v15052_v30, %v15054_v2 }
 0x7c9   : > { %26445 = vst [vmem:[#allocation32_spill] sm:$0xff] %v25676_v0  ;;  %26451 = vst [vmem:[#allocation38_spill] sm:$0xff] %v25694_v52  ;;  %v15064_v0 = vrot.slane %v25653_v53, 1  ;;  %v22587_v53 = vld [vmem:[#allocation2 + $0x90] sm:$0xff]  }
 0x7ca   : > { %20317 = vmatpush3.bf16.msra.mxu0 %v22445_v39  ;;  %v25656_v39 = vsel %vm1887_vm4, %v15038_v21, %v15040_v60  ;;  %v15056_v60 = vrot.slane %v25628_v6, 1 }
 0x7cb   : > { %20318 = vmatprep.subr.bf16.mxu0 %v22446_v31  ;;  %26439 = vst [vmem:[#allocation26_spill] sm:$0xff] %v25656_v39 }
 0x7cd   : > { %20271 = vmatmul.mubr.bf16.gmra.mrb[52].mxu0 %v25576_v19 }
 0x7ce   : > { %20274 = vmatprep.mubr.bf16.mxu0 %v25579_v9  ;;  %20319 = vmatpush3.bf16.msra.mxu0 %v22446_v31  ;;  %v15046_v31 = vrot.slane %v25605_v50, 1 }
 0x7cf   : > { %20320 = vmatprep.subr.bf16.mxu0 %v22447_v35 }
 0x7d0   : > { %v25679_v21 = vsel %vm1887_vm4, %v15044_v45, %v15046_v31  ;;  %v15058_v45 = vrot.slane %v25637_v18, 1  ;;  %v22592_v18 = vld [vmem:[#allocation2 + $0xb0] sm:$0xff]  }
 0x7d1   : > { %26446 = vst [vmem:[#allocation36_spill] sm:$0xff] %v25679_v21  ;;  %v15062_v21 = vrot.slane %v25651_v13, 1 }
 0x7d2   : > { %20321 = vmatpush3.bf16.msra.mxu0 %v22447_v35  ;;  %v15048_v35 = vrot.slane %v25607_v61, 1 }
 0x7d3   : > { %20322 = vmatprep.subr.bf16.mxu0 %v22448_v47 }
 0x7d4   : > { %v25682_v39 = vsel %vm1887_vm4, %v15046_v31, %v15048_v35  ;;  %v25688_v37 = vsel %vm1887_vm4, %v15048_v35, %v15050_v28  ;;  %v25698_v31 = vsel %vm1887_vm4, %v15054_v2, %v15056_v60  ;;  %v25707_v35 = vsel %vm1887_vm4, %v15056_v60, %v15058_v45 }
 0x7d5   : > { %20275 = vmatmul.mubr.bf16.gmra.mrb[56].mxu0 %v25611_v59  ;;  %26447 = vst [vmem:[#allocation35_spill] sm:$0xff] %v25682_v39  ;;  %26449 = vst [vmem:[#allocation37_spill] sm:$0xff] %v25688_v37  ;;  %v15060_v39 = vrot.slane %v25649_v40, 1  ;;  %v15070_v2 = vrot.slane %v25665_v24, 1  ;;  %v25722_v60 = vsel %vm1887_vm4, %v15062_v21, %v15064_v0  ;;  %v25725_v37 = vld [vmem:[#allocation8 + $0xc0] sm:$0xff]   ;;  %v22585_v24 = vld [vmem:[#allocation2 + $0x88] sm:$0xff]  }
 0x7d6   : > { %20278 = vmatprep.mubr.bf16.mxu0 %v25625_v33  ;;  %20323 = vmatpush3.bf16.msra.mxu0 %v22448_v47  ;;  %v25661_v47 = vld [vmem:[#allocation2 + $0xac] sm:$0xff]   ;;  %26452 = vst [vmem:[#allocation43_spill] sm:$0xff] %v25698_v31  ;;  %26453 = vst [vmem:[#allocation41_spill] sm:$0xff] %v25707_v35  ;;  %v25712_v31 = vld [vmem:[#allocation2 + $0x40] sm:$0xff]   ;;  %v15072_v35 = vrot.slane %v25673_v55, 1 }
 0x7d7   : > { %20324 = vmatprep.subr.bf16.mxu0 %v22449_v12  ;;  %26440 = vst [vmem:[#allocation30_spill] sm:$0xff] %v25661_v47  ;;  %v25716_v52 = vsel %vm1887_vm4, %v15058_v45, %v15060_v39  ;;  %26456 = vst [vmem:[#allocation47_spill] sm:$0xff] %v25722_v60  ;;  %v25744_v60 = vld [vmem:[#allocation2 + $0x48] sm:$0xff]   ;;  %v22584_v55 = vld [vmem:[#allocation2 + $0x80] sm:$0xff]  }
 0x7d8   : > { %26454 = vst [vmem:[#allocation44_spill] sm:$0xff] %v25716_v52  ;;  %v25738_v45 = vsel %vm1887_vm4, %v15070_v2, %v15072_v35  ;;  %v22588_v40 = vld [vmem:[#allocation2 + $0x98] sm:$0xff]  }
 0x7d9   : > { %26460 = vst [vmem:[#allocation52_spill] sm:$0xff] %v25738_v45  ;;  %v16647_v45 = vld [vmem:[#allocation2 + $0x18] sm:$0xe] }
 0x7da   : > { %20325 = vmatpush3.bf16.msra.mxu0 %v22449_v12  ;;  %v25691_v12 = vsel %vm1887_vm4, %v15050_v28, %v15052_v30  ;;  %v15066_v28 = vrot.slane %v25661_v47, 1  ;;  %v15068_v30 = vrot.slane %v25663_v62, 1 }
 0x7db   : > { %20326 = vmatprep.subr.bf16.mxu0 %v22450_v1  ;;  %26450 = vst [vmem:[#allocation40_spill] sm:$0xff] %v25691_v12  ;;  %v25719_v12 = vsel %vm1887_vm4, %v15060_v39, %v15062_v21  ;;  %v15074_v39 = vrot.slane %v25685_v8, 1  ;;  %v22583_v8 = vld [vmem:[#allocation2 + $0x78] sm:$0xff]  }
 0x7dc   : > { %26455 = vst [vmem:[#allocation42_spill] sm:$0xff] %v25719_v12  ;;  %v25728_v54 = vsel %vm1887_vm4, %v15064_v0, %v15066_v28  ;;  %v25731_v44 = vsel %vm1887_vm4, %v15066_v28, %v15068_v30  ;;  %v25747_v0 = vld [vmem:[#allocation2 + $0x50] sm:$0xff]   ;;  %v22569_v28 = vld [vmem:[#allocation2 + $0x28] sm:$0xff]  }
 0x7dd   : > { %20279 = vmatmul.mubr.bf16.gmra.mrb[60].mxu0 %v25703_v43  ;;  %26457 = vst [vmem:[#allocation45_spill] sm:$0xff] %v25728_v54  ;;  %26458 = vst [vmem:[#allocation51_spill] sm:$0xff] %v25731_v44  ;;  %v25741_v21 = vsel %vm1887_vm4, %v15072_v35, %v15074_v39  ;;  %v15935_v35 = vld [vmem:[#allocation2 + $0x1c] sm:$0xf]  ;;  %v22573_v39 = vld [vmem:[#allocation2 + $0x40] sm:$0xff]   ;;  %v16654_v12 = vrot.slane %v22569_v28, 1 }
 0x7de   : > { %20282 = vmatprep.mubr.bf16.mxu0 %v25712_v31  ;;  %20327 = vmatpush3.bf16.msra.mxu0 %v22450_v1  ;;  %v25734_v1 = vsel %vm1887_vm4, %v15068_v30, %v15070_v2  ;;  %26461 = vst [vmem:[#allocation53_spill] sm:$0xff] %v25741_v21  ;;  %v22571_v30 = vld [vmem:[#allocation2 + $0x30] sm:$0xff]   ;;  %v22572_v2 = vld [vmem:[#allocation2 + $0x38] sm:$0xff]   ;;  %v22575_v21 = vld [vmem:[#allocation2 + $0x48] sm:$0xff]   ;;  %v18056_v44 = vcombine.low %v16647_v45, %v15935_v35  ;;  %v16660_v45 = vrot.slane %v22573_v39, 1 }
 0x7df   : > { %20328 = vmatprep.subr.bf16.mxu0 %v22451_v48  ;;  %26459 = vst [vmem:[#allocation46_spill] sm:$0xff] %v25734_v1  ;;  %v22576_v1 = vld [vmem:[#allocation2 + $0x50] sm:$0xff]   ;;  %v22577_v54 = vld [vmem:[#allocation2 + $0x58] sm:$0xff]   ;;  %v16656_v5 = vrot.slane %v22571_v30, 1  ;;  %v16658_v47 = vrot.slane %v22572_v2, 1  ;;  %v16662_v35 = vrot.slane %v22575_v21, 1 }
 0x7e0   : > { %v16651_v52 = vrot.slane %v18056_v44, 1  ;;  %v16664_v13 = vrot.slane %v22576_v1, 1  ;;  %v16666_v2 = vrot.slane %v22577_v54, 1  ;;  %v22589_v21 = vld [vmem:[#allocation2 + $0xa0] sm:$0xff]   ;;  %v22591_v39 = vld [vmem:[#allocation2 + $0xa8] sm:$0xff]  }
 0x7e1   : > { %v25763_v28 = vsel %vm1887_vm4, %v16654_v12, %v16656_v5  ;;  %v25766_v44 = vsel %vm1887_vm4, %v16656_v5, %v16658_v47  ;;  %v25769_v30 = vsel %vm1887_vm4, %v16658_v47, %v16660_v45  ;;  %v25777_v5 = vld [vmem:[#allocation2 + $0xc8] sm:$0xff]  }
 0x7e2   : > { %20329 = vmatpush3.bf16.msra.mxu0 %v22451_v48  ;;  %v22568_v48 = vld [vmem:[#allocation2 + $0x20] sm:$0xff]   ;;  %26464 = vst [vmem:[#allocation54_spill] sm:$0xff] %v25763_v28  ;;  %26465 = vst [vmem:[#allocation55_spill] sm:$0xff] %v25766_v44  ;;  %v22593_v28 = vld [vmem:[#allocation2 + $0xb8] sm:$0xff]   ;;  %v25780_v47 = vsel %vm1887_vm4, %v16664_v13, %v16666_v2 }
 0x7e3   : > { %20378 = vmatprep.subr.bf16.mxu0 %v25725_v37  ;;  %26466 = vst [vmem:[#allocation56_spill] sm:$0xff] %v25769_v30  ;;  %v16674_v30 = vrot.slane %v22583_v8, 1 }
 0x7e5   : > { %20283 = vmatmul.mubr.bf16.gmra.mrb[64].mxu0 %v25744_v60 }
 0x7e6   : > { %20286 = vmatprep.mubr.bf16.mxu0 %v25747_v0 }
 0x7ed   : > { %20287 = vmatmul.mubr.bf16.gmra.mrb[68].mxu0 %v25408_v7  ;;  %v16652_v7 = vrot.slane %v22568_v48, 1 }
 0x7ee   : > { %20290 = vmatprep.mubr.bf16.mxu0 %v25427_v42  ;;  %v22579_v42 = vld [vmem:[#allocation2 + $0x60] sm:$0xff]  }
 0x7ef   : > { %v25757_v62 = vsel %vm1887_vm4, %v16652_v7, %v16654_v12  ;;  %v25760_v48 = vsel %vm1887_vm4, %v16651_v52, %v16652_v7  ;;  %v25775_v52 = vsel %vm1887_vm4, %v16662_v35, %v16664_v13  ;;  %v16668_v12 = vrot.slane %v22579_v42, 1 }
 0x7f0   : > { %26462 = vst [vmem:[#allocation48_spill] sm:$0xff] %v25757_v62  ;;  %26463 = vst [vmem:[#allocation49_spill] sm:$0xff] %v25760_v48  ;;  %v25772_v62 = vsel %vm1887_vm4, %v16660_v45, %v16662_v35  ;;  %v22595_v48 = vld [vmem:[#allocation2 + $0xc0] sm:$0xff]   ;;  %v16676_v45 = vrot.slane %v22584_v55, 1  ;;  %v16684_v35 = vrot.slane %v22589_v21, 1 }
 0x7f1   : > { %26467 = vst [vmem:[#allocation57_spill] sm:$0xff] %v25772_v62  ;;  %v16678_v62 = vrot.slane %v22585_v24, 1  ;;  %v25783_v54 = vsel %vm1887_vm4, %v16666_v2, %v16668_v12  ;;  %v16682_v24 = vrot.slane %v22588_v40, 1  ;;  %v16686_v2 = vrot.slane %v22591_v39, 1  ;;  %v22683_v21 = vld [vmem:[#allocation2 + $0x4] sm:$0xf] }
 0x7f2   : > { %v25796_v13 = vsel %vm1887_vm4, %v16674_v30, %v16676_v45 }
 0x7f3   : > { %26468 = vst [vmem:[#allocation58_spill] sm:$0xff] %v25796_v13  ;;  %v25799_v8 = vsel %vm1887_vm4, %v16676_v45, %v16678_v62  ;;  %v25810_v13 = vsel %vm1887_vm4, %v16682_v24, %v16684_v35  ;;  %v25813_v40 = vsel %vm1887_vm4, %v16684_v35, %v16686_v2 }
 0x7f5   : > { %20291 = vmatmul.mubr.bf16.gmra.mrb[72].mxu0 %v25440_v16  ;;  %v22580_v16 = vld [vmem:[#allocation2 + $0x68] sm:$0xff]  }
 0x7f6   : > { %20294 = vmatprep.mubr.bf16.mxu0 %v25462_v46  ;;  %v22581_v46 = vld [vmem:[#allocation2 + $0x70] sm:$0xff]   ;;  %v16670_v7 = vrot.slane %v22580_v16, 1  ;;  %v16680_v16 = vrot.slane %v22587_v53, 1  ;;  %v16688_v53 = vrot.slane %v22592_v18, 1 }
 0x7f7   : > { %v16672_v1 = vrot.slane %v22581_v46, 1 }
 0x7f8   : > { %v25786_v44 = vsel %vm1887_vm4, %v16668_v12, %v16670_v7  ;;  %v25803_v55 = vsel %vm1887_vm4, %v16678_v62, %v16680_v16  ;;  %v25806_v12 = vsel %vm1887_vm4, %v16680_v16, %v16682_v24  ;;  %v25816_v45 = vsel %vm1887_vm4, %v16686_v2, %v16688_v53 }
 0x7f9   : > { %v25789_v42 = vsel %vm1887_vm4, %v16670_v7, %v16672_v1  ;;  %v25793_v46 = vsel %vm1887_vm4, %v16672_v1, %v16674_v30  ;;  %v16690_v7 = vrot.slane %v22593_v28, 1  ;;  %v16692_v1 = vrot.slane %v22595_v48, 1  ;;  %v13399_v28 = vld [vmem:[#allocation2] sm:$0xe] }
 0x7fa   : > { %v16694_v30 = vrot.slane %v25777_v5, 1  ;;  %v17908_v39 = vcombine.low %v13399_v28, %v22683_v21  ;;  %v13404_v24 = vrot.slane %v25570_v34, 1  ;;  %v13406_v2 = vrot.slane %v25573_v22, 1  ;;  %v22455_v34 = vld [vmem:[#allocation8 + $0xd0] sm:$0xff]   ;;  %v22456_v22 = vld [vmem:[#allocation8 + $0xd8] sm:$0xff]  }
 0x7fb   : > { %v25819_v62 = vsel %vm1887_vm4, %v16688_v53, %v16690_v7  ;;  %v25822_v18 = vsel %vm1887_vm4, %v16690_v7, %v16692_v1  ;;  %v13408_v53 = vrot.slane %v25576_v19, 1  ;;  %v22454_v7 = vld [vmem:[#allocation8 + $0xc8] sm:$0xff]   ;;  %v13410_v21 = vrot.slane %v25579_v9, 1 }
 0x7fc   : > { %v25827_v48 = vsel %vm1887_vm4, %v16692_v1, %v16694_v30  ;;  %v13403_v16 = vrot.slane %v17908_v39, 1  ;;  %v13407_v1 = vsel %vm1887_vm4, %v13404_v24, %v13406_v2  ;;  %v13412_v39 = vrot.slane %v25611_v59, 1  ;;  %v22458_v9 = vld [vmem:[#allocation8 + $0xe8] sm:$0xff]  }
 0x7fd   : > { %20295 = vmatmul.mubr.bf16.gmra.mrb[76].mxu0 %v25484_v58  ;;  %v13409_v28 = vsel %vm1887_vm4, %v13406_v2, %v13408_v53  ;;  %v13411_v19 = vsel %vm1887_vm4, %v13408_v53, %v13410_v21  ;;  %v22459_v53 = vld [vmem:[#allocation8 + $0xf0] sm:$0xff]  }
 0x7fe   : > { %20298 = vmatprep.mubr.bf16.mxu0 %v25498_v17  ;;  %v13405_v35 = vsel %vm1887_vm4, %v13403_v16, %v13404_v24  ;;  %v13413_v16 = vsel %vm1887_vm4, %v13410_v21, %v13412_v39  ;;  %v22457_v24 = vld [vmem:[#allocation8 + $0xe0] sm:$0xff]   ;;  %v13422_v21 = vrot.slane %v25747_v0, 1  ;;  %v22687_v0 = vld [vmem:[#allocation2 + $0x70] sm:$0xff]  }
 0x805   : > { %20299 = vmatmul.mubr.bf16.gmra.mrb[80].mxu0 %v25512_v41 }
 0x806   : > { %20302 = vmatprep.mubr.bf16.mxu0 %v25514_v57 }
 0x80d   : > { %20303 = vmatmul.mubr.bf16.gmra.mrb[84].mxu0 %v25526_v36 }
 0x80e   : > { %20306 = vmatprep.mubr.bf16.mxu0 %v25531_v3 }
 0x815   : > { %20307 = vmatmul.mubr.bf16.gmra.mrb[88].mxu0 %v25536_v27 }
 0x816   : > { %20310 = vmatprep.mubr.bf16.mxu0 %v25551_v15 }
 0x81d   : > { %20311 = vmatmul.mubr.bf16.gmra.mrb[92].mxu0 %v25554_v11 }
 0x81e   : > { %20330 = vmatprep.mubr.bf16.mxu0 %v13405_v35  ;;  %v13416_v35 = vrot.slane %v25703_v43, 1 }
 0x825   : > { %20331 = vmatmul.mubr.bf16.vlgmr.msra.gmra.mrb[48].mxu0 %v13407_v1  ;;  %v13420_v1 = vrot.slane %v25744_v60, 1 }
 0x826   : > { %20334 = vmatprep.mubr.bf16.mxu0 %v13409_v28  ;;  %20379 = vmatpush3.bf16.msra.mxu0 %v25725_v37  ;;  %v13414_v37 = vrot.slane %v25625_v33, 1  ;;  %v22460_v33 = vld [vmem:[#allocation8 + $0xf8] sm:$0xff]  }
 0x827   : > { %20380 = vmatprep.subr.bf16.mxu0 %v22454_v7 }
 0x828   : > { %v13415_v59 = vsel %vm1887_vm4, %v13412_v39, %v13414_v37  ;;  %v13417_v2 = vsel %vm1887_vm4, %v13414_v37, %v13416_v35  ;;  %v22684_v39 = vld [vmem:[#allocation2 + $0x58] sm:$0xff]  }
 0x82a   : > { %20381 = vmatpush3.bf16.msra.mxu0 %v22454_v7  ;;  %v13418_v7 = vrot.slane %v25712_v31, 1  ;;  %v13423_v31 = vsel %vm1887_vm4, %v13420_v1, %v13422_v21 }
 0x82b   : > { %20382 = vmatprep.subr.bf16.mxu0 %v22455_v34 }
 0x82c   : > { %v13419_v43 = vsel %vm1887_vm4, %v13416_v35, %v13418_v7  ;;  %v13421_v28 = vsel %vm1887_vm4, %v13418_v7, %v13420_v1  ;;  %v13434_v1 = vrot.slane %v25498_v17, 1  ;;  %v13442_v17 = vrot.slane %v25531_v3, 1 }
 0x82d   : > { %20335 = vmatmul.mubr.bf16.gmra.mrb[52].mxu0 %v13411_v19  ;;  %v22685_v19 = vld [vmem:[#allocation2 + $0x60] sm:$0xff]   ;;  %v13450_v3 = vrot.slane %v25561_v63, 1 }
 0x82e   : > { %20338 = vmatprep.mubr.bf16.mxu0 %v13413_v16  ;;  %20383 = vmatpush3.bf16.msra.mxu0 %v22455_v34  ;;  %v22463_v34 = vld [vmem:[#allocation8 + $0x100] sm:$0xff]   ;;  %v13426_v16 = vrot.slane %v22685_v19, 1 }
 0x82f   : > { %20384 = vmatprep.subr.bf16.mxu0 %v22456_v22  ;;  %v22479_v63 = vld [vmem:[#allocation8 + $0x120] sm:$0xff]  }
 0x832   : > { %20385 = vmatpush3.bf16.msra.mxu0 %v22456_v22  ;;  %v13424_v22 = vrot.slane %v22684_v39, 1 }
 0x833   : > { %20386 = vmatprep.subr.bf16.mxu0 %v22457_v24 }
 0x834   : > { %v13425_v60 = vsel %vm1887_vm4, %v13422_v21, %v13424_v22  ;;  %v13427_v35 = vsel %vm1887_vm4, %v13424_v22, %v13426_v16  ;;  %v13438_v21 = vrot.slane %v25514_v57, 1  ;;  %v13446_v57 = vrot.slane %v25551_v15, 1  ;;  %v22471_v15 = vld [vmem:[#allocation8 + $0x110] sm:$0xff]  }
 0x835   : > { %20339 = vmatmul.mubr.bf16.gmra.mrb[56].mxu0 %v13415_v59  ;;  %v13430_v59 = vrot.slane %v22687_v0, 1  ;;  %v22475_v0 = vld [vmem:[#allocation8 + $0x118] sm:$0xff]  }
 0x836   : > { %20342 = vmatprep.mubr.bf16.mxu0 %v13417_v2  ;;  %20387 = vmatpush3.bf16.msra.mxu0 %v22457_v24  ;;  %v22686_v24 = vld [vmem:[#allocation2 + $0x68] sm:$0xff]   ;;  %v13432_v2 = vrot.slane %v25484_v58, 1  ;;  %v13440_v58 = vrot.slane %v25526_v36, 1  ;;  %v13448_v36 = vrot.slane %v25554_v11, 1 }
 0x837   : > { %20388 = vmatprep.subr.bf16.mxu0 %v22458_v9  ;;  %v13428_v37 = vrot.slane %v22686_v24, 1  ;;  %v22461_v24 = vld [vmem:[#allocation2 + $0xc] sm:$0xff]   ;;  %v22465_v11 = vld [vmem:[#allocation2 + $0x24] sm:$0xff]  }
 0x838   : > { %v13433_v7 = vsel %vm1887_vm4, %v13430_v59, %v13432_v2  ;;  %v13441_v22 = vsel %vm1887_vm4, %v13438_v21, %v13440_v58 }
 0x83a   : > { %20389 = vmatpush3.bf16.msra.mxu0 %v22458_v9  ;;  %v13429_v9 = vsel %vm1887_vm4, %v13426_v16, %v13428_v37  ;;  %v13449_v16 = vsel %vm1887_vm4, %v13446_v57, %v13448_v36 }
 0x83b   : > { %20390 = vmatprep.subr.bf16.mxu0 %v22459_v53 }
 0x83d   : > { %20343 = vmatmul.mubr.bf16.gmra.mrb[60].mxu0 %v13419_v43  ;;  %v13435_v43 = vsel %vm1887_vm4, %v13432_v2, %v13434_v1  ;;  %v22468_v2 = vld [vmem:[#allocation2 + $0x34] sm:$0xff]  }
 0x83e   : > { %20346 = vmatprep.mubr.bf16.mxu0 %v13421_v28  ;;  %20391 = vmatpush3.bf16.msra.mxu0 %v22459_v53  ;;  %v13431_v53 = vsel %vm1887_vm4, %v13428_v37, %v13430_v59  ;;  %v22462_v37 = vld [vmem:[#allocation2 + $0x14] sm:$0xff]   ;;  %v22466_v59 = vld [vmem:[#allocation2 + $0x2c] sm:$0xff]  }
 0x83f   : > { %20392 = vmatprep.subr.bf16.mxu0 %v22460_v33 }
 0x842   : > { %20393 = vmatpush3.bf16.msra.mxu0 %v22460_v33  ;;  %v13436_v33 = vrot.slane %v25512_v41, 1  ;;  %v13444_v41 = vrot.slane %v25536_v27, 1  ;;  %v13451_v27 = vsel %vm1887_vm4, %v13448_v36, %v13450_v3  ;;  %v22485_v36 = vld [vmem:[#allocation2 + $0x9c] sm:$0xff]   ;;  %v14310_v3 = vld [vmem:[#allocation2 + $0xc] sm:$0xf] }
 0x843   : > { %20442 = vmatprep.subr.bf16.mxu0 %v22463_v34 }
 0x844   : > { %v13437_v28 = vsel %vm1887_vm4, %v13434_v1, %v13436_v33  ;;  %v13439_v39 = vsel %vm1887_vm4, %v13436_v33, %v13438_v21  ;;  %v13447_v19 = vsel %vm1887_vm4, %v13444_v41, %v13446_v57  ;;  %v22470_v1 = vld [vmem:[#allocation2 + $0x44] sm:$0xff]   ;;  %v22491_v33 = vld [vmem:[#allocation8 + $0x138] sm:$0xff]  }
 0x845   : > { %20347 = vmatmul.mubr.bf16.gmra.mrb[64].mxu0 %v13423_v31  ;;  %v13443_v31 = vsel %vm1887_vm4, %v13440_v58, %v13442_v17  ;;  %v22473_v21 = vld [vmem:[#allocation2 + $0x54] sm:$0xff]   ;;  %v22474_v58 = vld [vmem:[#allocation2 + $0x5c] sm:$0xff]  }
 0x846   : > { %20350 = vmatprep.mubr.bf16.mxu0 %v13425_v60  ;;  %v13445_v60 = vsel %vm1887_vm4, %v13442_v17, %v13444_v41  ;;  %v22478_v17 = vld [vmem:[#allocation2 + $0x74] sm:$0xff]   ;;  %v22480_v41 = vld [vmem:[#allocation2 + $0x7c] sm:$0xff]  }
 0x847   : > { %v22484_v57 = vld [vmem:[#allocation2 + $0x94] sm:$0xff]  }
 0x84d   : > { %20351 = vmatmul.mubr.bf16.gmra.mrb[68].mxu0 %v13427_v35  ;;  %v22467_v35 = vld [vmem:[#allocation8 + $0x108] sm:$0xff]  }
 0x84e   : > { %20354 = vmatprep.mubr.bf16.mxu0 %v13429_v9  ;;  %v22464_v9 = vld [vmem:[#allocation2 + $0x1c] sm:$0xff]  }
 0x855   : > { %20355 = vmatmul.mubr.bf16.gmra.mrb[72].mxu0 %v13431_v53  ;;  %v22483_v53 = vld [vmem:[#allocation8 + $0x128] sm:$0xff]  }
 0x856   : > { %20358 = vmatprep.mubr.bf16.mxu0 %v13433_v7  ;;  %v22469_v7 = vld [vmem:[#allocation2 + $0x3c] sm:$0xff]  }
 0x85d   : > { %20359 = vmatmul.mubr.bf16.gmra.mrb[76].mxu0 %v13435_v43  ;;  %v22472_v43 = vld [vmem:[#allocation2 + $0x4c] sm:$0xff]  }
 0x85e   : > { %20362 = vmatprep.mubr.bf16.mxu0 %v13437_v28  ;;  %v22496_v28 = vld [vmem:[#allocation8 + $0x140] sm:$0xff]  }
 0x865   : > { %20363 = vmatmul.mubr.bf16.gmra.mrb[80].mxu0 %v13439_v39  ;;  %v22476_v39 = vld [vmem:[#allocation2 + $0x64] sm:$0xff]  }
 0x866   : > { %20366 = vmatprep.mubr.bf16.mxu0 %v13441_v22  ;;  %v22477_v22 = vld [vmem:[#allocation2 + $0x6c] sm:$0xff]  }
 0x86d   : > { %20367 = vmatmul.mubr.bf16.gmra.mrb[84].mxu0 %v13443_v31  ;;  %v22481_v31 = vld [vmem:[#allocation2 + $0x84] sm:$0xff]  }
 0x86e   : > { %20370 = vmatprep.mubr.bf16.mxu0 %v13445_v60  ;;  %v22482_v60 = vld [vmem:[#allocation2 + $0x8c] sm:$0xff]  }
 0x875   : > { %20371 = vmatmul.mubr.bf16.gmra.mrb[88].mxu0 %v13447_v19  ;;  %v22486_v19 = vld [vmem:[#allocation2 + $0xa4] sm:$0xff]  }
 0x876   : > { %20374 = vmatprep.mubr.bf16.mxu0 %v13449_v16  ;;  %v22488_v16 = vld [vmem:[#allocation2 + $0xac] sm:$0xff]  }
 0x87d   : > { %20375 = vmatmul.mubr.bf16.gmra.mrb[92].mxu0 %v13451_v27  ;;  %v17949_v27 = vcombine.low %v14310_v3, %v25584_v10  ;;  %v14502_v10 = vshrl.u32 %v25586_v14, 16  ;;  %v22508_v3 = vld [vmem:[#allocation8 + $0x158] sm:$0xff]  }
 0x87e   : > { %20394 = vmatprep.mubr.bf16.mxu0 %v22461_v24 }
 0x87f   : > { %v14485_v24 = vshll.u32 %v17949_v27, 16 }
 0x885   : > { %20395 = vmatmul.mubr.bf16.vlgmr.msra.gmra.mrb[48].mxu0 %v22462_v37  ;;  %v22489_v37 = vld [vmem:[#allocation2 + $0xb4] sm:$0xff]  }
 0x886   : > { %20398 = vmatprep.mubr.bf16.mxu0 %v22464_v9  ;;  %20443 = vmatpush3.bf16.msra.mxu0 %v22463_v34  ;;  %v22487_v34 = vld [vmem:[#allocation8 + $0x130] sm:$0xff]   ;;  %v14487_v9 = vrot.slane %v14485_v24, 1  ;;  %v14534_v24 = vshrl.u32 %v25594_v26, 16 }
 0x887   : > { %20444 = vmatprep.subr.bf16.mxu0 %v22467_v35 }
 0x88a   : > { %20445 = vmatpush3.bf16.msra.mxu0 %v22467_v35  ;;  %v22490_v35 = vld [vmem:[#allocation2 + $0xbc] sm:$0xff]  }
 0x88b   : > { %20446 = vmatprep.subr.bf16.mxu0 %v22471_v15 }
 0x88d   : > { %20399 = vmatmul.mubr.bf16.gmra.mrb[52].mxu0 %v22465_v11  ;;  %v14490_v11 = vshll.u32 %v25582_v4, 16 }
 0x88e   : > { %20402 = vmatprep.mubr.bf16.mxu0 %v22466_v59  ;;  %20447 = vmatpush3.bf16.msra.mxu0 %v22471_v15  ;;  %v14483_v15 = vshrl.u32 %v17949_v27, 16  ;;  %v14498_v59 = vshll.u32 %v25586_v14, 16  ;;  %v14518_v14 = vshrl.u32 %v25590_v38, 16 }
 0x88f   : > { %20448 = vmatprep.subr.bf16.mxu0 %v22475_v0 }
 0x892   : > { %20449 = vmatpush3.bf16.msra.mxu0 %v22475_v0  ;;  %v14488_v0 = vor.u32 %v14487_v9, %v14483_v15  ;;  %v14546_v15 = vshll.u32 %v25600_v49, 16 }
 0x893   : > { %20450 = vmatprep.subr.bf16.mxu0 %v22479_v63 }
 0x895   : > { %20403 = vmatmul.mubr.bf16.gmra.mrb[56].mxu0 %v22468_v2  ;;  %v14492_v2 = vrot.slane %v14490_v11, 1 }
 0x896   : > { %20406 = vmatprep.mubr.bf16.mxu0 %v22469_v7  ;;  %20451 = vmatpush3.bf16.msra.mxu0 %v22479_v63  ;;  %v22492_v63 = vld [vmem:[#allocation2 + $0xc4] sm:$0xff]   ;;  %v14500_v7 = vrot.slane %v14498_v59, 1 }
 0x897   : > { %20452 = vmatprep.subr.bf16.mxu0 %v22483_v53  ;;  %v22516_v59 = vld [vmem:[#allocation8 + $0x168] sm:$0xff]  }
 0x89a   : > { %20453 = vmatpush3.bf16.msra.mxu0 %v22483_v53  ;;  %v14493_v53 = vsel %vm1092_vm3, %v14488_v0, %v14492_v2 }
 0x89b   : > { %20454 = vmatprep.subr.bf16.mxu0 %v22487_v34 }
 0x89d   : > { %20407 = vmatmul.mubr.bf16.gmra.mrb[60].mxu0 %v22470_v1  ;;  %v14494_v1 = vshrl.u32 %v25582_v4, 16  ;;  %v22504_v4 = vld [vmem:[#allocation8 + $0x150] sm:$0xff]  }
 0x89e   : > { %20410 = vmatprep.mubr.bf16.mxu0 %v22472_v43  ;;  %20455 = vmatpush3.bf16.msra.mxu0 %v22487_v34  ;;  %v14506_v34 = vshll.u32 %v25588_v23, 16  ;;  %v14514_v43 = vshll.u32 %v25590_v38, 16 }
 0x89f   : > { %20456 = vmatprep.subr.bf16.mxu0 %v22491_v33 }
 0x8a2   : > { %20457 = vmatpush3.bf16.msra.mxu0 %v22491_v33  ;;  %v14504_v33 = vor.u32 %v14502_v10, %v14500_v7  ;;  %v14542_v10 = vshrl.u32 %v25596_v32, 16 }
 0x8a3   : > { %20506 = vmatprep.subr.bf16.mxu0 %v22496_v28 }
 0x8a5   : > { %20411 = vmatmul.mubr.bf16.gmra.mrb[64].mxu0 %v22473_v21  ;;  %v14496_v21 = vor.u32 %v14494_v1, %v14492_v2  ;;  %v14562_v1 = vshll.u32 %v25605_v50, 16 }
 0x8a6   : > { %20414 = vmatprep.mubr.bf16.mxu0 %v22474_v58  ;;  %v14508_v58 = vrot.slane %v14506_v34, 1 }
 0x8ad   : > { %20415 = vmatmul.mubr.bf16.gmra.mrb[68].mxu0 %v22476_v39  ;;  %v22500_v39 = vld [vmem:[#allocation8 + $0x148] sm:$0xff]  }
 0x8ae   : > { %20418 = vmatprep.mubr.bf16.mxu0 %v22477_v22  ;;  %v14501_v22 = vsel %vm1092_vm3, %v14496_v21, %v14500_v7  ;;  %v22520_v7 = vld [vmem:[#allocation8 + $0x170] sm:$0xff]   ;;  %v22524_v21 = vld [vmem:[#allocation8 + $0x178] sm:$0xff]  }
 0x8b5   : > { %20419 = vmatmul.mubr.bf16.gmra.mrb[72].mxu0 %v22478_v17  ;;  %v14509_v17 = vsel %vm1092_vm3, %v14504_v33, %v14508_v58 }
 0x8b6   : > { %20422 = vmatprep.mubr.bf16.mxu0 %v22480_v41  ;;  %v14516_v41 = vrot.slane %v14514_v43, 1 }
 0x8bd   : > { %20423 = vmatmul.mubr.bf16.gmra.mrb[76].mxu0 %v22481_v31  ;;  %v14522_v31 = vshll.u32 %v25592_v20, 16 }
 0x8be   : > { %20426 = vmatprep.mubr.bf16.mxu0 %v22482_v60  ;;  %v14510_v60 = vshrl.u32 %v25588_v23, 16  ;;  %v14538_v23 = vshll.u32 %v25596_v32, 16  ;;  %v14570_v32 = vshll.u32 %v25607_v61, 16 }
 0x8c0   : > { %v14540_v0 = vrot.slane %v14538_v23, 1 }
 0x8c2   : > { %v14544_v33 = vor.u32 %v14542_v10, %v14540_v0 }
 0x8c5   : > { %20427 = vmatmul.mubr.bf16.gmra.mrb[80].mxu0 %v22484_v57  ;;  %v14520_v57 = vor.u32 %v14518_v14, %v14516_v41 }
 0x8c6   : > { %20430 = vmatprep.mubr.bf16.mxu0 %v22485_v36  ;;  %v14530_v36 = vshll.u32 %v25594_v26, 16  ;;  %v14548_v26 = vrot.slane %v14546_v15, 1 }
 0x8c8   : > { %v14532_v38 = vrot.slane %v14530_v36, 1 }
 0x8ca   : > { %v14536_v9 = vor.u32 %v14534_v24, %v14532_v38 }
 0x8cc   : > { %v14541_v2 = vsel %vm1092_vm3, %v14536_v9, %v14540_v0  ;;  %v14590_v9 = vshrl.u32 %v25616_v51, 16 }
 0x8cd   : > { %20431 = vmatmul.mubr.bf16.gmra.mrb[84].mxu0 %v22486_v19  ;;  %v14512_v19 = vor.u32 %v14510_v60, %v14508_v58  ;;  %v14549_v58 = vsel %vm1092_vm3, %v14544_v33, %v14548_v26  ;;  %v14572_v60 = vrot.slane %v14570_v32, 1 }
 0x8ce   : > { %20434 = vmatprep.mubr.bf16.mxu0 %v22488_v16  ;;  %v14524_v16 = vrot.slane %v14522_v31, 1  ;;  %v14578_v31 = vshll.u32 %v25614_v29, 16 }
 0x8cf   : > { %v14517_v27 = vsel %vm1092_vm3, %v14512_v19, %v14516_v41  ;;  %v14558_v41 = vshrl.u32 %v25603_v56, 16  ;;  %v14582_v19 = vshrl.u32 %v25614_v29, 16  ;;  %v14602_v29 = vshll.u32 %v25628_v6, 16 }
 0x8d0   : > { %v14580_v36 = vrot.slane %v14578_v31, 1 }
 0x8d5   : > { %20435 = vmatmul.mubr.bf16.gmra.mrb[88].mxu0 %v22489_v37  ;;  %v22512_v37 = vld [vmem:[#allocation8 + $0x160] sm:$0xff]  }
 0x8d6   : > { %20438 = vmatprep.mubr.bf16.mxu0 %v22490_v35  ;;  %v14526_v35 = vshrl.u32 %v25592_v20, 16  ;;  %v14554_v20 = vshll.u32 %v25603_v56, 16  ;;  %v14574_v56 = vshrl.u32 %v25607_v61, 16  ;;  %v26469_v61 = vld [vmem:[#allocation19_spill] sm:$0xff] }
 0x8d8   : > { %v14528_v11 = vor.u32 %v14526_v35, %v14524_v16  ;;  %v14556_v43 = vrot.slane %v14554_v20, 1  ;;  %v14598_v35 = vshrl.u32 %v25618_v25, 16  ;;  %v26470_v20 = vld [vmem:[#allocation23_spill] sm:$0xff] }
 0x8d9   : > { %v14622_v32 = vshrl.u32 %v26470_v20, 16 }
 0x8dd   : > { %20439 = vmatmul.mubr.bf16.gmra.mrb[92].mxu0 %v22492_v63  ;;  %v14533_v63 = vsel %vm1092_vm3, %v14528_v11, %v14532_v38  ;;  %v14610_v11 = vshll.u32 %v26469_v61, 16 }
 0x8de   : > { %20458 = vmatprep.mubr.bf16.mxu0 %v14493_v53  ;;  %v14550_v53 = vshrl.u32 %v25600_v49, 16  ;;  %v14564_v49 = vrot.slane %v14562_v1, 1 }
 0x8e0   : > { %v14552_v34 = vor.u32 %v14550_v53, %v14548_v26  ;;  %v14612_v26 = vrot.slane %v14610_v11, 1  ;;  %v14614_v53 = vshrl.u32 %v26469_v61, 16 }
 0x8e2   : > { %v14616_v10 = vor.u32 %v14614_v53, %v14612_v26  ;;  %v26477_v53 = vld [vmem:[#allocation39_spill] sm:$0xff] }
 0x8e5   : > { %20459 = vmatmul.mubr.bf16.vlgmr.msra.gmra.mrb[48].mxu0 %v14501_v22  ;;  %v14566_v22 = vshrl.u32 %v25605_v50, 16 }
 0x8e6   : > { %20462 = vmatprep.mubr.bf16.mxu0 %v14509_v17  ;;  %20507 = vmatpush3.bf16.msra.mxu0 %v22496_v28  ;;  %v14525_v28 = vsel %vm1092_vm3, %v14520_v57, %v14524_v16  ;;  %v25909_v17 = vld [vmem:[#allocation8 + $0x180] sm:$0xff]   ;;  %v14586_v16 = vshll.u32 %v25616_v51, 16 }
 0x8e7   : > { %20508 = vmatprep.subr.bf16.mxu0 %v22500_v39  ;;  %v14568_v14 = vor.u32 %v14566_v22, %v14564_v49  ;;  %v26471_v51 = vld [vmem:[#allocation27_spill] sm:$0xff] }
 0x8e8   : > { %v14588_v38 = vrot.slane %v14586_v16, 1 }
 0x8e9   : > { %v14573_v50 = vsel %vm1092_vm3, %v14568_v14, %v14572_v60 }
 0x8ea   : > { %20509 = vmatpush3.bf16.msra.mxu0 %v22500_v39  ;;  %v14557_v39 = vsel %vm1092_vm3, %v14552_v34, %v14556_v43  ;;  %v14592_v0 = vor.u32 %v14590_v9, %v14588_v38  ;;  %v14626_v34 = vshll.u32 %v26471_v51, 16  ;;  %v26476_v9 = vld [vmem:[#allocation34_spill] sm:$0xff] }
 0x8eb   : > { %20510 = vmatprep.subr.bf16.mxu0 %v22504_v4 }
 0x8ed   : > { %20463 = vmatmul.mubr.bf16.gmra.mrb[52].mxu0 %v14517_v27  ;;  %v14594_v27 = vshll.u32 %v25618_v25, 16  ;;  %v14618_v25 = vshll.u32 %v26470_v20, 16  ;;  %v14674_v20 = vshll.u32 %v26477_v53, 16  ;;  %v22557_v53 = vld [vmem:[#allocation8 + $0x1e8] sm:$0xff]  }
 0x8ee   : > { %20466 = vmatprep.mubr.bf16.mxu0 %v14525_v28  ;;  %20511 = vmatpush3.bf16.msra.mxu0 %v22504_v4  ;;  %v14560_v4 = vor.u32 %v14558_v41, %v14556_v43  ;;  %v14576_v28 = vor.u32 %v14574_v56, %v14572_v60 }
 0x8ef   : > { %20512 = vmatprep.subr.bf16.mxu0 %v22508_v3  ;;  %v14620_v33 = vrot.slane %v14618_v25, 1 }
 0x8f0   : > { %v14565_v57 = vsel %vm1092_vm3, %v14560_v4, %v14564_v49  ;;  %v14581_v24 = vsel %vm1092_vm3, %v14576_v28, %v14580_v36  ;;  %v26472_v49 = vld [vmem:[#allocation29_spill] sm:$0xff] }
 0x8f1   : > { %v14634_v22 = vshll.u32 %v26472_v49, 16  ;;  %v14624_v31 = vor.u32 %v14622_v32, %v14620_v33  ;;  %v14638_v56 = vshrl.u32 %v26472_v49, 16  ;;  %v22531_v49 = vld [vmem:[#allocation8 + $0x1a0] sm:$0xff]   ;;  %v26483_v32 = vld [vmem:[#allocation25_spill] sm:$0xff] }
 0x8f2   : > { %20513 = vmatpush3.bf16.msra.mxu0 %v22508_v3  ;;  %v14584_v3 = vor.u32 %v14582_v19, %v14580_v36  ;;  %v26474_v19 = vld [vmem:[#allocation28_spill] sm:$0xff] }
 0x8f3   : > { %20514 = vmatprep.subr.bf16.mxu0 %v22512_v37  ;;  %v14636_v4 = vrot.slane %v14634_v22, 1  ;;  %v14650_v16 = vshll.u32 %v26474_v19, 16  ;;  %v14654_v61 = vshrl.u32 %v26474_v19, 16  ;;  %v22532_v22 = vld [vmem:[#allocation8 + $0x1a8] sm:$0xff]   ;;  %v26491_v19 = vld [vmem:[#allocation38_spill] sm:$0xff] }
 0x8f4   : > { %v14589_v23 = vsel %vm1092_vm3, %v14584_v3, %v14588_v38 }
 0x8f5   : > { %20467 = vmatmul.mubr.bf16.gmra.mrb[56].mxu0 %v14533_v63  ;;  %v14640_v38 = vor.u32 %v14638_v56, %v14636_v4  ;;  %v26493_v56 = vld [vmem:[#allocation41_spill] sm:$0xff] }
 0x8f6   : > { %20470 = vmatprep.mubr.bf16.mxu0 %v14541_v2  ;;  %20515 = vmatpush3.bf16.msra.mxu0 %v22512_v37  ;;  %v14596_v37 = vrot.slane %v14594_v27, 1  ;;  %v26475_v27 = vld [vmem:[#allocation33_spill] sm:$0xff] }
 0x8f7   : > { %20516 = vmatprep.subr.bf16.mxu0 %v22516_v59  ;;  %v14658_v28 = vshll.u32 %v26475_v27, 16 }
 0x8f8   : > { %v14600_v15 = vor.u32 %v14598_v35, %v14596_v37  ;;  %v14597_v63 = vsel %vm1092_vm3, %v14592_v0, %v14596_v37 }
 0x8f9   : > { %v14660_v35 = vrot.slane %v14658_v28, 1  ;;  %v26496_v28 = vld [vmem:[#allocation47_spill] sm:$0xff] }
 0x8fa   : > { %20517 = vmatpush3.bf16.msra.mxu0 %v22516_v59  ;;  %v14604_v59 = vrot.slane %v14602_v29, 1  ;;  %v14662_v29 = vshrl.u32 %v26475_v27, 16  ;;  %v26495_v27 = vld [vmem:[#allocation42_spill] sm:$0xff] }
 0x8fb   : > { %20518 = vmatprep.subr.bf16.mxu0 %v22520_v7 }
 0x8fc   : > { %v14605_v2 = vsel %vm1092_vm3, %v14600_v15, %v14604_v59  ;;  %v14666_v15 = vshll.u32 %v26476_v9, 16  ;;  %v14664_v11 = vor.u32 %v14662_v29, %v14660_v35  ;;  %v26501_v29 = vld [vmem:[#allocation53_spill] sm:$0xff] }
 0x8fd   : > { %20471 = vmatmul.mubr.bf16.gmra.mrb[60].mxu0 %v14549_v58  ;;  %v14628_v58 = vrot.slane %v14626_v34, 1  ;;  %v22528_v34 = vld [vmem:[#allocation8 + $0x188] sm:$0xff]  }
 0x8fe   : > { %20474 = vmatprep.mubr.bf16.mxu0 %v14557_v39  ;;  %20519 = vmatpush3.bf16.msra.mxu0 %v22520_v7  ;;  %v14606_v7 = vshrl.u32 %v25628_v6, 16  ;;  %v14630_v39 = vshrl.u32 %v26471_v51, 16  ;;  %v26473_v6 = vld [vmem:[#allocation30_spill] sm:$0xff]  ;;  %v26478_v51 = vld [vmem:[#allocation20_spill] sm:$0xff] }
 0x8ff   : > { %20520 = vmatprep.subr.bf16.mxu0 %v22524_v21  ;;  %v14642_v14 = vshll.u32 %v26473_v6, 16  ;;  %v14629_v60 = vsel %vm1092_vm3, %v14624_v31, %v14628_v58  ;;  %v14646_v36 = vshrl.u32 %v26473_v6, 16  ;;  %v22534_v6 = vld [vmem:[#allocation8 + $0x1b8] sm:$0xff]   ;;  %v26486_v31 = vld [vmem:[#allocation32_spill] sm:$0xff] }
 0x900   : > { %v14608_v1 = vor.u32 %v14606_v7, %v14604_v59  ;;  %v14632_v41 = vor.u32 %v14630_v39, %v14628_v58  ;;  %v14668_v59 = vrot.slane %v14666_v15, 1  ;;  %v14676_v7 = vrot.slane %v14674_v20, 1  ;;  %v26481_v58 = vld [vmem:[#allocation24_spill] sm:$0xff]  ;;  %v26482_v39 = vld [vmem:[#allocation21_spill] sm:$0xff] }
 0x901   : > { %v22541_v15 = vld [vmem:[#allocation8 + $0x1c8] sm:$0xff]  }
 0x902   : > { %20521 = vmatpush3.bf16.msra.mxu0 %v22524_v21  ;;  %v14613_v43 = vsel %vm1092_vm3, %v14608_v1, %v14612_v26  ;;  %v14621_v21 = vsel %vm1092_vm3, %v14616_v10, %v14620_v33  ;;  %v14670_v26 = vshrl.u32 %v26476_v9, 16  ;;  %v26479_v1 = vld [vmem:[#allocation50_spill] sm:$0xff]  ;;  %v22536_v9 = vld [vmem:[#allocation2 + $0x20] sm:$0xff]   ;;  %v22543_v20 = vld [vmem:[#allocation2 + $0x48] sm:$0xff]  }
 0x903   : > { %20570 = vmatprep.subr.bf16.mxu0 %v25909_v17  ;;  %v26480_v33 = vld [vmem:[#allocation22_spill] sm:$0xff] }
 0x904   : > { %v14672_v25 = vor.u32 %v14670_v26, %v14668_v59  ;;  %v22542_v26 = vld [vmem:[#allocation2 + $0x40] sm:$0xff]  }
 0x905   : > { %20475 = vmatmul.mubr.bf16.gmra.mrb[64].mxu0 %v14565_v57  ;;  %v14637_v57 = vsel %vm1092_vm3, %v14632_v41, %v14636_v4  ;;  %v26484_v41 = vld [vmem:[#allocation26_spill] sm:$0xff]  ;;  %v22537_v4 = vld [vmem:[#allocation8 + $0x1c0] sm:$0xff]  }
 0x906   : > { %20478 = vmatprep.mubr.bf16.mxu0 %v14573_v50  ;;  %v14644_v50 = vrot.slane %v14642_v14, 1  ;;  %v14677_v10 = vsel %vm1092_vm3, %v14672_v25, %v14676_v7  ;;  %v26485_v14 = vld [vmem:[#allocation31_spill] sm:$0xff]  ;;  %v22561_v25 = vld [vmem:[#allocation8 + $0x1f0] sm:$0xff]  }
 0x907   : > { %v22544_v7 = vld [vmem:[#allocation2 + $0x50] sm:$0xff]  }
 0x908   : > { %v14648_v3 = vor.u32 %v14646_v36, %v14644_v50  ;;  %v26490_v36 = vld [vmem:[#allocation40_spill] sm:$0xff] }
 0x90d   : > { %20479 = vmatmul.mubr.bf16.gmra.mrb[68].mxu0 %v14581_v24  ;;  %v14652_v24 = vrot.slane %v14650_v16, 1  ;;  %v26492_v16 = vld [vmem:[#allocation43_spill] sm:$0xff] }
 0x90e   : > { %20482 = vmatprep.mubr.bf16.mxu0 %v14589_v23  ;;  %v14645_v23 = vsel %vm1092_vm3, %v14640_v38, %v14644_v50  ;;  %v26489_v50 = vld [vmem:[#allocation37_spill] sm:$0xff] }
 0x90f   : > { %v14653_v37 = vsel %vm1092_vm3, %v14648_v3, %v14652_v24  ;;  %v14656_v0 = vor.u32 %v14654_v61, %v14652_v24  ;;  %v26494_v3 = vld [vmem:[#allocation44_spill] sm:$0xff]  ;;  %v26497_v38 = vld [vmem:[#allocation45_spill] sm:$0xff]  ;;  %v26498_v24 = vld [vmem:[#allocation51_spill] sm:$0xff] }
 0x910   : > { %v22538_v61 = vld [vmem:[#allocation2 + $0x28] sm:$0xff]  }
 0x915   : > { %20483 = vmatmul.mubr.bf16.gmra.mrb[72].mxu0 %v14597_v63  ;;  %v14661_v63 = vsel %vm1092_vm3, %v14656_v0, %v14660_v35  ;;  %v22535_v35 = vld [vmem:[#allocation2 + $0x18] sm:$0xff]   ;;  %v22539_v0 = vld [vmem:[#allocation2 + $0x30] sm:$0xff]  }
 0x916   : > { %20486 = vmatprep.mubr.bf16.mxu0 %v14605_v2  ;;  %v14669_v2 = vsel %vm1092_vm3, %v14664_v11, %v14668_v59  ;;  %v22545_v11 = vld [vmem:[#allocation8 + $0x1d0] sm:$0xff]   ;;  %v22549_v59 = vld [vmem:[#allocation8 + $0x1d8] sm:$0xff]  }
 0x91d   : > { %20487 = vmatmul.mubr.bf16.gmra.mrb[76].mxu0 %v14613_v43  ;;  %v22529_v43 = vld [vmem:[#allocation8 + $0x190] sm:$0xff]  }
 0x91e   : > { %20490 = vmatprep.mubr.bf16.mxu0 %v14621_v21  ;;  %v22530_v21 = vld [vmem:[#allocation8 + $0x198] sm:$0xff]  }
 0x925   : > { %20491 = vmatmul.mubr.bf16.gmra.mrb[80].mxu0 %v14629_v60  ;;  %v26487_v60 = vld [vmem:[#allocation36_spill] sm:$0xff] }
 0x926   : > { %20494 = vmatprep.mubr.bf16.mxu0 %v14637_v57  ;;  %v26488_v57 = vld [vmem:[#allocation35_spill] sm:$0xff] }
 0x92d   : > { %20495 = vmatmul.mubr.bf16.gmra.mrb[84].mxu0 %v14645_v23  ;;  %v26499_v23 = vld [vmem:[#allocation46_spill] sm:$0xff] }
 0x92e   : > { %20498 = vmatprep.mubr.bf16.mxu0 %v14653_v37  ;;  %v26500_v37 = vld [vmem:[#allocation52_spill] sm:$0xff] }
 0x935   : > { %20499 = vmatmul.mubr.bf16.gmra.mrb[88].mxu0 %v14661_v63  ;;  %v22540_v63 = vld [vmem:[#allocation2 + $0x38] sm:$0xff]  }
 0x936   : > { %20502 = vmatprep.mubr.bf16.mxu0 %v14669_v2  ;;  %v22553_v2 = vld [vmem:[#allocation8 + $0x1e0] sm:$0xff]  }
 0x93d   : > { %20503 = vmatmul.mubr.bf16.gmra.mrb[92].mxu0 %v14677_v10  ;;  %v22565_v10 = vld [vmem:[#allocation8 + $0x1f8] sm:$0xff]  }
 0x93e   : > { %20522 = vmatprep.mubr.bf16.mxu0 %v26478_v51  ;;  %v22546_v51 = vld [vmem:[#allocation2 + $0x58] sm:$0xff]  }
 0x945   : > { %20523 = vmatmul.mubr.bf16.vlgmr.msra.gmra.mrb[48].mxu0 %v26479_v1  ;;  %v22547_v1 = vld [vmem:[#allocation2 + $0x60] sm:$0xff]  }
 0x946   : > { %20526 = vmatprep.mubr.bf16.mxu0 %v26480_v33  ;;  %20571 = vmatpush3.bf16.msra.mxu0 %v25909_v17  ;;  %v22533_v17 = vld [vmem:[#allocation8 + $0x1b0] sm:$0xff]  }
 0x947   : > { %20572 = vmatprep.subr.bf16.mxu0 %v22528_v34  ;;  %v22548_v33 = vld [vmem:[#allocation2 + $0x68] sm:$0xff]  }
 0x94a   : > { %20573 = vmatpush3.bf16.msra.mxu0 %v22528_v34  ;;  %v25979_v34 = vld [vmem:[#allocation8 + $0x200] sm:$0xff]  }
 0x94b   : > { %20574 = vmatprep.subr.bf16.mxu0 %v22529_v43 }
 0x94d   : > { %20527 = vmatmul.mubr.bf16.gmra.mrb[52].mxu0 %v26481_v58  ;;  %v22552_v58 = vld [vmem:[#allocation2 + $0x80] sm:$0xff]  }
 0x94e   : > { %20530 = vmatprep.mubr.bf16.mxu0 %v26482_v39  ;;  %20575 = vmatpush3.bf16.msra.mxu0 %v22529_v43  ;;  %v22550_v43 = vld [vmem:[#allocation2 + $0x70] sm:$0xff]   ;;  %v22554_v39 = vld [vmem:[#allocation2 + $0x88] sm:$0xff]  }
 0x94f   : > { %20576 = vmatprep.subr.bf16.mxu0 %v22530_v21 }
 0x952   : > { %20577 = vmatpush3.bf16.msra.mxu0 %v22530_v21  ;;  %v22551_v21 = vld [vmem:[#allocation2 + $0x78] sm:$0xff]  }
 0x953   : > { %20578 = vmatprep.subr.bf16.mxu0 %v22531_v49 }
 0x955   : > { %20531 = vmatmul.mubr.bf16.gmra.mrb[56].mxu0 %v26483_v32  ;;  %v22558_v32 = vld [vmem:[#allocation2 + $0xa0] sm:$0xff]  }
 0x956   : > { %20534 = vmatprep.mubr.bf16.mxu0 %v26484_v41  ;;  %20579 = vmatpush3.bf16.msra.mxu0 %v22531_v49  ;;  %v22555_v49 = vld [vmem:[#allocation2 + $0x90] sm:$0xff]   ;;  %v22559_v41 = vld [vmem:[#allocation2 + $0xa8] sm:$0xff]  }
 0x957   : > { %20580 = vmatprep.subr.bf16.mxu0 %v22532_v22 }
 0x95a   : > { %20581 = vmatpush3.bf16.msra.mxu0 %v22532_v22  ;;  %v22556_v22 = vld [vmem:[#allocation2 + $0x98] sm:$0xff]  }
 0x95b   : > { %20582 = vmatprep.subr.bf16.mxu0 %v22533_v17 }
 0x95d   : > { %20535 = vmatmul.mubr.bf16.gmra.mrb[60].mxu0 %v26485_v14  ;;  %v15934_v14 = vld [vmem:[#allocation2 + $0x18] sm:$0xf] }
 0x95e   : > { %20538 = vmatprep.mubr.bf16.mxu0 %v26486_v31  ;;  %20583 = vmatpush3.bf16.msra.mxu0 %v22533_v17  ;;  %v22560_v17 = vld [vmem:[#allocation2 + $0xb0] sm:$0xff]   ;;  %v22688_v31 = vld [vmem:[#allocation2 + $0x1c] sm:$0xf] }
 0x95f   : > { %20584 = vmatprep.subr.bf16.mxu0 %v22534_v6 }
 0x962   : > { %20585 = vmatpush3.bf16.msra.mxu0 %v22534_v6  ;;  %v22562_v6 = vld [vmem:[#allocation2 + $0xb8] sm:$0xff]  }
 0x963   : > { %20634 = vmatprep.subr.bf16.mxu0 %v22537_v4 }
 0x965   : > { %20539 = vmatmul.mubr.bf16.gmra.mrb[64].mxu0 %v26487_v60 }
 0x966   : > { %20542 = vmatprep.mubr.bf16.mxu0 %v26488_v57  ;;  %v22563_v57 = vld [vmem:[#allocation2 + $0xc0] sm:$0xff]  }
 0x96d   : > { %20543 = vmatmul.mubr.bf16.gmra.mrb[68].mxu0 %v26489_v50  ;;  %v22564_v50 = vld [vmem:[#allocation2 + $0xc8] sm:$0xff]  }
 0x96e   : > { %20546 = vmatprep.mubr.bf16.mxu0 %v26490_v36 }
 0x975   : > { %20547 = vmatmul.mubr.bf16.gmra.mrb[72].mxu0 %v26491_v19  ;;  %v22689_v19 = vld [vmem:[#allocation2 + $0x20] sm:$0xff]  }
 0x976   : > { %20550 = vmatprep.mubr.bf16.mxu0 %v26492_v16  ;;  %v16114_v16 = vshll.u32 %v22689_v19, 16 }
 0x97d   : > { %20551 = vmatmul.mubr.bf16.gmra.mrb[76].mxu0 %v26493_v56 }
 0x97e   : > { %20554 = vmatprep.mubr.bf16.mxu0 %v26494_v3  ;;  %v22566_v3 = vld [vmem:[#allocation2 + $0xd0] sm:$0xff]  }
 0x985   : > { %20555 = vmatmul.mubr.bf16.gmra.mrb[80].mxu0 %v26495_v27 }
 0x986   : > { %20558 = vmatprep.mubr.bf16.mxu0 %v26496_v28  ;;  %v16116_v28 = vrot.slane %v16114_v16, 1 }
 0x98d   : > { %20559 = vmatmul.mubr.bf16.gmra.mrb[84].mxu0 %v26497_v38  ;;  %v22690_v38 = vld [vmem:[#allocation2 + $0x28] sm:$0xff]  }
 0x98e   : > { %20562 = vmatprep.mubr.bf16.mxu0 %v26498_v24  ;;  %v16122_v24 = vshll.u32 %v22690_v38, 16 }
 0x995   : > { %20563 = vmatmul.mubr.bf16.gmra.mrb[88].mxu0 %v26499_v23 }
 0x996   : > { %20566 = vmatprep.mubr.bf16.mxu0 %v26500_v37  ;;  %v16124_v37 = vrot.slane %v16122_v24, 1  ;;  %v22594_v24 = vld [vmem:[#allocation8 + $0x230] sm:$0xff]  }
 0x99d   : > { %20567 = vmatmul.mubr.bf16.gmra.mrb[92].mxu0 %v26501_v29 }
 0x99e   : > { %20586 = vmatprep.mubr.bf16.mxu0 %v22535_v35  ;;  %v22691_v35 = vld [vmem:[#allocation2 + $0x30] sm:$0xff]  }
 0x99f   : > { %v16130_v29 = vshll.u32 %v22691_v35, 16 }
 0x9a5   : > { %20587 = vmatmul.mubr.bf16.vlgmr.msra.gmra.mrb[48].mxu0 %v22536_v9  ;;  %v16126_v9 = vshrl.u32 %v22690_v38, 16 }
 0x9a6   : > { %20590 = vmatprep.mubr.bf16.mxu0 %v22538_v61  ;;  %20635 = vmatpush3.bf16.msra.mxu0 %v22537_v4  ;;  %v18023_v4 = vcombine.low %v15934_v14, %v22688_v31  ;;  %v22586_v14 = vld [vmem:[#allocation8 + $0x220] sm:$0xff]  }
 0x9a7   : > { %20636 = vmatprep.subr.bf16.mxu0 %v22541_v15  ;;  %v16128_v61 = vor.u32 %v16126_v9, %v16124_v37 }
 0x9a8   : > { %v16109_v60 = vshll.u32 %v18023_v4, 16  ;;  %v16107_v56 = vshrl.u32 %v18023_v4, 16 }
 0x9aa   : > { %20637 = vmatpush3.bf16.msra.mxu0 %v22541_v15  ;;  %v16111_v36 = vrot.slane %v16109_v60, 1  ;;  %v16118_v15 = vshrl.u32 %v22689_v19, 16  ;;  %v22590_v19 = vld [vmem:[#allocation8 + $0x228] sm:$0xff]  }
 0x9ab   : > { %20638 = vmatprep.subr.bf16.mxu0 %v22545_v11 }
 0x9ac   : > { %v16112_v27 = vor.u32 %v16111_v36, %v16107_v56 }
 0x9ad   : > { %20591 = vmatmul.mubr.bf16.gmra.mrb[52].mxu0 %v22539_v0  ;;  %v22692_v0 = vld [vmem:[#allocation2 + $0x38] sm:$0xff]  }
 0x9ae   : > { %20594 = vmatprep.mubr.bf16.mxu0 %v22540_v63  ;;  %20639 = vmatpush3.bf16.msra.mxu0 %v22545_v11  ;;  %v16117_v23 = vsel %vm1092_vm3, %v16112_v27, %v16116_v28  ;;  %v16132_v11 = vrot.slane %v16130_v29, 1  ;;  %v16120_v63 = vor.u32 %v16118_v15, %v16116_v28  ;;  %v22697_v27 = vld [vmem:[#allocation2 + $0x60] sm:$0xff]   ;;  %v22698_v29 = vld [vmem:[#allocation2 + $0x68] sm:$0xff]  }
 0x9af   : > { %20640 = vmatprep.subr.bf16.mxu0 %v22549_v59  ;;  %v16178_v28 = vshll.u32 %v22697_v27, 16  ;;  %v16186_v9 = vshll.u32 %v22698_v29, 16 }
 0x9b2   : > { %20641 = vmatpush3.bf16.msra.mxu0 %v22549_v59  ;;  %v16138_v59 = vshll.u32 %v22692_v0, 16 }
 0x9b3   : > { %20642 = vmatprep.subr.bf16.mxu0 %v22553_v2 }
 0x9b5   : > { %20595 = vmatmul.mubr.bf16.gmra.mrb[56].mxu0 %v22542_v26  ;;  %v16125_v26 = vsel %vm1092_vm3, %v16120_v63, %v16124_v37  ;;  %v22699_v63 = vld [vmem:[#allocation2 + $0x70] sm:$0xff]  }
 0x9b6   : > { %20598 = vmatprep.mubr.bf16.mxu0 %v22543_v20  ;;  %20643 = vmatpush3.bf16.msra.mxu0 %v22553_v2  ;;  %v22574_v2 = vld [vmem:[#allocation8 + $0x208] sm:$0xff]   ;;  %v16140_v20 = vrot.slane %v16138_v59, 1  ;;  %v16188_v59 = vrot.slane %v16186_v9, 1 }
 0x9b7   : > { %20644 = vmatprep.subr.bf16.mxu0 %v22557_v53 }
 0x9ba   : > { %20645 = vmatpush3.bf16.msra.mxu0 %v22557_v53  ;;  %v16133_v53 = vsel %vm1092_vm3, %v16128_v61, %v16132_v11  ;;  %v22598_v61 = vld [vmem:[#allocation8 + $0x238] sm:$0xff]  }
 0x9bb   : > { %20646 = vmatprep.subr.bf16.mxu0 %v22561_v25 }
 0x9bd   : > { %20599 = vmatmul.mubr.bf16.gmra.mrb[60].mxu0 %v22544_v7 }
 0x9be   : > { %20602 = vmatprep.mubr.bf16.mxu0 %v22546_v51  ;;  %20647 = vmatpush3.bf16.msra.mxu0 %v22561_v25  ;;  %v22693_v25 = vld [vmem:[#allocation2 + $0x40] sm:$0xff]   ;;  %v22578_v51 = vld [vmem:[#allocation8 + $0x210] sm:$0xff]  }
 0x9bf   : > { %20648 = vmatprep.subr.bf16.mxu0 %v22565_v10  ;;  %v16146_v7 = vshll.u32 %v22693_v25, 16  ;;  %v16150_v31 = vshrl.u32 %v22693_v25, 16 }
 0x9c2   : > { %20649 = vmatpush3.bf16.msra.mxu0 %v22565_v10  ;;  %v16142_v10 = vshrl.u32 %v22692_v0, 16 }
 0x9c3   : > { %20698 = vmatprep.subr.bf16.mxu0 %v25979_v34 }
 0x9c5   : > { %20603 = vmatmul.mubr.bf16.gmra.mrb[64].mxu0 %v22547_v1  ;;  %v16134_v1 = vshrl.u32 %v22691_v35, 16  ;;  %v16180_v35 = vrot.slane %v16178_v28, 1 }
 0x9c6   : > { %20606 = vmatprep.mubr.bf16.mxu0 %v22548_v33  ;;  %v16144_v33 = vor.u32 %v16142_v10, %v16140_v20 }
 0x9cd   : > { %20607 = vmatmul.mubr.bf16.gmra.mrb[68].mxu0 %v22550_v43  ;;  %v16148_v43 = vrot.slane %v16146_v7, 1  ;;  %v22700_v7 = vld [vmem:[#allocation2 + $0x78] sm:$0xff]  }
 0x9ce   : > { %20610 = vmatprep.mubr.bf16.mxu0 %v22551_v21  ;;  %v22694_v21 = vld [vmem:[#allocation2 + $0x48] sm:$0xff]   ;;  %v16202_v10 = vshll.u32 %v22700_v7, 16 }
 0x9cf   : > { %v16152_v36 = vor.u32 %v16150_v31, %v16148_v43 }
 0x9d5   : > { %20611 = vmatmul.mubr.bf16.gmra.mrb[72].mxu0 %v22552_v58  ;;  %v16154_v58 = vshll.u32 %v22694_v21, 16 }
 0x9d6   : > { %20614 = vmatprep.mubr.bf16.mxu0 %v22554_v39  ;;  %v16136_v39 = vor.u32 %v16134_v1, %v16132_v11 }
 0x9dd   : > { %20615 = vmatmul.mubr.bf16.gmra.mrb[76].mxu0 %v22555_v49  ;;  %v22582_v49 = vld [vmem:[#allocation8 + $0x218] sm:$0xff]  }
 0x9de   : > { %20618 = vmatprep.mubr.bf16.mxu0 %v22556_v22  ;;  %v16141_v22 = vsel %vm1092_vm3, %v16136_v39, %v16140_v20  ;;  %v16206_v39 = vshrl.u32 %v22700_v7, 16 }
 0x9e5   : > { %20619 = vmatmul.mubr.bf16.gmra.mrb[80].mxu0 %v22558_v32  ;;  %v16149_v32 = vsel %vm1092_vm3, %v16144_v33, %v16148_v43  ;;  %v16204_v43 = vrot.slane %v16202_v10, 1  ;;  %v22708_v10 = vld [vmem:[#allocation2 + $0xb8] sm:$0xff]  }
 0x9e6   : > { %20622 = vmatprep.mubr.bf16.mxu0 %v22559_v41  ;;  %v16156_v41 = vrot.slane %v16154_v58, 1 }
 0x9e8   : > { %v16157_v16 = vsel %vm1092_vm3, %v16152_v36, %v16156_v41 }
 0x9ed   : > { %20623 = vmatmul.mubr.bf16.gmra.mrb[84].mxu0 %v22560_v17  ;;  %v22695_v17 = vld [vmem:[#allocation2 + $0x50] sm:$0xff]  }
 0x9ee   : > { %20626 = vmatprep.mubr.bf16.mxu0 %v22562_v6  ;;  %v16158_v6 = vshrl.u32 %v22694_v21, 16  ;;  %v22701_v21 = vld [vmem:[#allocation2 + $0x80] sm:$0xff]  }
 0x9ef   : > { %v16210_v58 = vshll.u32 %v22701_v21, 16 }
 0x9f0   : > { %v16160_v4 = vor.u32 %v16158_v6, %v16156_v41  ;;  %v22702_v41 = vld [vmem:[#allocation2 + $0x88] sm:$0xff]  }
 0x9f5   : > { %20627 = vmatmul.mubr.bf16.gmra.mrb[88].mxu0 %v22563_v57  ;;  %v22696_v57 = vld [vmem:[#allocation2 + $0x58] sm:$0xff]  }
 0x9f6   : > { %20630 = vmatprep.mubr.bf16.mxu0 %v22564_v50  ;;  %v16170_v50 = vshll.u32 %v22696_v57, 16  ;;  %v16174_v38 = vshrl.u32 %v22696_v57, 16  ;;  %v16222_v57 = vshrl.u32 %v22702_v41, 16 }
 0x9fd   : > { %20631 = vmatmul.mubr.bf16.gmra.mrb[92].mxu0 %v22566_v3  ;;  %v16172_v3 = vrot.slane %v16170_v50, 1  ;;  %v16214_v50 = vshrl.u32 %v22701_v21, 16 }
 0x9fe   : > { %20650 = vmatprep.mubr.bf16.mxu0 %v16117_v23  ;;  %v16166_v23 = vshrl.u32 %v22695_v17, 16 }
 0x9ff   : > { %v16176_v37 = vor.u32 %v16174_v38, %v16172_v3 }
 0xa01   : > { %v16181_v0 = vsel %vm1092_vm3, %v16176_v37, %v16180_v35 }
 0xa05   : > { %20651 = vmatmul.mubr.bf16.vlgmr.msra.gmra.mrb[48].mxu0 %v16125_v26  ;;  %v16190_v26 = vshrl.u32 %v22698_v29, 16 }
 0xa06   : > { %20654 = vmatprep.mubr.bf16.mxu0 %v16133_v53  ;;  %20699 = vmatpush3.bf16.msra.mxu0 %v25979_v34  ;;  %v16162_v34 = vshll.u32 %v22695_v17, 16  ;;  %v16182_v53 = vshrl.u32 %v22697_v27, 16  ;;  %v16218_v17 = vshll.u32 %v22702_v41, 16 }
 0xa07   : > { %20700 = vmatprep.subr.bf16.mxu0 %v22574_v2  ;;  %v16192_v20 = vor.u32 %v16190_v26, %v16188_v59 }
 0xa08   : > { %v16164_v60 = vrot.slane %v16162_v34, 1  ;;  %v16220_v31 = vrot.slane %v16218_v17, 1  ;;  %v22710_v17 = vld [vmem:[#allocation2 + $0xc8] sm:$0xff]  }
 0xa0a   : > { %20701 = vmatpush3.bf16.msra.mxu0 %v22574_v2  ;;  %v16165_v56 = vsel %vm1092_vm3, %v16160_v4, %v16164_v60  ;;  %v16168_v15 = vor.u32 %v16166_v23, %v16164_v60  ;;  %v16194_v2 = vshll.u32 %v22699_v63, 16  ;;  %v22703_v4 = vld [vmem:[#allocation2 + $0x90] sm:$0xff]   ;;  %v16224_v36 = vor.u32 %v16222_v57, %v16220_v31 }
 0xa0b   : > { %20702 = vmatprep.subr.bf16.mxu0 %v22578_v51  ;;  %v16226_v60 = vshll.u32 %v22703_v4, 16 }
 0xa0c   : > { %v16173_v11 = vsel %vm1092_vm3, %v16168_v15, %v16172_v3  ;;  %v16196_v25 = vrot.slane %v16194_v2, 1  ;;  %v22706_v15 = vld [vmem:[#allocation2 + $0xa8] sm:$0xff]   ;;  %v22707_v2 = vld [vmem:[#allocation2 + $0xb0] sm:$0xff]  }
 0xa0d   : > { %20655 = vmatmul.mubr.bf16.gmra.mrb[52].mxu0 %v16141_v22  ;;  %v16208_v22 = vor.u32 %v16206_v39, %v16204_v43  ;;  %v16258_v26 = vshll.u32 %v22707_v2, 16 }
 0xa0e   : > { %20658 = vmatprep.mubr.bf16.mxu0 %v16149_v32  ;;  %20703 = vmatpush3.bf16.msra.mxu0 %v22578_v51  ;;  %v16184_v51 = vor.u32 %v16182_v53, %v16180_v35  ;;  %v16197_v33 = vsel %vm1092_vm3, %v16192_v20, %v16196_v25  ;;  %v16212_v32 = vrot.slane %v16210_v58, 1  ;;  %v16230_v35 = vshrl.u32 %v22703_v4, 16  ;;  %v22709_v58 = vld [vmem:[#allocation2 + $0xc0] sm:$0xff]  }
 0xa0f   : > { %20704 = vmatprep.subr.bf16.mxu0 %v22582_v49  ;;  %v16254_v53 = vshrl.u32 %v22706_v15, 16  ;;  %v16260_v7 = vrot.slane %v16258_v26, 1  ;;  %v16274_v39 = vshll.u32 %v22709_v58, 16 }
 0xa10   : > { %v16189_v1 = vsel %vm1092_vm3, %v16184_v51, %v16188_v59  ;;  %v16216_v3 = vor.u32 %v16214_v50, %v16212_v32  ;;  %v16266_v51 = vshll.u32 %v22708_v10, 16  ;;  %v16278_v50 = vshrl.u32 %v22709_v58, 16 }
 0xa11   : > { %v16276_v41 = vrot.slane %v16274_v39, 1 }
 0xa12   : > { %20705 = vmatpush3.bf16.msra.mxu0 %v22582_v49  ;;  %v16198_v49 = vshrl.u32 %v22699_v63, 16  ;;  %v16221_v27 = vsel %vm1092_vm3, %v16216_v3, %v16220_v31  ;;  %v16268_v21 = vrot.slane %v16266_v51, 1 }
 0xa13   : > { %20706 = vmatprep.subr.bf16.mxu0 %v22586_v14 }
 0xa14   : > { %v16200_v34 = vor.u32 %v16198_v49, %v16196_v25  ;;  %v16270_v49 = vshrl.u32 %v22708_v10, 16 }
 0xa15   : > { %20659 = vmatmul.mubr.bf16.gmra.mrb[56].mxu0 %v16157_v16  ;;  %v22704_v16 = vld [vmem:[#allocation2 + $0x98] sm:$0xff]  }
 0xa16   : > { %20662 = vmatprep.mubr.bf16.mxu0 %v16165_v56  ;;  %20707 = vmatpush3.bf16.msra.mxu0 %v22586_v14  ;;  %v16205_v6 = vsel %vm1092_vm3, %v16200_v34, %v16204_v43  ;;  %v16213_v14 = vsel %vm1092_vm3, %v16208_v22, %v16212_v32  ;;  %v16234_v56 = vshll.u32 %v22704_v16, 16  ;;  %v16238_v37 = vshrl.u32 %v22704_v16, 16 }
 0xa17   : > { %20708 = vmatprep.subr.bf16.mxu0 %v22590_v19  ;;  %v16262_v22 = vshrl.u32 %v22707_v2, 16  ;;  %v16272_v32 = vor.u32 %v16270_v49, %v16268_v21  ;;  %v16282_v34 = vshll.u32 %v22710_v17, 16  ;;  %v16280_v16 = vor.u32 %v16278_v50, %v16276_v41 }
 0xa18   : > { %v16236_v38 = vrot.slane %v16234_v56, 1 }
 0xa19   : > { %v16277_v4 = vsel %vm1092_vm3, %v16272_v32, %v16276_v41 }
 0xa1a   : > { %20709 = vmatpush3.bf16.msra.mxu0 %v22590_v19  ;;  %v16228_v19 = vrot.slane %v16226_v60, 1  ;;  %v16240_v29 = vor.u32 %v16238_v37, %v16236_v38  ;;  %v16284_v60 = vrot.slane %v16282_v34, 1 }
 0xa1b   : > { %20710 = vmatprep.subr.bf16.mxu0 %v22594_v24 }
 0xa1c   : > { %v16229_v28 = vsel %vm1092_vm3, %v16224_v36, %v16228_v19  ;;  %v22599_v36 = vld [vmem:[#allocation2 + $0xd8] ss:$0 sps:$4 sm:$0x11]  }
 0xa1d   : > { %20663 = vmatmul.mubr.bf16.gmra.mrb[60].mxu0 %v16173_v11  ;;  %v16232_v11 = vor.u32 %v16230_v35, %v16228_v19  ;;  %v16286_v19 = vshrl.u32 %v22710_v17, 16 }
 0xa1e   : > { %20666 = vmatprep.mubr.bf16.mxu0 %v16181_v0  ;;  %20711 = vmatpush3.bf16.msra.mxu0 %v22594_v24  ;;  %v22705_v24 = vld [vmem:[#allocation2 + $0xa0] sm:$0xff]  }
 0xa1f   : > { %20712 = vmatprep.subr.bf16.mxu0 %v22598_v61  ;;  %v16242_v23 = vshll.u32 %v22705_v24, 16  ;;  %v16237_v0 = vsel %vm1092_vm3, %v16232_v11, %v16236_v38  ;;  %v16246_v20 = vshrl.u32 %v22705_v24, 16  ;;  %v16288_v56 = vor.u32 %v16286_v19, %v16284_v60  ;;  %v26506_v11 = vld [vmem:[#allocation56_spill] sm:$0xff] }
 0xa20   : > { %v16285_v38 = vsel %vm1092_vm3, %v16280_v16, %v16284_v60 }
 0xa21   : > { %v16244_v9 = vrot.slane %v16242_v23, 1 }
 0xa22   : > { %20713 = vmatpush3.bf16.msra.mxu0 %v22598_v61  ;;  %v16250_v61 = vshll.u32 %v22706_v15, 16  ;;  %v26504_v15 = vld [vmem:[#allocation54_spill] sm:$0xff] }
 0xa23   : > { %v16245_v59 = vsel %vm1092_vm3, %v16240_v29, %v16244_v9  ;;  %v26502_v29 = vld [vmem:[#allocation49_spill] sm:$0xff] }
 0xa24   : > { %v16252_v63 = vrot.slane %v16250_v61, 1  ;;  %v26505_v61 = vld [vmem:[#allocation55_spill] sm:$0xff] }
 0xa25   : > { %20667 = vmatmul.mubr.bf16.gmra.mrb[64].mxu0 %v16189_v1  ;;  %v16248_v1 = vor.u32 %v16246_v20, %v16244_v9  ;;  %v26503_v9 = vld [vmem:[#allocation48_spill] sm:$0xff] }
 0xa26   : > { %20670 = vmatprep.mubr.bf16.mxu0 %v16197_v33  ;;  %v16256_v25 = vor.u32 %v16254_v53, %v16252_v63 }
 0xa27   : > { %v16253_v33 = vsel %vm1092_vm3, %v16248_v1, %v16252_v63 }
 0xa28   : > { %v16261_v43 = vsel %vm1092_vm3, %v16256_v25, %v16260_v7 }
 0xa2d   : > { %20671 = vmatmul.mubr.bf16.gmra.mrb[68].mxu0 %v16205_v6  ;;  %v16264_v6 = vor.u32 %v16262_v22, %v16260_v7 }
 0xa2e   : > { %20674 = vmatprep.mubr.bf16.mxu0 %v16213_v14  ;;  %v22597_v14 = vld [vmem:[#allocation2 + $0xd0] sm:$0xff]  }
 0xa2f   : > { %v16269_v31 = vsel %vm1092_vm3, %v16264_v6, %v16268_v21  ;;  %v16290_v57 = vshll.u32 %v22597_v14, 16 }
 0xa31   : > { %v16292_v3 = vrot.slane %v16290_v57, 1 }
 0xa33   : > { %v16293_v24 = vsel %vm1092_vm3, %v16288_v56, %v16292_v3 }
 0xa35   : > { %20675 = vmatmul.mubr.bf16.gmra.mrb[72].mxu0 %v16221_v27  ;;  %v16294_v27 = vshrl.u32 %v22597_v14, 16 }
 0xa36   : > { %20678 = vmatprep.mubr.bf16.mxu0 %v16229_v28  ;;  %v16298_v28 = vshll.u32 %v22599_v36, 16 }
 0xa37   : > { %v16296_v23 = vor.u32 %v16294_v27, %v16292_v3 }
 0xa38   : > { %v16300_v37 = vrot.slane %v16298_v28, 1 }
 0xa3a   : > { %v16301_v35 = vsel %vm1092_vm3, %v16296_v23, %v16300_v37 }
 0xa3d   : > { %20679 = vmatmul.mubr.bf16.gmra.mrb[76].mxu0 %v16237_v0  ;;  %v26507_v0 = vld [vmem:[#allocation57_spill] sm:$0xff] }
 0xa3e   : > { %20682 = vmatprep.mubr.bf16.mxu0 %v16245_v59  ;;  %v26508_v59 = vld [vmem:[#allocation58_spill] sm:$0xff] }
 0xa45   : > { %20683 = vmatmul.mubr.bf16.gmra.mrb[80].mxu0 %v16253_v33 }
 0xa46   : > { %20686 = vmatprep.mubr.bf16.mxu0 %v16261_v43 }
 0xa4d   : > { %20687 = vmatmul.mubr.bf16.gmra.mrb[84].mxu0 %v16269_v31 }
 0xa4e   : > { %20690 = vmatprep.mubr.bf16.mxu0 %v16277_v4 }
 0xa55   : > { %20691 = vmatmul.mubr.bf16.gmra.mrb[88].mxu0 %v16285_v38 }
 0xa56   : > { %20694 = vmatprep.mubr.bf16.mxu0 %v16293_v24 }
 0xa5d   : > { %20695 = vmatmul.mubr.bf16.gmra.mrb[92].mxu0 %v16301_v35 }
 0xa5e   : > { %20714 = vmatprep.mubr.bf16.mxu0 %v26502_v29 }
 0xa65   : > { %20715 = vmatmul.mubr.bf16.vlgmr.msra.gmra.mrb[48].mxu0 %v26503_v9 }
 0xa66   : > { %20718 = vmatprep.mubr.bf16.mxu0 %v26504_v15 }
 0xa6d   : > { %20719 = vmatmul.mubr.bf16.gmra.mrb[52].mxu0 %v26505_v61 }
 0xa6e   : > { %20722 = vmatprep.mubr.bf16.mxu0 %v26506_v11 }
 0xa75   : > { %20723 = vmatmul.mubr.bf16.gmra.mrb[56].mxu0 %v26507_v0 }
 0xa76   : > { %20726 = vmatprep.mubr.bf16.mxu0 %v25775_v52 }
 0xa7d   : > { %20727 = vmatmul.mubr.bf16.gmra.mrb[60].mxu0 %v25780_v47  ;;  %v16698_v47 = vrot.slane %v22599_v36, 1 }
 0xa7e   : > { %20730 = vmatprep.mubr.bf16.mxu0 %v25783_v54 }
 0xa85   : > { %20731 = vmatmul.mubr.bf16.gmra.mrb[64].mxu0 %v25786_v44  ;;  %v16696_v44 = vrot.slane %v22597_v14, 1 }
 0xa86   : > { %20734 = vmatprep.mubr.bf16.mxu0 %v25789_v42  ;;  %v26037_v42 = vld [vmem:[%s26253_s9] ss:$0 sm:$0xff] }
 0xa87   : > { %v16697_v52 = vsel %vm1887_vm4, %v16694_v30, %v16696_v44  ;;  %v16699_v54 = vsel %vm1887_vm4, %v16696_v44, %v16698_v47 }
 0xa8d   : > { %20735 = vmatmul.mubr.bf16.gmra.mrb[68].mxu0 %v25793_v46 }
 0xa8e   : > { %20738 = vmatprep.mubr.bf16.mxu0 %v26508_v59 }
 0xa95   : > { %20739 = vmatmul.mubr.bf16.gmra.mrb[72].mxu0 %v25799_v8 }
 0xa96   : > { %20742 = vmatprep.mubr.bf16.mxu0 %v25803_v55 }
 0xa9d   : > { %20743 = vmatmul.mubr.bf16.gmra.mrb[76].mxu0 %v25806_v12 }
 0xa9e   : > { %20746 = vmatprep.mubr.bf16.mxu0 %v25810_v13  ;;  %v26042_v13 = vld [vmem:[%s26254_s10] ss:$0 sm:$0xff] }
 0xaa5   : > { %20747 = vmatmul.mubr.bf16.gmra.mrb[80].mxu0 %v25813_v40 }
 0xaa6   : > { %20750 = vmatprep.mubr.bf16.mxu0 %v25816_v45 }
 0xaad   : > { %20751 = vmatmul.mubr.bf16.gmra.mrb[84].mxu0 %v25819_v62 }
 0xaae   : > { %20754 = vmatprep.mubr.bf16.mxu0 %v25822_v18 }
 0xab5   : > { %20755 = vmatmul.mubr.bf16.gmra.mrb[88].mxu0 %v25827_v48 }
 0xab6   : > { %20758 = vmatprep.mubr.bf16.mxu0 %v16697_v52 }
 0xabd   : > { %20759 = vmatmul.mubr.bf16.gmra.mrb[92].mxu0 %v16699_v54 }
 0xb38   : > { %v20716_v46 = vpop.f32.mrb[48].mxu0 }
 0xb39   : > { %v17054_v5 = vmul.f32 %v20716_v46, %v26037_v42  ;;  %v16806_v8 = vpop.f32.mrb[49].mxu0 }
 0xb3a   : > { %v17052_v55 = vmul.f32 %v26037_v42, %v16806_v8  ;;  %v20717_v12 = vpop.f32.mrb[50].mxu0 }
 0xb3b   : > { %v17109_v30 = vadd.f32 %v26042_v13, %v17054_v5  ;;  %v17055_v40 = vmul.f32 %v20717_v12, %v26037_v42  ;;  %v16809_v45 = vpop.f32.mrb[51].mxu0 }
 0xb3c   : > { %v17107_v62 = vadd.f32 %v26042_v13, %v17052_v55  ;;  %v17053_v18 = vmul.f32 %v26037_v42, %v16809_v45 }
 0xb3d   : > { %v17157_v48 = vmax.f32 %v17109_v30, 0.0  ;;  %v17110_v63 = vadd.f32 %v26042_v13, %v17055_v40 }
 0xb3e   : > { %v17155_v2 = vmax.f32 %v17107_v62, 0.0  ;;  %v17108_v26 = vadd.f32 %v26042_v13, %v17053_v18 }
 0xb3f   : > { %17205 = vst [vmem:[%s26054_s24 + $0xf] sm:$0x1] %v17157_v48  ;;  %v17158_v53 = vmax.f32 %v17110_v63, 0.0 }
 0xb40   : > { %17203 = vst [vmem:[%s26054_s24 - $0x1] sm:$0xfe] %v17155_v2  ;;  %v17156_v20 = vmax.f32 %v17108_v26, 0.0  ;;  %v20720_v25 = vpop.f32.mrb[52].mxu0 }
 0xb41   : > { %17206 = vst [vmem:[%s26054_s24 + $0xf] sm:$0xfe] %v17158_v53  ;;  %v17058_v7 = vmul.f32 %v20720_v25, %v26037_v42  ;;  %v16822_v10 = vpop.f32.mrb[53].mxu0 }
 0xb42   : > { %17204 = vst [vmem:[%s26054_s24 + $0x7] sm:$0xff] %v17156_v20  ;;  %v17056_v51 = vmul.f32 %v26037_v42, %v16822_v10  ;;  %v20721_v1 = vpop.f32.mrb[54].mxu0 }
 0xb43   : > { %v17113_v33 = vadd.f32 %v26042_v13, %v17058_v7  ;;  %v17059_v43 = vmul.f32 %v20721_v1, %v26037_v42  ;;  %v16825_v21 = vpop.f32.mrb[55].mxu0 }
 0xb44   : > { %v17111_v58 = vadd.f32 %v26042_v13, %v17056_v51  ;;  %v17057_v39 = vmul.f32 %v26037_v42, %v16825_v21 }
 0xb45   : > { %v17161_v49 = vmax.f32 %v17113_v33, 0.0  ;;  %v17114_v22 = vadd.f32 %v26042_v13, %v17059_v43 }
 0xb46   : > { %v17159_v32 = vmax.f32 %v17111_v58, 0.0  ;;  %v17112_v41 = vadd.f32 %v26042_v13, %v17057_v39 }
 0xb47   : > { %17209 = vst [vmem:[%s26054_s24 + $0x1f] sm:$0xfe] %v17161_v49  ;;  %v17162_v17 = vmax.f32 %v17114_v22, 0.0 }
 0xb48   : > { %17207 = vst [vmem:[%s26054_s24 + $0x17] sm:$0xff] %v17159_v32  ;;  %v17160_v34 = vmax.f32 %v17112_v41, 0.0  ;;  %v20724_v6 = vpop.f32.mrb[56].mxu0 }
 0xb49   : > { %17210 = vst [vmem:[%s26054_s24 + $0x27] sm:$0xff] %v17162_v17  ;;  %v17062_v14 = vmul.f32 %v20724_v6, %v26037_v42  ;;  %v16838_v31 = vpop.f32.mrb[57].mxu0 }
 0xb4a   : > { %17208 = vst [vmem:[%s26054_s24 + $0x1f] sm:$0x1] %v17160_v34  ;;  %v17060_v4 = vmul.f32 %v26037_v42, %v16838_v31  ;;  %v20725_v60 = vpop.f32.mrb[58].mxu0 }
 0xb4b   : > { %v17117_v57 = vadd.f32 %v26042_v13, %v17062_v14  ;;  %v17063_v50 = vmul.f32 %v20725_v60, %v26037_v42  ;;  %v16841_v36 = vpop.f32.mrb[59].mxu0 }
 0xb4c   : > { %v17115_v19 = vadd.f32 %v26042_v13, %v17060_v4  ;;  %v17061_v16 = vmul.f32 %v26037_v42, %v16841_v36 }
 0xb4d   : > { %v17165_v56 = vmax.f32 %v17117_v57, 0.0  ;;  %v17118_v3 = vadd.f32 %v26042_v13, %v17063_v50 }
 0xb4e   : > { %v17163_v27 = vmax.f32 %v17115_v19, 0.0  ;;  %v17116_v28 = vadd.f32 %v26042_v13, %v17061_v16 }
 0xb4f   : > { %17213 = vst [vmem:[%s26054_s24 + $0x37] sm:$0xff] %v17165_v56  ;;  %v17166_v38 = vmax.f32 %v17118_v3, 0.0 }
 0xb50   : > { %17211 = vst [vmem:[%s26054_s24 + $0x2f] sm:$0x1] %v17163_v27  ;;  %v17164_v24 = vmax.f32 %v17116_v28, 0.0  ;;  %v20728_v23 = vpop.f32.mrb[60].mxu0 }
 0xb51   : > { %17214 = vst [vmem:[%s26054_s24 + $0x3f] sm:$0x1] %v17166_v38  ;;  %v17066_v37 = vmul.f32 %v20728_v23, %v26037_v42  ;;  %v16854_v35 = vpop.f32.mrb[61].mxu0 }
 0xb52   : > { %17212 = vst [vmem:[%s26054_s24 + $0x2f] sm:$0xfe] %v17164_v24  ;;  %v17064_v29 = vmul.f32 %v26037_v42, %v16854_v35  ;;  %v20729_v9 = vpop.f32.mrb[62].mxu0 }
 0xb53   : > { %v17121_v15 = vadd.f32 %v26042_v13, %v17066_v37  ;;  %v17067_v61 = vmul.f32 %v20729_v9, %v26037_v42  ;;  %v16857_v11 = vpop.f32.mrb[63].mxu0 }
 0xb54   : > { %v17119_v0 = vadd.f32 %v26042_v13, %v17064_v29  ;;  %v17065_v59 = vmul.f32 %v26037_v42, %v16857_v11 }
 0xb55   : > { %v17169_v44 = vmax.f32 %v17121_v15, 0.0  ;;  %v17122_v52 = vadd.f32 %v26042_v13, %v17067_v61 }
 0xb56   : > { %v17167_v47 = vmax.f32 %v17119_v0, 0.0  ;;  %v17120_v54 = vadd.f32 %v26042_v13, %v17065_v59 }
 0xb57   : > { %17217 = vst [vmem:[%s26054_s24 + $0x4f] sm:$0x1] %v17169_v44  ;;  %v17170_v46 = vmax.f32 %v17122_v52, 0.0 }
 0xb58   : > { %17215 = vst [vmem:[%s26054_s24 + $0x3f] sm:$0xfe] %v17167_v47  ;;  %v17168_v5 = vmax.f32 %v17120_v54, 0.0  ;;  %v20732_v8 = vpop.f32.mrb[64].mxu0 }
 0xb59   : > { %17218 = vst [vmem:[%s26054_s24 + $0x4f] sm:$0xfe] %v17170_v46  ;;  %v17070_v55 = vmul.f32 %v20732_v8, %v26037_v42  ;;  %v16870_v12 = vpop.f32.mrb[65].mxu0 }
 0xb5a   : > { %17216 = vst [vmem:[%s26054_s24 + $0x47] sm:$0xff] %v17168_v5  ;;  %v17068_v30 = vmul.f32 %v26037_v42, %v16870_v12  ;;  %v20733_v40 = vpop.f32.mrb[66].mxu0 }
 0xb5b   : > { %v17125_v45 = vadd.f32 %v26042_v13, %v17070_v55  ;;  %v17071_v62 = vmul.f32 %v20733_v40, %v26037_v42  ;;  %v16873_v18 = vpop.f32.mrb[67].mxu0 }
 0xb5c   : > { %v17123_v48 = vadd.f32 %v26042_v13, %v17068_v30  ;;  %v17069_v63 = vmul.f32 %v26037_v42, %v16873_v18 }
 0xb5d   : > { %v17173_v2 = vmax.f32 %v17125_v45, 0.0  ;;  %v17126_v26 = vadd.f32 %v26042_v13, %v17071_v62 }
 0xb5e   : > { %v17171_v53 = vmax.f32 %v17123_v48, 0.0  ;;  %v17124_v20 = vadd.f32 %v26042_v13, %v17069_v63 }
 0xb5f   : > { %17221 = vst [vmem:[%s26054_s24 + $0x5f] sm:$0xfe] %v17173_v2  ;;  %v17174_v25 = vmax.f32 %v17126_v26, 0.0 }
 0xb60   : > { %17219 = vst [vmem:[%s26054_s24 + $0x57] sm:$0xff] %v17171_v53  ;;  %v17172_v7 = vmax.f32 %v17124_v20, 0.0  ;;  %v20736_v10 = vpop.f32.mrb[68].mxu0 }
 0xb61   : > { %17222 = vst [vmem:[%s26054_s24 + $0x67] sm:$0xff] %v17174_v25  ;;  %v17074_v51 = vmul.f32 %v20736_v10, %v26037_v42  ;;  %v16886_v1 = vpop.f32.mrb[69].mxu0 }
 0xb62   : > { %17220 = vst [vmem:[%s26054_s24 + $0x5f] sm:$0x1] %v17172_v7  ;;  %v17072_v33 = vmul.f32 %v26037_v42, %v16886_v1  ;;  %v20737_v43 = vpop.f32.mrb[70].mxu0 }
 0xb63   : > { %v17129_v21 = vadd.f32 %v26042_v13, %v17074_v51  ;;  %v17075_v58 = vmul.f32 %v20737_v43, %v26037_v42  ;;  %v16889_v39 = vpop.f32.mrb[71].mxu0 }
 0xb64   : > { %v17127_v49 = vadd.f32 %v26042_v13, %v17072_v33  ;;  %v17073_v22 = vmul.f32 %v26037_v42, %v16889_v39 }
 0xb65   : > { %v17177_v32 = vmax.f32 %v17129_v21, 0.0  ;;  %v17130_v41 = vadd.f32 %v26042_v13, %v17075_v58 }
 0xb66   : > { %v17175_v17 = vmax.f32 %v17127_v49, 0.0  ;;  %v17128_v34 = vadd.f32 %v26042_v13, %v17073_v22 }
 0xb67   : > { %17225 = vst [vmem:[%s26054_s24 + $0x77] sm:$0xff] %v17177_v32  ;;  %v17178_v6 = vmax.f32 %v17130_v41, 0.0 }
 0xb68   : > { %17223 = vst [vmem:[%s26054_s24 + $0x6f] sm:$0x1] %v17175_v17  ;;  %v17176_v14 = vmax.f32 %v17128_v34, 0.0  ;;  %v20740_v31 = vpop.f32.mrb[72].mxu0 }
 0xb69   : > { %17226 = vst [vmem:[%s26054_s24 + $0x7f] sm:$0x1] %v17178_v6  ;;  %v17078_v4 = vmul.f32 %v20740_v31, %v26037_v42  ;;  %v16902_v60 = vpop.f32.mrb[73].mxu0 }
 0xb6a   : > { %17224 = vst [vmem:[%s26054_s24 + $0x6f] sm:$0xfe] %v17176_v14  ;;  %v17076_v57 = vmul.f32 %v26037_v42, %v16902_v60  ;;  %v20741_v50 = vpop.f32.mrb[74].mxu0 }
 0xb6b   : > { %v17133_v36 = vadd.f32 %v26042_v13, %v17078_v4  ;;  %v17079_v19 = vmul.f32 %v20741_v50, %v26037_v42  ;;  %v16905_v16 = vpop.f32.mrb[75].mxu0 }
 0xb6c   : > { %v17131_v56 = vadd.f32 %v26042_v13, %v17076_v57  ;;  %v17077_v3 = vmul.f32 %v26037_v42, %v16905_v16 }
 0xb6d   : > { %v17181_v27 = vmax.f32 %v17133_v36, 0.0  ;;  %v17134_v28 = vadd.f32 %v26042_v13, %v17079_v19 }
 0xb6e   : > { %v17179_v38 = vmax.f32 %v17131_v56, 0.0  ;;  %v17132_v24 = vadd.f32 %v26042_v13, %v17077_v3 }
 0xb6f   : > { %17229 = vst [vmem:[%s26054_s24 + $0x8f] sm:$0x1] %v17181_v27  ;;  %v17182_v23 = vmax.f32 %v17134_v28, 0.0 }
 0xb70   : > { %17227 = vst [vmem:[%s26054_s24 + $0x7f] sm:$0xfe] %v17179_v38  ;;  %v17180_v37 = vmax.f32 %v17132_v24, 0.0  ;;  %v20744_v35 = vpop.f32.mrb[76].mxu0 }
 0xb71   : > { %17230 = vst [vmem:[%s26054_s24 + $0x8f] sm:$0xfe] %v17182_v23  ;;  %v17082_v29 = vmul.f32 %v20744_v35, %v26037_v42  ;;  %v16918_v9 = vpop.f32.mrb[77].mxu0 }
 0xb72   : > { %17228 = vst [vmem:[%s26054_s24 + $0x87] sm:$0xff] %v17180_v37  ;;  %v17080_v15 = vmul.f32 %v26037_v42, %v16918_v9  ;;  %v20745_v61 = vpop.f32.mrb[78].mxu0 }
 0xb73   : > { %v17137_v11 = vadd.f32 %v26042_v13, %v17082_v29  ;;  %v17083_v0 = vmul.f32 %v20745_v61, %v26037_v42  ;;  %v16921_v59 = vpop.f32.mrb[79].mxu0 }
 0xb74   : > { %v17135_v44 = vadd.f32 %v26042_v13, %v17080_v15  ;;  %v17081_v52 = vmul.f32 %v26037_v42, %v16921_v59 }
 0xb75   : > { %v17185_v47 = vmax.f32 %v17137_v11, 0.0  ;;  %v17138_v54 = vadd.f32 %v26042_v13, %v17083_v0 }
 0xb76   : > { %v17183_v46 = vmax.f32 %v17135_v44, 0.0  ;;  %v17136_v5 = vadd.f32 %v26042_v13, %v17081_v52 }
 0xb77   : > { %17233 = vst [vmem:[%s26054_s24 + $0x9f] sm:$0xfe] %v17185_v47  ;;  %v17186_v8 = vmax.f32 %v17138_v54, 0.0 }
 0xb78   : > { %17231 = vst [vmem:[%s26054_s24 + $0x97] sm:$0xff] %v17183_v46  ;;  %v17184_v55 = vmax.f32 %v17136_v5, 0.0  ;;  %v20748_v12 = vpop.f32.mrb[80].mxu0 }
 0xb79   : > { %17234 = vst [vmem:[%s26054_s24 + $0xa7] sm:$0xff] %v17186_v8  ;;  %v17086_v30 = vmul.f32 %v20748_v12, %v26037_v42  ;;  %v16934_v40 = vpop.f32.mrb[81].mxu0 }
 0xb7a   : > { %17232 = vst [vmem:[%s26054_s24 + $0x9f] sm:$0x1] %v17184_v55  ;;  %v17084_v45 = vmul.f32 %v26037_v42, %v16934_v40  ;;  %v20749_v62 = vpop.f32.mrb[82].mxu0 }
 0xb7b   : > { %v17141_v18 = vadd.f32 %v26042_v13, %v17086_v30  ;;  %v17087_v48 = vmul.f32 %v20749_v62, %v26037_v42  ;;  %v16937_v63 = vpop.f32.mrb[83].mxu0 }
 0xb7c   : > { %v17139_v2 = vadd.f32 %v26042_v13, %v17084_v45  ;;  %v17085_v26 = vmul.f32 %v26037_v42, %v16937_v63 }
 0xb7d   : > { %v17189_v53 = vmax.f32 %v17141_v18, 0.0  ;;  %v17142_v20 = vadd.f32 %v26042_v13, %v17087_v48 }
 0xb7e   : > { %v17187_v25 = vmax.f32 %v17139_v2, 0.0  ;;  %v17140_v7 = vadd.f32 %v26042_v13, %v17085_v26 }
 0xb7f   : > { %17237 = vst [vmem:[%s26054_s24 + $0xb7] sm:$0xff] %v17189_v53  ;;  %v17190_v10 = vmax.f32 %v17142_v20, 0.0 }
 0xb80   : > { %17235 = vst [vmem:[%s26054_s24 + $0xaf] sm:$0x1] %v17187_v25  ;;  %v17188_v51 = vmax.f32 %v17140_v7, 0.0  ;;  %v20752_v1 = vpop.f32.mrb[84].mxu0 }
 0xb81   : > { %17238 = vst [vmem:[%s26054_s24 + $0xbf] sm:$0x1] %v17190_v10  ;;  %v17090_v33 = vmul.f32 %v20752_v1, %v26037_v42  ;;  %v16950_v43 = vpop.f32.mrb[85].mxu0 }
 0xb82   : > { %17236 = vst [vmem:[%s26054_s24 + $0xaf] sm:$0xfe] %v17188_v51  ;;  %v17088_v21 = vmul.f32 %v26037_v42, %v16950_v43  ;;  %v20753_v58 = vpop.f32.mrb[86].mxu0 }
 0xb83   : > { %v17145_v39 = vadd.f32 %v26042_v13, %v17090_v33  ;;  %v17091_v49 = vmul.f32 %v20753_v58, %v26037_v42  ;;  %v16953_v22 = vpop.f32.mrb[87].mxu0 }
 0xb84   : > { %v17143_v32 = vadd.f32 %v26042_v13, %v17088_v21  ;;  %v17089_v41 = vmul.f32 %v26037_v42, %v16953_v22 }
 0xb85   : > { %v17193_v17 = vmax.f32 %v17145_v39, 0.0  ;;  %v17146_v34 = vadd.f32 %v26042_v13, %v17091_v49 }
 0xb86   : > { %v17191_v6 = vmax.f32 %v17143_v32, 0.0  ;;  %v17144_v14 = vadd.f32 %v26042_v13, %v17089_v41 }
 0xb87   : > { %17241 = vst [vmem:[%s26054_s24 + $0xcf] sm:$0x1] %v17193_v17  ;;  %v17194_v31 = vmax.f32 %v17146_v34, 0.0 }
 0xb88   : > { %17239 = vst [vmem:[%s26054_s24 + $0xbf] sm:$0xfe] %v17191_v6  ;;  %v17192_v4 = vmax.f32 %v17144_v14, 0.0  ;;  %v20756_v60 = vpop.f32.mrb[88].mxu0 }
 0xb89   : > { %17242 = vst [vmem:[%s26054_s24 + $0xcf] sm:$0xfe] %v17194_v31  ;;  %v17094_v57 = vmul.f32 %v20756_v60, %v26037_v42  ;;  %v16966_v50 = vpop.f32.mrb[89].mxu0 }
 0xb8a   : > { %17240 = vst [vmem:[%s26054_s24 + $0xc7] sm:$0xff] %v17192_v4  ;;  %v17092_v36 = vmul.f32 %v26037_v42, %v16966_v50  ;;  %v20757_v19 = vpop.f32.mrb[90].mxu0 }
 0xb8b   : > { %v17149_v16 = vadd.f32 %v26042_v13, %v17094_v57  ;;  %v17095_v56 = vmul.f32 %v20757_v19, %v26037_v42  ;;  %v16969_v3 = vpop.f32.mrb[91].mxu0 }
 0xb8c   : > { %v17147_v27 = vadd.f32 %v26042_v13, %v17092_v36  ;;  %v17093_v28 = vmul.f32 %v26037_v42, %v16969_v3 }
 0xb8d   : > { %v17197_v38 = vmax.f32 %v17149_v16, 0.0  ;;  %v17150_v24 = vadd.f32 %v26042_v13, %v17095_v56 }
 0xb8e   : > { %v17195_v23 = vmax.f32 %v17147_v27, 0.0  ;;  %v17148_v37 = vadd.f32 %v26042_v13, %v17093_v28 }
 0xb8f   : > { %17245 = vst [vmem:[%s26054_s24 + $0xdf] sm:$0xfe] %v17197_v38  ;;  %v17198_v35 = vmax.f32 %v17150_v24, 0.0 }
 0xb90   : > { %17243 = vst [vmem:[%s26054_s24 + $0xd7] sm:$0xff] %v17195_v23  ;;  %v17196_v29 = vmax.f32 %v17148_v37, 0.0  ;;  %v20760_v9 = vpop.f32.mrb[92].mxu0 }
 0xb91   : > { %17246 = vst [vmem:[%s26054_s24 + $0xe7] sm:$0xff] %v17198_v35  ;;  %v17098_v15 = vmul.f32 %v20760_v9, %v26037_v42  ;;  %v16982_v61 = vpop.f32.mrb[93].mxu0 }
 0xb92   : > { %17244 = vst [vmem:[%s26054_s24 + $0xdf] sm:$0x1] %v17196_v29  ;;  %v17096_v11 = vmul.f32 %v26037_v42, %v16982_v61  ;;  %v20761_v0 = vpop.f32.mrb[94].mxu0 }
 0xb93   : > { %v17153_v59 = vadd.f32 %v26042_v13, %v17098_v15  ;;  %v17099_v44 = vmul.f32 %v20761_v0, %v26037_v42  ;;  %v16985_v52 = vpop.f32.mrb[95].mxu0 }
 0xb94   : > { %v17151_v47 = vadd.f32 %v26042_v13, %v17096_v11  ;;  %v17097_v54 = vmul.f32 %v26037_v42, %v16985_v52 }
 0xb95   : > { %v17201_v46 = vmax.f32 %v17153_v59, 0.0  ;;  %v17154_v5 = vadd.f32 %v26042_v13, %v17099_v44 }
 0xb96   : > { %v17199_v8 = vmax.f32 %v17151_v47, 0.0  ;;  %v17152_v55 = vadd.f32 %v26042_v13, %v17097_v54 }
 0xb97   : > { %17249 = vst [vmem:[%s26054_s24 + $0xf7] sm:$0xff] %v17201_v46  ;;  %v17202_v12 = vmax.f32 %v17154_v5, 0.0 }
 0xb98   : > { %17247 = vst [vmem:[%s26054_s24 + $0xef] sm:$0x1] %v17199_v8  ;;  %v17200_v42 = vmax.f32 %v17152_v55, 0.0 }
 0xb99   : > { %17250 = vst [vmem:[%s26054_s24 + $0xff] sm:$0x1] %v17202_v12 }
 0xb9a   : > { %17248 = vst [vmem:[%s26054_s24 + $0xef] sm:$0xfe] %v17200_v42 }
 0xb9b   : > { %22808 = shalt.err (!%p22805_p9)
}
 0xb9c   : > { %s22809_s15 = scalar_lea.hbm %s26194_s30, 4096  ;;  %s22813_s29 = scalar_lea.hbm %s26509_s25, 8192 }
 0xb9d   : > { %p22810_p2 = scmp.ne.s32.totalorder %s26194_s30, %s22809_s15  ;;  %p22814_p5 = scmp.lt.u32.totalorder %s26194_s30, %s26509_s25 }
 0xb9e   : > { %p22815_p10 = scmp.lt.u32.totalorder %s22813_s29, %s22809_s15  ;;  %p22817_p4 = scmp.lt.u32.totalorder %s22809_s15, %s26194_s30 }
 0xb9f   : > { %p22811_p0 = pnand %p22810_p2, %p26510_p7 }
 0xba0   : > { %p22816_p12 = por %p22815_p10, %p22814_p5 }
 0xba1   : > { %p22812_p3 = pneg %p22811_p0 }
 0xba2   : > { %p22818_p8 = por %p22817_p4, %p22816_p12 }
 0xba4   : > { %p22819_p11 = pnand %p22818_p8, %p22812_p3 }
 0xba6   : > { %22822 = shalt.err (!%p22819_p11)
}
 0xba7   : > { %s22874_s24 = smov 128   ;;  %s22875_s26 = smov 8  }
 0xba8   : > { %21942 = dma.vmem_to_hbm [thread:$0]  (%p26510_p7), %s26196_s17, 4096, %s26194_s30, %s26203_s21, %s22874_s24, %s22874_s24, %s22875_s26  }
 0xba9 PF: > { %s26511_s20 = sld [smem:[#allocation15_spill]]  ;;  %s26512_s28 = sld [smem:[#allocation13_spill]] }
 0xbaa   : > { %s26513_s14 = sld [smem:[#allocation18_spill]] }
 0xbaf   : > { %p21964_p13 = scmp.ge.s32.totalorder %s26511_s20, 2  ;;  %s17280_s16 = sand.u32 1, %s26512_s28  }
 0xbb0   : > { %p26514_p1 = scmp.ne.s32.totalorder %s26513_s14, 0  ;;  %s17281_s19 = scalar_lea.sflag [#allocation5], %s17280_s16 }
 0xbb2   : > { %p21955_p6 = pnand %p21964_p13, %p26514_p1 }
 0xbb4   : > { %22848 = dma.done.wait (!%p21955_p6), %s17281_s19, 4096  }
 0xbb5   : > { %22850 = vsyncadd (!%p21955_p6), %s17281_s19, 4294963200  ;;  %s26515_s20 = sld [smem:[#allocation16_spill]]  ;;  %s26516_s12 = sld [smem:[#allocation14_spill]] }
 0xbb6   : > { %s26517_s19 = sld [smem:[#allocation17_spill]]  ;;  %s26518_s17 = smov %s22857_s18 }
 0xbbb   : > { %p23_p9 = scmp.ge.s32.totalorder %s26515_s20, 4   ;;  %s26519_s18 = smov %s26516_s12 }
 0xbbd   :  { %25 = sbr.rel (!%p23_p9) target bundleno = 7 (0x7), region = 112 }
 0xbc4   :  { %17286 = vsyncpa [#allocation4], 1 }
 0xbc5   :  { %17288 = vsyncpa [#allocation4 + $0x1], 1 }
 0xbc6   :  { %17289 = vsyncpa [#allocation7], 1 }
 0xbc7   :  { %17290 = vsyncpa [#allocation5], 1 }
 0xbc8   :  { %17292 = vsyncpa [#allocation5 + $0x1], 1 }

</bundles_post_ra>
